<compile_context>
chip_gen: v7x
topology: tpu7x:2x2x1
jax: 0.10.0
libtpu: 0.0.40
codegen_flags: <defaults>
</compile_context>

<pallas_src>
import functools
import math

import jax
import jax.numpy as jnp
from jax.experimental import pallas as pl
from jax.experimental.pallas import tpu as pltpu

EMBED_DIM = 128
NUM_HEADS = 8
HEAD_DIM = EMBED_DIM // NUM_HEADS
FFN_DIM = 2048
NUM_ENC_LAYERS = 4
NUM_DEC_LAYERS = 6
NUM_LAYERS = NUM_ENC_LAYERS + NUM_DEC_LAYERS
LN_EPS = 1e-5
ATTN_SCALE = 1.0 / math.sqrt(HEAD_DIM)
NEG_INF = -1e30

_D, _F = EMBED_DIM, FFN_DIM


def _offsets(fields):
    offs, o = {}, 0
    for name, size in fields:
        offs[name] = (o, o + size)
        o += size
    return offs, o


# packed per-layer weight slabs (bf16, shared contraction dim K=128):
ENC_WA_FIELDS = [("w_qkv", 3 * _D), ("w_o", _D), ("w_ff1", _F)]
DEC_WA_FIELDS = [("w_sa_qkv", 3 * _D), ("w_sa_o", _D), ("w_ca_q", _D),
                 ("w_ca_kv", 2 * _D), ("w_ca_o", _D), ("w_ff1", _F)]
# packed per-layer small-vector slabs (f32: biases + LN gains/shifts):
ENC_VEC_FIELDS = [("b_qkv", 3 * _D), ("b_o", _D), ("b_ff1", _F), ("b_ff2", _D),
                  ("ln1_g", _D), ("ln1_b", _D), ("ln2_g", _D), ("ln2_b", _D)]
DEC_VEC_FIELDS = [("b_sa_qkv", 3 * _D), ("b_sa_o", _D), ("b_ca_q", _D),
                  ("b_ca_kv", 2 * _D), ("b_ca_o", _D), ("b_ff1", _F),
                  ("b_ff2", _D),
                  ("ln1_g", _D), ("ln1_b", _D), ("ln2_g", _D), ("ln2_b", _D),
                  ("ln3_g", _D), ("ln3_b", _D)]
# final norms + classifier head (f32, constant across the whole grid):
FIN_FIELDS = [("enc_n_g", _D), ("enc_n_b", _D), ("dec_n_g", _D),
              ("dec_n_b", _D), ("fc_w", _D), ("fc_b", _D)]

ENC_WA_OFF, ENC_WA_LEN = _offsets(ENC_WA_FIELDS)     # 2560
DEC_WA_OFF, DEC_WA_LEN = _offsets(DEC_WA_FIELDS)     # 3072
ENC_VEC_OFF, ENC_VEC_LEN = _offsets(ENC_VEC_FIELDS)  # 3200
DEC_VEC_OFF, DEC_VEC_LEN = _offsets(DEC_VEC_FIELDS)  # 3968
FIN_OFF, FIN_LEN = _offsets(FIN_FIELDS)              # 768


# ----------------------------------------------------------------------------
# in-kernel helpers (operate on VMEM values / static ref slices)
# ----------------------------------------------------------------------------
def _sl(ref, offs, name):
    """Static lane-slice of a (1, rows, LEN) packed-slab ref -> (rows, size)."""
    lo, hi = offs[name]
    return ref[0, :, lo:hi]


def _ln(x, g, b):
    mu = jnp.mean(x, axis=-1, keepdims=True)
    xc = x - mu
    var = jnp.mean(xc * xc, axis=-1, keepdims=True)
    return xc * jax.lax.rsqrt(var + LN_EPS) * g + b


def _dense(x, w_bf16, b_f32, relu=False):
    y = jnp.dot(x.astype(jnp.bfloat16), w_bf16,
                preferred_element_type=jnp.float32) + b_f32
    return jnp.maximum(y, 0.0) if relu else y


def _mha(q, k, v, w_o, b_o, bias):
    """Heads are static lane slices; per-head softmax; outputs concatenated
    and sent through ONE K=128 out-projection (MXU-native depth)."""
    heads = []
    for h in range(NUM_HEADS):
        lo, hi = h * HEAD_DIM, (h + 1) * HEAD_DIM
        s = jax.lax.dot_general(q[:, lo:hi], k[:, lo:hi],
                                (((1,), (1,)), ((), ())),
                                preferred_element_type=jnp.float32)
        s = s * ATTN_SCALE + bias                       # additive batch mask
        m = jnp.max(s, axis=-1, keepdims=True)
        e = jnp.exp(s - m)
        p = e * pl.reciprocal(jnp.sum(e, axis=-1, keepdims=True), approx=True)
        heads.append(jnp.dot(p, v[:, lo:hi], preferred_element_type=jnp.float32))
    o = jnp.concatenate(heads, axis=-1).astype(jnp.bfloat16)     # (M, 128)
    return jnp.dot(o, w_o, preferred_element_type=jnp.float32) + b_o


# ----------------------------------------------------------------------------
# single fused transformer kernel: grid = (4 enc + 6 dec layers,)
# ----------------------------------------------------------------------------
def _transformer_kernel(ids_ref, emb_ref, bias_ref,
                        enc_wa, enc_wff2, enc_vec,
                        dec_wa, dec_wff2, dec_vec,
                        fin_vec,
                        out_ref, x_scr, mem_scr, *, B, S, V):
    l = pl.program_id(0)
    M = B * S
    D = EMBED_DIM
    bias = bias_ref[...]                                  # (M, M) f32 0/-1e30

    def fin(name):
        lo, hi = FIN_OFF[name]
        return fin_vec[:, lo:hi]

    def embed():
        # embedding gather as a one-hot matmul (no dynamic indexing needed)
        cols = jax.lax.broadcasted_iota(jnp.int32, (M, V), 1)
        onehot = (ids_ref[...] == cols).astype(jnp.float32)
        return jnp.dot(onehot, emb_ref[...], preferred_element_type=jnp.float32)

    # -------------------- encoder layers: grid steps 0..3 --------------------
    @pl.when(l < NUM_ENC_LAYERS)
    def _enc():
        @pl.when(l == 0)
        def _():
            x_scr[...] = embed()                          # src tokens

        x = x_scr[...]
        qkv = _dense(x, _sl(enc_wa, ENC_WA_OFF, "w_qkv"),
                     _sl(enc_vec, ENC_VEC_OFF, "b_qkv"))
        sa = _mha(qkv[:, :D], qkv[:, D:2 * D], qkv[:, 2 * D:],
                  _sl(enc_wa, ENC_WA_OFF, "w_o"),
                  _sl(enc_vec, ENC_VEC_OFF, "b_o"), bias)
        x = _ln(x + sa, _sl(enc_vec, ENC_VEC_OFF, "ln1_g"),
                _sl(enc_vec, ENC_VEC_OFF, "ln1_b"))
        h = _dense(x, _sl(enc_wa, ENC_WA_OFF, "w_ff1"),
                   _sl(enc_vec, ENC_VEC_OFF, "b_ff1"), relu=True)
        y = _dense(h, enc_wff2[0], _sl(enc_vec, ENC_VEC_OFF, "b_ff2"))
        x = _ln(x + y, _sl(enc_vec, ENC_VEC_OFF, "ln2_g"),
                _sl(enc_vec, ENC_VEC_OFF, "ln2_b"))
        x_scr[...] = x

        @pl.when(l == NUM_ENC_LAYERS - 1)
        def _():
            # final encoder LayerNorm -> memory stays resident in VMEM scratch
            mem_scr[...] = _ln(x, fin("enc_n_g"), fin("enc_n_b"))

    # -------------------- decoder layers: grid steps 4..9 --------------------
    @pl.when(l >= NUM_ENC_LAYERS)
    def _dec():
        @pl.when(l == NUM_ENC_LAYERS)
        def _():
            x_scr[...] = embed()                          # tgt tokens (== src)

        x = x_scr[...]
        mem = mem_scr[...]

        # decoder self-attention (non-causal: nn.Transformer default, no mask)
        qkv = _dense(x, _sl(dec_wa, DEC_WA_OFF, "w_sa_qkv"),
                     _sl(dec_vec, DEC_VEC_OFF, "b_sa_qkv"))
        sa = _mha(qkv[:, :D], qkv[:, D:2 * D], qkv[:, 2 * D:],
                  _sl(dec_wa, DEC_WA_OFF, "w_sa_o"),
                  _sl(dec_vec, DEC_VEC_OFF, "b_sa_o"), bias)
        x = _ln(x + sa, _sl(dec_vec, DEC_VEC_OFF, "ln1_g"),
                _sl(dec_vec, DEC_VEC_OFF, "ln1_b"))

        # cross-attention: q from tgt stream, k/v from encoder memory
        q = _dense(x, _sl(dec_wa, DEC_WA_OFF, "w_ca_q"),
                   _sl(dec_vec, DEC_VEC_OFF, "b_ca_q"))
        kv = _dense(mem, _sl(dec_wa, DEC_WA_OFF, "w_ca_kv"),
                    _sl(dec_vec, DEC_VEC_OFF, "b_ca_kv"))
        ca = _mha(q, kv[:, :D], kv[:, D:],
                  _sl(dec_wa, DEC_WA_OFF, "w_ca_o"),
                  _sl(dec_vec, DEC_VEC_OFF, "b_ca_o"), bias)
        x = _ln(x + ca, _sl(dec_vec, DEC_VEC_OFF, "ln2_g"),
                _sl(dec_vec, DEC_VEC_OFF, "ln2_b"))

        # FFN (dropout is identity in eval mode)
        h = _dense(x, _sl(dec_wa, DEC_WA_OFF, "w_ff1"),
                   _sl(dec_vec, DEC_VEC_OFF, "b_ff1"), relu=True)
        y = _dense(h, dec_wff2[0], _sl(dec_vec, DEC_VEC_OFF, "b_ff2"))
        x = _ln(x + y, _sl(dec_vec, DEC_VEC_OFF, "ln3_g"),
                _sl(dec_vec, DEC_VEC_OFF, "ln3_b"))
        x_scr[...] = x

        @pl.when(l == NUM_LAYERS - 1)
        def _():
            # final decoder norm + Linear(128,1) + sigmoid, lane-dense output:
            # fc_b is pre-broadcast over all 128 lanes so every column equals
            # sigmoid(logit + bias); the wrapper slices column 0.
            xf = _ln(x, fin("dec_n_g"), fin("dec_n_b"))
            logit = jnp.sum(xf * fin("fc_w"), axis=-1, keepdims=True)
            out_ref[...] = jax.nn.sigmoid(logit + fin("fc_b"))


# ----------------------------------------------------------------------------
# wrapper
# ----------------------------------------------------------------------------
def _attn_bias(B, S):
    # block-diagonal additive mask so heads of different batch rows never
    # attend to each other (src=tgt share the same batch layout).
    bid = jnp.repeat(jnp.arange(B, dtype=jnp.int32), S)
    same = bid[:, None] == bid[None, :]
    return jnp.where(same, 0.0, NEG_INF).astype(jnp.float32)


def forward(packed, x_ids):
    B, S = x_ids.shape
    M = B * S
    V = packed["emb"].shape[0]
    ids = x_ids.reshape(M, 1).astype(jnp.int32)
    bias = _attn_bias(B, S)

    # clamped index maps: each per-layer weight stack is fetched exactly once.
    enc_idx = lambda l: (jnp.minimum(l, NUM_ENC_LAYERS - 1), 0, 0)
    dec_idx = lambda l: (jnp.maximum(l - NUM_ENC_LAYERS, 0), 0, 0)
    const2 = lambda l: (0, 0)

    out = pl.pallas_call(
        functools.partial(_transformer_kernel, B=B, S=S, V=V),
        grid=(NUM_LAYERS,),
        in_specs=[
            pl.BlockSpec((M, 1), const2),                        # token ids
            pl.BlockSpec((V, EMBED_DIM), const2),                # embedding table
            pl.BlockSpec((M, M), const2),                        # additive batch mask
            pl.BlockSpec((1, EMBED_DIM, ENC_WA_LEN), enc_idx),   # enc [w_qkv|w_o|w_ff1]
            pl.BlockSpec((1, FFN_DIM, EMBED_DIM), enc_idx),      # enc w_ff2
            pl.BlockSpec((1, 1, ENC_VEC_LEN), enc_idx),          # enc biases/LN slab
            pl.BlockSpec((1, EMBED_DIM, DEC_WA_LEN), dec_idx),   # dec packed weights
            pl.BlockSpec((1, FFN_DIM, EMBED_DIM), dec_idx),      # dec w_ff2
            pl.BlockSpec((1, 1, DEC_VEC_LEN), dec_idx),          # dec biases/LN slab
            pl.BlockSpec((1, FIN_LEN), const2),                  # final norms + fc
        ],
        out_specs=pl.BlockSpec((M, EMBED_DIM), const2),          # lane-dense output
        out_shape=jax.ShapeDtypeStruct((M, EMBED_DIM), jnp.float32),
        scratch_shapes=[pltpu.VMEM((M, EMBED_DIM), jnp.float32),   # activations
                        pltpu.VMEM((M, EMBED_DIM), jnp.float32)],  # encoder memory
        compiler_params=pltpu.CompilerParams(
            dimension_semantics=("arbitrary",),
            vmem_limit_bytes=32 * 1024 * 1024),
    )(ids, packed["emb"], bias,
      packed["enc_wa"], packed["enc_wff2"], packed["enc_vec"],
      packed["dec_wa"], packed["dec_wff2"], packed["dec_vec"],
      packed["fin_vec"])
    return out[:, 0:1].reshape(B, S, 1)


# ----------------------------------------------------------------------------
# parameter packing (done once, outside jit)
# ----------------------------------------------------------------------------
def _pack_lanes(src, fields):
    parts = []
    for name, size in fields:
        a = src[name]
        assert a.shape[-1] == size, (name, a.shape, size)
        parts.append(a)
    return jnp.concatenate(parts, axis=-1)


def pack_params(params):
    ep, dp = params["enc"], params["dec"]
    fin_src = {
        "enc_n_g": params["enc_norm_g"], "enc_n_b": params["enc_norm_b"],
        "dec_n_g": params["dec_norm_g"], "dec_n_b": params["dec_norm_b"],
        "fc_w": params["fc_w"],
        "fc_b": jnp.broadcast_to(params["fc_b"], (1, 1, EMBED_DIM)),
    }
    return {
        "emb": params["embedding"].astype(jnp.float32),
        "enc_wa": _pack_lanes(ep, ENC_WA_FIELDS),          # (4,128,2560) bf16
        "enc_wff2": ep["w_ff2"],                           # (4,2048,128) bf16
        "enc_vec": _pack_lanes(ep, ENC_VEC_FIELDS),        # (4,1,3200)  f32
        "dec_wa": _pack_lanes(dp, DEC_WA_FIELDS),          # (6,128,3072) bf16
        "dec_wff2": dp["w_ff2"],                           # (6,2048,128) bf16
        "dec_vec": _pack_lanes(dp, DEC_VEC_FIELDS),        # (6,1,3968)  f32
        "fin_vec": _pack_lanes(fin_src, FIN_FIELDS)[0],    # (1,768)     f32
    }


# ----------------------------------------------------------------------------
# pure-JAX reference (same math / dtype choices) for a correctness check
# ----------------------------------------------------------------------------
def _ref_dense(x, w_bf16, b, act=None):
    y = jnp.dot(x.astype(jnp.bfloat16), w_bf16,
                preferred_element_type=jnp.float32) + b
    if act == "relu":
        y = jnp.maximum(y, 0.0)
    return y


def _ref_ln(x, g, b):
    mu = jnp.mean(x, -1, keepdims=True)
    xc = x - mu
    var = jnp.mean(xc * xc, -1, keepdims=True)
    return xc * jax.lax.rsqrt(var + LN_EPS) * g + b


def _ref_attn(q, k, v, w_o, b_o, B, Sq, Skv):
    qh = q.reshape(B, Sq, NUM_HEADS, HEAD_DIM).transpose(0, 2, 1, 3)
    kh = k.reshape(B, Skv, NUM_HEADS, HEAD_DIM).transpose(0, 2, 1, 3)
    vh = v.reshape(B, Skv, NUM_HEADS, HEAD_DIM).transpose(0, 2, 1, 3)
    s = jnp.einsum("bhqd,bhkd->bhqk", qh, kh) * ATTN_SCALE
    p = jax.nn.softmax(s, axis=-1)
    o = jnp.einsum("bhqk,bhkd->bhqd", p, vh)
    o = o.transpose(0, 2, 1, 3).reshape(B * Sq, EMBED_DIM)
    return _ref_dense(o, w_o, b_o)


def reference_forward(params, x_ids):
    B, S = x_ids.shape
    D = EMBED_DIM
    x = params["embedding"][x_ids].reshape(B * S, D).astype(jnp.float32)

    ep = params["enc"]
    mem = x
    for l in range(NUM_ENC_LAYERS):
        qkv = _ref_dense(mem, ep["w_qkv"][l], ep["b_qkv"][l])
        a = _ref_attn(qkv[:, :D], qkv[:, D:2 * D], qkv[:, 2 * D:],
                      ep["w_o"][l], ep["b_o"][l], B, S, S)
        mem = _ref_ln(mem + a, ep["ln1_g"][l], ep["ln1_b"][l])
        h = _ref_dense(mem, ep["w_ff1"][l], ep["b_ff1"][l], "relu")
        mem = _ref_ln(mem + _ref_dense(h, ep["w_ff2"][l], ep["b_ff2"][l]),
                      ep["ln2_g"][l], ep["ln2_b"][l])
    mem = _ref_ln(mem, params["enc_norm_g"][0], params["enc_norm_b"][0])

    dp = params["dec"]
    y = x
    for l in range(NUM_DEC_LAYERS):
        qkv = _ref_dense(y, dp["w_sa_qkv"][l], dp["b_sa_qkv"][l])
        a = _ref_attn(qkv[:, :D], qkv[:, D:2 * D], qkv[:, 2 * D:],
                      dp["w_sa_o"][l], dp["b_sa_o"][l], B, S, S)
        y = _ref_ln(y + a, dp["ln1_g"][l], dp["ln1_b"][l])
        q = _ref_dense(y, dp["w_ca_q"][l], dp["b_ca_q"][l])
        kv = _ref_dense(mem, dp["w_ca_kv"][l], dp["b_ca_kv"][l])
        a = _ref_attn(q, kv[:, :D], kv[:, D:], dp["w_ca_o"][l], dp["b_ca_o"][l],
                      B, S, S)
        y = _ref_ln(y + a, dp["ln2_g"][l], dp["ln2_b"][l])
        h = _ref_dense(y, dp["w_ff1"][l], dp["b_ff1"][l], "relu")
        y = _ref_ln(y + _ref_dense(h, dp["w_ff2"][l], dp["b_ff2"][l]),
                    dp["ln3_g"][l], dp["ln3_b"][l])
    y = _ref_ln(y, params["dec_norm_g"][0], params["dec_norm_b"][0])
    logit = jnp.sum(y * params["fc_w"][0], axis=-1, keepdims=True) + params["fc_b"][0]
    return jax.nn.sigmoid(logit).reshape(B, S, 1)


# ----------------------------------------------------------------------------
# deterministic synthetic parameters (bf16 matmul weights, f32 norms/biases)
# ----------------------------------------------------------------------------
def _wn(key, shape, scale=0.02, dtype=jnp.float32):
    return (scale * jax.random.normal(key, shape, dtype=jnp.float32)).astype(dtype)


def _init_encoder_params(key):
    L, D, F = NUM_ENC_LAYERS, EMBED_DIM, FFN_DIM
    ks = jax.random.split(key, 8)
    return {
        "w_qkv": _wn(ks[0], (L, D, 3 * D), dtype=jnp.bfloat16),
        "b_qkv": _wn(ks[1], (L, 1, 3 * D), scale=0.01),
        "w_o":   _wn(ks[2], (L, D, D), dtype=jnp.bfloat16),
        "b_o":   _wn(ks[3], (L, 1, D), scale=0.01),
        "w_ff1": _wn(ks[4], (L, D, F), dtype=jnp.bfloat16),
        "b_ff1": _wn(ks[5], (L, 1, F), scale=0.01),
        "w_ff2": _wn(ks[6], (L, F, D), dtype=jnp.bfloat16),
        "b_ff2": _wn(ks[7], (L, 1, D), scale=0.01),
        "ln1_g": jnp.ones((L, 1, D), jnp.float32),
        "ln1_b": jnp.zeros((L, 1, D), jnp.float32),
        "ln2_g": jnp.ones((L, 1, D), jnp.float32),
        "ln2_b": jnp.zeros((L, 1, D), jnp.float32),
    }


def _init_decoder_params(key):
    L, D, F = NUM_DEC_LAYERS, EMBED_DIM, FFN_DIM
    ks = jax.random.split(key, 14)
    return {
        "w_sa_qkv": _wn(ks[0], (L, D, 3 * D), dtype=jnp.bfloat16),
        "b_sa_qkv": _wn(ks[1], (L, 1, 3 * D), scale=0.01),
        "w_sa_o":   _wn(ks[2], (L, D, D), dtype=jnp.bfloat16),
        "b_sa_o":   _wn(ks[3], (L, 1, D), scale=0.01),
        "w_ca_q":   _wn(ks[4], (L, D, D), dtype=jnp.bfloat16),
        "b_ca_q":   _wn(ks[5], (L, 1, D), scale=0.01),
        "w_ca_kv":  _wn(ks[6], (L, D, 2 * D), dtype=jnp.bfloat16),
        "b_ca_kv":  _wn(ks[7], (L, 1, 2 * D), scale=0.01),
        "w_ca_o":   _wn(ks[8], (L, D, D), dtype=jnp.bfloat16),
        "b_ca_o":   _wn(ks[9], (L, 1, D), scale=0.01),
        "w_ff1":    _wn(ks[10], (L, D, F), dtype=jnp.bfloat16),
        "b_ff1":    _wn(ks[11], (L, 1, F), scale=0.01),
        "w_ff2":    _wn(ks[12], (L, F, D), dtype=jnp.bfloat16),
        "b_ff2":    _wn(ks[13], (L, 1, D), scale=0.01),
        "ln1_g": jnp.ones((L, 1, D), jnp.float32),
        "ln1_b": jnp.zeros((L, 1, D), jnp.float32),
        "ln2_g": jnp.ones((L, 1, D), jnp.float32),
        "ln2_b": jnp.zeros((L, 1, D), jnp.float32),
        "ln3_g": jnp.ones((L, 1, D), jnp.float32),
        "ln3_b": jnp.zeros((L, 1, D), jnp.float32),
    }


def init_params(key, vocab_size):
    D = EMBED_DIM
    k_emb, k_enc, k_dec, k_fc = jax.random.split(key, 4)
    return {
        "embedding": _wn(k_emb, (vocab_size, D), scale=1.0),
        "enc": _init_encoder_params(k_enc),
        "enc_norm_g": jnp.ones((1, 1, D), jnp.float32),
        "enc_norm_b": jnp.zeros((1, 1, D), jnp.float32),
        "dec": _init_decoder_params(k_dec),
        "dec_norm_g": jnp.ones((1, 1, D), jnp.float32),
        "dec_norm_b": jnp.zeros((1, 1, D), jnp.float32),
        "fc_w": _wn(k_fc, (1, 1, D)),              # fc.weight (1,128), f32
        "fc_b": jnp.zeros((1, 1, 1), jnp.float32),
    }


if __name__ == "__main__":
    key = jax.random.PRNGKey(0)
    pkey, xkey = jax.random.split(key)

    vocab_size = 32      # |set(''.join(phrases))| -- synthetic small vocab
    # hidden_dim argument of the module is unused by its forward pass
    B, S = 2, 8

    params = init_params(pkey, vocab_size)
    packed = pack_params(params)           # one-time packing, outside jit
    x = jax.random.randint(xkey, (B, S), 0, vocab_size, dtype=jnp.int32)

    out = jax.block_until_ready(jax.jit(forward)(packed, x))
    ref = jax.block_until_ready(jax.jit(reference_forward)(params, x))

    assert out.shape == (B, S, 1)
    assert bool(jnp.all((out >= 0.0) & (out <= 1.0)))
    err = float(jnp.max(jnp.abs(out - ref)))
    assert err < 2e-2, f"mismatch vs pure-JAX reference: {err}"
    print("KERNEL_OK")
</pallas_src>

<mosaic_0001>
module attributes {stable_mosaic.version = 11 : i64} {
  func.func @_transformer_kernel(%arg0: i32, %arg1: memref<16x1xi32, #tpu.memory_space<vmem>>, %arg2: memref<32x128xf32, #tpu.memory_space<vmem>>, %arg3: memref<16x16xf32, #tpu.memory_space<vmem>>, %arg4: memref<1x128x2560xbf16, #tpu.memory_space<vmem>>, %arg5: memref<1x2048x128xbf16, #tpu.memory_space<vmem>>, %arg6: memref<1x1x3200xf32, #tpu.memory_space<vmem>>, %arg7: memref<1x128x3072xbf16, #tpu.memory_space<vmem>>, %arg8: memref<1x2048x128xbf16, #tpu.memory_space<vmem>>, %arg9: memref<1x1x3968xf32, #tpu.memory_space<vmem>>, %arg10: memref<1x768xf32, #tpu.memory_space<vmem>>, %arg11: memref<16x128xf32, #tpu.memory_space<vmem>>, %arg12: memref<16x128xf32, #tpu.memory_space<vmem>>, %arg13: memref<16x128xf32, #tpu.memory_space<vmem>>) attributes {dimension_semantics = [#tpu.dimension_semantics<arbitrary>], iteration_bounds = array<i64: 10>, scalar_prefetch = 0 : i64, scratch_operands = 2 : i64, tpu.core_type = #tpu.core_type<tc>, window_params = [{pipeline_mode = #tpu.pipeline_mode<synchronous>, transform_indices = @transform_0, window_bounds = array<i64: 16, 1>}, {pipeline_mode = #tpu.pipeline_mode<synchronous>, transform_indices = @transform_1, window_bounds = array<i64: 32, 128>}, {pipeline_mode = #tpu.pipeline_mode<synchronous>, transform_indices = @transform_2, window_bounds = array<i64: 16, 16>}, {transform_indices = @transform_3, window_bounds = array<i64: 1, 128, 2560>}, {transform_indices = @transform_4, window_bounds = array<i64: 1, 2048, 128>}, {transform_indices = @transform_5, window_bounds = array<i64: 1, 1, 3200>}, {transform_indices = @transform_6, window_bounds = array<i64: 1, 128, 3072>}, {transform_indices = @transform_7, window_bounds = array<i64: 1, 2048, 128>}, {transform_indices = @transform_8, window_bounds = array<i64: 1, 1, 3968>}, {pipeline_mode = #tpu.pipeline_mode<synchronous>, transform_indices = @transform_9, window_bounds = array<i64: 1, 768>}, {pipeline_mode = #tpu.pipeline_mode<synchronous>, transform_indices = @transform_10, window_bounds = array<i64: 16, 128>}]} {
    %c0 = arith.constant 0 : index
    %c0_0 = arith.constant 0 : index
    %0 = vector.load %arg3[%c0, %c0_0] : memref<16x16xf32, #tpu.memory_space<vmem>>, vector<16x16xf32>
    %c4_i32 = arith.constant 4 : i32
    %1 = arith.cmpi slt, %arg0, %c4_i32 : i32
    %2 = arith.extui %1 : i1 to i32
    %c0_i32 = arith.constant 0 : i32
    %3 = arith.cmpi ne, %2, %c0_i32 : i32
    scf.if %3 {
      %c0_i32_3 = arith.constant 0 : i32
      %7 = arith.cmpi eq, %arg0, %c0_i32_3 : i32
      %8 = arith.extui %7 : i1 to i32
      %c0_i32_4 = arith.constant 0 : i32
      %9 = arith.cmpi ne, %8, %c0_i32_4 : i32
      scf.if %9 {
        %247 = tpu.iota {dimensions = array<i32: 1>} : vector<16x32xi32>
        %c0_93 = arith.constant 0 : index
        %c0_94 = arith.constant 0 : index
        %248 = vector.load %arg1[%c0_93, %c0_94] : memref<16x1xi32, #tpu.memory_space<vmem>>, vector<16x1xi32>
        %249 = vector.broadcast %248 : vector<16x1xi32> to vector<16x32xi32>
        %250 = arith.cmpi eq, %249, %247 : vector<16x32xi32>
        %251 = arith.extui %250 : vector<16x32xi1> to vector<16x32xi32>
        %252 = arith.sitofp %251 : vector<16x32xi32> to vector<16x32xf32>
        %c0_95 = arith.constant 0 : index
        %c0_96 = arith.constant 0 : index
        %253 = vector.load %arg2[%c0_95, %c0_96] : memref<32x128xf32, #tpu.memory_space<vmem>>, vector<32x128xf32>
        %cst_97 = arith.constant dense<0.000000e+00> : vector<16x128xf32>
        %254 = tpu.matmul %252, %253, %cst_97 {dimension_numbers = #tpu.dot_dimension_numbers<[1], [0], [0], [1], [0, 0, 1, 1], [], []>} : vector<16x32xf32>, vector<32x128xf32>, vector<16x128xf32> -> vector<16x128xf32>
        %c0_98 = arith.constant 0 : index
        %c0_99 = arith.constant 0 : index
        %255 = vector.load %arg12[%c0_98, %c0_99] : memref<16x128xf32, #tpu.memory_space<vmem>>, vector<16x128xf32>
        tpu.vector_store %arg12[%c0_98, %c0_99], %254 {strides = array<i32>} : memref<16x128xf32, #tpu.memory_space<vmem>>, vector<16x128xf32>,
      } else {
      }
      %c0_5 = arith.constant 0 : index
      %c0_6 = arith.constant 0 : index
      %10 = vector.load %arg12[%c0_5, %c0_6] : memref<16x128xf32, #tpu.memory_space<vmem>>, vector<16x128xf32>
      %c0_7 = arith.constant 0 : index
      %c0_8 = arith.constant 0 : index
      %c0_9 = arith.constant 0 : index
      %11 = vector.load %arg4[%c0_7, %c0_8, %c0_9] : memref<1x128x2560xbf16, #tpu.memory_space<vmem>>, vector<1x128x384xbf16>
      %12 = vector.shape_cast %11 : vector<1x128x384xbf16> to vector<128x384xbf16>
      %c0_10 = arith.constant 0 : index
      %c0_11 = arith.constant 0 : index
      %c0_12 = arith.constant 0 : index
      %13 = vector.load %arg6[%c0_10, %c0_11, %c0_12] : memref<1x1x3200xf32, #tpu.memory_space<vmem>>, vector<1x1x384xf32>
      %14 = vector.shape_cast %13 : vector<1x1x384xf32> to vector<1x384xf32>
      %15 = arith.truncf %10 : vector<16x128xf32> to vector<16x128xbf16>
      %cst = arith.constant dense<0.000000e+00> : vector<16x384xf32>
      %16 = tpu.matmul %15, %12, %cst {dimension_numbers = #tpu.dot_dimension_numbers<[1], [0], [0], [1], [0, 0, 1, 1], [], []>} : vector<16x128xbf16>, vector<128x384xbf16>, vector<16x384xf32> -> vector<16x384xf32>
      %17 = vector.broadcast %14 : vector<1x384xf32> to vector<16x384xf32>
      %18 = arith.addf %16, %17 : vector<16x384xf32>
      %19 = vector.extract_strided_slice %18 {offsets = [0, 0], sizes = [16, 128], strides = [1, 1]} : vector<16x384xf32> to vector<16x128xf32>
      %20 = vector.extract_strided_slice %18 {offsets = [0, 128], sizes = [16, 128], strides = [1, 1]} : vector<16x384xf32> to vector<16x128xf32>
      %21 = vector.extract_strided_slice %18 {offsets = [0, 256], sizes = [16, 128], strides = [1, 1]} : vector<16x384xf32> to vector<16x128xf32>
      %c0_13 = arith.constant 0 : index
      %c0_14 = arith.constant 0 : index
      %c384 = arith.constant 384 : index
      %22 = vector.load %arg4[%c0_13, %c0_14, %c384] : memref<1x128x2560xbf16, #tpu.memory_space<vmem>>, vector<1x128x128xbf16>
      %23 = vector.shape_cast %22 : vector<1x128x128xbf16> to vector<128x128xbf16>
      %c0_15 = arith.constant 0 : index
      %c0_16 = arith.constant 0 : index
      %c384_17 = arith.constant 384 : index
      %24 = vector.load %arg6[%c0_15, %c0_16, %c384_17] : memref<1x1x3200xf32, #tpu.memory_space<vmem>>, vector<1x1x128xf32>
      %25 = vector.shape_cast %24 : vector<1x1x128xf32> to vector<1x128xf32>
      %26 = vector.extract_strided_slice %19 {offsets = [0, 0], sizes = [16, 16], strides = [1, 1]} : vector<16x128xf32> to vector<16x16xf32>
      %27 = vector.extract_strided_slice %20 {offsets = [0, 0], sizes = [16, 16], strides = [1, 1]} : vector<16x128xf32> to vector<16x16xf32>
      %cst_18 = arith.constant dense<0.000000e+00> : vector<16x16xf32>
      %28 = tpu.matmul %26, %27, %cst_18 {dimension_numbers = #tpu.dot_dimension_numbers<[1], [1], [0], [0], [0, 0, 1, 0], [], []>} : vector<16x16xf32>, vector<16x16xf32>, vector<16x16xf32> -> vector<16x16xf32>
      %cst_19 = arith.constant 2.500000e-01 : f32
      %29 = vector.broadcast %cst_19 : f32 to vector<16x16xf32>
      %30 = arith.mulf %28, %29 : vector<16x16xf32>
      %31 = arith.addf %30, %0 : vector<16x16xf32>
      %cst_20 = arith.constant dense<0xFF800000> : vector<16xf32>
      %32 = vector.multi_reduction <maximumf>, %31, %cst_20 [1] : vector<16x16xf32> to vector<16xf32>
      %33 = vector.shape_cast %32 : vector<16xf32> to vector<16x1xf32>
      %34 = vector.broadcast %33 : vector<16x1xf32> to vector<16x16xf32>
      %35 = arith.subf %31, %34 : vector<16x16xf32>
      %36 = math.exp %35 : vector<16x16xf32>
      %cst_21 = arith.constant dense<0.000000e+00> : vector<16xf32>
      %37 = vector.multi_reduction <add>, %36, %cst_21 [1] : vector<16x16xf32> to vector<16xf32>
      %38 = vector.shape_cast %37 : vector<16xf32> to vector<16x1xf32>
      %39 = tpu.reciprocal %38 {approx = true} : vector<16x1xf32> -> vector<16x1xf32>
      %40 = vector.broadcast %39 : vector<16x1xf32> to vector<16x16xf32>
      %41 = arith.mulf %36, %40 : vector<16x16xf32>
      %42 = vector.extract_strided_slice %21 {offsets = [0, 0], sizes = [16, 16], strides = [1, 1]} : vector<16x128xf32> to vector<16x16xf32>
      %cst_22 = arith.constant dense<0.000000e+00> : vector<16x16xf32>
      %43 = tpu.matmul %41, %42, %cst_22 {dimension_numbers = #tpu.dot_dimension_numbers<[1], [0], [0], [1], [0, 0, 1, 1], [], []>} : vector<16x16xf32>, vector<16x16xf32>, vector<16x16xf32> -> vector<16x16xf32>
      %44 = vector.extract_strided_slice %19 {offsets = [0, 16], sizes = [16, 16], strides = [1, 1]} : vector<16x128xf32> to vector<16x16xf32>
      %45 = vector.extract_strided_slice %20 {offsets = [0, 16], sizes = [16, 16], strides = [1, 1]} : vector<16x128xf32> to vector<16x16xf32>
      %cst_23 = arith.constant dense<0.000000e+00> : vector<16x16xf32>
      %46 = tpu.matmul %44, %45, %cst_23 {dimension_numbers = #tpu.dot_dimension_numbers<[1], [1], [0], [0], [0, 0, 1, 0], [], []>} : vector<16x16xf32>, vector<16x16xf32>, vector<16x16xf32> -> vector<16x16xf32>
      %cst_24 = arith.constant 2.500000e-01 : f32
      %47 = vector.broadcast %cst_24 : f32 to vector<16x16xf32>
      %48 = arith.mulf %46, %47 : vector<16x16xf32>
      %49 = arith.addf %48, %0 : vector<16x16xf32>
      %cst_25 = arith.constant dense<0xFF800000> : vector<16xf32>
      %50 = vector.multi_reduction <maximumf>, %49, %cst_25 [1] : vector<16x16xf32> to vector<16xf32>
      %51 = vector.shape_cast %50 : vector<16xf32> to vector<16x1xf32>
      %52 = vector.broadcast %51 : vector<16x1xf32> to vector<16x16xf32>
      %53 = arith.subf %49, %52 : vector<16x16xf32>
      %54 = math.exp %53 : vector<16x16xf32>
      %cst_26 = arith.constant dense<0.000000e+00> : vector<16xf32>
      %55 = vector.multi_reduction <add>, %54, %cst_26 [1] : vector<16x16xf32> to vector<16xf32>
      %56 = vector.shape_cast %55 : vector<16xf32> to vector<16x1xf32>
      %57 = tpu.reciprocal %56 {approx = true} : vector<16x1xf32> -> vector<16x1xf32>
      %58 = vector.broadcast %57 : vector<16x1xf32> to vector<16x16xf32>
      %59 = arith.mulf %54, %58 : vector<16x16xf32>
      %60 = vector.extract_strided_slice %21 {offsets = [0, 16], sizes = [16, 16], strides = [1, 1]} : vector<16x128xf32> to vector<16x16xf32>
      %cst_27 = arith.constant dense<0.000000e+00> : vector<16x16xf32>
      %61 = tpu.matmul %59, %60, %cst_27 {dimension_numbers = #tpu.dot_dimension_numbers<[1], [0], [0], [1], [0, 0, 1, 1], [], []>} : vector<16x16xf32>, vector<16x16xf32>, vector<16x16xf32> -> vector<16x16xf32>
      %62 = vector.extract_strided_slice %19 {offsets = [0, 32], sizes = [16, 16], strides = [1, 1]} : vector<16x128xf32> to vector<16x16xf32>
      %63 = vector.extract_strided_slice %20 {offsets = [0, 32], sizes = [16, 16], strides = [1, 1]} : vector<16x128xf32> to vector<16x16xf32>
      %cst_28 = arith.constant dense<0.000000e+00> : vector<16x16xf32>
      %64 = tpu.matmul %62, %63, %cst_28 {dimension_numbers = #tpu.dot_dimension_numbers<[1], [1], [0], [0], [0, 0, 1, 0], [], []>} : vector<16x16xf32>, vector<16x16xf32>, vector<16x16xf32> -> vector<16x16xf32>
      %cst_29 = arith.constant 2.500000e-01 : f32
      %65 = vector.broadcast %cst_29 : f32 to vector<16x16xf32>
      %66 = arith.mulf %64, %65 : vector<16x16xf32>
      %67 = arith.addf %66, %0 : vector<16x16xf32>
      %cst_30 = arith.constant dense<0xFF800000> : vector<16xf32>
      %68 = vector.multi_reduction <maximumf>, %67, %cst_30 [1] : vector<16x16xf32> to vector<16xf32>
      %69 = vector.shape_cast %68 : vector<16xf32> to vector<16x1xf32>
      %70 = vector.broadcast %69 : vector<16x1xf32> to vector<16x16xf32>
      %71 = arith.subf %67, %70 : vector<16x16xf32>
      %72 = math.exp %71 : vector<16x16xf32>
      %cst_31 = arith.constant dense<0.000000e+00> : vector<16xf32>
      %73 = vector.multi_reduction <add>, %72, %cst_31 [1] : vector<16x16xf32> to vector<16xf32>
      %74 = vector.shape_cast %73 : vector<16xf32> to vector<16x1xf32>
      %75 = tpu.reciprocal %74 {approx = true} : vector<16x1xf32> -> vector<16x1xf32>
      %76 = vector.broadcast %75 : vector<16x1xf32> to vector<16x16xf32>
      %77 = arith.mulf %72, %76 : vector<16x16xf32>
      %78 = vector.extract_strided_slice %21 {offsets = [0, 32], sizes = [16, 16], strides = [1, 1]} : vector<16x128xf32> to vector<16x16xf32>
      %cst_32 = arith.constant dense<0.000000e+00> : vector<16x16xf32>
      %79 = tpu.matmul %77, %78, %cst_32 {dimension_numbers = #tpu.dot_dimension_numbers<[1], [0], [0], [1], [0, 0, 1, 1], [], []>} : vector<16x16xf32>, vector<16x16xf32>, vector<16x16xf32> -> vector<16x16xf32>
      %80 = vector.extract_strided_slice %19 {offsets = [0, 48], sizes = [16, 16], strides = [1, 1]} : vector<16x128xf32> to vector<16x16xf32>
      %81 = vector.extract_strided_slice %20 {offsets = [0, 48], sizes = [16, 16], strides = [1, 1]} : vector<16x128xf32> to vector<16x16xf32>
      %cst_33 = arith.constant dense<0.000000e+00> : vector<16x16xf32>
      %82 = tpu.matmul %80, %81, %cst_33 {dimension_numbers = #tpu.dot_dimension_numbers<[1], [1], [0], [0], [0, 0, 1, 0], [], []>} : vector<16x16xf32>, vector<16x16xf32>, vector<16x16xf32> -> vector<16x16xf32>
      %cst_34 = arith.constant 2.500000e-01 : f32
      %83 = vector.broadcast %cst_34 : f32 to vector<16x16xf32>
      %84 = arith.mulf %82, %83 : vector<16x16xf32>
      %85 = arith.addf %84, %0 : vector<16x16xf32>
      %cst_35 = arith.constant dense<0xFF800000> : vector<16xf32>
      %86 = vector.multi_reduction <maximumf>, %85, %cst_35 [1] : vector<16x16xf32> to vector<16xf32>
      %87 = vector.shape_cast %86 : vector<16xf32> to vector<16x1xf32>
      %88 = vector.broadcast %87 : vector<16x1xf32> to vector<16x16xf32>
      %89 = arith.subf %85, %88 : vector<16x16xf32>
      %90 = math.exp %89 : vector<16x16xf32>
      %cst_36 = arith.constant dense<0.000000e+00> : vector<16xf32>
      %91 = vector.multi_reduction <add>, %90, %cst_36 [1] : vector<16x16xf32> to vector<16xf32>
      %92 = vector.shape_cast %91 : vector<16xf32> to vector<16x1xf32>
      %93 = tpu.reciprocal %92 {approx = true} : vector<16x1xf32> -> vector<16x1xf32>
      %94 = vector.broadcast %93 : vector<16x1xf32> to vector<16x16xf32>
      %95 = arith.mulf %90, %94 : vector<16x16xf32>
      %96 = vector.extract_strided_slice %21 {offsets = [0, 48], sizes = [16, 16], strides = [1, 1]} : vector<16x128xf32> to vector<16x16xf32>
      %cst_37 = arith.constant dense<0.000000e+00> : vector<16x16xf32>
      %97 = tpu.matmul %95, %96, %cst_37 {dimension_numbers = #tpu.dot_dimension_numbers<[1], [0], [0], [1], [0, 0, 1, 1], [], []>} : vector<16x16xf32>, vector<16x16xf32>, vector<16x16xf32> -> vector<16x16xf32>
      %98 = vector.extract_strided_slice %19 {offsets = [0, 64], sizes = [16, 16], strides = [1, 1]} : vector<16x128xf32> to vector<16x16xf32>
      %99 = vector.extract_strided_slice %20 {offsets = [0, 64], sizes = [16, 16], strides = [1, 1]} : vector<16x128xf32> to vector<16x16xf32>
      %cst_38 = arith.constant dense<0.000000e+00> : vector<16x16xf32>
      %100 = tpu.matmul %98, %99, %cst_38 {dimension_numbers = #tpu.dot_dimension_numbers<[1], [1], [0], [0], [0, 0, 1, 0], [], []>} : vector<16x16xf32>, vector<16x16xf32>, vector<16x16xf32> -> vector<16x16xf32>
      %cst_39 = arith.constant 2.500000e-01 : f32
      %101 = vector.broadcast %cst_39 : f32 to vector<16x16xf32>
      %102 = arith.mulf %100, %101 : vector<16x16xf32>
      %103 = arith.addf %102, %0 : vector<16x16xf32>
      %cst_40 = arith.constant dense<0xFF800000> : vector<16xf32>
      %104 = vector.multi_reduction <maximumf>, %103, %cst_40 [1] : vector<16x16xf32> to vector<16xf32>
      %105 = vector.shape_cast %104 : vector<16xf32> to vector<16x1xf32>
      %106 = vector.broadcast %105 : vector<16x1xf32> to vector<16x16xf32>
      %107 = arith.subf %103, %106 : vector<16x16xf32>
      %108 = math.exp %107 : vector<16x16xf32>
      %cst_41 = arith.constant dense<0.000000e+00> : vector<16xf32>
      %109 = vector.multi_reduction <add>, %108, %cst_41 [1] : vector<16x16xf32> to vector<16xf32>
      %110 = vector.shape_cast %109 : vector<16xf32> to vector<16x1xf32>
      %111 = tpu.reciprocal %110 {approx = true} : vector<16x1xf32> -> vector<16x1xf32>
      %112 = vector.broadcast %111 : vector<16x1xf32> to vector<16x16xf32>
      %113 = arith.mulf %108, %112 : vector<16x16xf32>
      %114 = vector.extract_strided_slice %21 {offsets = [0, 64], sizes = [16, 16], strides = [1, 1]} : vector<16x128xf32> to vector<16x16xf32>
      %cst_42 = arith.constant dense<0.000000e+00> : vector<16x16xf32>
      %115 = tpu.matmul %113, %114, %cst_42 {dimension_numbers = #tpu.dot_dimension_numbers<[1], [0], [0], [1], [0, 0, 1, 1], [], []>} : vector<16x16xf32>, vector<16x16xf32>, vector<16x16xf32> -> vector<16x16xf32>
      %116 = vector.extract_strided_slice %19 {offsets = [0, 80], sizes = [16, 16], strides = [1, 1]} : vector<16x128xf32> to vector<16x16xf32>
      %117 = vector.extract_strided_slice %20 {offsets = [0, 80], sizes = [16, 16], strides = [1, 1]} : vector<16x128xf32> to vector<16x16xf32>
      %cst_43 = arith.constant dense<0.000000e+00> : vector<16x16xf32>
      %118 = tpu.matmul %116, %117, %cst_43 {dimension_numbers = #tpu.dot_dimension_numbers<[1], [1], [0], [0], [0, 0, 1, 0], [], []>} : vector<16x16xf32>, vector<16x16xf32>, vector<16x16xf32> -> vector<16x16xf32>
      %cst_44 = arith.constant 2.500000e-01 : f32
      %119 = vector.broadcast %cst_44 : f32 to vector<16x16xf32>
      %120 = arith.mulf %118, %119 : vector<16x16xf32>
      %121 = arith.addf %120, %0 : vector<16x16xf32>
      %cst_45 = arith.constant dense<0xFF800000> : vector<16xf32>
      %122 = vector.multi_reduction <maximumf>, %121, %cst_45 [1] : vector<16x16xf32> to vector<16xf32>
      %123 = vector.shape_cast %122 : vector<16xf32> to vector<16x1xf32>
      %124 = vector.broadcast %123 : vector<16x1xf32> to vector<16x16xf32>
      %125 = arith.subf %121, %124 : vector<16x16xf32>
      %126 = math.exp %125 : vector<16x16xf32>
      %cst_46 = arith.constant dense<0.000000e+00> : vector<16xf32>
      %127 = vector.multi_reduction <add>, %126, %cst_46 [1] : vector<16x16xf32> to vector<16xf32>
      %128 = vector.shape_cast %127 : vector<16xf32> to vector<16x1xf32>
      %129 = tpu.reciprocal %128 {approx = true} : vector<16x1xf32> -> vector<16x1xf32>
      %130 = vector.broadcast %129 : vector<16x1xf32> to vector<16x16xf32>
      %131 = arith.mulf %126, %130 : vector<16x16xf32>
      %132 = vector.extract_strided_slice %21 {offsets = [0, 80], sizes = [16, 16], strides = [1, 1]} : vector<16x128xf32> to vector<16x16xf32>
      %cst_47 = arith.constant dense<0.000000e+00> : vector<16x16xf32>
      %133 = tpu.matmul %131, %132, %cst_47 {dimension_numbers = #tpu.dot_dimension_numbers<[1], [0], [0], [1], [0, 0, 1, 1], [], []>} : vector<16x16xf32>, vector<16x16xf32>, vector<16x16xf32> -> vector<16x16xf32>
      %134 = vector.extract_strided_slice %19 {offsets = [0, 96], sizes = [16, 16], strides = [1, 1]} : vector<16x128xf32> to vector<16x16xf32>
      %135 = vector.extract_strided_slice %20 {offsets = [0, 96], sizes = [16, 16], strides = [1, 1]} : vector<16x128xf32> to vector<16x16xf32>
      %cst_48 = arith.constant dense<0.000000e+00> : vector<16x16xf32>
      %136 = tpu.matmul %134, %135, %cst_48 {dimension_numbers = #tpu.dot_dimension_numbers<[1], [1], [0], [0], [0, 0, 1, 0], [], []>} : vector<16x16xf32>, vector<16x16xf32>, vector<16x16xf32> -> vector<16x16xf32>
      %cst_49 = arith.constant 2.500000e-01 : f32
      %137 = vector.broadcast %cst_49 : f32 to vector<16x16xf32>
      %138 = arith.mulf %136, %137 : vector<16x16xf32>
      %139 = arith.addf %138, %0 : vector<16x16xf32>
      %cst_50 = arith.constant dense<0xFF800000> : vector<16xf32>
      %140 = vector.multi_reduction <maximumf>, %139, %cst_50 [1] : vector<16x16xf32> to vector<16xf32>
      %141 = vector.shape_cast %140 : vector<16xf32> to vector<16x1xf32>
      %142 = vector.broadcast %141 : vector<16x1xf32> to vector<16x16xf32>
      %143 = arith.subf %139, %142 : vector<16x16xf32>
      %144 = math.exp %143 : vector<16x16xf32>
      %cst_51 = arith.constant dense<0.000000e+00> : vector<16xf32>
      %145 = vector.multi_reduction <add>, %144, %cst_51 [1] : vector<16x16xf32> to vector<16xf32>
      %146 = vector.shape_cast %145 : vector<16xf32> to vector<16x1xf32>
      %147 = tpu.reciprocal %146 {approx = true} : vector<16x1xf32> -> vector<16x1xf32>
      %148 = vector.broadcast %147 : vector<16x1xf32> to vector<16x16xf32>
      %149 = arith.mulf %144, %148 : vector<16x16xf32>
      %150 = vector.extract_strided_slice %21 {offsets = [0, 96], sizes = [16, 16], strides = [1, 1]} : vector<16x128xf32> to vector<16x16xf32>
      %cst_52 = arith.constant dense<0.000000e+00> : vector<16x16xf32>
      %151 = tpu.matmul %149, %150, %cst_52 {dimension_numbers = #tpu.dot_dimension_numbers<[1], [0], [0], [1], [0, 0, 1, 1], [], []>} : vector<16x16xf32>, vector<16x16xf32>, vector<16x16xf32> -> vector<16x16xf32>
      %152 = vector.extract_strided_slice %19 {offsets = [0, 112], sizes = [16, 16], strides = [1, 1]} : vector<16x128xf32> to vector<16x16xf32>
      %153 = vector.extract_strided_slice %20 {offsets = [0, 112], sizes = [16, 16], strides = [1, 1]} : vector<16x128xf32> to vector<16x16xf32>
      %cst_53 = arith.constant dense<0.000000e+00> : vector<16x16xf32>
      %154 = tpu.matmul %152, %153, %cst_53 {dimension_numbers = #tpu.dot_dimension_numbers<[1], [1], [0], [0], [0, 0, 1, 0], [], []>} : vector<16x16xf32>, vector<16x16xf32>, vector<16x16xf32> -> vector<16x16xf32>
      %cst_54 = arith.constant 2.500000e-01 : f32
      %155 = vector.broadcast %cst_54 : f32 to vector<16x16xf32>
      %156 = arith.mulf %154, %155 : vector<16x16xf32>
      %157 = arith.addf %156, %0 : vector<16x16xf32>
      %cst_55 = arith.constant dense<0xFF800000> : vector<16xf32>
      %158 = vector.multi_reduction <maximumf>, %157, %cst_55 [1] : vector<16x16xf32> to vector<16xf32>
      %159 = vector.shape_cast %158 : vector<16xf32> to vector<16x1xf32>
      %160 = vector.broadcast %159 : vector<16x1xf32> to vector<16x16xf32>
      %161 = arith.subf %157, %160 : vector<16x16xf32>
      %162 = math.exp %161 : vector<16x16xf32>
      %cst_56 = arith.constant dense<0.000000e+00> : vector<16xf32>
      %163 = vector.multi_reduction <add>, %162, %cst_56 [1] : vector<16x16xf32> to vector<16xf32>
      %164 = vector.shape_cast %163 : vector<16xf32> to vector<16x1xf32>
      %165 = tpu.reciprocal %164 {approx = true} : vector<16x1xf32> -> vector<16x1xf32>
      %166 = vector.broadcast %165 : vector<16x1xf32> to vector<16x16xf32>
      %167 = arith.mulf %162, %166 : vector<16x16xf32>
      %168 = vector.extract_strided_slice %21 {offsets = [0, 112], sizes = [16, 16], strides = [1, 1]} : vector<16x128xf32> to vector<16x16xf32>
      %cst_57 = arith.constant dense<0.000000e+00> : vector<16x16xf32>
      %169 = tpu.matmul %167, %168, %cst_57 {dimension_numbers = #tpu.dot_dimension_numbers<[1], [0], [0], [1], [0, 0, 1, 1], [], []>} : vector<16x16xf32>, vector<16x16xf32>, vector<16x16xf32> -> vector<16x16xf32>
      %170 = tpu.concatenate %43, %61, %79, %97, %115, %133, %151, %169 in 1 : vector<16x16xf32>, vector<16x16xf32>, vector<16x16xf32>, vector<16x16xf32>, vector<16x16xf32>, vector<16x16xf32>, vector<16x16xf32>, vector<16x16xf32> -> vector<16x128xf32>
      %171 = arith.truncf %170 : vector<16x128xf32> to vector<16x128xbf16>
      %cst_58 = arith.constant dense<0.000000e+00> : vector<16x128xf32>
      %172 = tpu.matmul %171, %23, %cst_58 {dimension_numbers = #tpu.dot_dimension_numbers<[1], [0], [0], [1], [0, 0, 1, 1], [], []>} : vector<16x128xbf16>, vector<128x128xbf16>, vector<16x128xf32> -> vector<16x128xf32>
      %173 = vector.broadcast %25 : vector<1x128xf32> to vector<16x128xf32>
      %174 = arith.addf %172, %173 : vector<16x128xf32>
      %175 = arith.addf %10, %174 : vector<16x128xf32>
      %c0_59 = arith.constant 0 : index
      %c0_60 = arith.constant 0 : index
      %c2688 = arith.constant 2688 : index
      %176 = vector.load %arg6[%c0_59, %c0_60, %c2688] : memref<1x1x3200xf32, #tpu.memory_space<vmem>>, vector<1x1x128xf32>
      %177 = vector.shape_cast %176 : vector<1x1x128xf32> to vector<1x128xf32>
      %c0_61 = arith.constant 0 : index
      %c0_62 = arith.constant 0 : index
      %c2816 = arith.constant 2816 : index
      %178 = vector.load %arg6[%c0_61, %c0_62, %c2816] : memref<1x1x3200xf32, #tpu.memory_space<vmem>>, vector<1x1x128xf32>
      %179 = vector.shape_cast %178 : vector<1x1x128xf32> to vector<1x128xf32>
      %cst_63 = arith.constant dense<0.000000e+00> : vector<16xf32>
      %180 = vector.multi_reduction <add>, %175, %cst_63 [1] : vector<16x128xf32> to vector<16xf32>
      %181 = vector.shape_cast %180 : vector<16xf32> to vector<16x1xf32>
      %cst_64 = arith.constant 1.280000e+02 : f32
      %182 = vector.broadcast %cst_64 : f32 to vector<16x1xf32>
      %183 = arith.divf %181, %182 : vector<16x1xf32>
      %184 = vector.broadcast %183 : vector<16x1xf32> to vector<16x128xf32>
      %185 = arith.subf %175, %184 : vector<16x128xf32>
      %186 = arith.mulf %185, %185 : vector<16x128xf32>
      %cst_65 = arith.constant dense<0.000000e+00> : vector<16xf32>
      %187 = vector.multi_reduction <add>, %186, %cst_65 [1] : vector<16x128xf32> to vector<16xf32>
      %188 = vector.shape_cast %187 : vector<16xf32> to vector<16x1xf32>
      %cst_66 = arith.constant 1.280000e+02 : f32
      %189 = vector.broadcast %cst_66 : f32 to vector<16x1xf32>
      %190 = arith.divf %188, %189 : vector<16x1xf32>
      %cst_67 = arith.constant 9.99999974E-6 : f32
      %191 = vector.broadcast %cst_67 : f32 to vector<16x1xf32>
      %192 = arith.addf %190, %191 : vector<16x1xf32>
      %193 = math.rsqrt %192 : vector<16x1xf32>
      %194 = vector.broadcast %193 : vector<16x1xf32> to vector<16x128xf32>
      %195 = arith.mulf %185, %194 : vector<16x128xf32>
      %196 = vector.broadcast %177 : vector<1x128xf32> to vector<16x128xf32>
      %197 = arith.mulf %195, %196 : vector<16x128xf32>
      %198 = vector.broadcast %179 : vector<1x128xf32> to vector<16x128xf32>
      %199 = arith.addf %197, %198 : vector<16x128xf32>
      %c0_68 = arith.constant 0 : index
      %c0_69 = arith.constant 0 : index
      %c512 = arith.constant 512 : index
      %200 = vector.load %arg4[%c0_68, %c0_69, %c512] : memref<1x128x2560xbf16, #tpu.memory_space<vmem>>, vector<1x128x2048xbf16>
      %201 = vector.shape_cast %200 : vector<1x128x2048xbf16> to vector<128x2048xbf16>
      %c0_70 = arith.constant 0 : index
      %c0_71 = arith.constant 0 : index
      %c512_72 = arith.constant 512 : index
      %202 = vector.load %arg6[%c0_70, %c0_71, %c512_72] : memref<1x1x3200xf32, #tpu.memory_space<vmem>>, vector<1x1x2048xf32>
      %203 = vector.shape_cast %202 : vector<1x1x2048xf32> to vector<1x2048xf32>
      %204 = arith.truncf %199 : vector<16x128xf32> to vector<16x128xbf16>
      %cst_73 = arith.constant dense<0.000000e+00> : vector<16x2048xf32>
      %205 = tpu.matmul %204, %201, %cst_73 {dimension_numbers = #tpu.dot_dimension_numbers<[1], [0], [0], [1], [0, 0, 1, 1], [], []>} : vector<16x128xbf16>, vector<128x2048xbf16>, vector<16x2048xf32> -> vector<16x2048xf32>
      %206 = vector.broadcast %203 : vector<1x2048xf32> to vector<16x2048xf32>
      %207 = arith.addf %205, %206 : vector<16x2048xf32>
      %cst_74 = arith.constant 0.000000e+00 : f32
      %208 = vector.broadcast %cst_74 : f32 to vector<16x2048xf32>
      %209 = arith.maximumf %207, %208 : vector<16x2048xf32>
      %c0_75 = arith.constant 0 : index
      %c0_76 = arith.constant 0 : index
      %c0_77 = arith.constant 0 : index
      %210 = vector.load %arg5[%c0_75, %c0_76, %c0_77] : memref<1x2048x128xbf16, #tpu.memory_space<vmem>>, vector<1x2048x128xbf16>
      %211 = vector.shape_cast %210 : vector<1x2048x128xbf16> to vector<2048x128xbf16>
      %c0_78 = arith.constant 0 : index
      %c0_79 = arith.constant 0 : index
      %c2560 = arith.constant 2560 : index
      %212 = vector.load %arg6[%c0_78, %c0_79, %c2560] : memref<1x1x3200xf32, #tpu.memory_space<vmem>>, vector<1x1x128xf32>
      %213 = vector.shape_cast %212 : vector<1x1x128xf32> to vector<1x128xf32>
      %214 = arith.truncf %209 : vector<16x2048xf32> to vector<16x2048xbf16>
      %cst_80 = arith.constant dense<0.000000e+00> : vector<16x128xf32>
      %215 = tpu.matmul %214, %211, %cst_80 {dimension_numbers = #tpu.dot_dimension_numbers<[1], [0], [0], [1], [0, 0, 1, 1], [], []>} : vector<16x2048xbf16>, vector<2048x128xbf16>, vector<16x128xf32> -> vector<16x128xf32>
      %216 = vector.broadcast %213 : vector<1x128xf32> to vector<16x128xf32>
      %217 = arith.addf %215, %216 : vector<16x128xf32>
      %218 = arith.addf %199, %217 : vector<16x128xf32>
      %c0_81 = arith.constant 0 : index
      %c0_82 = arith.constant 0 : index
      %c2944 = arith.constant 2944 : index
      %219 = vector.load %arg6[%c0_81, %c0_82, %c2944] : memref<1x1x3200xf32, #tpu.memory_space<vmem>>, vector<1x1x128xf32>
      %220 = vector.shape_cast %219 : vector<1x1x128xf32> to vector<1x128xf32>
      %c0_83 = arith.constant 0 : index
      %c0_84 = arith.constant 0 : index
      %c3072 = arith.constant 3072 : index
      %221 = vector.load %arg6[%c0_83, %c0_84, %c3072] : memref<1x1x3200xf32, #tpu.memory_space<vmem>>, vector<1x1x128xf32>
      %222 = vector.shape_cast %221 : vector<1x1x128xf32> to vector<1x128xf32>
      %cst_85 = arith.constant dense<0.000000e+00> : vector<16xf32>
      %223 = vector.multi_reduction <add>, %218, %cst_85 [1] : vector<16x128xf32> to vector<16xf32>
      %224 = vector.shape_cast %223 : vector<16xf32> to vector<16x1xf32>
      %cst_86 = arith.constant 1.280000e+02 : f32
      %225 = vector.broadcast %cst_86 : f32 to vector<16x1xf32>
      %226 = arith.divf %224, %225 : vector<16x1xf32>
      %227 = vector.broadcast %226 : vector<16x1xf32> to vector<16x128xf32>
      %228 = arith.subf %218, %227 : vector<16x128xf32>
      %229 = arith.mulf %228, %228 : vector<16x128xf32>
      %cst_87 = arith.constant dense<0.000000e+00> : vector<16xf32>
      %230 = vector.multi_reduction <add>, %229, %cst_87 [1] : vector<16x128xf32> to vector<16xf32>
      %231 = vector.shape_cast %230 : vector<16xf32> to vector<16x1xf32>
      %cst_88 = arith.constant 1.280000e+02 : f32
      %232 = vector.broadcast %cst_88 : f32 to vector<16x1xf32>
      %233 = arith.divf %231, %232 : vector<16x1xf32>
      %cst_89 = arith.constant 9.99999974E-6 : f32
      %234 = vector.broadcast %cst_89 : f32 to vector<16x1xf32>
      %235 = arith.addf %233, %234 : vector<16x1xf32>
      %236 = math.rsqrt %235 : vector<16x1xf32>
      %237 = vector.broadcast %236 : vector<16x1xf32> to vector<16x128xf32>
      %238 = arith.mulf %228, %237 : vector<16x128xf32>
      %239 = vector.broadcast %220 : vector<1x128xf32> to vector<16x128xf32>
      %240 = arith.mulf %238, %239 : vector<16x128xf32>
      %241 = vector.broadcast %222 : vector<1x128xf32> to vector<16x128xf32>
      %242 = arith.addf %240, %241 : vector<16x128xf32>
      %c0_90 = arith.constant 0 : index
      %c0_91 = arith.constant 0 : index
      %243 = vector.load %arg12[%c0_90, %c0_91] : memref<16x128xf32, #tpu.memory_space<vmem>>, vector<16x128xf32>
      tpu.vector_store %arg12[%c0_90, %c0_91], %242 {strides = array<i32>} : memref<16x128xf32, #tpu.memory_space<vmem>>, vector<16x128xf32>,
      %c3_i32 = arith.constant 3 : i32
      %244 = arith.cmpi eq, %arg0, %c3_i32 : i32
      %245 = arith.extui %244 : i1 to i32
      %c0_i32_92 = arith.constant 0 : i32
      %246 = arith.cmpi ne, %245, %c0_i32_92 : i32
      scf.if %246 {
        %c0_93 = arith.constant 0 : index
        %c0_94 = arith.constant 0 : index
        %247 = vector.load %arg10[%c0_93, %c0_94] : memref<1x768xf32, #tpu.memory_space<vmem>>, vector<1x128xf32>
        %c0_95 = arith.constant 0 : index
        %c128 = arith.constant 128 : index
        %248 = vector.load %arg10[%c0_95, %c128] : memref<1x768xf32, #tpu.memory_space<vmem>>, vector<1x128xf32>
        %cst_96 = arith.constant dense<0.000000e+00> : vector<16xf32>
        %249 = vector.multi_reduction <add>, %242, %cst_96 [1] : vector<16x128xf32> to vector<16xf32>
        %250 = vector.shape_cast %249 : vector<16xf32> to vector<16x1xf32>
        %cst_97 = arith.constant 1.280000e+02 : f32
        %251 = vector.broadcast %cst_97 : f32 to vector<16x1xf32>
        %252 = arith.divf %250, %251 : vector<16x1xf32>
        %253 = vector.broadcast %252 : vector<16x1xf32> to vector<16x128xf32>
        %254 = arith.subf %242, %253 : vector<16x128xf32>
        %255 = arith.mulf %254, %254 : vector<16x128xf32>
        %cst_98 = arith.constant dense<0.000000e+00> : vector<16xf32>
        %256 = vector.multi_reduction <add>, %255, %cst_98 [1] : vector<16x128xf32> to vector<16xf32>
        %257 = vector.shape_cast %256 : vector<16xf32> to vector<16x1xf32>
        %cst_99 = arith.constant 1.280000e+02 : f32
        %258 = vector.broadcast %cst_99 : f32 to vector<16x1xf32>
        %259 = arith.divf %257, %258 : vector<16x1xf32>
        %cst_100 = arith.constant 9.99999974E-6 : f32
        %260 = vector.broadcast %cst_100 : f32 to vector<16x1xf32>
        %261 = arith.addf %259, %260 : vector<16x1xf32>
        %262 = math.rsqrt %261 : vector<16x1xf32>
        %263 = vector.broadcast %262 : vector<16x1xf32> to vector<16x128xf32>
        %264 = arith.mulf %254, %263 : vector<16x128xf32>
        %265 = vector.broadcast %247 : vector<1x128xf32> to vector<16x128xf32>
        %266 = arith.mulf %264, %265 : vector<16x128xf32>
        %267 = vector.broadcast %248 : vector<1x128xf32> to vector<16x128xf32>
        %268 = arith.addf %266, %267 : vector<16x128xf32>
        %c0_101 = arith.constant 0 : index
        %c0_102 = arith.constant 0 : index
        %269 = vector.load %arg13[%c0_101, %c0_102] : memref<16x128xf32, #tpu.memory_space<vmem>>, vector<16x128xf32>
        tpu.vector_store %arg13[%c0_101, %c0_102], %268 {strides = array<i32>} : memref<16x128xf32, #tpu.memory_space<vmem>>, vector<16x128xf32>,
      } else {
      }
    } else {
    }
    %c4_i32_1 = arith.constant 4 : i32
    %4 = arith.cmpi sge, %arg0, %c4_i32_1 : i32
    %5 = arith.extui %4 : i1 to i32
    %c0_i32_2 = arith.constant 0 : i32
    %6 = arith.cmpi ne, %5, %c0_i32_2 : i32
    scf.if %6 {
      %c4_i32_3 = arith.constant 4 : i32
      %7 = arith.cmpi eq, %arg0, %c4_i32_3 : i32
      %8 = arith.extui %7 : i1 to i32
      %c0_i32_4 = arith.constant 0 : i32
      %9 = arith.cmpi ne, %8, %c0_i32_4 : i32
      scf.if %9 {
        %444 = tpu.iota {dimensions = array<i32: 1>} : vector<16x32xi32>
        %c0_162 = arith.constant 0 : index
        %c0_163 = arith.constant 0 : index
        %445 = vector.load %arg1[%c0_162, %c0_163] : memref<16x1xi32, #tpu.memory_space<vmem>>, vector<16x1xi32>
        %446 = vector.broadcast %445 : vector<16x1xi32> to vector<16x32xi32>
        %447 = arith.cmpi eq, %446, %444 : vector<16x32xi32>
        %448 = arith.extui %447 : vector<16x32xi1> to vector<16x32xi32>
        %449 = arith.sitofp %448 : vector<16x32xi32> to vector<16x32xf32>
        %c0_164 = arith.constant 0 : index
        %c0_165 = arith.constant 0 : index
        %450 = vector.load %arg2[%c0_164, %c0_165] : memref<32x128xf32, #tpu.memory_space<vmem>>, vector<32x128xf32>
        %cst_166 = arith.constant dense<0.000000e+00> : vector<16x128xf32>
        %451 = tpu.matmul %449, %450, %cst_166 {dimension_numbers = #tpu.dot_dimension_numbers<[1], [0], [0], [1], [0, 0, 1, 1], [], []>} : vector<16x32xf32>, vector<32x128xf32>, vector<16x128xf32> -> vector<16x128xf32>
        %c0_167 = arith.constant 0 : index
        %c0_168 = arith.constant 0 : index
        %452 = vector.load %arg12[%c0_167, %c0_168] : memref<16x128xf32, #tpu.memory_space<vmem>>, vector<16x128xf32>
        tpu.vector_store %arg12[%c0_167, %c0_168], %451 {strides = array<i32>} : memref<16x128xf32, #tpu.memory_space<vmem>>, vector<16x128xf32>,
      } else {
      }
      %c0_5 = arith.constant 0 : index
      %c0_6 = arith.constant 0 : index
      %10 = vector.load %arg12[%c0_5, %c0_6] : memref<16x128xf32, #tpu.memory_space<vmem>>, vector<16x128xf32>
      %c0_7 = arith.constant 0 : index
      %c0_8 = arith.constant 0 : index
      %11 = vector.load %arg13[%c0_7, %c0_8] : memref<16x128xf32, #tpu.memory_space<vmem>>, vector<16x128xf32>
      %c0_9 = arith.constant 0 : index
      %c0_10 = arith.constant 0 : index
      %c0_11 = arith.constant 0 : index
      %12 = vector.load %arg7[%c0_9, %c0_10, %c0_11] : memref<1x128x3072xbf16, #tpu.memory_space<vmem>>, vector<1x128x384xbf16>
      %13 = vector.shape_cast %12 : vector<1x128x384xbf16> to vector<128x384xbf16>
      %c0_12 = arith.constant 0 : index
      %c0_13 = arith.constant 0 : index
      %c0_14 = arith.constant 0 : index
      %14 = vector.load %arg9[%c0_12, %c0_13, %c0_14] : memref<1x1x3968xf32, #tpu.memory_space<vmem>>, vector<1x1x384xf32>
      %15 = vector.shape_cast %14 : vector<1x1x384xf32> to vector<1x384xf32>
      %16 = arith.truncf %10 : vector<16x128xf32> to vector<16x128xbf16>
      %cst = arith.constant dense<0.000000e+00> : vector<16x384xf32>
      %17 = tpu.matmul %16, %13, %cst {dimension_numbers = #tpu.dot_dimension_numbers<[1], [0], [0], [1], [0, 0, 1, 1], [], []>} : vector<16x128xbf16>, vector<128x384xbf16>, vector<16x384xf32> -> vector<16x384xf32>
      %18 = vector.broadcast %15 : vector<1x384xf32> to vector<16x384xf32>
      %19 = arith.addf %17, %18 : vector<16x384xf32>
      %20 = vector.extract_strided_slice %19 {offsets = [0, 0], sizes = [16, 128], strides = [1, 1]} : vector<16x384xf32> to vector<16x128xf32>
      %21 = vector.extract_strided_slice %19 {offsets = [0, 128], sizes = [16, 128], strides = [1, 1]} : vector<16x384xf32> to vector<16x128xf32>
      %22 = vector.extract_strided_slice %19 {offsets = [0, 256], sizes = [16, 128], strides = [1, 1]} : vector<16x384xf32> to vector<16x128xf32>
      %c0_15 = arith.constant 0 : index
      %c0_16 = arith.constant 0 : index
      %c384 = arith.constant 384 : index
      %23 = vector.load %arg7[%c0_15, %c0_16, %c384] : memref<1x128x3072xbf16, #tpu.memory_space<vmem>>, vector<1x128x128xbf16>
      %24 = vector.shape_cast %23 : vector<1x128x128xbf16> to vector<128x128xbf16>
      %c0_17 = arith.constant 0 : index
      %c0_18 = arith.constant 0 : index
      %c384_19 = arith.constant 384 : index
      %25 = vector.load %arg9[%c0_17, %c0_18, %c384_19] : memref<1x1x3968xf32, #tpu.memory_space<vmem>>, vector<1x1x128xf32>
      %26 = vector.shape_cast %25 : vector<1x1x128xf32> to vector<1x128xf32>
      %27 = vector.extract_strided_slice %20 {offsets = [0, 0], sizes = [16, 16], strides = [1, 1]} : vector<16x128xf32> to vector<16x16xf32>
      %28 = vector.extract_strided_slice %21 {offsets = [0, 0], sizes = [16, 16], strides = [1, 1]} : vector<16x128xf32> to vector<16x16xf32>
      %cst_20 = arith.constant dense<0.000000e+00> : vector<16x16xf32>
      %29 = tpu.matmul %27, %28, %cst_20 {dimension_numbers = #tpu.dot_dimension_numbers<[1], [1], [0], [0], [0, 0, 1, 0], [], []>} : vector<16x16xf32>, vector<16x16xf32>, vector<16x16xf32> -> vector<16x16xf32>
      %cst_21 = arith.constant 2.500000e-01 : f32
      %30 = vector.broadcast %cst_21 : f32 to vector<16x16xf32>
      %31 = arith.mulf %29, %30 : vector<16x16xf32>
      %32 = arith.addf %31, %0 : vector<16x16xf32>
      %cst_22 = arith.constant dense<0xFF800000> : vector<16xf32>
      %33 = vector.multi_reduction <maximumf>, %32, %cst_22 [1] : vector<16x16xf32> to vector<16xf32>
      %34 = vector.shape_cast %33 : vector<16xf32> to vector<16x1xf32>
      %35 = vector.broadcast %34 : vector<16x1xf32> to vector<16x16xf32>
      %36 = arith.subf %32, %35 : vector<16x16xf32>
      %37 = math.exp %36 : vector<16x16xf32>
      %cst_23 = arith.constant dense<0.000000e+00> : vector<16xf32>
      %38 = vector.multi_reduction <add>, %37, %cst_23 [1] : vector<16x16xf32> to vector<16xf32>
      %39 = vector.shape_cast %38 : vector<16xf32> to vector<16x1xf32>
      %40 = tpu.reciprocal %39 {approx = true} : vector<16x1xf32> -> vector<16x1xf32>
      %41 = vector.broadcast %40 : vector<16x1xf32> to vector<16x16xf32>
      %42 = arith.mulf %37, %41 : vector<16x16xf32>
      %43 = vector.extract_strided_slice %22 {offsets = [0, 0], sizes = [16, 16], strides = [1, 1]} : vector<16x128xf32> to vector<16x16xf32>
      %cst_24 = arith.constant dense<0.000000e+00> : vector<16x16xf32>
      %44 = tpu.matmul %42, %43, %cst_24 {dimension_numbers = #tpu.dot_dimension_numbers<[1], [0], [0], [1], [0, 0, 1, 1], [], []>} : vector<16x16xf32>, vector<16x16xf32>, vector<16x16xf32> -> vector<16x16xf32>
      %45 = vector.extract_strided_slice %20 {offsets = [0, 16], sizes = [16, 16], strides = [1, 1]} : vector<16x128xf32> to vector<16x16xf32>
      %46 = vector.extract_strided_slice %21 {offsets = [0, 16], sizes = [16, 16], strides = [1, 1]} : vector<16x128xf32> to vector<16x16xf32>
      %cst_25 = arith.constant dense<0.000000e+00> : vector<16x16xf32>
      %47 = tpu.matmul %45, %46, %cst_25 {dimension_numbers = #tpu.dot_dimension_numbers<[1], [1], [0], [0], [0, 0, 1, 0], [], []>} : vector<16x16xf32>, vector<16x16xf32>, vector<16x16xf32> -> vector<16x16xf32>
      %cst_26 = arith.constant 2.500000e-01 : f32
      %48 = vector.broadcast %cst_26 : f32 to vector<16x16xf32>
      %49 = arith.mulf %47, %48 : vector<16x16xf32>
      %50 = arith.addf %49, %0 : vector<16x16xf32>
      %cst_27 = arith.constant dense<0xFF800000> : vector<16xf32>
      %51 = vector.multi_reduction <maximumf>, %50, %cst_27 [1] : vector<16x16xf32> to vector<16xf32>
      %52 = vector.shape_cast %51 : vector<16xf32> to vector<16x1xf32>
      %53 = vector.broadcast %52 : vector<16x1xf32> to vector<16x16xf32>
      %54 = arith.subf %50, %53 : vector<16x16xf32>
      %55 = math.exp %54 : vector<16x16xf32>
      %cst_28 = arith.constant dense<0.000000e+00> : vector<16xf32>
      %56 = vector.multi_reduction <add>, %55, %cst_28 [1] : vector<16x16xf32> to vector<16xf32>
      %57 = vector.shape_cast %56 : vector<16xf32> to vector<16x1xf32>
      %58 = tpu.reciprocal %57 {approx = true} : vector<16x1xf32> -> vector<16x1xf32>
      %59 = vector.broadcast %58 : vector<16x1xf32> to vector<16x16xf32>
      %60 = arith.mulf %55, %59 : vector<16x16xf32>
      %61 = vector.extract_strided_slice %22 {offsets = [0, 16], sizes = [16, 16], strides = [1, 1]} : vector<16x128xf32> to vector<16x16xf32>
      %cst_29 = arith.constant dense<0.000000e+00> : vector<16x16xf32>
      %62 = tpu.matmul %60, %61, %cst_29 {dimension_numbers = #tpu.dot_dimension_numbers<[1], [0], [0], [1], [0, 0, 1, 1], [], []>} : vector<16x16xf32>, vector<16x16xf32>, vector<16x16xf32> -> vector<16x16xf32>
      %63 = vector.extract_strided_slice %20 {offsets = [0, 32], sizes = [16, 16], strides = [1, 1]} : vector<16x128xf32> to vector<16x16xf32>
      %64 = vector.extract_strided_slice %21 {offsets = [0, 32], sizes = [16, 16], strides = [1, 1]} : vector<16x128xf32> to vector<16x16xf32>
      %cst_30 = arith.constant dense<0.000000e+00> : vector<16x16xf32>
      %65 = tpu.matmul %63, %64, %cst_30 {dimension_numbers = #tpu.dot_dimension_numbers<[1], [1], [0], [0], [0, 0, 1, 0], [], []>} : vector<16x16xf32>, vector<16x16xf32>, vector<16x16xf32> -> vector<16x16xf32>
      %cst_31 = arith.constant 2.500000e-01 : f32
      %66 = vector.broadcast %cst_31 : f32 to vector<16x16xf32>
      %67 = arith.mulf %65, %66 : vector<16x16xf32>
      %68 = arith.addf %67, %0 : vector<16x16xf32>
      %cst_32 = arith.constant dense<0xFF800000> : vector<16xf32>
      %69 = vector.multi_reduction <maximumf>, %68, %cst_32 [1] : vector<16x16xf32> to vector<16xf32>
      %70 = vector.shape_cast %69 : vector<16xf32> to vector<16x1xf32>
      %71 = vector.broadcast %70 : vector<16x1xf32> to vector<16x16xf32>
      %72 = arith.subf %68, %71 : vector<16x16xf32>
      %73 = math.exp %72 : vector<16x16xf32>
      %cst_33 = arith.constant dense<0.000000e+00> : vector<16xf32>
      %74 = vector.multi_reduction <add>, %73, %cst_33 [1] : vector<16x16xf32> to vector<16xf32>
      %75 = vector.shape_cast %74 : vector<16xf32> to vector<16x1xf32>
      %76 = tpu.reciprocal %75 {approx = true} : vector<16x1xf32> -> vector<16x1xf32>
      %77 = vector.broadcast %76 : vector<16x1xf32> to vector<16x16xf32>
      %78 = arith.mulf %73, %77 : vector<16x16xf32>
      %79 = vector.extract_strided_slice %22 {offsets = [0, 32], sizes = [16, 16], strides = [1, 1]} : vector<16x128xf32> to vector<16x16xf32>
      %cst_34 = arith.constant dense<0.000000e+00> : vector<16x16xf32>
      %80 = tpu.matmul %78, %79, %cst_34 {dimension_numbers = #tpu.dot_dimension_numbers<[1], [0], [0], [1], [0, 0, 1, 1], [], []>} : vector<16x16xf32>, vector<16x16xf32>, vector<16x16xf32> -> vector<16x16xf32>
      %81 = vector.extract_strided_slice %20 {offsets = [0, 48], sizes = [16, 16], strides = [1, 1]} : vector<16x128xf32> to vector<16x16xf32>
      %82 = vector.extract_strided_slice %21 {offsets = [0, 48], sizes = [16, 16], strides = [1, 1]} : vector<16x128xf32> to vector<16x16xf32>
      %cst_35 = arith.constant dense<0.000000e+00> : vector<16x16xf32>
      %83 = tpu.matmul %81, %82, %cst_35 {dimension_numbers = #tpu.dot_dimension_numbers<[1], [1], [0], [0], [0, 0, 1, 0], [], []>} : vector<16x16xf32>, vector<16x16xf32>, vector<16x16xf32> -> vector<16x16xf32>
      %cst_36 = arith.constant 2.500000e-01 : f32
      %84 = vector.broadcast %cst_36 : f32 to vector<16x16xf32>
      %85 = arith.mulf %83, %84 : vector<16x16xf32>
      %86 = arith.addf %85, %0 : vector<16x16xf32>
      %cst_37 = arith.constant dense<0xFF800000> : vector<16xf32>
      %87 = vector.multi_reduction <maximumf>, %86, %cst_37 [1] : vector<16x16xf32> to vector<16xf32>
      %88 = vector.shape_cast %87 : vector<16xf32> to vector<16x1xf32>
      %89 = vector.broadcast %88 : vector<16x1xf32> to vector<16x16xf32>
      %90 = arith.subf %86, %89 : vector<16x16xf32>
      %91 = math.exp %90 : vector<16x16xf32>
      %cst_38 = arith.constant dense<0.000000e+00> : vector<16xf32>
      %92 = vector.multi_reduction <add>, %91, %cst_38 [1] : vector<16x16xf32> to vector<16xf32>
      %93 = vector.shape_cast %92 : vector<16xf32> to vector<16x1xf32>
      %94 = tpu.reciprocal %93 {approx = true} : vector<16x1xf32> -> vector<16x1xf32>
      %95 = vector.broadcast %94 : vector<16x1xf32> to vector<16x16xf32>
      %96 = arith.mulf %91, %95 : vector<16x16xf32>
      %97 = vector.extract_strided_slice %22 {offsets = [0, 48], sizes = [16, 16], strides = [1, 1]} : vector<16x128xf32> to vector<16x16xf32>
      %cst_39 = arith.constant dense<0.000000e+00> : vector<16x16xf32>
      %98 = tpu.matmul %96, %97, %cst_39 {dimension_numbers = #tpu.dot_dimension_numbers<[1], [0], [0], [1], [0, 0, 1, 1], [], []>} : vector<16x16xf32>, vector<16x16xf32>, vector<16x16xf32> -> vector<16x16xf32>
      %99 = vector.extract_strided_slice %20 {offsets = [0, 64], sizes = [16, 16], strides = [1, 1]} : vector<16x128xf32> to vector<16x16xf32>
      %100 = vector.extract_strided_slice %21 {offsets = [0, 64], sizes = [16, 16], strides = [1, 1]} : vector<16x128xf32> to vector<16x16xf32>
      %cst_40 = arith.constant dense<0.000000e+00> : vector<16x16xf32>
      %101 = tpu.matmul %99, %100, %cst_40 {dimension_numbers = #tpu.dot_dimension_numbers<[1], [1], [0], [0], [0, 0, 1, 0], [], []>} : vector<16x16xf32>, vector<16x16xf32>, vector<16x16xf32> -> vector<16x16xf32>
      %cst_41 = arith.constant 2.500000e-01 : f32
      %102 = vector.broadcast %cst_41 : f32 to vector<16x16xf32>
      %103 = arith.mulf %101, %102 : vector<16x16xf32>
      %104 = arith.addf %103, %0 : vector<16x16xf32>
      %cst_42 = arith.constant dense<0xFF800000> : vector<16xf32>
      %105 = vector.multi_reduction <maximumf>, %104, %cst_42 [1] : vector<16x16xf32> to vector<16xf32>
      %106 = vector.shape_cast %105 : vector<16xf32> to vector<16x1xf32>
      %107 = vector.broadcast %106 : vector<16x1xf32> to vector<16x16xf32>
      %108 = arith.subf %104, %107 : vector<16x16xf32>
      %109 = math.exp %108 : vector<16x16xf32>
      %cst_43 = arith.constant dense<0.000000e+00> : vector<16xf32>
      %110 = vector.multi_reduction <add>, %109, %cst_43 [1] : vector<16x16xf32> to vector<16xf32>
      %111 = vector.shape_cast %110 : vector<16xf32> to vector<16x1xf32>
      %112 = tpu.reciprocal %111 {approx = true} : vector<16x1xf32> -> vector<16x1xf32>
      %113 = vector.broadcast %112 : vector<16x1xf32> to vector<16x16xf32>
      %114 = arith.mulf %109, %113 : vector<16x16xf32>
      %115 = vector.extract_strided_slice %22 {offsets = [0, 64], sizes = [16, 16], strides = [1, 1]} : vector<16x128xf32> to vector<16x16xf32>
      %cst_44 = arith.constant dense<0.000000e+00> : vector<16x16xf32>
      %116 = tpu.matmul %114, %115, %cst_44 {dimension_numbers = #tpu.dot_dimension_numbers<[1], [0], [0], [1], [0, 0, 1, 1], [], []>} : vector<16x16xf32>, vector<16x16xf32>, vector<16x16xf32> -> vector<16x16xf32>
      %117 = vector.extract_strided_slice %20 {offsets = [0, 80], sizes = [16, 16], strides = [1, 1]} : vector<16x128xf32> to vector<16x16xf32>
      %118 = vector.extract_strided_slice %21 {offsets = [0, 80], sizes = [16, 16], strides = [1, 1]} : vector<16x128xf32> to vector<16x16xf32>
      %cst_45 = arith.constant dense<0.000000e+00> : vector<16x16xf32>
      %119 = tpu.matmul %117, %118, %cst_45 {dimension_numbers = #tpu.dot_dimension_numbers<[1], [1], [0], [0], [0, 0, 1, 0], [], []>} : vector<16x16xf32>, vector<16x16xf32>, vector<16x16xf32> -> vector<16x16xf32>
      %cst_46 = arith.constant 2.500000e-01 : f32
      %120 = vector.broadcast %cst_46 : f32 to vector<16x16xf32>
      %121 = arith.mulf %119, %120 : vector<16x16xf32>
      %122 = arith.addf %121, %0 : vector<16x16xf32>
      %cst_47 = arith.constant dense<0xFF800000> : vector<16xf32>
      %123 = vector.multi_reduction <maximumf>, %122, %cst_47 [1] : vector<16x16xf32> to vector<16xf32>
      %124 = vector.shape_cast %123 : vector<16xf32> to vector<16x1xf32>
      %125 = vector.broadcast %124 : vector<16x1xf32> to vector<16x16xf32>
      %126 = arith.subf %122, %125 : vector<16x16xf32>
      %127 = math.exp %126 : vector<16x16xf32>
      %cst_48 = arith.constant dense<0.000000e+00> : vector<16xf32>
      %128 = vector.multi_reduction <add>, %127, %cst_48 [1] : vector<16x16xf32> to vector<16xf32>
      %129 = vector.shape_cast %128 : vector<16xf32> to vector<16x1xf32>
      %130 = tpu.reciprocal %129 {approx = true} : vector<16x1xf32> -> vector<16x1xf32>
      %131 = vector.broadcast %130 : vector<16x1xf32> to vector<16x16xf32>
      %132 = arith.mulf %127, %131 : vector<16x16xf32>
      %133 = vector.extract_strided_slice %22 {offsets = [0, 80], sizes = [16, 16], strides = [1, 1]} : vector<16x128xf32> to vector<16x16xf32>
      %cst_49 = arith.constant dense<0.000000e+00> : vector<16x16xf32>
      %134 = tpu.matmul %132, %133, %cst_49 {dimension_numbers = #tpu.dot_dimension_numbers<[1], [0], [0], [1], [0, 0, 1, 1], [], []>} : vector<16x16xf32>, vector<16x16xf32>, vector<16x16xf32> -> vector<16x16xf32>
      %135 = vector.extract_strided_slice %20 {offsets = [0, 96], sizes = [16, 16], strides = [1, 1]} : vector<16x128xf32> to vector<16x16xf32>
      %136 = vector.extract_strided_slice %21 {offsets = [0, 96], sizes = [16, 16], strides = [1, 1]} : vector<16x128xf32> to vector<16x16xf32>
      %cst_50 = arith.constant dense<0.000000e+00> : vector<16x16xf32>
      %137 = tpu.matmul %135, %136, %cst_50 {dimension_numbers = #tpu.dot_dimension_numbers<[1], [1], [0], [0], [0, 0, 1, 0], [], []>} : vector<16x16xf32>, vector<16x16xf32>, vector<16x16xf32> -> vector<16x16xf32>
      %cst_51 = arith.constant 2.500000e-01 : f32
      %138 = vector.broadcast %cst_51 : f32 to vector<16x16xf32>
      %139 = arith.mulf %137, %138 : vector<16x16xf32>
      %140 = arith.addf %139, %0 : vector<16x16xf32>
      %cst_52 = arith.constant dense<0xFF800000> : vector<16xf32>
      %141 = vector.multi_reduction <maximumf>, %140, %cst_52 [1] : vector<16x16xf32> to vector<16xf32>
      %142 = vector.shape_cast %141 : vector<16xf32> to vector<16x1xf32>
      %143 = vector.broadcast %142 : vector<16x1xf32> to vector<16x16xf32>
      %144 = arith.subf %140, %143 : vector<16x16xf32>
      %145 = math.exp %144 : vector<16x16xf32>
      %cst_53 = arith.constant dense<0.000000e+00> : vector<16xf32>
      %146 = vector.multi_reduction <add>, %145, %cst_53 [1] : vector<16x16xf32> to vector<16xf32>
      %147 = vector.shape_cast %146 : vector<16xf32> to vector<16x1xf32>
      %148 = tpu.reciprocal %147 {approx = true} : vector<16x1xf32> -> vector<16x1xf32>
      %149 = vector.broadcast %148 : vector<16x1xf32> to vector<16x16xf32>
      %150 = arith.mulf %145, %149 : vector<16x16xf32>
      %151 = vector.extract_strided_slice %22 {offsets = [0, 96], sizes = [16, 16], strides = [1, 1]} : vector<16x128xf32> to vector<16x16xf32>
      %cst_54 = arith.constant dense<0.000000e+00> : vector<16x16xf32>
      %152 = tpu.matmul %150, %151, %cst_54 {dimension_numbers = #tpu.dot_dimension_numbers<[1], [0], [0], [1], [0, 0, 1, 1], [], []>} : vector<16x16xf32>, vector<16x16xf32>, vector<16x16xf32> -> vector<16x16xf32>
      %153 = vector.extract_strided_slice %20 {offsets = [0, 112], sizes = [16, 16], strides = [1, 1]} : vector<16x128xf32> to vector<16x16xf32>
      %154 = vector.extract_strided_slice %21 {offsets = [0, 112], sizes = [16, 16], strides = [1, 1]} : vector<16x128xf32> to vector<16x16xf32>
      %cst_55 = arith.constant dense<0.000000e+00> : vector<16x16xf32>
      %155 = tpu.matmul %153, %154, %cst_55 {dimension_numbers = #tpu.dot_dimension_numbers<[1], [1], [0], [0], [0, 0, 1, 0], [], []>} : vector<16x16xf32>, vector<16x16xf32>, vector<16x16xf32> -> vector<16x16xf32>
      %cst_56 = arith.constant 2.500000e-01 : f32
      %156 = vector.broadcast %cst_56 : f32 to vector<16x16xf32>
      %157 = arith.mulf %155, %156 : vector<16x16xf32>
      %158 = arith.addf %157, %0 : vector<16x16xf32>
      %cst_57 = arith.constant dense<0xFF800000> : vector<16xf32>
      %159 = vector.multi_reduction <maximumf>, %158, %cst_57 [1] : vector<16x16xf32> to vector<16xf32>
      %160 = vector.shape_cast %159 : vector<16xf32> to vector<16x1xf32>
      %161 = vector.broadcast %160 : vector<16x1xf32> to vector<16x16xf32>
      %162 = arith.subf %158, %161 : vector<16x16xf32>
      %163 = math.exp %162 : vector<16x16xf32>
      %cst_58 = arith.constant dense<0.000000e+00> : vector<16xf32>
      %164 = vector.multi_reduction <add>, %163, %cst_58 [1] : vector<16x16xf32> to vector<16xf32>
      %165 = vector.shape_cast %164 : vector<16xf32> to vector<16x1xf32>
      %166 = tpu.reciprocal %165 {approx = true} : vector<16x1xf32> -> vector<16x1xf32>
      %167 = vector.broadcast %166 : vector<16x1xf32> to vector<16x16xf32>
      %168 = arith.mulf %163, %167 : vector<16x16xf32>
      %169 = vector.extract_strided_slice %22 {offsets = [0, 112], sizes = [16, 16], strides = [1, 1]} : vector<16x128xf32> to vector<16x16xf32>
      %cst_59 = arith.constant dense<0.000000e+00> : vector<16x16xf32>
      %170 = tpu.matmul %168, %169, %cst_59 {dimension_numbers = #tpu.dot_dimension_numbers<[1], [0], [0], [1], [0, 0, 1, 1], [], []>} : vector<16x16xf32>, vector<16x16xf32>, vector<16x16xf32> -> vector<16x16xf32>
      %171 = tpu.concatenate %44, %62, %80, %98, %116, %134, %152, %170 in 1 : vector<16x16xf32>, vector<16x16xf32>, vector<16x16xf32>, vector<16x16xf32>, vector<16x16xf32>, vector<16x16xf32>, vector<16x16xf32>, vector<16x16xf32> -> vector<16x128xf32>
      %172 = arith.truncf %171 : vector<16x128xf32> to vector<16x128xbf16>
      %cst_60 = arith.constant dense<0.000000e+00> : vector<16x128xf32>
      %173 = tpu.matmul %172, %24, %cst_60 {dimension_numbers = #tpu.dot_dimension_numbers<[1], [0], [0], [1], [0, 0, 1, 1], [], []>} : vector<16x128xbf16>, vector<128x128xbf16>, vector<16x128xf32> -> vector<16x128xf32>
      %174 = vector.broadcast %26 : vector<1x128xf32> to vector<16x128xf32>
      %175 = arith.addf %173, %174 : vector<16x128xf32>
      %176 = arith.addf %10, %175 : vector<16x128xf32>
      %c0_61 = arith.constant 0 : index
      %c0_62 = arith.constant 0 : index
      %c3200 = arith.constant 3200 : index
      %177 = vector.load %arg9[%c0_61, %c0_62, %c3200] : memref<1x1x3968xf32, #tpu.memory_space<vmem>>, vector<1x1x128xf32>
      %178 = vector.shape_cast %177 : vector<1x1x128xf32> to vector<1x128xf32>
      %c0_63 = arith.constant 0 : index
      %c0_64 = arith.constant 0 : index
      %c3328 = arith.constant 3328 : index
      %179 = vector.load %arg9[%c0_63, %c0_64, %c3328] : memref<1x1x3968xf32, #tpu.memory_space<vmem>>, vector<1x1x128xf32>
      %180 = vector.shape_cast %179 : vector<1x1x128xf32> to vector<1x128xf32>
      %cst_65 = arith.constant dense<0.000000e+00> : vector<16xf32>
      %181 = vector.multi_reduction <add>, %176, %cst_65 [1] : vector<16x128xf32> to vector<16xf32>
      %182 = vector.shape_cast %181 : vector<16xf32> to vector<16x1xf32>
      %cst_66 = arith.constant 1.280000e+02 : f32
      %183 = vector.broadcast %cst_66 : f32 to vector<16x1xf32>
      %184 = arith.divf %182, %183 : vector<16x1xf32>
      %185 = vector.broadcast %184 : vector<16x1xf32> to vector<16x128xf32>
      %186 = arith.subf %176, %185 : vector<16x128xf32>
      %187 = arith.mulf %186, %186 : vector<16x128xf32>
      %cst_67 = arith.constant dense<0.000000e+00> : vector<16xf32>
      %188 = vector.multi_reduction <add>, %187, %cst_67 [1] : vector<16x128xf32> to vector<16xf32>
      %189 = vector.shape_cast %188 : vector<16xf32> to vector<16x1xf32>
      %cst_68 = arith.constant 1.280000e+02 : f32
      %190 = vector.broadcast %cst_68 : f32 to vector<16x1xf32>
      %191 = arith.divf %189, %190 : vector<16x1xf32>
      %cst_69 = arith.constant 9.99999974E-6 : f32
      %192 = vector.broadcast %cst_69 : f32 to vector<16x1xf32>
      %193 = arith.addf %191, %192 : vector<16x1xf32>
      %194 = math.rsqrt %193 : vector<16x1xf32>
      %195 = vector.broadcast %194 : vector<16x1xf32> to vector<16x128xf32>
      %196 = arith.mulf %186, %195 : vector<16x128xf32>
      %197 = vector.broadcast %178 : vector<1x128xf32> to vector<16x128xf32>
      %198 = arith.mulf %196, %197 : vector<16x128xf32>
      %199 = vector.broadcast %180 : vector<1x128xf32> to vector<16x128xf32>
      %200 = arith.addf %198, %199 : vector<16x128xf32>
      %c0_70 = arith.constant 0 : index
      %c0_71 = arith.constant 0 : index
      %c512 = arith.constant 512 : index
      %201 = vector.load %arg7[%c0_70, %c0_71, %c512] : memref<1x128x3072xbf16, #tpu.memory_space<vmem>>, vector<1x128x128xbf16>
      %202 = vector.shape_cast %201 : vector<1x128x128xbf16> to vector<128x128xbf16>
      %c0_72 = arith.constant 0 : index
      %c0_73 = arith.constant 0 : index
      %c512_74 = arith.constant 512 : index
      %203 = vector.load %arg9[%c0_72, %c0_73, %c512_74] : memref<1x1x3968xf32, #tpu.memory_space<vmem>>, vector<1x1x128xf32>
      %204 = vector.shape_cast %203 : vector<1x1x128xf32> to vector<1x128xf32>
      %205 = arith.truncf %200 : vector<16x128xf32> to vector<16x128xbf16>
      %cst_75 = arith.constant dense<0.000000e+00> : vector<16x128xf32>
      %206 = tpu.matmul %205, %202, %cst_75 {dimension_numbers = #tpu.dot_dimension_numbers<[1], [0], [0], [1], [0, 0, 1, 1], [], []>} : vector<16x128xbf16>, vector<128x128xbf16>, vector<16x128xf32> -> vector<16x128xf32>
      %207 = vector.broadcast %204 : vector<1x128xf32> to vector<16x128xf32>
      %208 = arith.addf %206, %207 : vector<16x128xf32>
      %c0_76 = arith.constant 0 : index
      %c0_77 = arith.constant 0 : index
      %c640 = arith.constant 640 : index
      %209 = vector.load %arg7[%c0_76, %c0_77, %c640] : memref<1x128x3072xbf16, #tpu.memory_space<vmem>>, vector<1x128x256xbf16>
      %210 = vector.shape_cast %209 : vector<1x128x256xbf16> to vector<128x256xbf16>
      %c0_78 = arith.constant 0 : index
      %c0_79 = arith.constant 0 : index
      %c640_80 = arith.constant 640 : index
      %211 = vector.load %arg9[%c0_78, %c0_79, %c640_80] : memref<1x1x3968xf32, #tpu.memory_space<vmem>>, vector<1x1x256xf32>
      %212 = vector.shape_cast %211 : vector<1x1x256xf32> to vector<1x256xf32>
      %213 = arith.truncf %11 : vector<16x128xf32> to vector<16x128xbf16>
      %cst_81 = arith.constant dense<0.000000e+00> : vector<16x256xf32>
      %214 = tpu.matmul %213, %210, %cst_81 {dimension_numbers = #tpu.dot_dimension_numbers<[1], [0], [0], [1], [0, 0, 1, 1], [], []>} : vector<16x128xbf16>, vector<128x256xbf16>, vector<16x256xf32> -> vector<16x256xf32>
      %215 = vector.broadcast %212 : vector<1x256xf32> to vector<16x256xf32>
      %216 = arith.addf %214, %215 : vector<16x256xf32>
      %217 = vector.extract_strided_slice %216 {offsets = [0, 0], sizes = [16, 128], strides = [1, 1]} : vector<16x256xf32> to vector<16x128xf32>
      %218 = vector.extract_strided_slice %216 {offsets = [0, 128], sizes = [16, 128], strides = [1, 1]} : vector<16x256xf32> to vector<16x128xf32>
      %c0_82 = arith.constant 0 : index
      %c0_83 = arith.constant 0 : index
      %c896 = arith.constant 896 : index
      %219 = vector.load %arg7[%c0_82, %c0_83, %c896] : memref<1x128x3072xbf16, #tpu.memory_space<vmem>>, vector<1x128x128xbf16>
      %220 = vector.shape_cast %219 : vector<1x128x128xbf16> to vector<128x128xbf16>
      %c0_84 = arith.constant 0 : index
      %c0_85 = arith.constant 0 : index
      %c896_86 = arith.constant 896 : index
      %221 = vector.load %arg9[%c0_84, %c0_85, %c896_86] : memref<1x1x3968xf32, #tpu.memory_space<vmem>>, vector<1x1x128xf32>
      %222 = vector.shape_cast %221 : vector<1x1x128xf32> to vector<1x128xf32>
      %223 = vector.extract_strided_slice %208 {offsets = [0, 0], sizes = [16, 16], strides = [1, 1]} : vector<16x128xf32> to vector<16x16xf32>
      %224 = vector.extract_strided_slice %217 {offsets = [0, 0], sizes = [16, 16], strides = [1, 1]} : vector<16x128xf32> to vector<16x16xf32>
      %cst_87 = arith.constant dense<0.000000e+00> : vector<16x16xf32>
      %225 = tpu.matmul %223, %224, %cst_87 {dimension_numbers = #tpu.dot_dimension_numbers<[1], [1], [0], [0], [0, 0, 1, 0], [], []>} : vector<16x16xf32>, vector<16x16xf32>, vector<16x16xf32> -> vector<16x16xf32>
      %cst_88 = arith.constant 2.500000e-01 : f32
      %226 = vector.broadcast %cst_88 : f32 to vector<16x16xf32>
      %227 = arith.mulf %225, %226 : vector<16x16xf32>
      %228 = arith.addf %227, %0 : vector<16x16xf32>
      %cst_89 = arith.constant dense<0xFF800000> : vector<16xf32>
      %229 = vector.multi_reduction <maximumf>, %228, %cst_89 [1] : vector<16x16xf32> to vector<16xf32>
      %230 = vector.shape_cast %229 : vector<16xf32> to vector<16x1xf32>
      %231 = vector.broadcast %230 : vector<16x1xf32> to vector<16x16xf32>
      %232 = arith.subf %228, %231 : vector<16x16xf32>
      %233 = math.exp %232 : vector<16x16xf32>
      %cst_90 = arith.constant dense<0.000000e+00> : vector<16xf32>
      %234 = vector.multi_reduction <add>, %233, %cst_90 [1] : vector<16x16xf32> to vector<16xf32>
      %235 = vector.shape_cast %234 : vector<16xf32> to vector<16x1xf32>
      %236 = tpu.reciprocal %235 {approx = true} : vector<16x1xf32> -> vector<16x1xf32>
      %237 = vector.broadcast %236 : vector<16x1xf32> to vector<16x16xf32>
      %238 = arith.mulf %233, %237 : vector<16x16xf32>
      %239 = vector.extract_strided_slice %218 {offsets = [0, 0], sizes = [16, 16], strides = [1, 1]} : vector<16x128xf32> to vector<16x16xf32>
      %cst_91 = arith.constant dense<0.000000e+00> : vector<16x16xf32>
      %240 = tpu.matmul %238, %239, %cst_91 {dimension_numbers = #tpu.dot_dimension_numbers<[1], [0], [0], [1], [0, 0, 1, 1], [], []>} : vector<16x16xf32>, vector<16x16xf32>, vector<16x16xf32> -> vector<16x16xf32>
      %241 = vector.extract_strided_slice %208 {offsets = [0, 16], sizes = [16, 16], strides = [1, 1]} : vector<16x128xf32> to vector<16x16xf32>
      %242 = vector.extract_strided_slice %217 {offsets = [0, 16], sizes = [16, 16], strides = [1, 1]} : vector<16x128xf32> to vector<16x16xf32>
      %cst_92 = arith.constant dense<0.000000e+00> : vector<16x16xf32>
      %243 = tpu.matmul %241, %242, %cst_92 {dimension_numbers = #tpu.dot_dimension_numbers<[1], [1], [0], [0], [0, 0, 1, 0], [], []>} : vector<16x16xf32>, vector<16x16xf32>, vector<16x16xf32> -> vector<16x16xf32>
      %cst_93 = arith.constant 2.500000e-01 : f32
      %244 = vector.broadcast %cst_93 : f32 to vector<16x16xf32>
      %245 = arith.mulf %243, %244 : vector<16x16xf32>
      %246 = arith.addf %245, %0 : vector<16x16xf32>
      %cst_94 = arith.constant dense<0xFF800000> : vector<16xf32>
      %247 = vector.multi_reduction <maximumf>, %246, %cst_94 [1] : vector<16x16xf32> to vector<16xf32>
      %248 = vector.shape_cast %247 : vector<16xf32> to vector<16x1xf32>
      %249 = vector.broadcast %248 : vector<16x1xf32> to vector<16x16xf32>
      %250 = arith.subf %246, %249 : vector<16x16xf32>
      %251 = math.exp %250 : vector<16x16xf32>
      %cst_95 = arith.constant dense<0.000000e+00> : vector<16xf32>
      %252 = vector.multi_reduction <add>, %251, %cst_95 [1] : vector<16x16xf32> to vector<16xf32>
      %253 = vector.shape_cast %252 : vector<16xf32> to vector<16x1xf32>
      %254 = tpu.reciprocal %253 {approx = true} : vector<16x1xf32> -> vector<16x1xf32>
      %255 = vector.broadcast %254 : vector<16x1xf32> to vector<16x16xf32>
      %256 = arith.mulf %251, %255 : vector<16x16xf32>
      %257 = vector.extract_strided_slice %218 {offsets = [0, 16], sizes = [16, 16], strides = [1, 1]} : vector<16x128xf32> to vector<16x16xf32>
      %cst_96 = arith.constant dense<0.000000e+00> : vector<16x16xf32>
      %258 = tpu.matmul %256, %257, %cst_96 {dimension_numbers = #tpu.dot_dimension_numbers<[1], [0], [0], [1], [0, 0, 1, 1], [], []>} : vector<16x16xf32>, vector<16x16xf32>, vector<16x16xf32> -> vector<16x16xf32>
      %259 = vector.extract_strided_slice %208 {offsets = [0, 32], sizes = [16, 16], strides = [1, 1]} : vector<16x128xf32> to vector<16x16xf32>
      %260 = vector.extract_strided_slice %217 {offsets = [0, 32], sizes = [16, 16], strides = [1, 1]} : vector<16x128xf32> to vector<16x16xf32>
      %cst_97 = arith.constant dense<0.000000e+00> : vector<16x16xf32>
      %261 = tpu.matmul %259, %260, %cst_97 {dimension_numbers = #tpu.dot_dimension_numbers<[1], [1], [0], [0], [0, 0, 1, 0], [], []>} : vector<16x16xf32>, vector<16x16xf32>, vector<16x16xf32> -> vector<16x16xf32>
      %cst_98 = arith.constant 2.500000e-01 : f32
      %262 = vector.broadcast %cst_98 : f32 to vector<16x16xf32>
      %263 = arith.mulf %261, %262 : vector<16x16xf32>
      %264 = arith.addf %263, %0 : vector<16x16xf32>
      %cst_99 = arith.constant dense<0xFF800000> : vector<16xf32>
      %265 = vector.multi_reduction <maximumf>, %264, %cst_99 [1] : vector<16x16xf32> to vector<16xf32>
      %266 = vector.shape_cast %265 : vector<16xf32> to vector<16x1xf32>
      %267 = vector.broadcast %266 : vector<16x1xf32> to vector<16x16xf32>
      %268 = arith.subf %264, %267 : vector<16x16xf32>
      %269 = math.exp %268 : vector<16x16xf32>
      %cst_100 = arith.constant dense<0.000000e+00> : vector<16xf32>
      %270 = vector.multi_reduction <add>, %269, %cst_100 [1] : vector<16x16xf32> to vector<16xf32>
      %271 = vector.shape_cast %270 : vector<16xf32> to vector<16x1xf32>
      %272 = tpu.reciprocal %271 {approx = true} : vector<16x1xf32> -> vector<16x1xf32>
      %273 = vector.broadcast %272 : vector<16x1xf32> to vector<16x16xf32>
      %274 = arith.mulf %269, %273 : vector<16x16xf32>
      %275 = vector.extract_strided_slice %218 {offsets = [0, 32], sizes = [16, 16], strides = [1, 1]} : vector<16x128xf32> to vector<16x16xf32>
      %cst_101 = arith.constant dense<0.000000e+00> : vector<16x16xf32>
      %276 = tpu.matmul %274, %275, %cst_101 {dimension_numbers = #tpu.dot_dimension_numbers<[1], [0], [0], [1], [0, 0, 1, 1], [], []>} : vector<16x16xf32>, vector<16x16xf32>, vector<16x16xf32> -> vector<16x16xf32>
      %277 = vector.extract_strided_slice %208 {offsets = [0, 48], sizes = [16, 16], strides = [1, 1]} : vector<16x128xf32> to vector<16x16xf32>
      %278 = vector.extract_strided_slice %217 {offsets = [0, 48], sizes = [16, 16], strides = [1, 1]} : vector<16x128xf32> to vector<16x16xf32>
      %cst_102 = arith.constant dense<0.000000e+00> : vector<16x16xf32>
      %279 = tpu.matmul %277, %278, %cst_102 {dimension_numbers = #tpu.dot_dimension_numbers<[1], [1], [0], [0], [0, 0, 1, 0], [], []>} : vector<16x16xf32>, vector<16x16xf32>, vector<16x16xf32> -> vector<16x16xf32>
      %cst_103 = arith.constant 2.500000e-01 : f32
      %280 = vector.broadcast %cst_103 : f32 to vector<16x16xf32>
      %281 = arith.mulf %279, %280 : vector<16x16xf32>
      %282 = arith.addf %281, %0 : vector<16x16xf32>
      %cst_104 = arith.constant dense<0xFF800000> : vector<16xf32>
      %283 = vector.multi_reduction <maximumf>, %282, %cst_104 [1] : vector<16x16xf32> to vector<16xf32>
      %284 = vector.shape_cast %283 : vector<16xf32> to vector<16x1xf32>
      %285 = vector.broadcast %284 : vector<16x1xf32> to vector<16x16xf32>
      %286 = arith.subf %282, %285 : vector<16x16xf32>
      %287 = math.exp %286 : vector<16x16xf32>
      %cst_105 = arith.constant dense<0.000000e+00> : vector<16xf32>
      %288 = vector.multi_reduction <add>, %287, %cst_105 [1] : vector<16x16xf32> to vector<16xf32>
      %289 = vector.shape_cast %288 : vector<16xf32> to vector<16x1xf32>
      %290 = tpu.reciprocal %289 {approx = true} : vector<16x1xf32> -> vector<16x1xf32>
      %291 = vector.broadcast %290 : vector<16x1xf32> to vector<16x16xf32>
      %292 = arith.mulf %287, %291 : vector<16x16xf32>
      %293 = vector.extract_strided_slice %218 {offsets = [0, 48], sizes = [16, 16], strides = [1, 1]} : vector<16x128xf32> to vector<16x16xf32>
      %cst_106 = arith.constant dense<0.000000e+00> : vector<16x16xf32>
      %294 = tpu.matmul %292, %293, %cst_106 {dimension_numbers = #tpu.dot_dimension_numbers<[1], [0], [0], [1], [0, 0, 1, 1], [], []>} : vector<16x16xf32>, vector<16x16xf32>, vector<16x16xf32> -> vector<16x16xf32>
      %295 = vector.extract_strided_slice %208 {offsets = [0, 64], sizes = [16, 16], strides = [1, 1]} : vector<16x128xf32> to vector<16x16xf32>
      %296 = vector.extract_strided_slice %217 {offsets = [0, 64], sizes = [16, 16], strides = [1, 1]} : vector<16x128xf32> to vector<16x16xf32>
      %cst_107 = arith.constant dense<0.000000e+00> : vector<16x16xf32>
      %297 = tpu.matmul %295, %296, %cst_107 {dimension_numbers = #tpu.dot_dimension_numbers<[1], [1], [0], [0], [0, 0, 1, 0], [], []>} : vector<16x16xf32>, vector<16x16xf32>, vector<16x16xf32> -> vector<16x16xf32>
      %cst_108 = arith.constant 2.500000e-01 : f32
      %298 = vector.broadcast %cst_108 : f32 to vector<16x16xf32>
      %299 = arith.mulf %297, %298 : vector<16x16xf32>
      %300 = arith.addf %299, %0 : vector<16x16xf32>
      %cst_109 = arith.constant dense<0xFF800000> : vector<16xf32>
      %301 = vector.multi_reduction <maximumf>, %300, %cst_109 [1] : vector<16x16xf32> to vector<16xf32>
      %302 = vector.shape_cast %301 : vector<16xf32> to vector<16x1xf32>
      %303 = vector.broadcast %302 : vector<16x1xf32> to vector<16x16xf32>
      %304 = arith.subf %300, %303 : vector<16x16xf32>
      %305 = math.exp %304 : vector<16x16xf32>
      %cst_110 = arith.constant dense<0.000000e+00> : vector<16xf32>
      %306 = vector.multi_reduction <add>, %305, %cst_110 [1] : vector<16x16xf32> to vector<16xf32>
      %307 = vector.shape_cast %306 : vector<16xf32> to vector<16x1xf32>
      %308 = tpu.reciprocal %307 {approx = true} : vector<16x1xf32> -> vector<16x1xf32>
      %309 = vector.broadcast %308 : vector<16x1xf32> to vector<16x16xf32>
      %310 = arith.mulf %305, %309 : vector<16x16xf32>
      %311 = vector.extract_strided_slice %218 {offsets = [0, 64], sizes = [16, 16], strides = [1, 1]} : vector<16x128xf32> to vector<16x16xf32>
      %cst_111 = arith.constant dense<0.000000e+00> : vector<16x16xf32>
      %312 = tpu.matmul %310, %311, %cst_111 {dimension_numbers = #tpu.dot_dimension_numbers<[1], [0], [0], [1], [0, 0, 1, 1], [], []>} : vector<16x16xf32>, vector<16x16xf32>, vector<16x16xf32> -> vector<16x16xf32>
      %313 = vector.extract_strided_slice %208 {offsets = [0, 80], sizes = [16, 16], strides = [1, 1]} : vector<16x128xf32> to vector<16x16xf32>
      %314 = vector.extract_strided_slice %217 {offsets = [0, 80], sizes = [16, 16], strides = [1, 1]} : vector<16x128xf32> to vector<16x16xf32>
      %cst_112 = arith.constant dense<0.000000e+00> : vector<16x16xf32>
      %315 = tpu.matmul %313, %314, %cst_112 {dimension_numbers = #tpu.dot_dimension_numbers<[1], [1], [0], [0], [0, 0, 1, 0], [], []>} : vector<16x16xf32>, vector<16x16xf32>, vector<16x16xf32> -> vector<16x16xf32>
      %cst_113 = arith.constant 2.500000e-01 : f32
      %316 = vector.broadcast %cst_113 : f32 to vector<16x16xf32>
      %317 = arith.mulf %315, %316 : vector<16x16xf32>
      %318 = arith.addf %317, %0 : vector<16x16xf32>
      %cst_114 = arith.constant dense<0xFF800000> : vector<16xf32>
      %319 = vector.multi_reduction <maximumf>, %318, %cst_114 [1] : vector<16x16xf32> to vector<16xf32>
      %320 = vector.shape_cast %319 : vector<16xf32> to vector<16x1xf32>
      %321 = vector.broadcast %320 : vector<16x1xf32> to vector<16x16xf32>
      %322 = arith.subf %318, %321 : vector<16x16xf32>
      %323 = math.exp %322 : vector<16x16xf32>
      %cst_115 = arith.constant dense<0.000000e+00> : vector<16xf32>
      %324 = vector.multi_reduction <add>, %323, %cst_115 [1] : vector<16x16xf32> to vector<16xf32>
      %325 = vector.shape_cast %324 : vector<16xf32> to vector<16x1xf32>
      %326 = tpu.reciprocal %325 {approx = true} : vector<16x1xf32> -> vector<16x1xf32>
      %327 = vector.broadcast %326 : vector<16x1xf32> to vector<16x16xf32>
      %328 = arith.mulf %323, %327 : vector<16x16xf32>
      %329 = vector.extract_strided_slice %218 {offsets = [0, 80], sizes = [16, 16], strides = [1, 1]} : vector<16x128xf32> to vector<16x16xf32>
      %cst_116 = arith.constant dense<0.000000e+00> : vector<16x16xf32>
      %330 = tpu.matmul %328, %329, %cst_116 {dimension_numbers = #tpu.dot_dimension_numbers<[1], [0], [0], [1], [0, 0, 1, 1], [], []>} : vector<16x16xf32>, vector<16x16xf32>, vector<16x16xf32> -> vector<16x16xf32>
      %331 = vector.extract_strided_slice %208 {offsets = [0, 96], sizes = [16, 16], strides = [1, 1]} : vector<16x128xf32> to vector<16x16xf32>
      %332 = vector.extract_strided_slice %217 {offsets = [0, 96], sizes = [16, 16], strides = [1, 1]} : vector<16x128xf32> to vector<16x16xf32>
      %cst_117 = arith.constant dense<0.000000e+00> : vector<16x16xf32>
      %333 = tpu.matmul %331, %332, %cst_117 {dimension_numbers = #tpu.dot_dimension_numbers<[1], [1], [0], [0], [0, 0, 1, 0], [], []>} : vector<16x16xf32>, vector<16x16xf32>, vector<16x16xf32> -> vector<16x16xf32>
      %cst_118 = arith.constant 2.500000e-01 : f32
      %334 = vector.broadcast %cst_118 : f32 to vector<16x16xf32>
      %335 = arith.mulf %333, %334 : vector<16x16xf32>
      %336 = arith.addf %335, %0 : vector<16x16xf32>
      %cst_119 = arith.constant dense<0xFF800000> : vector<16xf32>
      %337 = vector.multi_reduction <maximumf>, %336, %cst_119 [1] : vector<16x16xf32> to vector<16xf32>
      %338 = vector.shape_cast %337 : vector<16xf32> to vector<16x1xf32>
      %339 = vector.broadcast %338 : vector<16x1xf32> to vector<16x16xf32>
      %340 = arith.subf %336, %339 : vector<16x16xf32>
      %341 = math.exp %340 : vector<16x16xf32>
      %cst_120 = arith.constant dense<0.000000e+00> : vector<16xf32>
      %342 = vector.multi_reduction <add>, %341, %cst_120 [1] : vector<16x16xf32> to vector<16xf32>
      %343 = vector.shape_cast %342 : vector<16xf32> to vector<16x1xf32>
      %344 = tpu.reciprocal %343 {approx = true} : vector<16x1xf32> -> vector<16x1xf32>
      %345 = vector.broadcast %344 : vector<16x1xf32> to vector<16x16xf32>
      %346 = arith.mulf %341, %345 : vector<16x16xf32>
      %347 = vector.extract_strided_slice %218 {offsets = [0, 96], sizes = [16, 16], strides = [1, 1]} : vector<16x128xf32> to vector<16x16xf32>
      %cst_121 = arith.constant dense<0.000000e+00> : vector<16x16xf32>
      %348 = tpu.matmul %346, %347, %cst_121 {dimension_numbers = #tpu.dot_dimension_numbers<[1], [0], [0], [1], [0, 0, 1, 1], [], []>} : vector<16x16xf32>, vector<16x16xf32>, vector<16x16xf32> -> vector<16x16xf32>
      %349 = vector.extract_strided_slice %208 {offsets = [0, 112], sizes = [16, 16], strides = [1, 1]} : vector<16x128xf32> to vector<16x16xf32>
      %350 = vector.extract_strided_slice %217 {offsets = [0, 112], sizes = [16, 16], strides = [1, 1]} : vector<16x128xf32> to vector<16x16xf32>
      %cst_122 = arith.constant dense<0.000000e+00> : vector<16x16xf32>
      %351 = tpu.matmul %349, %350, %cst_122 {dimension_numbers = #tpu.dot_dimension_numbers<[1], [1], [0], [0], [0, 0, 1, 0], [], []>} : vector<16x16xf32>, vector<16x16xf32>, vector<16x16xf32> -> vector<16x16xf32>
      %cst_123 = arith.constant 2.500000e-01 : f32
      %352 = vector.broadcast %cst_123 : f32 to vector<16x16xf32>
      %353 = arith.mulf %351, %352 : vector<16x16xf32>
      %354 = arith.addf %353, %0 : vector<16x16xf32>
      %cst_124 = arith.constant dense<0xFF800000> : vector<16xf32>
      %355 = vector.multi_reduction <maximumf>, %354, %cst_124 [1] : vector<16x16xf32> to vector<16xf32>
      %356 = vector.shape_cast %355 : vector<16xf32> to vector<16x1xf32>
      %357 = vector.broadcast %356 : vector<16x1xf32> to vector<16x16xf32>
      %358 = arith.subf %354, %357 : vector<16x16xf32>
      %359 = math.exp %358 : vector<16x16xf32>
      %cst_125 = arith.constant dense<0.000000e+00> : vector<16xf32>
      %360 = vector.multi_reduction <add>, %359, %cst_125 [1] : vector<16x16xf32> to vector<16xf32>
      %361 = vector.shape_cast %360 : vector<16xf32> to vector<16x1xf32>
      %362 = tpu.reciprocal %361 {approx = true} : vector<16x1xf32> -> vector<16x1xf32>
      %363 = vector.broadcast %362 : vector<16x1xf32> to vector<16x16xf32>
      %364 = arith.mulf %359, %363 : vector<16x16xf32>
      %365 = vector.extract_strided_slice %218 {offsets = [0, 112], sizes = [16, 16], strides = [1, 1]} : vector<16x128xf32> to vector<16x16xf32>
      %cst_126 = arith.constant dense<0.000000e+00> : vector<16x16xf32>
      %366 = tpu.matmul %364, %365, %cst_126 {dimension_numbers = #tpu.dot_dimension_numbers<[1], [0], [0], [1], [0, 0, 1, 1], [], []>} : vector<16x16xf32>, vector<16x16xf32>, vector<16x16xf32> -> vector<16x16xf32>
      %367 = tpu.concatenate %240, %258, %276, %294, %312, %330, %348, %366 in 1 : vector<16x16xf32>, vector<16x16xf32>, vector<16x16xf32>, vector<16x16xf32>, vector<16x16xf32>, vector<16x16xf32>, vector<16x16xf32>, vector<16x16xf32> -> vector<16x128xf32>
      %368 = arith.truncf %367 : vector<16x128xf32> to vector<16x128xbf16>
      %cst_127 = arith.constant dense<0.000000e+00> : vector<16x128xf32>
      %369 = tpu.matmul %368, %220, %cst_127 {dimension_numbers = #tpu.dot_dimension_numbers<[1], [0], [0], [1], [0, 0, 1, 1], [], []>} : vector<16x128xbf16>, vector<128x128xbf16>, vector<16x128xf32> -> vector<16x128xf32>
      %370 = vector.broadcast %222 : vector<1x128xf32> to vector<16x128xf32>
      %371 = arith.addf %369, %370 : vector<16x128xf32>
      %372 = arith.addf %200, %371 : vector<16x128xf32>
      %c0_128 = arith.constant 0 : index
      %c0_129 = arith.constant 0 : index
      %c3456 = arith.constant 3456 : index
      %373 = vector.load %arg9[%c0_128, %c0_129, %c3456] : memref<1x1x3968xf32, #tpu.memory_space<vmem>>, vector<1x1x128xf32>
      %374 = vector.shape_cast %373 : vector<1x1x128xf32> to vector<1x128xf32>
      %c0_130 = arith.constant 0 : index
      %c0_131 = arith.constant 0 : index
      %c3584 = arith.constant 3584 : index
      %375 = vector.load %arg9[%c0_130, %c0_131, %c3584] : memref<1x1x3968xf32, #tpu.memory_space<vmem>>, vector<1x1x128xf32>
      %376 = vector.shape_cast %375 : vector<1x1x128xf32> to vector<1x128xf32>
      %cst_132 = arith.constant dense<0.000000e+00> : vector<16xf32>
      %377 = vector.multi_reduction <add>, %372, %cst_132 [1] : vector<16x128xf32> to vector<16xf32>
      %378 = vector.shape_cast %377 : vector<16xf32> to vector<16x1xf32>
      %cst_133 = arith.constant 1.280000e+02 : f32
      %379 = vector.broadcast %cst_133 : f32 to vector<16x1xf32>
      %380 = arith.divf %378, %379 : vector<16x1xf32>
      %381 = vector.broadcast %380 : vector<16x1xf32> to vector<16x128xf32>
      %382 = arith.subf %372, %381 : vector<16x128xf32>
      %383 = arith.mulf %382, %382 : vector<16x128xf32>
      %cst_134 = arith.constant dense<0.000000e+00> : vector<16xf32>
      %384 = vector.multi_reduction <add>, %383, %cst_134 [1] : vector<16x128xf32> to vector<16xf32>
      %385 = vector.shape_cast %384 : vector<16xf32> to vector<16x1xf32>
      %cst_135 = arith.constant 1.280000e+02 : f32
      %386 = vector.broadcast %cst_135 : f32 to vector<16x1xf32>
      %387 = arith.divf %385, %386 : vector<16x1xf32>
      %cst_136 = arith.constant 9.99999974E-6 : f32
      %388 = vector.broadcast %cst_136 : f32 to vector<16x1xf32>
      %389 = arith.addf %387, %388 : vector<16x1xf32>
      %390 = math.rsqrt %389 : vector<16x1xf32>
      %391 = vector.broadcast %390 : vector<16x1xf32> to vector<16x128xf32>
      %392 = arith.mulf %382, %391 : vector<16x128xf32>
      %393 = vector.broadcast %374 : vector<1x128xf32> to vector<16x128xf32>
      %394 = arith.mulf %392, %393 : vector<16x128xf32>
      %395 = vector.broadcast %376 : vector<1x128xf32> to vector<16x128xf32>
      %396 = arith.addf %394, %395 : vector<16x128xf32>
      %c0_137 = arith.constant 0 : index
      %c0_138 = arith.constant 0 : index
      %c1024 = arith.constant 1024 : index
      %397 = vector.load %arg7[%c0_137, %c0_138, %c1024] : memref<1x128x3072xbf16, #tpu.memory_space<vmem>>, vector<1x128x2048xbf16>
      %398 = vector.shape_cast %397 : vector<1x128x2048xbf16> to vector<128x2048xbf16>
      %c0_139 = arith.constant 0 : index
      %c0_140 = arith.constant 0 : index
      %c1024_141 = arith.constant 1024 : index
      %399 = vector.load %arg9[%c0_139, %c0_140, %c1024_141] : memref<1x1x3968xf32, #tpu.memory_space<vmem>>, vector<1x1x2048xf32>
      %400 = vector.shape_cast %399 : vector<1x1x2048xf32> to vector<1x2048xf32>
      %401 = arith.truncf %396 : vector<16x128xf32> to vector<16x128xbf16>
      %cst_142 = arith.constant dense<0.000000e+00> : vector<16x2048xf32>
      %402 = tpu.matmul %401, %398, %cst_142 {dimension_numbers = #tpu.dot_dimension_numbers<[1], [0], [0], [1], [0, 0, 1, 1], [], []>} : vector<16x128xbf16>, vector<128x2048xbf16>, vector<16x2048xf32> -> vector<16x2048xf32>
      %403 = vector.broadcast %400 : vector<1x2048xf32> to vector<16x2048xf32>
      %404 = arith.addf %402, %403 : vector<16x2048xf32>
      %cst_143 = arith.constant 0.000000e+00 : f32
      %405 = vector.broadcast %cst_143 : f32 to vector<16x2048xf32>
      %406 = arith.maximumf %404, %405 : vector<16x2048xf32>
      %c0_144 = arith.constant 0 : index
      %c0_145 = arith.constant 0 : index
      %c0_146 = arith.constant 0 : index
      %407 = vector.load %arg8[%c0_144, %c0_145, %c0_146] : memref<1x2048x128xbf16, #tpu.memory_space<vmem>>, vector<1x2048x128xbf16>
      %408 = vector.shape_cast %407 : vector<1x2048x128xbf16> to vector<2048x128xbf16>
      %c0_147 = arith.constant 0 : index
      %c0_148 = arith.constant 0 : index
      %c3072 = arith.constant 3072 : index
      %409 = vector.load %arg9[%c0_147, %c0_148, %c3072] : memref<1x1x3968xf32, #tpu.memory_space<vmem>>, vector<1x1x128xf32>
      %410 = vector.shape_cast %409 : vector<1x1x128xf32> to vector<1x128xf32>
      %411 = arith.truncf %406 : vector<16x2048xf32> to vector<16x2048xbf16>
      %cst_149 = arith.constant dense<0.000000e+00> : vector<16x128xf32>
      %412 = tpu.matmul %411, %408, %cst_149 {dimension_numbers = #tpu.dot_dimension_numbers<[1], [0], [0], [1], [0, 0, 1, 1], [], []>} : vector<16x2048xbf16>, vector<2048x128xbf16>, vector<16x128xf32> -> vector<16x128xf32>
      %413 = vector.broadcast %410 : vector<1x128xf32> to vector<16x128xf32>
      %414 = arith.addf %412, %413 : vector<16x128xf32>
      %415 = arith.addf %396, %414 : vector<16x128xf32>
      %c0_150 = arith.constant 0 : index
      %c0_151 = arith.constant 0 : index
      %c3712 = arith.constant 3712 : index
      %416 = vector.load %arg9[%c0_150, %c0_151, %c3712] : memref<1x1x3968xf32, #tpu.memory_space<vmem>>, vector<1x1x128xf32>
      %417 = vector.shape_cast %416 : vector<1x1x128xf32> to vector<1x128xf32>
      %c0_152 = arith.constant 0 : index
      %c0_153 = arith.constant 0 : index
      %c3840 = arith.constant 3840 : index
      %418 = vector.load %arg9[%c0_152, %c0_153, %c3840] : memref<1x1x3968xf32, #tpu.memory_space<vmem>>, vector<1x1x128xf32>
      %419 = vector.shape_cast %418 : vector<1x1x128xf32> to vector<1x128xf32>
      %cst_154 = arith.constant dense<0.000000e+00> : vector<16xf32>
      %420 = vector.multi_reduction <add>, %415, %cst_154 [1] : vector<16x128xf32> to vector<16xf32>
      %421 = vector.shape_cast %420 : vector<16xf32> to vector<16x1xf32>
      %cst_155 = arith.constant 1.280000e+02 : f32
      %422 = vector.broadcast %cst_155 : f32 to vector<16x1xf32>
      %423 = arith.divf %421, %422 : vector<16x1xf32>
      %424 = vector.broadcast %423 : vector<16x1xf32> to vector<16x128xf32>
      %425 = arith.subf %415, %424 : vector<16x128xf32>
      %426 = arith.mulf %425, %425 : vector<16x128xf32>
      %cst_156 = arith.constant dense<0.000000e+00> : vector<16xf32>
      %427 = vector.multi_reduction <add>, %426, %cst_156 [1] : vector<16x128xf32> to vector<16xf32>
      %428 = vector.shape_cast %427 : vector<16xf32> to vector<16x1xf32>
      %cst_157 = arith.constant 1.280000e+02 : f32
      %429 = vector.broadcast %cst_157 : f32 to vector<16x1xf32>
      %430 = arith.divf %428, %429 : vector<16x1xf32>
      %cst_158 = arith.constant 9.99999974E-6 : f32
      %431 = vector.broadcast %cst_158 : f32 to vector<16x1xf32>
      %432 = arith.addf %430, %431 : vector<16x1xf32>
      %433 = math.rsqrt %432 : vector<16x1xf32>
      %434 = vector.broadcast %433 : vector<16x1xf32> to vector<16x128xf32>
      %435 = arith.mulf %425, %434 : vector<16x128xf32>
      %436 = vector.broadcast %417 : vector<1x128xf32> to vector<16x128xf32>
      %437 = arith.mulf %435, %436 : vector<16x128xf32>
      %438 = vector.broadcast %419 : vector<1x128xf32> to vector<16x128xf32>
      %439 = arith.addf %437, %438 : vector<16x128xf32>
      %c0_159 = arith.constant 0 : index
      %c0_160 = arith.constant 0 : index
      %440 = vector.load %arg12[%c0_159, %c0_160] : memref<16x128xf32, #tpu.memory_space<vmem>>, vector<16x128xf32>
      tpu.vector_store %arg12[%c0_159, %c0_160], %439 {strides = array<i32>} : memref<16x128xf32, #tpu.memory_space<vmem>>, vector<16x128xf32>,
      %c9_i32 = arith.constant 9 : i32
      %441 = arith.cmpi eq, %arg0, %c9_i32 : i32
      %442 = arith.extui %441 : i1 to i32
      %c0_i32_161 = arith.constant 0 : i32
      %443 = arith.cmpi ne, %442, %c0_i32_161 : i32
      scf.if %443 {
        %c0_162 = arith.constant 0 : index
        %c256 = arith.constant 256 : index
        %444 = vector.load %arg10[%c0_162, %c256] : memref<1x768xf32, #tpu.memory_space<vmem>>, vector<1x128xf32>
        %c0_163 = arith.constant 0 : index
        %c384_164 = arith.constant 384 : index
        %445 = vector.load %arg10[%c0_163, %c384_164] : memref<1x768xf32, #tpu.memory_space<vmem>>, vector<1x128xf32>
        %cst_165 = arith.constant dense<0.000000e+00> : vector<16xf32>
        %446 = vector.multi_reduction <add>, %439, %cst_165 [1] : vector<16x128xf32> to vector<16xf32>
        %447 = vector.shape_cast %446 : vector<16xf32> to vector<16x1xf32>
        %cst_166 = arith.constant 1.280000e+02 : f32
        %448 = vector.broadcast %cst_166 : f32 to vector<16x1xf32>
        %449 = arith.divf %447, %448 : vector<16x1xf32>
        %450 = vector.broadcast %449 : vector<16x1xf32> to vector<16x128xf32>
        %451 = arith.subf %439, %450 : vector<16x128xf32>
        %452 = arith.mulf %451, %451 : vector<16x128xf32>
        %cst_167 = arith.constant dense<0.000000e+00> : vector<16xf32>
        %453 = vector.multi_reduction <add>, %452, %cst_167 [1] : vector<16x128xf32> to vector<16xf32>
        %454 = vector.shape_cast %453 : vector<16xf32> to vector<16x1xf32>
        %cst_168 = arith.constant 1.280000e+02 : f32
        %455 = vector.broadcast %cst_168 : f32 to vector<16x1xf32>
        %456 = arith.divf %454, %455 : vector<16x1xf32>
        %cst_169 = arith.constant 9.99999974E-6 : f32
        %457 = vector.broadcast %cst_169 : f32 to vector<16x1xf32>
        %458 = arith.addf %456, %457 : vector<16x1xf32>
        %459 = math.rsqrt %458 : vector<16x1xf32>
        %460 = vector.broadcast %459 : vector<16x1xf32> to vector<16x128xf32>
        %461 = arith.mulf %451, %460 : vector<16x128xf32>
        %462 = vector.broadcast %444 : vector<1x128xf32> to vector<16x128xf32>
        %463 = arith.mulf %461, %462 : vector<16x128xf32>
        %464 = vector.broadcast %445 : vector<1x128xf32> to vector<16x128xf32>
        %465 = arith.addf %463, %464 : vector<16x128xf32>
        %c0_170 = arith.constant 0 : index
        %c512_171 = arith.constant 512 : index
        %466 = vector.load %arg10[%c0_170, %c512_171] : memref<1x768xf32, #tpu.memory_space<vmem>>, vector<1x128xf32>
        %467 = vector.broadcast %466 : vector<1x128xf32> to vector<16x128xf32>
        %468 = arith.mulf %465, %467 : vector<16x128xf32>
        %cst_172 = arith.constant dense<0.000000e+00> : vector<16xf32>
        %469 = vector.multi_reduction <add>, %468, %cst_172 [1] : vector<16x128xf32> to vector<16xf32>
        %470 = vector.shape_cast %469 : vector<16xf32> to vector<16x1xf32>
        %c0_173 = arith.constant 0 : index
        %c640_174 = arith.constant 640 : index
        %471 = vector.load %arg10[%c0_173, %c640_174] : memref<1x768xf32, #tpu.memory_space<vmem>>, vector<1x128xf32>
        %472 = vector.broadcast %470 : vector<16x1xf32> to vector<16x128xf32>
        %473 = vector.broadcast %471 : vector<1x128xf32> to vector<16x128xf32>
        %474 = arith.addf %472, %473 : vector<16x128xf32>
        %475 = arith.negf %474 : vector<16x128xf32>
        %476 = math.exp %475 : vector<16x128xf32>
        %cst_175 = arith.constant 1.000000e+00 : f32
        %477 = vector.broadcast %cst_175 : f32 to vector<16x128xf32>
        %478 = arith.addf %477, %476 : vector<16x128xf32>
        %479 = arith.divf %477, %478 : vector<16x128xf32>
        %c0_176 = arith.constant 0 : index
        %c0_177 = arith.constant 0 : index
        %480 = vector.load %arg11[%c0_176, %c0_177] : memref<16x128xf32, #tpu.memory_space<vmem>>, vector<16x128xf32>
        tpu.vector_store %arg11[%c0_176, %c0_177], %479 {strides = array<i32>} : memref<16x128xf32, #tpu.memory_space<vmem>>, vector<16x128xf32>,
      } else {
      }
    } else {
    }
    return
  }
  func.func @transform_0(%arg0: i32) -> (i32, i32) {
    %c0_i32 = arith.constant 0 : i32
    %c0_i32_0 = arith.constant 0 : i32
    %c0_i32_1 = arith.constant 0 : i32
    return %c0_i32, %c0_i32_0 : i32, i32
  }
  func.func @transform_1(%arg0: i32) -> (i32, i32) {
    %c0_i32 = arith.constant 0 : i32
    %c0_i32_0 = arith.constant 0 : i32
    %c0_i32_1 = arith.constant 0 : i32
    return %c0_i32, %c0_i32_0 : i32, i32
  }
  func.func @transform_2(%arg0: i32) -> (i32, i32) {
    %c0_i32 = arith.constant 0 : i32
    %c0_i32_0 = arith.constant 0 : i32
    %c0_i32_1 = arith.constant 0 : i32
    return %c0_i32, %c0_i32_0 : i32, i32
  }
  func.func @transform_3(%arg0: i32) -> (i32, i32, i32) {
    %c3_i32 = arith.constant 3 : i32
    %0 = arith.minsi %arg0, %c3_i32 : i32
    %c0_i32 = arith.constant 0 : i32
    %c0_i32_0 = arith.constant 0 : i32
    %c0_i32_1 = arith.constant 0 : i32
    return %0, %c0_i32, %c0_i32_0 : i32, i32, i32
  }
  func.func @transform_4(%arg0: i32) -> (i32, i32, i32) {
    %c3_i32 = arith.constant 3 : i32
    %0 = arith.minsi %arg0, %c3_i32 : i32
    %c0_i32 = arith.constant 0 : i32
    %c0_i32_0 = arith.constant 0 : i32
    %c0_i32_1 = arith.constant 0 : i32
    return %0, %c0_i32, %c0_i32_0 : i32, i32, i32
  }
  func.func @transform_5(%arg0: i32) -> (i32, i32, i32) {
    %c3_i32 = arith.constant 3 : i32
    %0 = arith.minsi %arg0, %c3_i32 : i32
    %c0_i32 = arith.constant 0 : i32
    %c0_i32_0 = arith.constant 0 : i32
    %c0_i32_1 = arith.constant 0 : i32
    return %0, %c0_i32, %c0_i32_0 : i32, i32, i32
  }
  func.func @transform_6(%arg0: i32) -> (i32, i32, i32) {
    %c4_i32 = arith.constant 4 : i32
    %0 = arith.subi %arg0, %c4_i32 : i32
    %c0_i32 = arith.constant 0 : i32
    %1 = arith.maxsi %0, %c0_i32 : i32
    %c0_i32_0 = arith.constant 0 : i32
    %c0_i32_1 = arith.constant 0 : i32
    %c0_i32_2 = arith.constant 0 : i32
    return %1, %c0_i32_0, %c0_i32_1 : i32, i32, i32
  }
  func.func @transform_7(%arg0: i32) -> (i32, i32, i32) {
    %c4_i32 = arith.constant 4 : i32
    %0 = arith.subi %arg0, %c4_i32 : i32
    %c0_i32 = arith.constant 0 : i32
    %1 = arith.maxsi %0, %c0_i32 : i32
    %c0_i32_0 = arith.constant 0 : i32
    %c0_i32_1 = arith.constant 0 : i32
    %c0_i32_2 = arith.constant 0 : i32
    return %1, %c0_i32_0, %c0_i32_1 : i32, i32, i32
  }
  func.func @transform_8(%arg0: i32) -> (i32, i32, i32) {
    %c4_i32 = arith.constant 4 : i32
    %0 = arith.subi %arg0, %c4_i32 : i32
    %c0_i32 = arith.constant 0 : i32
    %1 = arith.maxsi %0, %c0_i32 : i32
    %c0_i32_0 = arith.constant 0 : i32
    %c0_i32_1 = arith.constant 0 : i32
    %c0_i32_2 = arith.constant 0 : i32
    return %1, %c0_i32_0, %c0_i32_1 : i32, i32, i32
  }
  func.func @transform_9(%arg0: i32) -> (i32, i32) {
    %c0_i32 = arith.constant 0 : i32
    %c0_i32_0 = arith.constant 0 : i32
    %c0_i32_1 = arith.constant 0 : i32
    return %c0_i32, %c0_i32_0 : i32, i32
  }
  func.func @transform_10(%arg0: i32) -> (i32, i32) {
    %c0_i32 = arith.constant 0 : i32
    %c0_i32_0 = arith.constant 0 : i32
    %c0_i32_1 = arith.constant 0 : i32
    return %c0_i32, %c0_i32_0 : i32, i32
  }
}

</mosaic_0001>

<bundles_post_ra>
// kernel: eq.8
= control target key start
LH: loop header
LB: loop body
LE: loop exit
PB: predicated region body
PF: predicated region fallthrough
CT: control target
= control target key end

     0   :  { %vm7_vm0 = vcmask 64512   ;;  %vm13_vm1 = vcmask 130112   ;;  %s39_s0 = inlined_call_operand.vmem [shape: s32[2,8], index: 0, kind: input, shape index: {}]   ;;  %s40_s1 = inlined_call_operand.vmem [shape: s32[16], index: 1, kind: output, shape index: {}]  }
   0x1   :  { %v4_v0 = vld [vmem:[%s39_s0] sm:$0x3]  ;;  %s22_s0 = smov 8  }
   0x2   :  { %5 = vst [vmem:[#allocation1] sm:$0x3] %v4_v0 }
   0x9   :  { %v10_v1 = vld [vmem:[#allocation1 + $0x1] sm:$0x1]   ;;  %v6_v2 = vld [vmem:[#allocation1] sm:$0x1]  }
   0xa   :  { %11 = vrot.lane.b32.xlu0 %v10_v1, %s22_s0  ;;  %8 = vst.msk [vmem:[#allocation0] sm:$0x1] %vm7_vm0, %v6_v2  }
  0x7c   :  { %v12_v3 = vpop.permute.xlu0 %11  }
  0x7d   :  { %14 = vst.msk [vmem:[#allocation0] sm:$0x1] %vm13_vm1, %v12_v3  }
  0x84   :  { %v18_v4 = vld [vmem:[#allocation0] sm:$0x1] }
  0x85   :  { %20 = vst [vmem:[%s40_s1] sm:$0x1] %v18_v4 }

// kernel: forward.1
= control target key start
LH: loop header
LB: loop body
LE: loop exit
PB: predicated region body
PF: predicated region fallthrough
CT: control target
= control target key end

     0   :  { %s18797_s0 = inlined_call_operand.vmem [shape: s32[16,1], index: 0, kind: input, shape index: {}]   ;;  %s18798_s1 = inlined_call_operand.hbm [shape: f32[32,128], index: 1, kind: input, shape index: {}]   ;;  %s18799_s2 = inlined_call_operand.vmem [shape: f32[16,16], index: 2, kind: input, shape index: {}]   ;;  %s18800_s3 = inlined_call_operand.hbm [shape: bf16[4,128,2560], index: 3, kind: input, shape index: {}]   ;;  %s18801_s4 = inlined_call_operand.hbm [shape: bf16[4,2048,128], index: 4, kind: input, shape index: {}]   ;;  %s18802_s5 = inlined_call_operand.hbm [shape: f32[4,1,3200], index: 5, kind: input, shape index: {}]   ;;  %s18803_s6 = inlined_call_operand.hbm [shape: bf16[6,128,3072], index: 6, kind: input, shape index: {}]   ;;  %s18804_s7 = inlined_call_operand.hbm [shape: bf16[6,2048,128], index: 7, kind: input, shape index: {}]   ;;  %s18805_s8 = inlined_call_operand.hbm [shape: f32[6,1,3968], index: 8, kind: input, shape index: {}]   ;;  %s18806_s9 = inlined_call_operand.hbm [shape: f32[1,768], index: 9, kind: input, shape index: {}]   ;;  %s18807_s10 = inlined_call_operand.vmem [shape: f32[16,128], index: 10, kind: output, shape index: {}]  }
   0x1   :  { %18837 = sst [smem:[#allocation29_spill]] %s18797_s0 }
   0x2   :  { %18838 = sst [smem:[#allocation30_spill]] %s18798_s1 }
   0x3   :  { %18839 = sst [smem:[#allocation31_spill]] %s18799_s2 }
   0x4   :  { %18840 = sst [smem:[#allocation32_spill]] %s18800_s3 }
   0x5   :  { %18841 = sst [smem:[#allocation33_spill]] %s18802_s5 }
   0x6   :  { %18842 = sst [smem:[#allocation34_spill]] %s18803_s6 }
   0x7   :  { %18843 = sst [smem:[#allocation35_spill]] %s18804_s7 }
   0x8   :  { %18844 = sst [smem:[#allocation36_spill]] %s18805_s8 }
   0x9   :  { %18845 = sst [smem:[#allocation37_spill]] %s18807_s10 }
   0xa   :  { %15 = vsyncpa [#allocation5], 0 }
   0xb   :  { %16 = vsyncpa [#allocation7], 0 }
   0xc   :  { %18 = vsyncpa [#allocation7 + $0x1], 0 }
   0xd   :  { %19 = vsyncpa [#allocation10], 0 }
   0xe   :  { %21 = vsyncpa [#allocation10 + $0x1], 0 }
   0xf   :  { %22 = vsyncpa [#allocation13], 0 }
  0x10   :  { %24 = vsyncpa [#allocation13 + $0x1], 0 }
  0x11   :  { %25 = vsyncpa [#allocation16], 0  ;;  %s16582_s13 = smov 0   ;;  %s16584_s14 = smov 0  }
  0x12   :  { %s16586_s15 = smov 0   ;;  %s16588_s16 = smov 0  }
  0x13   :  { %s16590_s17 = smov 0   ;;  %s16592_s18 = smov 0  }
  0x14   :  { %s16594_s19 = smov 0  }
  0x15 LB: > { %18846 = sst [smem:[#allocation23_spill]] %s16469_s15  ;;  %s16618_s20 = sadd.s32 1, %s16485_s19   ;;  %s16485_s19 = sphi %s16594_s19, %s18900_s19   ;;  %s16481_s18 = sphi %s16592_s18, %s18904_s18   ;;  %s16477_s17 = sphi %s16590_s17, %s18908_s17   ;;  %s16473_s16 = sphi %s16588_s16, %s18907_s16   ;;  %s16469_s15 = sphi %s16586_s15, %s18902_s15   ;;  %s16465_s14 = sphi %s16584_s14, %s18906_s14   ;;  %s16461_s13 = sphi %s16582_s13, %s18905_s13  }
  0x16   : > { %18847 = sst [smem:[#allocation24_spill]] %s16481_s18  ;;  %p98_p0 = scmp.lt.s32.totalorder %s16485_s19, 3 }
  0x17   : > { %18848 = sst [smem:[#allocation25_spill]] %s16618_s20  ;;  %p100_p1 = scmp.lt.s32.totalorder %s16618_s20, 3 }
  0x18   : > { %s105_s21 = sadd.s32 1, %s16481_s18  ;;  %p112_p2 = scmp.ne.s32.totalorder %s16481_s18, %s16477_s17 }
  0x19   : > { %s16624_s22 = scalar_select %p98_p0, %s16485_s19, 3 }
  0x1a   : > { %s101_s23 = scalar_select %p100_p1, %s16618_s20, 3 }
  0x1b   : > { %p18811_p3 = scmp.eq.s32.totalorder %s16485_s19, 0  ;;  %p18810_p6 = scmp.lt.s32.totalorder %s16485_s19, 10 }
  0x1c   : > { %s102_s24 = ssub.s32 %s16624_s22, %s101_s23  ;;  %s16635_s25 = sand.u32 1, %s16485_s19  }
  0x1d   : > { %p103_p4 = scmp.eq.s32.totalorder %s102_s24, 0  ;;  %p114_p5 = por %p18811_p3, %p112_p2 }
  0x1e   : > { %s16641_s27 = sand.u32 1, %s16481_s18   ;;  %s14982_s30 = smul.u32 20480, %s16624_s22 }
  0x1f   : > { %s16638_s26 = scalar_select %p103_p4, %s16481_s18, %s105_s21  }
  0x20   : > { %s14981_s28 = smul.u32 1280, %s16641_s27  ;;  %p16646_p7 = pnand %p18810_p6, %p114_p5 }
  0x21   : > { %18849 = sst [smem:[#allocation26_spill]] %s16638_s26  ;;  %s18851_s3 = sld [smem:[#allocation32_spill]] }
  0x22   : > { %s18850_s29 = scalar_select %p16646_p7, 1, 0 }
  0x23   : > { %s374_s21 = scalar_lea.vmem [#allocation6], %s14981_s28  ;;  %p16663_p9 = pneg %p16646_p7 }
  0x24   : > { %s383_s24 = sshll.u32 %s374_s21, 4  ;;  %s16656_s24 = int_to_ptr.vmem [resolvable:$true] %s383_s24 }
  0x25   : > { %s18852_s10 = scalar_select %p16663_p9, 1, 0 }
  0x27   : > { %s16654_s23 = scalar_lea.hbm %s18851_s3, %s14982_s30  ;;  %s16176_s12 = scalar_lea.hbm %s18851_s3, 81920 }
  0x28   : > { %s16171_s18 = scalar_lea.hbm %s16654_s23, 20480  ;;  %p16177_p12 = scmp.lt.u32.totalorder %s16654_s23, %s18851_s3 }
  0x29   : > { %p16172_p8 = scmp.ne.s32.totalorder %s16654_s23, %s16171_s18  ;;  %p16178_p13 = scmp.lt.u32.totalorder %s16176_s12, %s16171_s18 }
  0x2a   : > { %p16180_p1 = scmp.lt.u32.totalorder %s16171_s18, %s16654_s23 }
  0x2b   : > { %p16174_p10 = pnand %p16663_p9, %p16172_p8  ;;  %p16179_p0 = por %p16178_p13, %p16177_p12 }
  0x2d   : > { %p16175_p11 = pneg %p16174_p10  ;;  %p16181_p2 = por %p16180_p1, %p16179_p0 }
  0x2f   : > { %p16182_p4 = pnand %p16181_p2, %p16175_p11 }
  0x31   : > { %16185 = shalt.err (!%p16182_p4)
}
  0x32   : > { %s16186_s26 = scalar_lea.vmem %s16656_s24, 20480  ;;  %s16487_s30 = smov [#allocation6]  }
  0x33   : > { %p16187_p5 = scmp.ne.s32.totalorder %s16656_s24, %s16186_s26  ;;  %s16191_s11 = sshll.u32 %s16487_s30, 4  ;;  %s16192_s11 = int_to_ptr.vmem [resolvable:$false] %s16191_s11 }
  0x34   : > { %s16193_s28 = scalar_lea.vmem %s16192_s11, 40960  ;;  %p16194_p6 = scmp.lt.s32.totalorder %s16656_s24, %s16192_s11 }
  0x35   : > { %p16189_p8 = pnand %p16187_p5, %p16663_p9  ;;  %p16195_p3 = scmp.lt.s32.totalorder %s16193_s28, %s16186_s26 }
  0x37   : > { %p16190_p10 = pneg %p16189_p8  ;;  %p16196_p12 = por %p16195_p3, %p16194_p6 }
  0x39   : > { %p16197_p13 = pnand %p16196_p12, %p16190_p10 }
  0x3b   : > { %16200 = shalt.err (!%p16197_p13)
}
  0x3c   : > { %s16488_s18 = smov 1280   ;;  %s16489_s12 = smov 80  }
  0x3d   : > { %s18853_s21 = scalar_lea.sflag [#allocation7], %s16635_s25  ;;  %s14983_s30 = smul.u32 25, %s16641_s27 }
  0x3e   : > { %15023 = dma.hbm_to_vmem [thread:$0]  (!%p16646_p7), %s16654_s23, 20480, %s16656_s24, %s18853_s21, %s16488_s18, %s16488_s18, %s16489_s12  }
  0x3f   : > { %s14984_s3 = smul.u32 400, %s16624_s22  ;;  %s18854_s5 = sld [smem:[#allocation33_spill]] }
  0x40   : > { %s420_s0 = scalar_lea.vmem [#allocation9], %s14983_s30  ;;  %s18819_s8 = scalar_lea.sflag [#allocation10], %s16635_s25 }
  0x41   : > { %s430_s2 = sshll.u32 %s420_s0, 4  ;;  %s431_s2 = int_to_ptr.vmem [resolvable:$true] %s430_s2 }
  0x45   : > { %s16693_s28 = scalar_lea.hbm %s18854_s5, %s14984_s3  ;;  %s16206_s18 = scalar_lea.hbm %s18854_s5, 1600 }
  0x46   : > { %s16201_s6 = scalar_lea.hbm %s16693_s28, 400  ;;  %p16207_p0 = scmp.lt.u32.totalorder %s16693_s28, %s18854_s5 }
  0x47   : > { %p16202_p3 = scmp.ne.s32.totalorder %s16693_s28, %s16201_s6  ;;  %p16208_p1 = scmp.lt.u32.totalorder %s16206_s18, %s16201_s6 }
  0x48   : > { %p16210_p4 = scmp.lt.u32.totalorder %s16201_s6, %s16693_s28 }
  0x49   : > { %p16204_p6 = pnand %p16202_p3, %p16663_p9  ;;  %p16209_p2 = por %p16208_p1, %p16207_p0 }
  0x4b   : > { %p16205_p11 = pneg %p16204_p6  ;;  %p16211_p5 = por %p16210_p4, %p16209_p2 }
  0x4d   : > { %p16212_p8 = pnand %p16211_p5, %p16205_p11 }
  0x4f   : > { %16215 = shalt.err (!%p16212_p8)
}
  0x50   : > { %s16216_s0 = scalar_lea.vmem %s431_s2, 400  ;;  %s16490_s21 = smov [#allocation9]  }
  0x51   : > { %p16217_p10 = scmp.ne.s32.totalorder %s431_s2, %s16216_s0  ;;  %s16221_s30 = sshll.u32 %s16490_s21, 4  ;;  %s16222_s30 = int_to_ptr.vmem [resolvable:$false] %s16221_s30 }
  0x52   : > { %s16223_s11 = scalar_lea.vmem %s16222_s30, 800  ;;  %p16224_p3 = scmp.lt.s32.totalorder %s431_s2, %s16222_s30 }
  0x53   : > { %p16219_p12 = pnand %p16217_p10, %p16663_p9  ;;  %p16225_p6 = scmp.lt.s32.totalorder %s16223_s11, %s16216_s0 }
  0x55   : > { %p16220_p13 = pneg %p16219_p12  ;;  %p16226_p7 = por %p16225_p6, %p16224_p3 }
  0x57   : > { %p16227_p0 = pnand %p16226_p7, %p16220_p13 }
  0x59   : > { %16230 = shalt.err (!%p16227_p0)
}
  0x5a   : > { %p18855_p1 = scmp.ne.s32.totalorder %s18850_s29, 0  ;;  %s12815_s6 = sadd.s32 4294967292, %s16485_s19 }
  0x5b   : > { %p189_p11 = scmp.gt.s32.totalorder %s12815_s6, 0  ;;  %s12816_s26 = sadd.s32 4294967292, %s16618_s20 }
  0x5c   : > { %15029 = dma.hbm_to_vmem [thread:$0]  (!%p18855_p1), %s16693_s28, 400, %s431_s2, %s18819_s8  }
  0x5d   : > { %p192_p7 = scmp.gt.s32.totalorder %s12816_s26, 0  ;;  %s197_s23 = sadd.s32 1, %s16469_s15 }
  0x5e   : > { %s18910_s6 = smov (!%p189_p11, %s12815_s6), 0  ;;  %p204_p2 = scmp.ne.s32.totalorder %s16469_s15, %s16465_s14 }
  0x5f   : > { %s18912_s26 = smov (!%p192_p7, %s12816_s26), 0  ;;  %p18856_p5 = scmp.eq.s32.totalorder %s16485_s19, 0 }
  0x60   : > { %s194_s24 = ssub.s32 %s18910_s6, %s18912_s26  ;;  %s16726_s18 = sand.u32 1, %s16469_s15  }
  0x61   : > { %p195_p4 = scmp.eq.s32.totalorder %s194_s24, 0  ;;  %p206_p8 = por %p204_p2, %p18856_p5 }
  0x62   : > { %p18858_p10 = scmp.lt.s32.totalorder %s16485_s19, 10  ;;  %s12832_s12 = sshll.u32 %s16726_s18, 10 }
  0x63   : > { %s16729_s2 = scalar_select %p195_p4, %s16469_s15, %s197_s23  }
  0x64   : > { %p16733_p12 = pnand %p18858_p10, %p206_p8  ;;  %s13636_s3 = sshll.u32 %s18910_s6, 14 }
  0x65   : > { %18857 = sst [smem:[#allocation27_spill]] %s16729_s2  ;;  %s18860_s7 = sld [smem:[#allocation35_spill]] }
  0x66   : > { %s18859_s28 = scalar_select %p16733_p12, 1, 0 }
  0x67   : > { %s465_s11 = scalar_lea.vmem [#allocation12], %s12832_s12  ;;  %p16751_p3 = pneg %p16733_p12 }
  0x68   : > { %s475_s26 = sshll.u32 %s465_s11, 4  ;;  %s16744_s26 = int_to_ptr.vmem [resolvable:$true] %s475_s26 }
  0x69   : > { %s18861_s8 = scalar_select %p16751_p3, 1, 0 }
  0x6b   : > { %s16742_s30 = scalar_lea.hbm %s18860_s7, %s13636_s3  ;;  %s16236_s21 = scalar_lea.hbm %s18860_s7, 98304 }
  0x6c   : > { %s16231_s24 = scalar_lea.hbm %s16742_s30, 16384  ;;  %p16237_p11 = scmp.lt.u32.totalorder %s16742_s30, %s18860_s7 }
  0x6d   : > { %p16232_p13 = scmp.ne.s32.totalorder %s16742_s30, %s16231_s24  ;;  %p16238_p7 = scmp.lt.u32.totalorder %s16236_s21, %s16231_s24 }
  0x6e   : > { %p16240_p4 = scmp.lt.u32.totalorder %s16231_s24, %s16742_s30 }
  0x6f   : > { %p16234_p6 = pnand %p16751_p3, %p16232_p13  ;;  %p16239_p2 = por %p16238_p7, %p16237_p11 }
  0x71   : > { %p16235_p0 = pneg %p16234_p6  ;;  %p16241_p5 = por %p16240_p4, %p16239_p2 }
  0x73   : > { %p16242_p8 = pnand %p16241_p5, %p16235_p0 }
  0x75   : > { %16245 = shalt.err (!%p16242_p8)
}
  0x76   : > { %s16246_s23 = scalar_lea.vmem %s16744_s26, 16384  ;;  %s16491_s3 = smov [#allocation12]  }
  0x77   : > { %p16247_p10 = scmp.ne.s32.totalorder %s16744_s26, %s16246_s23  ;;  %s16251_s0 = sshll.u32 %s16491_s3, 4  ;;  %s16252_s0 = int_to_ptr.vmem [resolvable:$false] %s16251_s0 }
  0x78   : > { %s16253_s12 = scalar_lea.vmem %s16252_s0, 32768  ;;  %p16254_p1 = scmp.lt.s32.totalorder %s16744_s26, %s16252_s0 }
  0x79   : > { %p16249_p13 = pnand %p16247_p10, %p16751_p3  ;;  %p16255_p9 = scmp.lt.s32.totalorder %s16253_s12, %s16246_s23 }
  0x7b   : > { %p16250_p6 = pneg %p16249_p13  ;;  %p16256_p11 = por %p16255_p9, %p16254_p1 }
  0x7d   : > { %p16257_p7 = pnand %p16256_p11, %p16250_p6 }
  0x7f   : > { %16260 = shalt.err (!%p16257_p7)
}
  0x80   : > { %s18822_s24 = smov 64   ;;  %s18823_s21 = smov 4  }
  0x81   : > { %s18862_s23 = scalar_lea.sflag [#allocation13], %s16635_s25  ;;  %s16780_s11 = sadd.s32 4294967295, %s16485_s19  }
  0x82   : > { %15035 = dma.hbm_to_vmem [thread:$0]  (!%p16733_p12), %s16742_s30, 16384, %s16744_s26, %s18862_s23, %s18822_s24, %s18822_s24, %s18823_s21  }
  0x83   : > { %p118_p9 = scmp.ne.s32.totalorder %s16477_s17, %s16473_s16  ;;  %p18825_p1 = scmp.eq.s32.totalorder %s16780_s11, 0 }
  0x84   : > { %p210_p0 = scmp.ne.s32.totalorder %s16465_s14, %s16461_s13  ;;  %p12821_p2 = scmp.ge.s32.totalorder %s16485_s19, 1 }
  0x85   : > { %p327_p4 = scmp.lt.s32.totalorder %s16485_s19, 11  ;;  %p16791_p5 = por %p18825_p1, %p118_p9 }
  0x86   : > { %p16797_p8 = por %p210_p0, %p18825_p1  ;;  %s16494_s13 = smov [#allocation4]  }
  0x87   : > { %s18863_s3 = scalar_select %p16791_p5, 1, 0 }
  0x88   : > { %s18864_s30 = scalar_select %p16797_p8, 1, 0 }
  0x89   : > { %p16801_p10 = pnand %p12821_p2, %p327_p4  ;;  %s342_s16 = sshll.u32 %s16494_s13, 4  ;;  %s343_s16 = int_to_ptr.vmem [resolvable:$true] %s342_s16 }
  0x8a   : > { %18865 = sst [smem:[#allocation28_spill]] %s18864_s30  ;;  %s16495_s0 = smov [#allocation15]  }
  0x8b   : > { %s18866_s26 = scalar_select %p16801_p10, 1, 0 }
  0x8c   : > { %p15013_p6 = pneg %p16801_p10  ;;  %s359_s12 = sshll.u32 %s16495_s0, 4  ;;  %s16815_s12 = int_to_ptr.vmem [resolvable:$true] %s359_s12 }
  0x8d   : > { %s18868_s1 = sld [smem:[#allocation30_spill]] }
  0x8e   : > { %p16810_p11 = pnand %p15013_p6, %p18825_p1 }
  0x90   : > { %p16263_p9 = pneg %p16810_p11 }
  0x93   : > { %s16261_s5 = scalar_lea.hbm %s18868_s1, 512 }
  0x94   : > { %p16262_p7 = scmp.ne.s32.totalorder %s18868_s1, %s16261_s5  ;;  %p16268_p4 = scmp.lt.u32.totalorder %s16261_s5, %s18868_s1 }
  0x96   : > { %p16264_p0 = pnand %p16263_p9, %p16262_p7 }
  0x98   : > { %p16265_p2 = pneg %p16264_p0 }
  0x9a   : > { %p16270_p6 = pnand %p16268_p4, %p16265_p2 }
  0x9c   : > { %16273 = shalt.err (!%p16270_p6)
}
  0x9d   : > { %s16274_s0 = scalar_lea.vmem %s343_s16, 512  ;;  %p16282_p5 = scmp.lt.s32.totalorder %s343_s16, %s343_s16 }
  0x9e   : > { %p16275_p13 = scmp.ne.s32.totalorder %s343_s16, %s16274_s0  ;;  %p16283_p10 = scmp.lt.s32.totalorder %s16274_s0, %s16274_s0 }
  0xa0   : > { %p16277_p1 = pnand %p16275_p13, %p16263_p9  ;;  %p16284_p12 = por %p16283_p10, %p16282_p5 }
  0xa2   : > { %p16278_p8 = pneg %p16277_p1 }
  0xa4   : > { %p16285_p3 = pnand %p16284_p12, %p16278_p8 }
  0xa6   : > { %16288 = shalt.err (!%p16285_p3)
}
  0xa7   : > { %s16496_s7 = smov 128   ;;  %s16497_s2 = smov 8  }
  0xa8   : > { %15016 = dma.hbm_to_vmem [thread:$0]  (!%p16810_p11), %s18868_s1, 512, %s343_s16, [#allocation5], %s16496_s7, %s16496_s7, %s16497_s2  }
  0xa9   : > { %s16289_s13 = scalar_lea.hbm %s18806_s9, 96 }
  0xaa   : > { %p16290_p1 = scmp.ne.s32.totalorder %s18806_s9, %s16289_s13  ;;  %p16296_p5 = scmp.lt.u32.totalorder %s16289_s13, %s18806_s9 }
  0xac   : > { %p16292_p12 = pnand %p16290_p1, %p16263_p9 }
  0xae   : > { %p16293_p3 = pneg %p16292_p12 }
  0xb0   : > { %p16298_p8 = pnand %p16296_p5, %p16293_p3 }
  0xb2   : > { %16301 = shalt.err (!%p16298_p8)
}
  0xb3   : > { %s16302_s16 = scalar_lea.vmem %s16815_s12, 96  ;;  %p16310_p0 = scmp.lt.s32.totalorder %s16815_s12, %s16815_s12 }
  0xb4   : > { %p16303_p10 = scmp.ne.s32.totalorder %s16815_s12, %s16302_s16  ;;  %p16311_p2 = scmp.lt.s32.totalorder %s16302_s16, %s16302_s16 }
  0xb6   : > { %p16305_p13 = pnand %p16303_p10, %p16263_p9  ;;  %p16312_p4 = por %p16311_p2, %p16310_p0 }
  0xb8   : > { %p16306_p7 = pneg %p16305_p13 }
  0xba   : > { %p16313_p6 = pnand %p16312_p4, %p16306_p7 }
  0xbc   : > { %16316 = shalt.err (!%p16313_p6)
}
  0xbd   : > { %15019 = dma.hbm_to_vmem [thread:$0]  (!%p16810_p11), %s18806_s9, 96, %s16815_s12, [#allocation16]  }
  0xbe   : > { %s13635_s23 = sshll.u32 %s16624_s22, 14  ;;  %s18869_s15 = sshll.u32 %s16641_s27, 10 }
  0xbf   : > { %s16868_s5 = scalar_lea.hbm %s18801_s4, %s13635_s23  ;;  %s397_s19 = scalar_lea.vmem [#allocation8], %s18869_s15 }
  0xc0   : > { %s406_s24 = sshll.u32 %s397_s19, 4  ;;  %s14985_s21 = smul.u32 1536, %s16726_s18  ;;  %s16872_s24 = int_to_ptr.vmem [resolvable:$true] %s406_s24 }
  0xc1   : > { %s16317_s13 = scalar_lea.hbm %s16868_s5, 16384  ;;  %p18870_p1 = scmp.ne.s32.totalorder %s18852_s10, 0 }
  0xc2   : > { %p16318_p9 = scmp.ne.s32.totalorder %s16868_s5, %s16317_s13  ;;  %s16322_s0 = scalar_lea.hbm %s18801_s4, 65536 }
  0xc3   : > { %p16323_p3 = scmp.lt.u32.totalorder %s16868_s5, %s18801_s4  ;;  %p16324_p5 = scmp.lt.u32.totalorder %s16322_s0, %s16317_s13 }
  0xc4   : > { %p16320_p11 = pnand %p16318_p9, %p18870_p1  ;;  %p16326_p10 = scmp.lt.u32.totalorder %s16317_s13, %s16868_s5 }
  0xc5   : > { %p16325_p8 = por %p16324_p5, %p16323_p3 }
  0xc6   : > { %p16321_p12 = pneg %p16320_p11 }
  0xc7   : > { %p16327_p13 = por %p16326_p10, %p16325_p8 }
  0xc9   : > { %p16328_p7 = pnand %p16327_p13, %p16321_p12 }
  0xcb   : > { %16331 = shalt.err (!%p16328_p7)
}
  0xcc   : > { %s16332_s20 = scalar_lea.vmem %s16872_s24, 16384  ;;  %s16498_s30 = smov [#allocation8]  }
  0xcd   : > { %p16333_p0 = scmp.ne.s32.totalorder %s16872_s24, %s16332_s20  ;;  %s16337_s23 = sshll.u32 %s16498_s30, 4  ;;  %s16338_s23 = int_to_ptr.vmem [resolvable:$false] %s16337_s23 }
  0xce   : > { %s16339_s7 = scalar_lea.vmem %s16338_s23, 32768  ;;  %p16340_p6 = scmp.lt.s32.totalorder %s16872_s24, %s16338_s23 }
  0xcf   : > { %p16335_p2 = pnand %p16333_p0, %p18870_p1  ;;  %p16341_p9 = scmp.lt.s32.totalorder %s16339_s7, %s16332_s20 }
  0xd1   : > { %p16336_p4 = pneg %p16335_p2  ;;  %p16342_p11 = por %p16341_p9, %p16340_p6 }
  0xd3   : > { %p16343_p3 = pnand %p16342_p11, %p16336_p4 }
  0xd5   : > { %16346 = shalt.err (!%p16343_p3)
}
  0xd6   : > { %p18871_p12 = scmp.ne.s32.totalorder %s18850_s29, 0  ;;  %s18872_s2 = smov 4  }
  0xd7   : > { %s18873_s15 = smov 64   ;;  %s18874_s19 = scalar_lea.sflag [#allocation7], %s16635_s25 }
  0xd8   : > { %15026 = dma.hbm_to_vmem [thread:$0]  (!%p18871_p12), %s16868_s5, 16384, %s16872_s24, %s18874_s19, %s18873_s15, %s18873_s15, %s18872_s2  }
  0xd9   : > { %s14986_s10 = smul.u32 24576, %s18910_s6  ;;  %s441_s13 = scalar_lea.vmem [#allocation11], %s14985_s21 }
  0xda   : > { %s451_s22 = sshll.u32 %s441_s13, 4  ;;  %s18875_s16 = sld [smem:[#allocation34_spill]]  ;;  %s16909_s22 = int_to_ptr.vmem [resolvable:$true] %s451_s22 }
  0xdb   : > { %s14987_s20 = smul.u32 31, %s16726_s18  ;;  %p18877_p5 = scmp.ne.s32.totalorder %s18861_s8, 0 }
  0xe0   : > { %s18876_s27 = smov %s18875_s16  ;;  %s16907_s29 = scalar_lea.hbm %s18875_s16, %s14986_s10 }
  0xe1   : > { %s16347_s30 = scalar_lea.hbm %s16907_s29, 24576  ;;  %s16352_s21 = scalar_lea.hbm %s18876_s27, 147456 }
  0xe2   : > { %p16348_p1 = scmp.ne.s32.totalorder %s16907_s29, %s16347_s30  ;;  %p16353_p13 = scmp.lt.u32.totalorder %s16907_s29, %s18876_s27 }
  0xe3   : > { %p16354_p7 = scmp.lt.u32.totalorder %s16352_s21, %s16347_s30  ;;  %p16356_p2 = scmp.lt.u32.totalorder %s16347_s30, %s16907_s29 }
  0xe4   : > { %p16350_p8 = pnand %p16348_p1, %p18877_p5 }
  0xe5   : > { %p16355_p0 = por %p16354_p7, %p16353_p13 }
  0xe6   : > { %p16351_p10 = pneg %p16350_p8 }
  0xe7   : > { %p16357_p4 = por %p16356_p2, %p16355_p0 }
  0xe9   : > { %p16358_p6 = pnand %p16357_p4, %p16351_p10 }
  0xeb   : > { %16361 = shalt.err (!%p16358_p6)
}
  0xec   : > { %s16362_s2 = scalar_lea.vmem %s16909_s22, 24576  ;;  %s16499_s15 = smov [#allocation11]  }
  0xed   : > { %p16363_p9 = scmp.ne.s32.totalorder %s16909_s22, %s16362_s2  ;;  %s16367_s19 = sshll.u32 %s16499_s15, 4  ;;  %s16368_s19 = int_to_ptr.vmem [resolvable:$false] %s16367_s19 }
  0xee   : > { %s16369_s10 = scalar_lea.vmem %s16368_s19, 49152  ;;  %p16370_p12 = scmp.lt.s32.totalorder %s16909_s22, %s16368_s19 }
  0xef   : > { %p16365_p11 = pnand %p16363_p9, %p18877_p5  ;;  %p16371_p1 = scmp.lt.s32.totalorder %s16369_s10, %s16362_s2 }
  0xf1   : > { %p16366_p3 = pneg %p16365_p11  ;;  %p16372_p8 = por %p16371_p1, %p16370_p12 }
  0xf3   : > { %p16373_p13 = pnand %p16372_p8, %p16366_p3 }
  0xf5   : > { %16376 = shalt.err (!%p16373_p13)
}
  0xf6   : > { %s16500_s13 = smov 1536   ;;  %s16501_s12 = smov 96  }
  0xf7   : > { %p18878_p10 = scmp.ne.s32.totalorder %s18859_s28, 0  ;;  %s18879_s0 = scalar_lea.sflag [#allocation10], %s16635_s25 }
  0xf8   : > { %s14988_s16 = smul.u32 496, %s18910_s6  ;;  %s489_s30 = scalar_lea.vmem [#allocation14], %s14987_s20 }
  0xf9   : > { %15032 = dma.hbm_to_vmem [thread:$0]  (!%p18878_p10), %s16907_s29, 24576, %s16909_s22, %s18879_s0, %s16500_s13, %s16500_s13, %s16501_s12  }
  0xfa   : > { %s500_s5 = sshll.u32 %s489_s30, 4  ;;  %s18880_s23 = sld [smem:[#allocation36_spill]]  ;;  %s501_s5 = int_to_ptr.vmem [resolvable:$true] %s500_s5 }
 0x100   : > { %s498_s7 = scalar_lea.hbm %s18880_s23, %s14988_s16  ;;  %s16382_s10 = scalar_lea.hbm %s18880_s23, 2976 }
 0x101   : > { %s16377_s2 = scalar_lea.hbm %s498_s7, 496  ;;  %p16383_p4 = scmp.lt.u32.totalorder %s498_s7, %s18880_s23 }
 0x102   : > { %p16378_p7 = scmp.ne.s32.totalorder %s498_s7, %s16377_s2  ;;  %p16384_p6 = scmp.lt.u32.totalorder %s16382_s10, %s16377_s2 }
 0x103   : > { %p16386_p11 = scmp.lt.u32.totalorder %s16377_s2, %s498_s7 }
 0x104   : > { %p16380_p0 = pnand %p16378_p7, %p18877_p5  ;;  %p16385_p9 = por %p16384_p6, %p16383_p4 }
 0x106   : > { %p16381_p2 = pneg %p16380_p0  ;;  %p16387_p3 = por %p16386_p11, %p16385_p9 }
 0x108   : > { %p16388_p12 = pnand %p16387_p3, %p16381_p2 }
 0x10a   : > { %16391 = shalt.err (!%p16388_p12)
}
 0x10b   : > { %s16392_s6 = scalar_lea.vmem %s501_s5, 496  ;;  %s16502_s18 = smov [#allocation14]  }
 0x10c   : > { %p16393_p1 = scmp.ne.s32.totalorder %s501_s5, %s16392_s6  ;;  %s16397_s29 = sshll.u32 %s16502_s18, 4  ;;  %s16398_s29 = int_to_ptr.vmem [resolvable:$false] %s16397_s29 }
 0x10d   : > { %s16399_s20 = scalar_lea.vmem %s16398_s29, 992  ;;  %p16400_p7 = scmp.lt.s32.totalorder %s501_s5, %s16398_s29 }
 0x10e   : > { %p16395_p8 = pnand %p16393_p1, %p18877_p5  ;;  %p16401_p0 = scmp.lt.s32.totalorder %s16399_s20, %s16392_s6 }
 0x110   : > { %p16396_p13 = pneg %p16395_p8  ;;  %p16402_p10 = por %p16401_p0, %p16400_p7 }
 0x112   : > { %p16403_p4 = pnand %p16402_p10, %p16396_p13 }
 0x114   : > { %16406 = shalt.err (!%p16403_p4)
}
 0x115   : > { %p18881_p6 = scmp.ne.s32.totalorder %s18859_s28, 0  ;;  %s18882_s1 = scalar_lea.sflag [#allocation13], %s16635_s25 }
 0x116   : > { %p18883_p2 = scmp.ne.s32.totalorder %s18866_s26, 0 }
 0x117   : > { %15038 = dma.hbm_to_vmem [thread:$0]  (!%p18881_p6), %s498_s7, 496, %s501_s5, %s18882_s1  }
 0x118   : > { %509 = sbr.rel (%p18883_p2) target bundleno = 17794 (0x4582), region = 60  ;;  %p18884_p5 = scmp.eq.s32.totalorder (!%p18883_p2), %s16780_s11, 0 }
 0x11f   : > { %16436 = dma.done.wait (%p18884_p5), [#allocation5], 512   ;;  %p18885_p9 = pmov %p18884_p5 }
 0x120   : > { %s515_s8 = sand.u32 1, %s16780_s11   ;;  %s517_s13 = sand.u32 1, %s16477_s17  }
 0x121   : > { %16438 = vsyncadd (%p18885_p9), [#allocation5], 4294966784  ;;  %s14989_s12 = smul.u32 1280, %s517_s13  ;;  %s516_s0 = scalar_lea.sflag [#allocation7], %s515_s8 }
 0x122   : > { %p18886_p10 = scmp.ne.s32.totalorder %s18863_s3, 0 }
 0x123   : > { %s16963_s28 = scalar_lea.vmem [#allocation6], %s14989_s12 }
 0x124   : > { %16440 = dma.done.wait (%p18886_p10), %s516_s0, 36864  }
 0x125   : > { %16442 = vsyncadd (%p18886_p10), %s516_s0, 4294930432  ;;  %s12840_s25 = sshll.u32 %s517_s13, 10  ;;  %s14990_s26 = smul.u32 25, %s517_s13 }
 0x126   : > { %s16969_s16 = scalar_lea.vmem [#allocation8], %s12840_s25  ;;  %s534_s30 = scalar_lea.sflag [#allocation10], %s515_s8 }
 0x127   : > { %s16971_s5 = scalar_lea.vmem [#allocation9], %s14990_s26 }
 0x128   : > { %16444 = dma.done.wait (%p18886_p10), %s534_s30, 400  }
 0x129   : > { %16446 = vsyncadd (%p18886_p10), %s534_s30, 4294966896  ;;  %s18887_s24 = sld [smem:[#allocation28_spill]]  ;;  %s544_s21 = sand.u32 1, %s16465_s14  }
 0x12a   : > { %s14991_s7 = smul.u32 1536, %s544_s21 }
 0x12c   : > { %s16978_s2 = scalar_lea.vmem [#allocation11], %s14991_s7 }
 0x12f   : > { %p18888_p11 = scmp.ne.s32.totalorder %s18887_s24, 0 }
 0x131   : > { %16448 = dma.done.wait (%p18888_p11), %s534_s30, 24576  }
 0x132   : > { %16450 = vsyncadd (%p18888_p11), %s534_s30, 4294942720  ;;  %s12841_s15 = sshll.u32 %s544_s21, 10  ;;  %s552_s19 = scalar_lea.sflag [#allocation13], %s515_s8 }
 0x133   : > { %s16984_s10 = scalar_lea.vmem [#allocation12], %s12841_s15 }
 0x134   : > { %16452 = dma.done.wait (%p18888_p11), %s552_s19, 16880  }
 0x135   : > { %16454 = vsyncadd (%p18888_p11), %s552_s19, 4294950416  ;;  %s14992_s3 = smul.u32 31, %s544_s21  ;;  %p18889_p3 = pmov %p18884_p5 }
 0x137   : > { %s16990_s22 = scalar_lea.vmem [#allocation14], %s14992_s3 }
 0x138   : > { %16456 = dma.done.wait (%p18889_p3), [#allocation16], 96   ;;  %p18890_p12 = pmov %p18889_p3 }
 0x139   : > { %s18891_s29 = sld [smem:[#allocation31_spill]]  ;;  %p12843_p1 = scmp.ge.s32.totalorder %s16780_s11, 4 }
 0x13a   : > { %16458 = vsyncadd (%p18890_p12), [#allocation16], 4294967200  ;;  %p18892_p8 = scmp.ne.s32.totalorder (!%p12843_p1), %s16780_s11, 0 }
 0x13b   : > { %646 = sbr.rel (%p12843_p1) target bundleno = 6784 (0x1a80), region = 96 }
 0x13f   : > { %v16999_v0 = vld [vmem:[%s18891_s29] sm:$0xff]  ;;  %v17004_v1 = vld [vmem:[%s18891_s29 + $0x8] sm:$0xff] }
 0x142   : > { %650 = sbr.rel (%p18892_p8) target bundleno = 677 (0x2a5), region = 100  ;;  %s18893_s12 = sld [smem:[#allocation29_spill]] (!%p18892_p8)  ;;  %v667_v3 = vld [vmem:[#allocation4] sm:$0xff] (!%p18892_p8)  ;;  %v16503_v4 = vmov (!%p18892_p8), 0   ;;  %v668_v5 = vld [vmem:[#allocation4 + $0x8] sm:$0xff] (!%p18892_p8)  ;;  %v669_v6 = vld [vmem:[#allocation4 + $0x10] sm:$0xff] (!%p18892_p8)  ;;  %v651_v11 = vlaneseq (!%p18892_p8) }
 0x143   : > { %15134 = vset.pattern.permute.xlu0 (!%p18892_p8), %v16503_v4  ;;  %v670_v7 = vld [vmem:[#allocation4 + $0x18] sm:$0xff] (!%p18892_p8)  ;;  %v14725_v8 = vpack.c.bf16 (!%p18892_p8), %v668_v5, %v667_v3  ;;  %vm671_vm0 = vcmask (!%p18892_p8), 261120   ;;  %v16504_v14 = vmov (!%p18892_p8), 0.0  }
 0x144   : > { %v14729_v9 = vpack.c.bf16 (!%p18892_p8), %v670_v7, %v669_v6  ;;  %v652_v12 = vand.u32 (!%p18892_p8), 127, %v651_v11 }
 0x145   : > { %14726 = vmatprep.subr.bf16.mxu0 (!%p18892_p8), %v14725_v8 }
 0x146   : > { %14728 = vmatpush3.bf16.msra.mxu0 (!%p18892_p8), %v14725_v8 }
 0x147   : > { %14730 = vmatprep.subr.bf16.mxu0 (!%p18892_p8), %v14729_v9 }
 0x148   : > { %v653_v2 = vld [vmem:[%s18893_s12] sm:$0xff] (!%p18892_p8)  ;;  %v654_v10 = vld [vmem:[%s18893_s12 + $0x8] sm:$0xff] (!%p18892_p8) }
 0x149   : > { %656 = vperm.xlu0 %15134, %v653_v2  }
 0x14a   : > { %14732 = vmatpush3.bf16.msra.mxu0 %v14729_v9 }
 0x14d   : > { %659 = vperm.xlu0 %15134, %v654_v10  }
 0x1c8   : > { %v657_v13 = vpop.permute.xlu0 %656 }
 0x1c9   : > { %vm661_vm1 = vcmp.eq.s32.totalorder %v657_v13, %v652_v12 }
 0x1ca   : > { %v12845_v15 = vsel %vm661_vm1, 1.0, %v16504_v14 }
 0x1cb   : > { %14255 = vmatprep.mubr.msk.f32.mxu0 %vm671_vm0, %v12845_v15 }
 0x1cc   : > { %v660_v16 = vpop.permute.xlu0 %659 }
 0x1cd   : > { %vm662_vm2 = vcmp.eq.s32.totalorder %v660_v16, %v652_v12 }
 0x1ce   : > { %v12846_v17 = vsel %vm662_vm2, 1.0, %v16504_v14 }
 0x1cf   : > { %14256 = vmatmul.mubr.msk.f32.vlgmr.msra.gmra.mrb[0].mxu0 %vm671_vm0, %v12846_v17 }
 0x2a2   : > { %v14257_v18 = vpop.f32.mrb[0].mxu0 }
 0x2a3   : > { %754 = vst [vmem:[#allocation2 + $0x8] sm:$0xff] %v14257_v18  ;;  %v744_v19 = vpop.f32.mrb[1].mxu0 }
 0x2a4   : > { %753 = vst [vmem:[#allocation2] sm:$0xff] %v744_v19 }
 0x2a5 PF: > { %v15240_v20 = vld [vmem:[%s16963_s28 + $0x4] ss:$80 sps:$4 sm:$0xff]   ;;  %v15242_v21 = vld [vmem:[%s16963_s28] ss:$80 sps:$4 sm:$0xff]   ;;  %v16505_v22 = vmov 0   ;;  %v792_v40 = vlaneseq  ;;  %v16506_v47 = vmov 0.0  }
 0x2a6   : > { %967 = vmatprep.mubr.bf16.mxu0 %v16505_v22  ;;  %935 = vmatprep.subr.bf16.mxu0 %v15240_v20  ;;  %v15243_v23 = vld [vmem:[%s16963_s28 + $0xa4] ss:$80 sps:$4 sm:$0xff]   ;;  %v15245_v24 = vld [vmem:[%s16963_s28 + $0xa0] ss:$80 sps:$4 sm:$0xff]   ;;  %v15264_v46 = vld [vmem:[%s16963_s28 + $0x8] ss:$80 sps:$4 sm:$0xff]  }
 0x2a7   : > { %936 = vmatpush1.bf16.msra.mxu0 %v15242_v21  ;;  %v15246_v25 = vld [vmem:[%s16963_s28 + $0x144] ss:$80 sps:$4 sm:$0xff]   ;;  %v15248_v26 = vld [vmem:[%s16963_s28 + $0x140] ss:$80 sps:$4 sm:$0xff]   ;;  %v17032_v41 = vshrl.u32 %v792_v40, 7  ;;  %14258 = vmatprep.subr.bf16.mxu1 %v16506_v47  ;;  %vm16507_vm3 = vmmov 0  }
 0x2a8   : > { %937 = vmatprep.subr.bf16.mxu0 %v15243_v23  ;;  %v15249_v27 = vld [vmem:[%s16963_s28 + $0x1e4] ss:$80 sps:$4 sm:$0xff]   ;;  %v15251_v28 = vld [vmem:[%s16963_s28 + $0x1e0] ss:$80 sps:$4 sm:$0xff]   ;;  %14274 = vmatprep.mubr.msk.bf16.mxu1 %vm16507_vm3, %v16506_v47  ;;  %vm1036_vm4 = vcmask 130048   ;;  %s16508_s26 = smov 96  }
 0x2a9   : > { %v15252_v29 = vld [vmem:[%s16963_s28 + $0x284] ss:$80 sps:$4 sm:$0xff]   ;;  %v15254_v30 = vld [vmem:[%s16963_s28 + $0x280] ss:$80 sps:$4 sm:$0xff]   ;;  %v17035_v42 = vsub.s32 0, %v17032_v41  ;;  %v17041_v44 = vsub.s32 1, %v17032_v41  ;;  %14259 = vmatpush3.bf16.msra.mxu1 %v15264_v46  ;;  %vm17059_vm5 = vmpackc.low %vm1036_vm4, %vm1036_vm4 }
 0x2aa   : > { %v15255_v31 = vld [vmem:[%s16963_s28 + $0x324] ss:$80 sps:$4 sm:$0xff]   ;;  %v15257_v32 = vld [vmem:[%s16963_s28 + $0x320] ss:$80 sps:$4 sm:$0xff]   ;;  %v756_v38 = vld [vmem:[#allocation2 + $0x8] sm:$0xff]  ;;  %14260 = vmatprep.subr.bf16.mxu1 %v16506_v47  ;;  %s16509_s30 = smov 112  }
 0x2ab   : > { %938 = vmatpush1.bf16.msra.mxu0 %v15245_v24  ;;  %v15258_v33 = vld [vmem:[%s16963_s28 + $0x3c4] ss:$80 sps:$4 sm:$0xff]   ;;  %v15260_v34 = vld [vmem:[%s16963_s28 + $0x3c0] ss:$80 sps:$4 sm:$0xff]   ;;  %v15265_v50 = vld [vmem:[%s16963_s28 + $0xa8] ss:$80 sps:$4 sm:$0xff]  }
 0x2ac   : > { %939 = vmatprep.subr.bf16.mxu0 %v15246_v25  ;;  %v15261_v35 = vld [vmem:[%s16963_s28 + $0x464] ss:$80 sps:$4 sm:$0xff]   ;;  %v15263_v36 = vld [vmem:[%s16963_s28 + $0x460] ss:$80 sps:$4 sm:$0xff]   ;;  %v15266_v58 = vld [vmem:[%s16963_s28 + $0x148] ss:$80 sps:$4 sm:$0xff]  }
 0x2ad   : > { %v755_v37 = vld [vmem:[#allocation2] sm:$0xff]  ;;  %14261 = vmatpush3.bf16.msra.mxu1 %v15265_v50  ;;  %v15267_v61 = vld [vmem:[%s16963_s28 + $0x1e8] ss:$80 sps:$4 sm:$0xff]   ;;  %v17094_v13 = vsub.s32 2, %v17032_v41  ;;  %s16510_s24 = smov 80   ;;  %s16511_s21 = smov 64  }
 0x2ae   : > { %v790_v39 = vpack.c.bf16 %v756_v38, %v755_v37  ;;  %v17038_v43 = vld [vmem:[%s16971_s5] sm:$0x7]  ;;  %14262 = vmatprep.subr.bf16.mxu1 %v16506_v47  ;;  %s16512_s7 = smov 48   ;;  %s16513_s15 = smov 32   ;;  %vm2719_vm6 = vcmask 261120   ;;  %vm2722_vm7 = vcmask 392192  }
 0x2af   : > { %940 = vmatpush1.bf16.msra.mxu0 %v15248_v26  ;;  %v795_v45 = vrot.slane %v17038_v43, %v17035_v42  ;;  %v799_v49 = vrot.slane %v17038_v43, %v17041_v44  ;;  %v15268_v62 = vld [vmem:[%s16963_s28 + $0x288] ss:$80 sps:$4 sm:$0xff]   ;;  %v803_v15 = vrot.slane %v17038_v43, %v17094_v13  ;;  %s16514_s19 = smov 16   ;;  %vm2725_vm8 = vcmask 523264   ;;  %p13191_p13 = scmp.ne.s32.totalorder %s16780_s11, 3 }
 0x2b0   : > { %941 = vmatprep.subr.bf16.mxu0 %v15249_v27  ;;  %v15269_v2 = vld [vmem:[%s16963_s28 + $0x328] ss:$80 sps:$4 sm:$0xff]   ;;  %vm2728_vm9 = vcmask 654336   ;;  %vm2731_vm10 = vcmask 785408   ;;  %vm2734_vm11 = vcmask 916480  }
 0x2b1   : > { %14263 = vmatpush3.bf16.msra.mxu1 %v15266_v58  ;;  %v15270_v3 = vld [vmem:[%s16963_s28 + $0x3c8] ss:$80 sps:$4 sm:$0xff]  }
 0x2b2   : > { %14264 = vmatprep.subr.bf16.mxu1 %v16506_v47  ;;  %v15271_v4 = vld [vmem:[%s16963_s28 + $0x468] ss:$80 sps:$4 sm:$0xff]  }
 0x2b3   : > { %942 = vmatpush1.bf16.msra.mxu0 %v15251_v28 }
 0x2b4   : > { %943 = vmatprep.subr.bf16.mxu0 %v15252_v29 }
 0x2b5   : > { %14265 = vmatpush3.bf16.msra.mxu1 %v15267_v61 }
 0x2b6   : > { %14266 = vmatprep.subr.bf16.mxu1 %v16506_v47 }
 0x2b7   : > { %944 = vmatpush1.bf16.msra.mxu0 %v15254_v30 }
 0x2b8   : > { %945 = vmatprep.subr.bf16.mxu0 %v15255_v31 }
 0x2b9   : > { %14267 = vmatpush3.bf16.msra.mxu1 %v15268_v62 }
 0x2ba   : > { %14268 = vmatprep.subr.bf16.mxu1 %v16506_v47 }
 0x2bb   : > { %946 = vmatpush1.bf16.msra.mxu0 %v15257_v32 }
 0x2bc   : > { %947 = vmatprep.subr.bf16.mxu0 %v15258_v33 }
 0x2bd   : > { %14269 = vmatpush3.bf16.msra.mxu1 %v15269_v2 }
 0x2be   : > { %14270 = vmatprep.subr.bf16.mxu1 %v16506_v47 }
 0x2bf   : > { %948 = vmatpush1.bf16.msra.mxu0 %v15260_v34 }
 0x2c0   : > { %949 = vmatprep.subr.bf16.mxu0 %v15261_v35 }
 0x2c1   : > { %14271 = vmatpush3.bf16.msra.mxu1 %v15270_v3 }
 0x2c2   : > { %14272 = vmatprep.subr.bf16.mxu1 %v16506_v47 }
 0x2c3   : > { %950 = vmatpush1.bf16.msra.mxu0 %v15263_v36 }
 0x2c5   : > { %14273 = vmatpush3.bf16.msra.mxu1 %v15271_v4 }
 0x2c6   : > { %968 = vmatmul.mubr.bf16.vlgmr.msra.gmra.mrb[0].mxu0 %v790_v39 }
 0x2c8   : > { %14275 = vmatmul.mubr.bf16.vlgmr.msra.gmra.mrb[0].mxu1 %v790_v39 }
 0x399   : > { %v969_v48 = vpop.f32.mrb[0].mxu0 }
 0x39a   : > { %v17052_v51 = vadd.f32 %v969_v48, %v795_v45  ;;  %v971_v52 = vpop.f32.mrb[1].mxu0 }
 0x39b   : > { %v973_v53 = vpop.f32.mrb[2].mxu0  ;;  %v972_v55 = vadd.f32 %v971_v52, %v799_v49  ;;  %v1012_v14 = vpop.f32.mrb[0].mxu1 }
 0x39c   : > { %v975_v54 = vpop.f32.mrb[3].mxu0  ;;  %14282 = vmatprep.mubr.msk.f32.mxu0 %vm1036_vm4, %v17052_v51  ;;  %v17078_v63 = vadd.f32 %v973_v53, %v795_v45  ;;  %v14276_v16 = vpop.f32.mrb[1].mxu1  ;;  %v17098_v18 = vadd.f32 %v1012_v14, %v803_v15 }
 0x39d   : > { %v976_v56 = vadd.f32 %v975_v54, %v799_v49  ;;  %v1015_v17 = vpop.f32.mrb[2].mxu1 }
 0x39e   : > { %v17100_v19 = vadd.f32 %v1015_v17, %v803_v15  ;;  %v14277_v20 = vpop.f32.mrb[3].mxu1 }
 0x39f   : > { %v17065_v59 = vpack.i.bf16 %v976_v56, %v972_v55  ;;  %v14733_v60 = vpack.c.bf16 %v976_v56, %v972_v55 }
 0x3a0   : > { %v14739_v21 = vpack.c.bf16 %v17100_v19, %v17098_v18 }
 0x3a1   : > { %15141 = vrot.lane.b32.xlu1 %v17065_v59, %s16508_s26  ;;  %14735 = vmatprep.subr.msk.bf16.mxu0 %vm17059_vm5, %v14733_v60 }
 0x3a2   : > { %14738 = vmatpush3.bf16.xpose.msk.msra.mxu0 %vm17059_vm5, %v14733_v60 }
 0x3a3   : > { %14740 = vmatprep.subr.bf16.mxu0 %v14739_v21 }
 0x3a5   : > { %1231 = vrot.lane.b32.xlu1 %v17052_v51, %s16509_s30 }
 0x3a9   : > { %14283 = vmatmul.mubr.msk.f32.vlgmr.msra.gmra.mrb[4].mxu0 %vm1036_vm4, %v17078_v63 }
 0x3aa   : > { %14742 = vmatpush3.bf16.msra.mxu0 %v14739_v21 }
 0x413   : > { %v15142_v37 = vpop.permute.xlu1 %15141 }
 0x414   : > { %v15144_v46 = vunpack.i.h.bf16 %v15142_v37  ;;  %v15143_v48 = vunpack.i.l.bf16 %v15142_v37 }
 0x416   : > { %v14753_v52 = vpack.c.bf16 %v15144_v46, %v15143_v48 }
 0x417   : > { %v1232_v38 = vpop.permute.xlu1 %1231 }
 0x47c   : > { %v14284_v5 = vpop.f32.mrb[4].mxu0 }
 0x47d   : > { %v1115_v6 = vpop.f32.mrb[5].mxu0  ;;  %v1125_v7 = vmul.f32 0.25, %v14284_v5 }
 0x47e   : > { %v1124_v8 = vmul.f32 0.25, %v1115_v6 }
 0x47f   : > { %v1127_v10 = vadd.f32 %v1125_v7, %v17004_v1 }
 0x480   : > { %v1126_v9 = vadd.f32 %v1124_v8, %v16999_v0 }
 0x481   : > { %v1131_v12 = vsel %vm1036_vm4, %v1127_v10, -inf }
 0x482   : > { %v1128_v11 = vsel %vm1036_vm4, %v1126_v9, -inf }
 0x483   : > { %1129 = vmax.xlane.f32.xlu0 %v1128_v11 }
 0x487   : > { %1132 = vmax.xlane.f32.xlu0 %v1131_v12 }
 0x49d   : > { %15136 = vrot.lane.b32.xlu0 %v17065_v59, %s16509_s30 }
 0x4a1   : > { %1437 = vrot.lane.b32.xlu0 %v17052_v51, %s16508_s26 }
 0x510   : > { %v1130_v23 = vpop.xlane.xlu0 %1129 }
 0x511   : > { %v1134_v24 = vsub.f32 %v1126_v9, %v1130_v23 }
 0x513   : > { %v1136_v27 = vmul.f32 1.442695, %v1134_v24 }
 0x514   : > { %v1133_v25 = vpop.xlane.xlu0 %1132 }
 0x515   : > { %v1135_v26 = vsub.f32 %v1127_v10, %v1133_v25 }
 0x517   : > { %v1138_v28 = vmul.f32 1.442695, %v1135_v26  ;;  %v17148_v26 = vpack.i.bf16 %v17100_v19, %v17098_v18 }
 0x518   : > { %v15137_v29 = vpop.permute.xlu0 %15136 }
 0x519   : > { %15600 = vpow2.f32 %v1138_v28  ;;  %v15139_v30 = vunpack.i.h.bf16 %v15137_v29  ;;  %v15138_v31 = vunpack.i.l.bf16 %v15137_v29 }
 0x51a   : > { %15602 = vpow2.f32 %v1136_v27 }
 0x51b   : > { %v14743_v32 = vpack.c.bf16 %v15139_v30, %v15138_v31 }
 0x51c   : > { %v1438_v54 = vpop.permute.xlu0 %1437 }
 0x51d   : > { %14745 = vmatprep.subr.msk.bf16.mxu0 %vm17059_vm5, %v14743_v32 }
 0x523   : > { %v15601_v33 = vpop.eup %15600 }
 0x524   : > { %v1143_v34 = vsel %vm1036_vm4, %v15601_v33, 0.0  ;;  %v15603_v35 = vpop.eup %15602 }
 0x525   : > { %1144 = vadd.xlane.f32.xlu1 %v1143_v34  ;;  %v1140_v36 = vsel %vm1036_vm4, %v15603_v35, 0.0 }
 0x529   : > { %1141 = vadd.xlane.f32.xlu1 %v1140_v36 }
 0x53a   : > { %1233 = vrot.lane.b32.xlu1 %v17078_v63, %s16509_s30 }
 0x53e   : > { %1439 = vrot.lane.b32.xlu1 %v17078_v63, %s16508_s26 }
 0x5b2   : > { %v1145_v39 = vpop.xlane.xlu1 %1144 }
 0x5b3   : > { %15604 = vrcp.f32 %v1145_v39 }
 0x5b6   : > { %v1142_v40 = vpop.xlane.xlu1 %1141 }
 0x5b7   : > { %15606 = vrcp.f32 %v1142_v40 }
 0x5ba   : > { %v1234_v53 = vpop.permute.xlu1 %1233 }
 0x5bd   : > { %v15605_v43 = vpop.eup %15604 }
 0x5be   : > { %v1149_v50 = vmul.f32 %v15605_v43, %v15601_v33  ;;  %v1440_v55 = vpop.permute.xlu1 %1439 }
 0x5c1   : > { %v15607_v45 = vpop.eup %15606 }
 0x5c2   : > { %v1148_v49 = vmul.f32 %v15607_v45, %v15603_v35 }
 0x5c4   : > { %14289 = vmatprep.mubr.msk.f32.mxu0 %vm1036_vm4, %v1148_v49 }
 0x5c5   : > { %14290 = vmatmul.mubr.msk.f32.vlgmr.msra.gmra.mrb[6].mxu0 %vm1036_vm4, %v1149_v50 }
 0x5c6   : > { %14748 = vmatpush3.bf16.xpose.msk.msra.mxu0 %vm17059_vm5, %v14743_v32  ;;  %14296 = vmatprep.mubr.msk.f32.mxu0 %vm1036_vm4, %v1232_v38 }
 0x5c7   : > { %14755 = vmatprep.subr.msk.bf16.mxu0 %vm17059_vm5, %v14753_v52 }
 0x5cd   : > { %14297 = vmatmul.mubr.msk.f32.vlgmr.msra.gmra.mrb[8].mxu0 %vm1036_vm4, %v1234_v53 }
 0x5ce   : > { %14758 = vmatpush3.bf16.xpose.msk.msra.mxu0 %vm17059_vm5, %v14753_v52  ;;  %14310 = vmatprep.mubr.msk.f32.mxu0 %vm1036_vm4, %v1438_v54 }
 0x5d5   : > { %14311 = vmatmul.mubr.msk.f32.vlgmr.msra.gmra.mrb[10].mxu0 %vm1036_vm4, %v1440_v55 }
 0x698   : > { %v17128_v56 = vpop.f32.mrb[6].mxu0 }
 0x699   : > { %v17130_v58 = vpop.f32.mrb[7].mxu0 }
 0x6a0   : > { %v14298_v60 = vpop.f32.mrb[8].mxu0 }
 0x6a1   : > { %v1313_v61 = vpop.f32.mrb[9].mxu0  ;;  %v1323_v9 = vmul.f32 0.25, %v14298_v60 }
 0x6a2   : > { %v1322_v33 = vmul.f32 0.25, %v1313_v61 }
 0x6a3   : > { %v1325_v10 = vadd.f32 %v1323_v9, %v17004_v1 }
 0x6a4   : > { %v1324_v34 = vadd.f32 %v1322_v33, %v16999_v0 }
 0x6a5   : > { %v1329_v11 = vsel %vm1036_vm4, %v1325_v10, -inf }
 0x6a6   : > { %v1326_v35 = vsel %vm1036_vm4, %v1324_v34, -inf }
 0x6a8   : > { %v14312_v62 = vpop.f32.mrb[10].mxu0 }
 0x6a9   : > { %v1529_v2 = vmul.f32 0.25, %v14312_v62  ;;  %v1519_v3 = vpop.f32.mrb[11].mxu0 }
 0x6aa   : > { %v1528_v4 = vmul.f32 0.25, %v1519_v3 }
 0x6ab   : > { %v1531_v5 = vadd.f32 %v1529_v2, %v17004_v1 }
 0x6ac   : > { %v1530_v6 = vadd.f32 %v1528_v4, %v16999_v0 }
 0x6ad   : > { %v1535_v7 = vsel %vm1036_vm4, %v1531_v5, -inf }
 0x6ae   : > { %1536 = vmax.xlane.f32.xlu1 %v1535_v7  ;;  %v1532_v8 = vsel %vm1036_vm4, %v1530_v6, -inf }
 0x6af   : > { %1533 = vmax.xlane.f32.xlu0 %v1532_v8 }
 0x6bf   : > { %15151 = vrot.lane.b32.xlu1 %v17065_v59, %s16510_s24 }
 0x6c3   : > { %1641 = vrot.lane.b32.xlu1 %v17052_v51, %s16510_s24 }
 0x6c7   : > { %1643 = vrot.lane.b32.xlu1 %v17078_v63, %s16510_s24 }
 0x6eb   : > { %1330 = vmax.xlane.f32.xlu1 %v1329_v11 }
 0x73b   : > { %v1537_v12 = vpop.xlane.xlu1 %1536 }
 0x73c   : > { %v1539_v14 = vsub.f32 %v1531_v5, %v1537_v12  ;;  %v1534_v15 = vpop.xlane.xlu0 %1533 }
 0x73d   : > { %v1538_v16 = vsub.f32 %v1530_v6, %v1534_v15 }
 0x73e   : > { %v1542_v17 = vmul.f32 1.442695, %v1539_v14 }
 0x73f   : > { %v1540_v20 = vmul.f32 1.442695, %v1538_v16  ;;  %v15152_v27 = vpop.permute.xlu1 %15151 }
 0x740   : > { %15608 = vpow2.f32 %v1542_v17  ;;  %v15154_v39 = vunpack.i.h.bf16 %v15152_v27  ;;  %v15153_v40 = vunpack.i.l.bf16 %v15152_v27 }
 0x741   : > { %15610 = vpow2.f32 %v1540_v20 }
 0x742   : > { %v14763_v48 = vpack.c.bf16 %v15154_v39, %v15153_v40 }
 0x743   : > { %v1642_v28 = vpop.permute.xlu1 %1641 }
 0x747   : > { %v1644_v29 = vpop.permute.xlu1 %1643 }
 0x74a   : > { %v15609_v21 = vpop.eup %15608 }
 0x74b   : > { %v1547_v23 = vsel %vm1036_vm4, %v15609_v21, 0.0  ;;  %v15611_v24 = vpop.eup %15610 }
 0x74c   : > { %1548 = vadd.xlane.f32.xlu0 %v1547_v23  ;;  %v1544_v25 = vsel %vm1036_vm4, %v15611_v24, 0.0 }
 0x750   : > { %1545 = vadd.xlane.f32.xlu0 %v1544_v25 }
 0x766   : > { %15146 = vrot.lane.b32.xlu0 %v17148_v26, %s16508_s26 }
 0x778   : > { %v1331_v30 = vpop.xlane.xlu1 %1330 }
 0x779   : > { %v1333_v31 = vsub.f32 %v1325_v10, %v1331_v30 }
 0x77b   : > { %v1336_v32 = vmul.f32 1.442695, %v1333_v31 }
 0x77d   : > { %15612 = vpow2.f32 %v1336_v32 }
 0x785   : > { %1327 = vmax.xlane.f32.xlu0 %v1326_v35 }
 0x787   : > { %v17154_v36 = vpop.eup %15612 }
 0x788   : > { %v1341_v18 = vsel %vm1036_vm4, %v17154_v36, 0.0 }
 0x789   : > { %1342 = vadd.xlane.f32.xlu1 %v1341_v18 }
 0x7d9   : > { %v1549_v19 = vpop.xlane.xlu0 %1548 }
 0x7da   : > { %15614 = vrcp.f32 %v1549_v19 }
 0x7dd   : > { %v1546_v37 = vpop.xlane.xlu0 %1545 }
 0x7de   : > { %15616 = vrcp.f32 %v1546_v37 }
 0x7e1   : > { %v15147_v38 = vpop.permute.xlu0 %15146 }
 0x7e2   : > { %v15149_v43 = vunpack.i.h.bf16 %v15147_v38  ;;  %v15148_v45 = vunpack.i.l.bf16 %v15147_v38 }
 0x7e4   : > { %v14759_v46 = vpack.c.bf16 %v15149_v43, %v15148_v45  ;;  %v15615_v49 = vpop.eup %15614 }
 0x7e5   : > { %v1553_v53 = vmul.f32 %v15615_v49, %v15609_v21 }
 0x7e6   : > { %14760 = vmatprep.subr.bf16.mxu0 %v14759_v46 }
 0x7e7   : > { %14762 = vmatpush3.bf16.msra.mxu0 %v14759_v46 }
 0x7e8   : > { %v15617_v50 = vpop.eup %15616  ;;  %14765 = vmatprep.subr.msk.bf16.mxu0 %vm17059_vm5, %v14763_v48 }
 0x7e9   : > { %v1552_v52 = vmul.f32 %v15617_v50, %v15611_v24 }
 0x7eb   : > { %14317 = vmatprep.mubr.msk.f32.mxu0 %vm1036_vm4, %v1552_v52 }
 0x7ec   : > { %14318 = vmatmul.mubr.msk.f32.vlgmr.msra.gmra.mrb[12].mxu0 %vm1036_vm4, %v1553_v53 }
 0x7ed   : > { %14324 = vmatprep.mubr.msk.f32.mxu0 %vm1036_vm4, %v1642_v28 }
 0x7f0   : > { %14768 = vmatpush3.bf16.xpose.msk.msra.mxu0 %vm17059_vm5, %v14763_v48 }
 0x7f7   : > { %14325 = vmatmul.mubr.msk.f32.vlgmr.msra.gmra.mrb[14].mxu0 %vm1036_vm4, %v1644_v29 }
 0x812   : > { %v1328_v55 = vpop.xlane.xlu0 %1327 }
 0x813   : > { %v1332_v62 = vsub.f32 %v1324_v34, %v1328_v55 }
 0x815   : > { %v1334_v2 = vmul.f32 1.442695, %v1332_v62 }
 0x816   : > { %v1343_v31 = vpop.xlane.xlu1 %1342 }
 0x817   : > { %15618 = vpow2.f32 %v1334_v2 }
 0x821   : > { %v15619_v11 = vpop.eup %15618 }
 0x822   : > { %v1338_v12 = vsel %vm1036_vm4, %v15619_v11, 0.0 }
 0x8bf   : > { %v17166_v54 = vpop.f32.mrb[12].mxu0 }
 0x8c0   : > { %v17168_v60 = vpop.f32.mrb[13].mxu0 }
 0x8c1   : > { %v15210_v61 = vpack.i.bf16 %v17166_v54, %v17168_v60 }
 0x8ca   : > { %v14326_v3 = vpop.f32.mrb[14].mxu0 }
 0x8cb   : > { %v1723_v4 = vpop.f32.mrb[15].mxu0  ;;  %v1733_v5 = vmul.f32 0.25, %v14326_v3 }
 0x8cc   : > { %v1732_v6 = vmul.f32 0.25, %v1723_v4 }
 0x8cd   : > { %v1735_v8 = vadd.f32 %v1733_v5, %v17004_v1 }
 0x8ce   : > { %v1734_v7 = vadd.f32 %v1732_v6, %v16999_v0 }
 0x8cf   : > { %v1739_v10 = vsel %vm1036_vm4, %v1735_v8, -inf }
 0x8d0   : > { %v1736_v9 = vsel %vm1036_vm4, %v1734_v7, -inf }
 0x8d1   : > { %1737 = vmax.xlane.f32.xlu0 %v1736_v9 }
 0x8d5   : > { %1740 = vmax.xlane.f32.xlu0 %v1739_v10 }
 0x8d9   : > { %1339 = vadd.xlane.f32.xlu0 %v1338_v12 }
 0x95e   : > { %v1738_v14 = vpop.xlane.xlu0 %1737 }
 0x95f   : > { %v1742_v15 = vsub.f32 %v1734_v7, %v1738_v14 }
 0x961   : > { %v1744_v16 = vmul.f32 1.442695, %v1742_v15 }
 0x962   : > { %v1741_v17 = vpop.xlane.xlu0 %1740 }
 0x963   : > { %15620 = vpow2.f32 %v1744_v16  ;;  %v1743_v20 = vsub.f32 %v1735_v8, %v1741_v17 }
 0x965   : > { %v1746_v21 = vmul.f32 1.442695, %v1743_v20 }
 0x966   : > { %v1340_v23 = vpop.xlane.xlu0 %1339 }
 0x967   : > { %15622 = vpow2.f32 %v1746_v21 }
 0x968   : > { %15624 = vrcp.f32 %v1340_v23 }
 0x969   : > { %15626 = vrcp.f32 %v1343_v31 }
 0x96d   : > { %v15621_v24 = vpop.eup %15620 }
 0x96e   : > { %v1748_v25 = vsel %vm1036_vm4, %v15621_v24, 0.0 }
 0x96f   : > { %1749 = vadd.xlane.f32.xlu0 %v1748_v25 }
 0x971   : > { %v15623_v27 = vpop.eup %15622 }
 0x972   : > { %v15625_v28 = vpop.eup %15624  ;;  %v1751_v29 = vsel %vm1036_vm4, %v15623_v27, 0.0 }
 0x973   : > { %1752 = vadd.xlane.f32.xlu1 %v1751_v29  ;;  %v1346_v30 = vmul.f32 %v15625_v28, %v15619_v11  ;;  %v15627_v37 = vpop.eup %15626 }
 0x974   : > { %v1347_v45 = vmul.f32 %v15627_v37, %v17154_v36 }
 0x975   : > { %14303 = vmatprep.mubr.msk.f32.mxu1 %vm1036_vm4, %v1346_v30 }
 0x984   : > { %15161 = vrot.lane.b32.xlu1 %v17148_v26, %s16510_s24 }
 0x985   : > { %15156 = vrot.lane.b32.xlu0 %v17148_v26, %s16509_s30 }
 0x988   : > { %15166 = vrot.lane.b32.xlu1 %v17065_v59, %s16511_s21 }
 0x989   : > { %1847 = vrot.lane.b32.xlu0 %v17078_v63, %s16511_s21 }
 0x98c   : > { %1845 = vrot.lane.b32.xlu1 %v17052_v51, %s16511_s21 }
 0x9fc   : > { %v1750_v32 = vpop.xlane.xlu0 %1749 }
 0x9fd   : > { %15628 = vrcp.f32 %v1750_v32 }
 0xa00   : > { %v1753_v33 = vpop.xlane.xlu1 %1752  ;;  %v15157_v34 = vpop.permute.xlu0 %15156 }
 0xa01   : > { %15630 = vrcp.f32 %v1753_v33  ;;  %v15159_v35 = vunpack.i.h.bf16 %v15157_v34  ;;  %v15158_v18 = vunpack.i.l.bf16 %v15157_v34 }
 0xa03   : > { %v14749_v19 = vpack.c.bf16 %v15159_v35, %v15158_v18 }
 0xa04   : > { %v15162_v38 = vpop.permute.xlu1 %15161  ;;  %v1848_v36 = vpop.permute.xlu0 %1847 }
 0xa05   : > { %v15164_v39 = vunpack.i.h.bf16 %v15162_v38  ;;  %v15163_v40 = vunpack.i.l.bf16 %v15162_v38  ;;  %14750 = vmatprep.subr.bf16.mxu1 %v14749_v19 }
 0xa06   : > { %14752 = vmatpush3.bf16.msra.mxu1 %v14749_v19 }
 0xa07   : > { %v15629_v43 = vpop.eup %15628  ;;  %v14769_v46 = vpack.c.bf16 %v15164_v39, %v15163_v40 }
 0xa08   : > { %v15167_v48 = vpop.permute.xlu1 %15166  ;;  %v1756_v49 = vmul.f32 %v15629_v43, %v15621_v24 }
 0xa09   : > { %v15169_v50 = vunpack.i.h.bf16 %v15167_v48  ;;  %v15168_v52 = vunpack.i.l.bf16 %v15167_v48  ;;  %14304 = vmatmul.mubr.msk.f32.vlgmr.msra.gmra.mrb[4].mxu1 %vm1036_vm4, %v1347_v45  ;;  %14770 = vmatprep.subr.bf16.mxu1 %v14769_v46 }
 0xa0a   : > { %14772 = vmatpush3.bf16.msra.mxu1 %v14769_v46  ;;  %14331 = vmatprep.mubr.msk.f32.mxu1 %vm1036_vm4, %v1756_v49 }
 0xa0b   : > { %v15631_v53 = vpop.eup %15630  ;;  %v14773_v55 = vpack.c.bf16 %v15169_v50, %v15168_v52 }
 0xa0c   : > { %v1757_v62 = vmul.f32 %v15631_v53, %v15623_v27  ;;  %v1846_v2 = vpop.permute.xlu1 %1845 }
 0xa0d   : > { %14775 = vmatprep.subr.msk.bf16.mxu1 %vm17059_vm5, %v14773_v55 }
 0xa0e   : > { %14332 = vmatmul.mubr.msk.f32.vlgmr.msra.gmra.mrb[6].mxu1 %vm1036_vm4, %v1757_v62 }
 0xa0f   : > { %14338 = vmatprep.mubr.msk.f32.mxu1 %vm1036_vm4, %v1846_v2 }
 0xa13   : > { %14778 = vmatpush3.bf16.xpose.msk.msra.mxu1 %vm17059_vm5, %v14773_v55 }
 0xa1a   : > { %14339 = vmatmul.mubr.msk.f32.vlgmr.msra.gmra.mrb[8].mxu1 %vm1036_vm4, %v1848_v36 }
 0xadc   : > { %v17200_v3 = vpop.f32.mrb[4].mxu1 }
 0xadd   : > { %v17202_v4 = vpop.f32.mrb[5].mxu1 }
 0xade   : > { %v15205_v5 = vpack.i.bf16 %v17200_v3, %v17202_v4  ;;  %v15272_v4 = vld [vmem:[%s16963_s28 + $0xc] ss:$80 sps:$4 sm:$0xff]  }
 0xae1   : > { %v17206_v6 = vpop.f32.mrb[6].mxu1 }
 0xae2   : > { %v17208_v7 = vpop.f32.mrb[7].mxu1 }
 0xae3   : > { %v15215_v8 = vpack.i.bf16 %v17206_v6, %v17208_v7 }
 0xaed   : > { %v14340_v9 = vpop.f32.mrb[8].mxu1 }
 0xaee   : > { %v1937_v10 = vmul.f32 0.25, %v14340_v9  ;;  %v1927_v11 = vpop.f32.mrb[9].mxu1 }
 0xaef   : > { %v1936_v12 = vmul.f32 0.25, %v1927_v11 }
 0xaf0   : > { %v1939_v14 = vadd.f32 %v1937_v10, %v17004_v1 }
 0xaf1   : > { %v1938_v15 = vadd.f32 %v1936_v12, %v16999_v0 }
 0xaf2   : > { %v1943_v16 = vsel %vm1036_vm4, %v1939_v14, -inf }
 0xaf3   : > { %1944 = vmax.xlane.f32.xlu0 %v1943_v16  ;;  %v1940_v17 = vsel %vm1036_vm4, %v1938_v15, -inf }
 0xaf4   : > { %1941 = vmax.xlane.f32.xlu1 %v1940_v17 }
 0xb05   : > { %15171 = vrot.lane.b32.xlu1 %v17148_v26, %s16511_s21 }
 0xb09   : > { %2049 = vrot.lane.b32.xlu1 %v17052_v51, %s16512_s7 }
 0xb0d   : > { %2051 = vrot.lane.b32.xlu1 %v17078_v63, %s16512_s7 }
 0xb80   : > { %v1945_v20 = vpop.xlane.xlu0 %1944 }
 0xb81   : > { %v1947_v21 = vsub.f32 %v1939_v14, %v1945_v20  ;;  %v1942_v23 = vpop.xlane.xlu1 %1941 }
 0xb82   : > { %v1946_v24 = vsub.f32 %v1938_v15, %v1942_v23 }
 0xb83   : > { %v1950_v25 = vmul.f32 1.442695, %v1947_v21 }
 0xb84   : > { %v1948_v27 = vmul.f32 1.442695, %v1946_v24 }
 0xb85   : > { %15632 = vpow2.f32 %v1950_v25  ;;  %v15172_v28 = vpop.permute.xlu1 %15171 }
 0xb86   : > { %v15174_v29 = vunpack.i.h.bf16 %v15172_v28  ;;  %v15173_v30 = vunpack.i.l.bf16 %v15172_v28  ;;  %15634 = vpow2.f32 %v1948_v27 }
 0xb88   : > { %v14779_v31 = vpack.c.bf16 %v15174_v29, %v15173_v30 }
 0xb89   : > { %v2050_v49 = vpop.permute.xlu1 %2049 }
 0xb8a   : > { %14780 = vmatprep.subr.bf16.mxu0 %v14779_v31 }
 0xb8b   : > { %14782 = vmatpush3.bf16.msra.mxu0 %v14779_v31 }
 0xb8d   : > { %v2052_v50 = vpop.permute.xlu1 %2051 }
 0xb8f   : > { %v15633_v32 = vpop.eup %15632 }
 0xb90   : > { %v1955_v33 = vsel %vm1036_vm4, %v15633_v32, 0.0  ;;  %v15635_v34 = vpop.eup %15634 }
 0xb91   : > { %1956 = vadd.xlane.f32.xlu0 %v1955_v33  ;;  %v1952_v35 = vsel %vm1036_vm4, %v15635_v34, 0.0 }
 0xb95   : > { %1953 = vadd.xlane.f32.xlu0 %v1952_v35 }
 0xbab   : > { %15176 = vrot.lane.b32.xlu0 %v17065_v59, %s16512_s7 }
 0xc1e   : > { %v1957_v18 = vpop.xlane.xlu0 %1956 }
 0xc1f   : > { %15636 = vrcp.f32 %v1957_v18 }
 0xc22   : > { %v1954_v19 = vpop.xlane.xlu0 %1953 }
 0xc23   : > { %15638 = vrcp.f32 %v1954_v19 }
 0xc26   : > { %v15177_v37 = vpop.permute.xlu0 %15176 }
 0xc27   : > { %v15179_v38 = vunpack.i.h.bf16 %v15177_v37  ;;  %v15178_v39 = vunpack.i.l.bf16 %v15177_v37 }
 0xc29   : > { %v14783_v40 = vpack.c.bf16 %v15179_v38, %v15178_v39  ;;  %v15637_v43 = vpop.eup %15636 }
 0xc2a   : > { %v1961_v48 = vmul.f32 %v15637_v43, %v15633_v32 }
 0xc2b   : > { %14785 = vmatprep.subr.msk.bf16.mxu0 %vm17059_vm5, %v14783_v40 }
 0xc2d   : > { %v15639_v45 = vpop.eup %15638 }
 0xc2e   : > { %v1960_v46 = vmul.f32 %v15639_v45, %v15635_v34 }
 0xc30   : > { %14345 = vmatprep.mubr.msk.f32.mxu0 %vm1036_vm4, %v1960_v46 }
 0xc31   : > { %14346 = vmatmul.mubr.msk.f32.vlgmr.msra.gmra.mrb[16].mxu0 %vm1036_vm4, %v1961_v48 }
 0xc32   : > { %14788 = vmatpush3.bf16.xpose.msk.msra.mxu0 %vm17059_vm5, %v14783_v40  ;;  %14352 = vmatprep.mubr.msk.f32.mxu0 %vm1036_vm4, %v2050_v49 }
 0xc39   : > { %14353 = vmatmul.mubr.msk.f32.vlgmr.msra.gmra.mrb[18].mxu0 %vm1036_vm4, %v2052_v50 }
 0xd04   : > { %v17234_v52 = vpop.f32.mrb[16].mxu0 }
 0xd05   : > { %v17236_v53 = vpop.f32.mrb[17].mxu0 }
 0xd06   : > { %v15220_v55 = vpack.i.bf16 %v17234_v52, %v17236_v53 }
 0xd0c   : > { %v14354_v62 = vpop.f32.mrb[18].mxu0 }
 0xd0d   : > { %v2141_v2 = vmul.f32 0.25, %v14354_v62  ;;  %v2131_v36 = vpop.f32.mrb[19].mxu0 }
 0xd0e   : > { %v2140_v9 = vmul.f32 0.25, %v2131_v36 }
 0xd0f   : > { %v2143_v10 = vadd.f32 %v2141_v2, %v17004_v1 }
 0xd10   : > { %v2142_v11 = vadd.f32 %v2140_v9, %v16999_v0 }
 0xd11   : > { %v2147_v12 = vsel %vm1036_vm4, %v2143_v10, -inf }
 0xd12   : > { %2148 = vmax.xlane.f32.xlu0 %v2147_v12  ;;  %v2144_v14 = vsel %vm1036_vm4, %v2142_v11, -inf }
 0xd13   : > { %2145 = vmax.xlane.f32.xlu1 %v2144_v14 }
 0xd24   : > { %15181 = vrot.lane.b32.xlu1 %v17148_v26, %s16512_s7 }
 0xd28   : > { %2253 = vrot.lane.b32.xlu1 %v17052_v51, %s16513_s15 }
 0xd2c   : > { %2255 = vrot.lane.b32.xlu1 %v17078_v63, %s16513_s15 }
 0xd9f   : > { %v2149_v15 = vpop.xlane.xlu0 %2148 }
 0xda0   : > { %v2151_v16 = vsub.f32 %v2143_v10, %v2149_v15  ;;  %v2146_v17 = vpop.xlane.xlu1 %2145 }
 0xda1   : > { %v2150_v20 = vsub.f32 %v2142_v11, %v2146_v17 }
 0xda2   : > { %v2154_v21 = vmul.f32 1.442695, %v2151_v16 }
 0xda3   : > { %v2152_v23 = vmul.f32 1.442695, %v2150_v20 }
 0xda4   : > { %15640 = vpow2.f32 %v2154_v21  ;;  %v15182_v24 = vpop.permute.xlu1 %15181 }
 0xda5   : > { %v15184_v25 = vunpack.i.h.bf16 %v15182_v24  ;;  %v15183_v27 = vunpack.i.l.bf16 %v15182_v24  ;;  %15642 = vpow2.f32 %v2152_v23 }
 0xda7   : > { %v14789_v28 = vpack.c.bf16 %v15184_v25, %v15183_v27 }
 0xda8   : > { %v2254_v45 = vpop.permute.xlu1 %2253 }
 0xda9   : > { %14790 = vmatprep.subr.bf16.mxu1 %v14789_v28 }
 0xdaa   : > { %14792 = vmatpush3.bf16.msra.mxu1 %v14789_v28 }
 0xdac   : > { %v2256_v46 = vpop.permute.xlu1 %2255 }
 0xdae   : > { %v15641_v29 = vpop.eup %15640 }
 0xdaf   : > { %v2159_v30 = vsel %vm1036_vm4, %v15641_v29, 0.0  ;;  %v15643_v31 = vpop.eup %15642 }
 0xdb0   : > { %2160 = vadd.xlane.f32.xlu0 %v2159_v30  ;;  %v2156_v32 = vsel %vm1036_vm4, %v15643_v31, 0.0 }
 0xdb4   : > { %2157 = vadd.xlane.f32.xlu0 %v2156_v32 }
 0xdca   : > { %15186 = vrot.lane.b32.xlu0 %v17065_v59, %s16513_s15 }
 0xe3d   : > { %v2161_v33 = vpop.xlane.xlu0 %2160 }
 0xe3e   : > { %15644 = vrcp.f32 %v2161_v33 }
 0xe41   : > { %v2158_v34 = vpop.xlane.xlu0 %2157 }
 0xe42   : > { %15646 = vrcp.f32 %v2158_v34 }
 0xe45   : > { %v15187_v35 = vpop.permute.xlu0 %15186 }
 0xe46   : > { %v15189_v18 = vunpack.i.h.bf16 %v15187_v35  ;;  %v15188_v19 = vunpack.i.l.bf16 %v15187_v35 }
 0xe48   : > { %v14793_v37 = vpack.c.bf16 %v15189_v18, %v15188_v19  ;;  %v15645_v38 = vpop.eup %15644 }
 0xe49   : > { %v2165_v43 = vmul.f32 %v15645_v38, %v15641_v29 }
 0xe4a   : > { %14795 = vmatprep.subr.msk.bf16.mxu1 %vm17059_vm5, %v14793_v37 }
 0xe4c   : > { %v15647_v39 = vpop.eup %15646 }
 0xe4d   : > { %v2164_v40 = vmul.f32 %v15647_v39, %v15643_v31 }
 0xe4f   : > { %14359 = vmatprep.mubr.msk.f32.mxu1 %vm1036_vm4, %v2164_v40 }
 0xe50   : > { %14360 = vmatmul.mubr.msk.f32.vlgmr.msra.gmra.mrb[10].mxu1 %vm1036_vm4, %v2165_v43 }
 0xe51   : > { %14798 = vmatpush3.bf16.xpose.msk.msra.mxu1 %vm17059_vm5, %v14793_v37  ;;  %14366 = vmatprep.mubr.msk.f32.mxu1 %vm1036_vm4, %v2254_v45 }
 0xe58   : > { %14367 = vmatmul.mubr.msk.f32.vlgmr.msra.gmra.mrb[12].mxu1 %vm1036_vm4, %v2256_v46 }
 0xf23   : > { %v17262_v48 = vpop.f32.mrb[10].mxu1 }
 0xf24   : > { %v17264_v49 = vpop.f32.mrb[11].mxu1 }
 0xf25   : > { %v15225_v50 = vpack.i.bf16 %v17262_v48, %v17264_v49  ;;  %v15274_v48 = vld [vmem:[%s16963_s28 + $0x14c] ss:$80 sps:$4 sm:$0xff]  }
 0xf26   : > { %v15275_v49 = vld [vmem:[%s16963_s28 + $0x1ec] ss:$80 sps:$4 sm:$0xff]  }
 0xf2b   : > { %v14368_v62 = vpop.f32.mrb[12].mxu1 }
 0xf2c   : > { %v2345_v2 = vmul.f32 0.25, %v14368_v62  ;;  %v2335_v36 = vpop.f32.mrb[13].mxu1 }
 0xf2d   : > { %v2344_v9 = vmul.f32 0.25, %v2335_v36 }
 0xf2e   : > { %v2347_v10 = vadd.f32 %v2345_v2, %v17004_v1 }
 0xf2f   : > { %v2346_v11 = vadd.f32 %v2344_v9, %v16999_v0 }
 0xf30   : > { %v2351_v12 = vsel %vm1036_vm4, %v2347_v10, -inf }
 0xf31   : > { %2352 = vmax.xlane.f32.xlu0 %v2351_v12  ;;  %v2348_v14 = vsel %vm1036_vm4, %v2346_v11, -inf }
 0xf32   : > { %2349 = vmax.xlane.f32.xlu1 %v2348_v14 }
 0xf43   : > { %15191 = vrot.lane.b32.xlu1 %v17148_v26, %s16513_s15 }
 0xf47   : > { %2457 = vrot.lane.b32.xlu1 %v17052_v51, %s16514_s19 }
 0xf4b   : > { %2459 = vrot.lane.b32.xlu1 %v17078_v63, %s16514_s19 }
 0xfbe   : > { %v2353_v15 = vpop.xlane.xlu0 %2352 }
 0xfbf   : > { %v2355_v16 = vsub.f32 %v2347_v10, %v2353_v15  ;;  %v2350_v17 = vpop.xlane.xlu1 %2349 }
 0xfc0   : > { %v2354_v20 = vsub.f32 %v2346_v11, %v2350_v17 }
 0xfc1   : > { %v2358_v21 = vmul.f32 1.442695, %v2355_v16 }
 0xfc2   : > { %v2356_v23 = vmul.f32 1.442695, %v2354_v20 }
 0xfc3   : > { %15648 = vpow2.f32 %v2358_v21  ;;  %v15192_v24 = vpop.permute.xlu1 %15191 }
 0xfc4   : > { %v15194_v25 = vunpack.i.h.bf16 %v15192_v24  ;;  %v15193_v27 = vunpack.i.l.bf16 %v15192_v24  ;;  %15650 = vpow2.f32 %v2356_v23 }
 0xfc6   : > { %v14799_v28 = vpack.c.bf16 %v15194_v25, %v15193_v27  ;;  %v15277_v27 = vld [vmem:[%s16963_s28 + $0x32c] ss:$80 sps:$4 sm:$0xff]  }
 0xfc7   : > { %v2458_v40 = vpop.permute.xlu1 %2457 }
 0xfc8   : > { %14800 = vmatprep.subr.bf16.mxu0 %v14799_v28 }
 0xfc9   : > { %14802 = vmatpush3.bf16.msra.mxu0 %v14799_v28  ;;  %v15278_v28 = vld [vmem:[%s16963_s28 + $0x3cc] ss:$80 sps:$4 sm:$0xff]  }
 0xfcd   : > { %v15649_v29 = vpop.eup %15648 }
 0xfce   : > { %v2363_v51 = vsel %vm1036_vm4, %v15649_v29, 0.0  ;;  %v15651_v30 = vpop.eup %15650 }
 0xfcf   : > { %2364 = vadd.xlane.f32.xlu0 %v2363_v51  ;;  %v2360_v63 = vsel %vm1036_vm4, %v15651_v30, 0.0 }
 0xfd3   : > { %2361 = vadd.xlane.f32.xlu0 %v2360_v63 }
 0xfe9   : > { %15196 = vrot.lane.b32.xlu0 %v17065_v59, %s16514_s19  ;;  %v2460_v59 = vpop.permute.xlu1 %2459 }
0x105c   : > { %v2365_v31 = vpop.xlane.xlu0 %2364 }
0x105d   : > { %15652 = vrcp.f32 %v2365_v31 }
0x1060   : > { %v2362_v32 = vpop.xlane.xlu0 %2361 }
0x1061   : > { %15654 = vrcp.f32 %v2362_v32 }
0x1064   : > { %v15197_v33 = vpop.permute.xlu0 %15196 }
0x1065   : > { %v15199_v34 = vunpack.i.h.bf16 %v15197_v33  ;;  %v15198_v35 = vunpack.i.l.bf16 %v15197_v33 }
0x1067   : > { %v14803_v18 = vpack.c.bf16 %v15199_v34, %v15198_v35  ;;  %v15653_v19 = vpop.eup %15652 }
0x1068   : > { %v2369_v39 = vmul.f32 %v15653_v19, %v15649_v29  ;;  %v15279_v29 = vld [vmem:[%s16963_s28 + $0x46c] ss:$80 sps:$4 sm:$0xff]  }
0x1069   : > { %14805 = vmatprep.subr.msk.bf16.mxu0 %vm17059_vm5, %v14803_v18 }
0x106b   : > { %v15655_v37 = vpop.eup %15654 }
0x106c   : > { %v2368_v38 = vmul.f32 %v15655_v37, %v15651_v30 }
0x106e   : > { %14373 = vmatprep.mubr.msk.f32.mxu0 %vm1036_vm4, %v2368_v38 }
0x106f   : > { %14374 = vmatmul.mubr.msk.f32.vlgmr.msra.gmra.mrb[20].mxu0 %vm1036_vm4, %v2369_v39 }
0x1070   : > { %14808 = vmatpush3.bf16.xpose.msk.msra.mxu0 %vm17059_vm5, %v14803_v18  ;;  %14380 = vmatprep.mubr.msk.f32.mxu0 %vm1036_vm4, %v2458_v40 }
0x1077   : > { %14381 = vmatmul.mubr.msk.f32.vlgmr.msra.gmra.mrb[22].mxu0 %vm1036_vm4, %v2460_v59 }
0x1078   : > { %3761 = vmatprep.mubr.bf16.mxu0 %v16505_v22 }
0x1142   : > { %v14375_v43 = vpop.f32.mrb[20].mxu0 }
0x1143   : > { %v2448_v45 = vpop.f32.mrb[21].mxu0 }
0x1144   : > { %v15230_v46 = vpack.i.bf16 %v14375_v43, %v2448_v45 }
0x114a   : > { %v14382_v62 = vpop.f32.mrb[22].mxu0 }
0x114b   : > { %v2549_v2 = vmul.f32 0.25, %v14382_v62  ;;  %v2539_v36 = vpop.f32.mrb[23].mxu0 }
0x114c   : > { %v2548_v9 = vmul.f32 0.25, %v2539_v36 }
0x114d   : > { %v2551_v10 = vadd.f32 %v2549_v2, %v17004_v1 }
0x114e   : > { %v2550_v11 = vadd.f32 %v2548_v9, %v16999_v0 }
0x114f   : > { %v2555_v57 = vsel %vm1036_vm4, %v2551_v10, -inf }
0x1150   : > { %2556 = vmax.xlane.f32.xlu0 %v2555_v57  ;;  %v2552_v12 = vsel %vm1036_vm4, %v2550_v11, -inf }
0x1151   : > { %2553 = vmax.xlane.f32.xlu1 %v2552_v12 }
0x1162   : > { %15201 = vrot.lane.b32.xlu1 %v17148_v26, %s16514_s19 }
0x1166   : > { %15211 = vrot.lane.b32.xlu1 %v15210_v61, %s16513_s15 }
0x116a   : > { %15216 = vrot.lane.b32.xlu1 %v15215_v8, %s16512_s7 }
0x116e   : > { %15221 = vrot.lane.b32.xlu1 %v15220_v55, %s16511_s21 }
0x1172   : > { %15231 = vrot.lane.b32.xlu1 %v15230_v46, %s16508_s26 }
0x11dd   : > { %v2557_v14 = vpop.xlane.xlu0 %2556 }
0x11de   : > { %v2559_v15 = vsub.f32 %v2551_v10, %v2557_v14  ;;  %v2554_v26 = vpop.xlane.xlu1 %2553 }
0x11df   : > { %v2558_v16 = vsub.f32 %v2550_v11, %v2554_v26 }
0x11e0   : > { %v2562_v17 = vmul.f32 1.442695, %v2559_v15 }
0x11e1   : > { %v2560_v20 = vmul.f32 1.442695, %v2558_v16 }
0x11e2   : > { %v15202_v54 = vpop.permute.xlu1 %15201 }
0x11e3   : > { %15656 = vpow2.f32 %v2560_v20  ;;  %v15204_v60 = vunpack.i.h.bf16 %v15202_v54  ;;  %v15203_v61 = vunpack.i.l.bf16 %v15202_v54 }
0x11e4   : > { %15658 = vpow2.f32 %v2562_v17 }
0x11e5   : > { %v14809_v6 = vpack.c.bf16 %v15204_v60, %v15203_v61 }
0x11e6   : > { %v15212_v31 = vpop.permute.xlu1 %15211 }
0x11e7   : > { %14810 = vmatprep.subr.bf16.mxu1 %v14809_v6  ;;  %v15213_v37 = vunpack.i.l.bf16 %v15212_v31 }
0x11e8   : > { %14812 = vmatpush3.bf16.msra.mxu1 %v14809_v6 }
0x11e9   : > { %14390 = vmatprep.subr.bf16.mxu1 %v16506_v47 }
0x11ea   : > { %v15217_v35 = vpop.permute.xlu1 %15216 }
0x11eb   : > { %v15219_v40 = vunpack.i.h.bf16 %v15217_v35  ;;  %v15218_v59 = vunpack.i.l.bf16 %v15217_v35 }
0x11ed   : > { %v15657_v7 = vpop.eup %15656 }
0x11ee   : > { %v2564_v8 = vsel %vm1036_vm4, %v15657_v7, 0.0  ;;  %v15659_v52 = vpop.eup %15658  ;;  %v15222_v43 = vpop.permute.xlu1 %15221 }
0x11ef   : > { %2565 = vadd.xlane.f32.xlu0 %v2564_v8  ;;  %v2567_v53 = vsel %vm1036_vm4, %v15659_v52, 0.0  ;;  %v15224_v2 = vunpack.i.h.bf16 %v15222_v43  ;;  %v15223_v36 = vunpack.i.l.bf16 %v15222_v43  ;;  %v15301_v43 = vld [vmem:[%s16963_s28 + $0x1f8] ss:$80 sps:$4 sm:$0xff]  }
0x11f3   : > { %2568 = vadd.xlane.f32.xlu0 %v2567_v53 }
0x1209   : > { %15206 = vrot.lane.b32.xlu0 %v15205_v5, %s16514_s19  ;;  %v15273_v5 = vld [vmem:[%s16963_s28 + $0xac] ss:$80 sps:$4 sm:$0xff]  }
0x120d   : > { %15226 = vrot.lane.b32.xlu0 %v15225_v50, %s16510_s24  ;;  %v15276_v50 = vld [vmem:[%s16963_s28 + $0x28c] ss:$80 sps:$4 sm:$0xff]  }
0x127c   : > { %v2566_v55 = vpop.xlane.xlu0 %2565 }
0x127d   : > { %15660 = vrcp.f32 %v2566_v55 }
0x1280   : > { %v2569_v21 = vpop.xlane.xlu0 %2568 }
0x1281   : > { %15662 = vrcp.f32 %v2569_v21 }
0x1284   : > { %v15207_v32 = vpop.permute.xlu0 %15206 }
0x1285   : > { %v15209_v33 = vunpack.i.h.bf16 %v15207_v32  ;;  %v15208_v34 = vunpack.i.l.bf16 %v15207_v32 }
0x1287   : > { %v15661_v23 = vpop.eup %15660  ;;  %v2718_v18 = vsel %vm1036_vm4, %v17128_v56, %v15209_v33  ;;  %v2717_v19 = vsel %vm1036_vm4, %v17130_v58, %v15208_v34  ;;  %v15232_v58 = vpop.permute.xlu1 %15231 }
0x1288   : > { %v2572_v24 = vmul.f32 %v15661_v23, %v15657_v7  ;;  %v2720_v38 = vsel %vm2719_vm6, %v2717_v19, %v15213_v37  ;;  %v15227_v45 = vpop.permute.xlu0 %15226  ;;  %v15234_v14 = vunpack.i.h.bf16 %v15232_v58  ;;  %v15233_v15 = vunpack.i.l.bf16 %v15232_v58  ;;  %v12921_v7 = vld [vmem:[%s16971_s5 + $0x3] ss:$0 sm:$0xff]  ;;  %v15294_v19 = vld [vmem:[%s16963_s28 + $0x154] ss:$80 sps:$4 sm:$0xff]  }
0x1289   : > { %v2723_v46 = vsel %vm2722_vm7, %v2720_v38, %v15218_v59  ;;  %v15229_v9 = vunpack.i.h.bf16 %v15227_v45  ;;  %v15228_v10 = vunpack.i.l.bf16 %v15227_v45  ;;  %v15292_v37 = vld [vmem:[%s16963_s28 + $0x150] ss:$80 sps:$4 sm:$0xff]   ;;  %v15295_v38 = vld [vmem:[%s16963_s28 + $0x158] ss:$80 sps:$4 sm:$0xff]   ;;  %v15306_v45 = vld [vmem:[%s16963_s28 + $0x294] ss:$80 sps:$4 sm:$0xff]  }
0x128a   : > { %14387 = vmatprep.mubr.msk.f32.mxu1 %vm1036_vm4, %v2572_v24  ;;  %v2726_v56 = vsel %vm2725_vm8, %v2723_v46, %v15223_v36  ;;  %v15672_v24 = vld [vmem:[#allocation2] sm:$0xff]  ;;  %v15309_v46 = vld [vmem:[%s16963_s28 + $0x29c] ss:$80 sps:$4 sm:$0xff]  }
0x128b   : > { %v15663_v25 = vpop.eup %15662  ;;  %v2729_v57 = vsel %vm2728_vm9, %v2726_v56, %v15228_v10  ;;  %v15298_v59 = vld [vmem:[%s16963_s28 + $0x1f0] ss:$80 sps:$4 sm:$0xff]   ;;  %v15312_v36 = vld [vmem:[%s16963_s28 + $0x334] ss:$80 sps:$4 sm:$0xff]   ;;  %v15313_v56 = vld [vmem:[%s16963_s28 + $0x338] ss:$80 sps:$4 sm:$0xff]  }
0x128c   : > { %v2573_v3 = vmul.f32 %v15663_v25, %v15659_v52  ;;  %v2732_v20 = vsel %vm2731_vm10, %v2729_v57, %v15233_v15  ;;  %v15310_v10 = vld [vmem:[%s16963_s28 + $0x330] ss:$80 sps:$4 sm:$0xff]   ;;  %v15321_v58 = vld [vmem:[%s16963_s28 + $0x3dc] ss:$80 sps:$4 sm:$0xff]  }
0x128d   : > { %v15316_v57 = vld [vmem:[%s16963_s28 + $0x3d0] ss:$80 sps:$4 sm:$0xff]   ;;  %v15327_v15 = vld [vmem:[%s16963_s28 + $0x47c] ss:$80 sps:$4 sm:$0xff]  }
0x128e   : > { %14388 = vmatmul.mubr.msk.f32.vlgmr.msra.gmra.mrb[14].mxu1 %vm1036_vm4, %v2573_v3  ;;  %v15673_v3 = vld [vmem:[#allocation2 + $0x8] sm:$0xff] }
0x128f   : > { %14406 = vmatprep.mubr.msk.bf16.mxu1 %vm16507_vm3, %v16506_v47  ;;  %14391 = vmatpush3.bf16.msra.mxu1 %v15272_v4 }
0x1290   : > { %14392 = vmatprep.subr.bf16.mxu1 %v16506_v47 }
0x1293   : > { %14393 = vmatpush3.bf16.msra.mxu1 %v15273_v5  ;;  %v15280_v5 = vld [vmem:[%s16963_s28 + $0x10] ss:$80 sps:$4 sm:$0xff]  }
0x1294   : > { %14394 = vmatprep.subr.bf16.mxu1 %v16506_v47 }
0x1297   : > { %14395 = vmatpush3.bf16.msra.mxu1 %v15274_v48  ;;  %v15282_v48 = vld [vmem:[%s16963_s28 + $0x14] ss:$80 sps:$4 sm:$0xff]  }
0x1298   : > { %14396 = vmatprep.subr.bf16.mxu1 %v16506_v47  ;;  %3729 = vmatprep.subr.bf16.mxu0 %v15282_v48  ;;  %v15328_v48 = vld [vmem:[%s16963_s28 + $0x20] ss:$80 sps:$4 sm:$0xff]  }
0x1299   : > { %3730 = vmatpush1.bf16.msra.mxu0 %v15280_v5 }
0x129b   : > { %14397 = vmatpush3.bf16.msra.mxu1 %v15275_v49  ;;  %v15283_v49 = vld [vmem:[%s16963_s28 + $0x18] ss:$80 sps:$4 sm:$0xff]  }
0x129c   : > { %14398 = vmatprep.subr.bf16.mxu1 %v16506_v47 }
0x129f   : > { %14399 = vmatpush3.bf16.msra.mxu1 %v15276_v50  ;;  %v15285_v50 = vld [vmem:[%s16963_s28 + $0x1c] ss:$80 sps:$4 sm:$0xff]  }
0x12a0   : > { %14400 = vmatprep.subr.bf16.mxu1 %v16506_v47 }
0x12a3   : > { %14401 = vmatpush3.bf16.msra.mxu1 %v15277_v27  ;;  %v15288_v27 = vld [vmem:[%s16963_s28 + $0xb4] ss:$80 sps:$4 sm:$0xff]  }
0x12a4   : > { %14402 = vmatprep.subr.bf16.mxu1 %v16506_v47  ;;  %3731 = vmatprep.subr.bf16.mxu0 %v15288_v27  ;;  %v15336_v27 = vld [vmem:[%s16963_s28 + $0xc4] ss:$80 sps:$4 sm:$0xff]  }
0x12a7   : > { %14403 = vmatpush3.bf16.msra.mxu1 %v15278_v28  ;;  %v15291_v28 = vld [vmem:[%s16963_s28 + $0xbc] ss:$80 sps:$4 sm:$0xff]  }
0x12a8   : > { %14404 = vmatprep.subr.bf16.mxu1 %v16506_v47  ;;  %v15214_v47 = vunpack.i.h.bf16 %v15212_v31 }
0x12aa   : > { %v2721_v39 = vsel %vm2719_vm6, %v2718_v18, %v15214_v47  ;;  %v15297_v47 = vld [vmem:[%s16963_s28 + $0x15c] ss:$80 sps:$4 sm:$0xff]  }
0x12ab   : > { %14405 = vmatpush3.bf16.msra.mxu1 %v15279_v29  ;;  %v2724_v62 = vsel %vm2722_vm7, %v2721_v39, %v15219_v40  ;;  %v15286_v29 = vld [vmem:[%s16963_s28 + $0xb0] ss:$80 sps:$4 sm:$0xff]   ;;  %v15300_v39 = vld [vmem:[%s16963_s28 + $0x1f4] ss:$80 sps:$4 sm:$0xff]   ;;  %v15303_v40 = vld [vmem:[%s16963_s28 + $0x1fc] ss:$80 sps:$4 sm:$0xff]  }
0x12ac   : > { %v2727_v11 = vsel %vm2725_vm8, %v2724_v62, %v15224_v2  ;;  %3772 = vmatprep.subr.bf16.mxu1 %v15285_v50  ;;  %3732 = vmatpush1.bf16.msra.mxu0 %v15286_v29  ;;  %v15304_v62 = vld [vmem:[%s16963_s28 + $0x290] ss:$80 sps:$4 sm:$0xff]   ;;  %v15307_v2 = vld [vmem:[%s16963_s28 + $0x298] ss:$80 sps:$4 sm:$0xff]  }
0x12ad   : > { %v2730_v12 = vsel %vm2728_vm9, %v2727_v11, %v15229_v9  ;;  %3733 = vmatprep.subr.bf16.mxu0 %v15294_v19  ;;  %v15315_v9 = vld [vmem:[%s16963_s28 + $0x33c] ss:$80 sps:$4 sm:$0xff]   ;;  %v15318_v11 = vld [vmem:[%s16963_s28 + $0x3d4] ss:$80 sps:$4 sm:$0xff]   ;;  %v15334_v29 = vld [vmem:[%s16963_s28 + $0xc0] ss:$80 sps:$4 sm:$0xff]  }
0x12ae   : > { %v2733_v54 = vsel %vm2731_vm10, %v2730_v12, %v15234_v14  ;;  %v15319_v12 = vld [vmem:[%s16963_s28 + $0x3d8] ss:$80 sps:$4 sm:$0xff]   ;;  %v15324_v14 = vld [vmem:[%s16963_s28 + $0x474] ss:$80 sps:$4 sm:$0xff]  }
0x12af   : > { %v15354_v19 = vld [vmem:[%s16963_s28 + $0x2a4] ss:$80 sps:$4 sm:$0xff]  }
0x12b0   : > { %3734 = vmatpush1.bf16.msra.mxu0 %v15292_v37  ;;  %v15352_v37 = vld [vmem:[%s16963_s28 + $0x2a0] ss:$80 sps:$4 sm:$0xff]  }
0x12b1   : > { %3735 = vmatprep.subr.bf16.mxu0 %v15300_v39  ;;  %v15360_v39 = vld [vmem:[%s16963_s28 + $0x344] ss:$80 sps:$4 sm:$0xff]  }
0x12b4   : > { %3736 = vmatpush1.bf16.msra.mxu0 %v15298_v59  ;;  %v15358_v59 = vld [vmem:[%s16963_s28 + $0x340] ss:$80 sps:$4 sm:$0xff]  }
0x12b5   : > { %3737 = vmatprep.subr.bf16.mxu0 %v15306_v45  ;;  %v15366_v45 = vld [vmem:[%s16963_s28 + $0x3e4] ss:$80 sps:$4 sm:$0xff]  }
0x12b8   : > { %3738 = vmatpush1.bf16.msra.mxu0 %v15304_v62  ;;  %v15364_v62 = vld [vmem:[%s16963_s28 + $0x3e0] ss:$80 sps:$4 sm:$0xff]  }
0x12b9   : > { %3739 = vmatprep.subr.bf16.mxu0 %v15312_v36  ;;  %v15372_v36 = vld [vmem:[%s16963_s28 + $0x484] ss:$80 sps:$4 sm:$0xff]  }
0x12bc   : > { %3740 = vmatpush1.bf16.msra.mxu0 %v15310_v10  ;;  %v15370_v10 = vld [vmem:[%s16963_s28 + $0x480] ss:$80 sps:$4 sm:$0xff]  }
0x12bd   : > { %3741 = vmatprep.subr.bf16.mxu0 %v15318_v11  ;;  %v15378_v11 = vld [vmem:[%s16963_s28 + $0x34] ss:$80 sps:$4 sm:$0xff]  }
0x12c0   : > { %3742 = vmatpush1.bf16.msra.mxu0 %v15316_v57  ;;  %v15376_v57 = vld [vmem:[%s16963_s28 + $0x30] ss:$80 sps:$4 sm:$0xff]  }
0x12c1   : > { %3743 = vmatprep.subr.bf16.mxu0 %v15324_v14  ;;  %v15384_v14 = vld [vmem:[%s16963_s28 + $0xd4] ss:$80 sps:$4 sm:$0xff]  }
0x1361   : > { %v14389_v51 = vpop.f32.mrb[14].mxu1 }
0x1362   : > { %v2652_v30 = vpop.f32.mrb[15].mxu1 }
0x1363   : > { %v15235_v63 = vpack.i.bf16 %v14389_v51, %v2652_v30  ;;  %v15289_v51 = vld [vmem:[%s16963_s28 + $0xb8] ss:$80 sps:$4 sm:$0xff]  }
0x1365   : > { %15236 = vrot.lane.b32.xlu0 %v15235_v63, %s16509_s30 }
0x13d7   : > { %v15237_v26 = vpop.permute.xlu0 %15236 }
0x13d8   : > { %v15239_v16 = vunpack.i.h.bf16 %v15237_v26  ;;  %v15238_v17 = vunpack.i.l.bf16 %v15237_v26  ;;  %v15322_v26 = vld [vmem:[%s16963_s28 + $0x470] ss:$80 sps:$4 sm:$0xff]  }
0x13d9   : > { %3744 = vmatpush1.bf16.msra.mxu0 %v15322_v26  ;;  %v15382_v26 = vld [vmem:[%s16963_s28 + $0xd0] ss:$80 sps:$4 sm:$0xff]  }
0x13da   : > { %v2736_v60 = vsel %vm2734_vm11, %v2733_v54, %v15239_v16  ;;  %v2735_v61 = vsel %vm2734_vm11, %v2732_v20, %v15238_v17  ;;  %v15325_v16 = vld [vmem:[%s16963_s28 + $0x478] ss:$80 sps:$4 sm:$0xff]   ;;  %v15330_v17 = vld [vmem:[%s16963_s28 + $0x24] ss:$80 sps:$4 sm:$0xff]   ;;  %v15333_v20 = vld [vmem:[%s16963_s28 + $0x2c] ss:$80 sps:$4 sm:$0xff]  }
0x13db   : > { %v2737_v6 = vpack.c.bf16 %v2736_v60, %v2735_v61  ;;  %3815 = vmatprep.subr.bf16.mxu0 %v15330_v17  ;;  %v15390_v17 = vld [vmem:[%s16963_s28 + $0x174] ss:$80 sps:$4 sm:$0xff]  }
0x13dd   : > { %14407 = vmatmul.mubr.bf16.vlgmr.msra.gmra.mrb[16].mxu1 %v2737_v6 }
0x13de   : > { %3804 = vmatprep.mubr.bf16.mxu1 %v16505_v22  ;;  %3773 = vmatpush1.bf16.msra.mxu1 %v15283_v49  ;;  %v15331_v49 = vld [vmem:[%s16963_s28 + $0x28] ss:$80 sps:$4 sm:$0xff]  }
0x13df   : > { %3774 = vmatprep.subr.bf16.mxu1 %v15291_v28  ;;  %v15339_v28 = vld [vmem:[%s16963_s28 + $0xcc] ss:$80 sps:$4 sm:$0xff]  }
0x13e2   : > { %3775 = vmatpush1.bf16.msra.mxu1 %v15289_v51  ;;  %v15337_v51 = vld [vmem:[%s16963_s28 + $0xc8] ss:$80 sps:$4 sm:$0xff]  }
0x13e3   : > { %3776 = vmatprep.subr.bf16.mxu1 %v15297_v47  ;;  %v15357_v47 = vld [vmem:[%s16963_s28 + $0x2ac] ss:$80 sps:$4 sm:$0xff]  }
0x13e6   : > { %3777 = vmatpush1.bf16.msra.mxu1 %v15295_v38  ;;  %v15355_v38 = vld [vmem:[%s16963_s28 + $0x2a8] ss:$80 sps:$4 sm:$0xff]  }
0x13e7   : > { %3778 = vmatprep.subr.bf16.mxu1 %v15303_v40  ;;  %v15363_v40 = vld [vmem:[%s16963_s28 + $0x34c] ss:$80 sps:$4 sm:$0xff]  }
0x13ea   : > { %3779 = vmatpush1.bf16.msra.mxu1 %v15301_v43  ;;  %v15361_v43 = vld [vmem:[%s16963_s28 + $0x348] ss:$80 sps:$4 sm:$0xff]  }
0x13eb   : > { %3780 = vmatprep.subr.bf16.mxu1 %v15309_v46  ;;  %v15369_v46 = vld [vmem:[%s16963_s28 + $0x3ec] ss:$80 sps:$4 sm:$0xff]  }
0x13ee   : > { %3781 = vmatpush1.bf16.msra.mxu1 %v15307_v2  ;;  %v15367_v2 = vld [vmem:[%s16963_s28 + $0x3e8] ss:$80 sps:$4 sm:$0xff]  }
0x13ef   : > { %3782 = vmatprep.subr.bf16.mxu1 %v15315_v9  ;;  %v15375_v9 = vld [vmem:[%s16963_s28 + $0x48c] ss:$80 sps:$4 sm:$0xff]  }
0x13f2   : > { %3783 = vmatpush1.bf16.msra.mxu1 %v15313_v56  ;;  %v15373_v56 = vld [vmem:[%s16963_s28 + $0x488] ss:$80 sps:$4 sm:$0xff]  }
0x13f3   : > { %3784 = vmatprep.subr.bf16.mxu1 %v15321_v58  ;;  %v15381_v58 = vld [vmem:[%s16963_s28 + $0x3c] ss:$80 sps:$4 sm:$0xff]  }
0x13f6   : > { %3785 = vmatpush1.bf16.msra.mxu1 %v15319_v12  ;;  %v15379_v12 = vld [vmem:[%s16963_s28 + $0x38] ss:$80 sps:$4 sm:$0xff]  }
0x13f7   : > { %3786 = vmatprep.subr.bf16.mxu1 %v15327_v15  ;;  %v15387_v15 = vld [vmem:[%s16963_s28 + $0xdc] ss:$80 sps:$4 sm:$0xff]  }
0x13fa   : > { %3787 = vmatpush1.bf16.msra.mxu1 %v15325_v16  ;;  %v15385_v16 = vld [vmem:[%s16963_s28 + $0xd8] ss:$80 sps:$4 sm:$0xff]  }
0x13fb   : > { %3858 = vmatprep.subr.bf16.mxu1 %v15333_v20  ;;  %v15393_v20 = vld [vmem:[%s16963_s28 + $0x17c] ss:$80 sps:$4 sm:$0xff]  }
0x14b0   : > { %v2826_v8 = vpop.f32.mrb[16].mxu1 }
0x14b1   : > { %v2827_v52 = vadd.f32 %v12921_v7, %v2826_v8  ;;  %v14408_v53 = vpop.f32.mrb[17].mxu1 }
0x14b2   : > { %v2829_v55 = vpop.f32.mrb[18].mxu1 }
0x14b3   : > { %v2830_v21 = vadd.f32 %v12921_v7, %v2829_v55  ;;  %v14409_v23 = vpop.f32.mrb[19].mxu1  ;;  %v2833_v25 = vadd.f32 %v15672_v24, %v2827_v52  ;;  %v12930_v55 = vld [vmem:[%s16971_s5 + $0x15] ss:$0 sm:$0xff] }
0x14b5   : > { %2837 = vadd.xlane.f32.xlu1 %v2833_v25  ;;  %v2834_v4 = vadd.f32 %v15673_v3, %v2830_v21 }
0x14b7   : > { %2839 = vadd.xlane.f32.xlu0 %v2834_v4 }
0x1542   : > { %v2838_v30 = vpop.xlane.xlu1 %2837 }
0x1543   : > { %v2842_v63 = vmul.f32 0.0078125, %v2838_v30  ;;  %v15342_v30 = vld [vmem:[%s16963_s28 + $0x164] ss:$80 sps:$4 sm:$0xff]  }
0x1544   : > { %v2840_v31 = vpop.xlane.xlu0 %2839 }
0x1545   : > { %v17355_v32 = vsub.f32 %v2833_v25, %v2842_v63  ;;  %v2843_v33 = vmul.f32 0.0078125, %v2840_v31  ;;  %v12931_v25 = vld [vmem:[%s16971_s5 + $0x16] ss:$0 sm:$0xff]  ;;  %v15340_v31 = vld [vmem:[%s16963_s28 + $0x160] ss:$80 sps:$4 sm:$0xff]  }
0x1546   : > { %v15345_v63 = vld [vmem:[%s16963_s28 + $0x16c] ss:$80 sps:$4 sm:$0xff]  }
0x1547   : > { %v17357_v34 = vsub.f32 %v2834_v4, %v2843_v33  ;;  %v2846_v35 = vmul.f32 %v17355_v32, %v17355_v32  ;;  %v15348_v33 = vld [vmem:[%s16963_s28 + $0x204] ss:$80 sps:$4 sm:$0xff]  }
0x1549   : > { %2848 = vadd.xlane.f32.xlu0 %v2846_v35  ;;  %v2847_v18 = vmul.f32 %v17357_v34, %v17357_v34  ;;  %v15346_v35 = vld [vmem:[%s16963_s28 + $0x200] ss:$80 sps:$4 sm:$0xff]  }
0x154d   : > { %2850 = vadd.xlane.f32.xlu0 %v2847_v18  ;;  %v15349_v18 = vld [vmem:[%s16963_s28 + $0x208] ss:$80 sps:$4 sm:$0xff]  }
0x15d6   : > { %v2849_v54 = vpop.xlane.xlu0 %2848 }
0x15d7   : > { %v2852_v60 = vmul.f32 0.0078125, %v2849_v54  ;;  %v15388_v54 = vld [vmem:[%s16963_s28 + $0x170] ss:$80 sps:$4 sm:$0xff]  }
0x15d9   : > { %v2854_v61 = vadd.f32 1e-05, %v2852_v60  ;;  %v15391_v60 = vld [vmem:[%s16963_s28 + $0x178] ss:$80 sps:$4 sm:$0xff]  }
0x15da   : > { %v2851_v6 = vpop.xlane.xlu0 %2850 }
0x15db   : > { %15664 = vrsqrt.f32 %v2854_v61  ;;  %v2853_v7 = vmul.f32 0.0078125, %v2851_v6  ;;  %v15396_v61 = vld [vmem:[%s16963_s28 + $0x214] ss:$80 sps:$4 sm:$0xff]   ;;  %v15399_v6 = vld [vmem:[%s16963_s28 + $0x21c] ss:$80 sps:$4 sm:$0xff]  }
0x15dd   : > { %v2855_v8 = vadd.f32 1e-05, %v2853_v7  ;;  %v15394_v7 = vld [vmem:[%s16963_s28 + $0x210] ss:$80 sps:$4 sm:$0xff]  }
0x15df   : > { %15666 = vrsqrt.f32 %v2855_v8  ;;  %v15397_v8 = vld [vmem:[%s16963_s28 + $0x218] ss:$80 sps:$4 sm:$0xff]  }
0x15e5   : > { %v15665_v52 = vpop.eup %15664 }
0x15e6   : > { %v2858_v53 = vmul.f32 %v15665_v52, %v17355_v32  ;;  %v15343_v32 = vld [vmem:[%s16963_s28 + $0x168] ss:$80 sps:$4 sm:$0xff]   ;;  %v15402_v52 = vld [vmem:[%s16963_s28 + $0x2b4] ss:$80 sps:$4 sm:$0xff]  }
0x15e8   : > { %v2866_v23 = vmul.f32 %v12930_v55, %v2858_v53  ;;  %v15405_v53 = vld [vmem:[%s16963_s28 + $0x2bc] ss:$80 sps:$4 sm:$0xff]  }
0x15e9   : > { %v15667_v21 = vpop.eup %15666 }
0x15ea   : > { %v2859_v24 = vmul.f32 %v15667_v21, %v17357_v34  ;;  %v17393_v4 = vadd.f32 %v12931_v25, %v2866_v23  ;;  %v15351_v34 = vld [vmem:[%s16963_s28 + $0x20c] ss:$80 sps:$4 sm:$0xff]   ;;  %v15403_v21 = vld [vmem:[%s16963_s28 + $0x2b8] ss:$80 sps:$4 sm:$0xff]   ;;  %v15408_v23 = vld [vmem:[%s16963_s28 + $0x354] ss:$80 sps:$4 sm:$0xff]  }
0x15ec   : > { %v2867_v3 = vmul.f32 %v12930_v55, %v2859_v24  ;;  %v15400_v55 = vld [vmem:[%s16963_s28 + $0x2b0] ss:$80 sps:$4 sm:$0xff]   ;;  %v15411_v24 = vld [vmem:[%s16963_s28 + $0x35c] ss:$80 sps:$4 sm:$0xff]  }
0x15ee   : > { %v17395_v5 = vadd.f32 %v12931_v25, %v2867_v3  ;;  %v15406_v25 = vld [vmem:[%s16963_s28 + $0x350] ss:$80 sps:$4 sm:$0xff]   ;;  %v15409_v3 = vld [vmem:[%s16963_s28 + $0x358] ss:$80 sps:$4 sm:$0xff]  }
0x15f0   : > { %v17401_v50 = vpack.c.bf16 %v17395_v5, %v17393_v4 }
0x15f2   : > { %3762 = vmatmul.mubr.bf16.vlgmr.msra.gmra.mrb[24].mxu0 %v17401_v50  ;;  %3805 = vmatmul.mubr.bf16.vlgmr.msra.gmra.mrb[20].mxu1 %v17401_v50 }
0x15f3   : > { %3816 = vmatpush1.bf16.msra.mxu0 %v15328_v48  ;;  %3859 = vmatpush1.bf16.msra.mxu1 %v15331_v49  ;;  %v15414_v48 = vld [vmem:[%s16963_s28 + $0x3f4] ss:$80 sps:$4 sm:$0xff]   ;;  %v15417_v49 = vld [vmem:[%s16963_s28 + $0x3fc] ss:$80 sps:$4 sm:$0xff]  }
0x15f4   : > { %3817 = vmatprep.subr.bf16.mxu0 %v15336_v27  ;;  %3860 = vmatprep.subr.bf16.mxu1 %v15339_v28  ;;  %v15412_v27 = vld [vmem:[%s16963_s28 + $0x3f0] ss:$80 sps:$4 sm:$0xff]   ;;  %v15415_v28 = vld [vmem:[%s16963_s28 + $0x3f8] ss:$80 sps:$4 sm:$0xff]  }
0x15f5   : > { %3847 = vmatprep.mubr.bf16.mxu0 %v16505_v22  ;;  %3890 = vmatprep.mubr.bf16.mxu1 %v16505_v22 }
0x15f7   : > { %3818 = vmatpush1.bf16.msra.mxu0 %v15334_v29  ;;  %3861 = vmatpush1.bf16.msra.mxu1 %v15337_v51  ;;  %v15420_v29 = vld [vmem:[%s16963_s28 + $0x494] ss:$80 sps:$4 sm:$0xff]   ;;  %v15423_v51 = vld [vmem:[%s16963_s28 + $0x49c] ss:$80 sps:$4 sm:$0xff]  }
0x15f8   : > { %3819 = vmatprep.subr.bf16.mxu0 %v15342_v30  ;;  %3862 = vmatprep.subr.bf16.mxu1 %v15345_v63  ;;  %v15418_v30 = vld [vmem:[%s16963_s28 + $0x490] ss:$80 sps:$4 sm:$0xff]   ;;  %v15421_v63 = vld [vmem:[%s16963_s28 + $0x498] ss:$80 sps:$4 sm:$0xff]  }
0x15fb   : > { %3820 = vmatpush1.bf16.msra.mxu0 %v15340_v31  ;;  %3863 = vmatpush1.bf16.msra.mxu1 %v15343_v32  ;;  %v15426_v31 = vld [vmem:[%s16963_s28 + $0x44] ss:$80 sps:$4 sm:$0xff]   ;;  %v15429_v32 = vld [vmem:[%s16963_s28 + $0x4c] ss:$80 sps:$4 sm:$0xff]  }
0x15fc   : > { %3821 = vmatprep.subr.bf16.mxu0 %v15348_v33  ;;  %3864 = vmatprep.subr.bf16.mxu1 %v15351_v34  ;;  %v15424_v33 = vld [vmem:[%s16963_s28 + $0x40] ss:$80 sps:$4 sm:$0xff]   ;;  %v15427_v34 = vld [vmem:[%s16963_s28 + $0x48] ss:$80 sps:$4 sm:$0xff]  }
0x15ff   : > { %3822 = vmatpush1.bf16.msra.mxu0 %v15346_v35  ;;  %3865 = vmatpush1.bf16.msra.mxu1 %v15349_v18  ;;  %v15432_v35 = vld [vmem:[%s16963_s28 + $0xe4] ss:$80 sps:$4 sm:$0xff]   ;;  %v15435_v18 = vld [vmem:[%s16963_s28 + $0xec] ss:$80 sps:$4 sm:$0xff]  }
0x1600   : > { %3823 = vmatprep.subr.bf16.mxu0 %v15354_v19  ;;  %3866 = vmatprep.subr.bf16.mxu1 %v15357_v47  ;;  %v15430_v19 = vld [vmem:[%s16963_s28 + $0xe0] ss:$80 sps:$4 sm:$0xff]   ;;  %v15433_v47 = vld [vmem:[%s16963_s28 + $0xe8] ss:$80 sps:$4 sm:$0xff]  }
0x1603   : > { %3824 = vmatpush1.bf16.msra.mxu0 %v15352_v37  ;;  %3867 = vmatpush1.bf16.msra.mxu1 %v15355_v38  ;;  %v15438_v37 = vld [vmem:[%s16963_s28 + $0x184] ss:$80 sps:$4 sm:$0xff]   ;;  %v15441_v38 = vld [vmem:[%s16963_s28 + $0x18c] ss:$80 sps:$4 sm:$0xff]  }
0x1604   : > { %3825 = vmatprep.subr.bf16.mxu0 %v15360_v39  ;;  %3868 = vmatprep.subr.bf16.mxu1 %v15363_v40  ;;  %v15436_v39 = vld [vmem:[%s16963_s28 + $0x180] ss:$80 sps:$4 sm:$0xff]   ;;  %v15439_v40 = vld [vmem:[%s16963_s28 + $0x188] ss:$80 sps:$4 sm:$0xff]  }
0x1607   : > { %3826 = vmatpush1.bf16.msra.mxu0 %v15358_v59  ;;  %3869 = vmatpush1.bf16.msra.mxu1 %v15361_v43  ;;  %v15444_v59 = vld [vmem:[%s16963_s28 + $0x224] ss:$80 sps:$4 sm:$0xff]   ;;  %v15447_v43 = vld [vmem:[%s16963_s28 + $0x22c] ss:$80 sps:$4 sm:$0xff]  }
0x1608   : > { %3827 = vmatprep.subr.bf16.mxu0 %v15366_v45  ;;  %3870 = vmatprep.subr.bf16.mxu1 %v15369_v46  ;;  %v15442_v45 = vld [vmem:[%s16963_s28 + $0x220] ss:$80 sps:$4 sm:$0xff]   ;;  %v15445_v46 = vld [vmem:[%s16963_s28 + $0x228] ss:$80 sps:$4 sm:$0xff]  }
0x160b   : > { %3828 = vmatpush1.bf16.msra.mxu0 %v15364_v62  ;;  %3871 = vmatpush1.bf16.msra.mxu1 %v15367_v2  ;;  %v15453_v62 = vld [vmem:[%s16963_s28 + $0x2cc] ss:$80 sps:$4 sm:$0xff]   ;;  %v15448_v2 = vld [vmem:[%s16963_s28 + $0x2c0] ss:$80 sps:$4 sm:$0xff]  }
0x160c   : > { %3829 = vmatprep.subr.bf16.mxu0 %v15372_v36  ;;  %3872 = vmatprep.subr.bf16.mxu1 %v15375_v9  ;;  %v15451_v36 = vld [vmem:[%s16963_s28 + $0x2c8] ss:$80 sps:$4 sm:$0xff]   ;;  %v15456_v9 = vld [vmem:[%s16963_s28 + $0x364] ss:$80 sps:$4 sm:$0xff]  }
0x160f   : > { %3830 = vmatpush1.bf16.msra.mxu0 %v15370_v10  ;;  %3873 = vmatpush1.bf16.msra.mxu1 %v15373_v56  ;;  %v15459_v10 = vld [vmem:[%s16963_s28 + $0x36c] ss:$80 sps:$4 sm:$0xff]   ;;  %v15454_v56 = vld [vmem:[%s16963_s28 + $0x360] ss:$80 sps:$4 sm:$0xff]  }
0x1610   : > { %3901 = vmatprep.subr.bf16.mxu0 %v15378_v11  ;;  %3944 = vmatprep.subr.bf16.mxu1 %v15381_v58  ;;  %v15457_v11 = vld [vmem:[%s16963_s28 + $0x368] ss:$80 sps:$4 sm:$0xff]   ;;  %v15462_v58 = vld [vmem:[%s16963_s28 + $0x404] ss:$80 sps:$4 sm:$0xff]  }
0x1612   : > { %3848 = vmatmul.mubr.bf16.vlgmr.msra.gmra.mrb[28].mxu0 %v17401_v50  ;;  %3891 = vmatmul.mubr.bf16.vlgmr.msra.gmra.mrb[24].mxu1 %v17401_v50 }
0x1613   : > { %3902 = vmatpush1.bf16.msra.mxu0 %v15376_v57  ;;  %3945 = vmatpush1.bf16.msra.mxu1 %v15379_v12  ;;  %v15465_v57 = vld [vmem:[%s16963_s28 + $0x40c] ss:$80 sps:$4 sm:$0xff]   ;;  %v15460_v12 = vld [vmem:[%s16963_s28 + $0x400] ss:$80 sps:$4 sm:$0xff]  }
0x1614   : > { %3903 = vmatprep.subr.bf16.mxu0 %v15384_v14  ;;  %3946 = vmatprep.subr.bf16.mxu1 %v15387_v15  ;;  %v15463_v14 = vld [vmem:[%s16963_s28 + $0x408] ss:$80 sps:$4 sm:$0xff]   ;;  %v15468_v15 = vld [vmem:[%s16963_s28 + $0x4a4] ss:$80 sps:$4 sm:$0xff]  }
0x1615   : > { %3933 = vmatprep.mubr.bf16.mxu0 %v16505_v22  ;;  %3976 = vmatprep.mubr.bf16.mxu1 %v16505_v22 }
0x1617   : > { %3904 = vmatpush1.bf16.msra.mxu0 %v15382_v26  ;;  %3947 = vmatpush1.bf16.msra.mxu1 %v15385_v16  ;;  %v15471_v26 = vld [vmem:[%s16963_s28 + $0x4ac] ss:$80 sps:$4 sm:$0xff]   ;;  %v15466_v16 = vld [vmem:[%s16963_s28 + $0x4a0] ss:$80 sps:$4 sm:$0xff]  }
0x1618   : > { %3905 = vmatprep.subr.bf16.mxu0 %v15390_v17  ;;  %3948 = vmatprep.subr.bf16.mxu1 %v15393_v20  ;;  %v15469_v17 = vld [vmem:[%s16963_s28 + $0x4a8] ss:$80 sps:$4 sm:$0xff]   ;;  %v15472_v20 = vld [vmem:[%s16969_s16 + $0x40] sm:$0xff]  }
0x161b   : > { %3906 = vmatpush1.bf16.msra.mxu0 %v15388_v54  ;;  %3949 = vmatpush1.bf16.msra.mxu1 %v15391_v60  ;;  %v15473_v54 = vld [vmem:[%s16969_s16 + $0xc0] sm:$0xff]  }
0x161c   : > { %3907 = vmatprep.subr.bf16.mxu0 %v15396_v61  ;;  %3950 = vmatprep.subr.bf16.mxu1 %v15399_v6  ;;  %v15474_v60 = vld [vmem:[%s16969_s16] sm:$0xff]   ;;  %v15476_v6 = vld [vmem:[%s16969_s16 + $0x48] sm:$0xff]  }
0x161d   : > { %v15475_v61 = vld [vmem:[%s16969_s16 + $0x80] sm:$0xff]  }
0x161f   : > { %3908 = vmatpush1.bf16.msra.mxu0 %v15394_v7  ;;  %3951 = vmatpush1.bf16.msra.mxu1 %v15397_v8  ;;  %v15477_v7 = vld [vmem:[%s16969_s16 + $0xc8] sm:$0xff]  }
0x1620   : > { %3909 = vmatprep.subr.bf16.mxu0 %v15402_v52  ;;  %3952 = vmatprep.subr.bf16.mxu1 %v15405_v53  ;;  %v15478_v8 = vld [vmem:[%s16969_s16 + $0x8] sm:$0xff]   ;;  %v15480_v53 = vld [vmem:[%s16969_s16 + $0x50] sm:$0xff]  }
0x1621   : > { %v15479_v52 = vld [vmem:[%s16969_s16 + $0x88] sm:$0xff]  }
0x1623   : > { %3910 = vmatpush1.bf16.msra.mxu0 %v15400_v55  ;;  %3953 = vmatpush1.bf16.msra.mxu1 %v15403_v21  ;;  %v15481_v55 = vld [vmem:[%s16969_s16 + $0xd0] sm:$0xff]  }
0x1624   : > { %3911 = vmatprep.subr.bf16.mxu0 %v15408_v23  ;;  %3954 = vmatprep.subr.bf16.mxu1 %v15411_v24  ;;  %v15482_v21 = vld [vmem:[%s16969_s16 + $0x10] sm:$0xff]   ;;  %v15485_v24 = vld [vmem:[%s16969_s16 + $0xd8] sm:$0xff]  }
0x1625   : > { %v15483_v23 = vld [vmem:[%s16969_s16 + $0x90] sm:$0xff]  }
0x1627   : > { %3912 = vmatpush1.bf16.msra.mxu0 %v15406_v25  ;;  %3955 = vmatpush1.bf16.msra.mxu1 %v15409_v3  ;;  %v15486_v25 = vld [vmem:[%s16969_s16 + $0x18] sm:$0xff]  }
0x1628   : > { %3913 = vmatprep.subr.bf16.mxu0 %v15414_v48  ;;  %3956 = vmatprep.subr.bf16.mxu1 %v15417_v49  ;;  %v15487_v3 = vld [vmem:[%s16969_s16 + $0x98] sm:$0xff]   ;;  %v15488_v48 = vld [vmem:[%s16969_s16 + $0x60] sm:$0xff]  }
0x1629   : > { %v15489_v49 = vld [vmem:[%s16969_s16 + $0xe0] sm:$0xff]  }
0x162b   : > { %3914 = vmatpush1.bf16.msra.mxu0 %v15412_v27  ;;  %3957 = vmatpush1.bf16.msra.mxu1 %v15415_v28  ;;  %v15490_v27 = vld [vmem:[%s16969_s16 + $0x20] sm:$0xff]  }
0x162c   : > { %3915 = vmatprep.subr.bf16.mxu0 %v15420_v29  ;;  %3958 = vmatprep.subr.bf16.mxu1 %v15423_v51  ;;  %v15491_v28 = vld [vmem:[%s16969_s16 + $0xa0] sm:$0xff]   ;;  %v15492_v29 = vld [vmem:[%s16969_s16 + $0x68] sm:$0xff]  }
0x162d   : > { %v15493_v51 = vld [vmem:[%s16969_s16 + $0xe8] sm:$0xff]  }
0x162f   : > { %3916 = vmatpush1.bf16.msra.mxu0 %v15418_v30  ;;  %3959 = vmatpush1.bf16.msra.mxu1 %v15421_v63  ;;  %v15494_v30 = vld [vmem:[%s16969_s16 + $0x28] sm:$0xff]  }
0x1630   : > { %3987 = vmatprep.subr.bf16.mxu0 %v15426_v31  ;;  %4030 = vmatprep.subr.bf16.mxu1 %v15429_v32  ;;  %v15495_v63 = vld [vmem:[%s16969_s16 + $0xa8] sm:$0xff]   ;;  %v15496_v31 = vld [vmem:[%s16969_s16 + $0x70] sm:$0xff]  }
0x1631   : > { %v15497_v32 = vld [vmem:[%s16969_s16 + $0xf0] sm:$0xff]  }
0x1632   : > { %3934 = vmatmul.mubr.bf16.vlgmr.msra.gmra.mrb[32].mxu0 %v17401_v50  ;;  %3977 = vmatmul.mubr.bf16.vlgmr.msra.gmra.mrb[28].mxu1 %v17401_v50 }
0x1633   : > { %3988 = vmatpush1.bf16.msra.mxu0 %v15424_v33  ;;  %4031 = vmatpush1.bf16.msra.mxu1 %v15427_v34  ;;  %v15498_v33 = vld [vmem:[%s16969_s16 + $0x30] sm:$0xff]  }
0x1634   : > { %3989 = vmatprep.subr.bf16.mxu0 %v15432_v35  ;;  %4032 = vmatprep.subr.bf16.mxu1 %v15435_v18  ;;  %v15499_v34 = vld [vmem:[%s16969_s16 + $0xb0] sm:$0xff]   ;;  %v15500_v35 = vld [vmem:[%s16969_s16 + $0x78] sm:$0xff]  }
0x1635   : > { %4019 = vmatprep.mubr.bf16.mxu0 %v16505_v22  ;;  %4062 = vmatprep.mubr.bf16.mxu1 %v16505_v22  ;;  %v15450_v22 = vld [vmem:[%s16963_s28 + $0x2c4] ss:$80 sps:$4 sm:$0xff]   ;;  %v15501_v18 = vld [vmem:[%s16969_s16 + $0xf8] sm:$0xff]  }
0x1637   : > { %3990 = vmatpush1.bf16.msra.mxu0 %v15430_v19  ;;  %4033 = vmatpush1.bf16.msra.mxu1 %v15433_v47  ;;  %v15502_v19 = vld [vmem:[%s16969_s16 + $0x38] sm:$0xff]  }
0x1638   : > { %3991 = vmatprep.subr.bf16.mxu0 %v15438_v37  ;;  %4034 = vmatprep.subr.bf16.mxu1 %v15441_v38  ;;  %v15503_v47 = vld [vmem:[%s16969_s16 + $0xb8] sm:$0xff]   ;;  %v15504_v37 = vld [vmem:[%s16969_s16 + $0x140] sm:$0xff]  }
0x1639   : > { %v15505_v38 = vld [vmem:[%s16969_s16 + $0x1c0] sm:$0xff]  }
0x163b   : > { %3992 = vmatpush1.bf16.msra.mxu0 %v15436_v39  ;;  %4035 = vmatpush1.bf16.msra.mxu1 %v15439_v40  ;;  %v17544_v39 = vld [vmem:[%s16971_s5 + $0x4] sm:$0xff]  ;;  %v3023_v40 = vsub.s32 3, %v17032_v41 }
0x163c   : > { %3993 = vmatprep.subr.bf16.mxu0 %v15444_v59  ;;  %4036 = vmatprep.subr.bf16.mxu1 %v15447_v43  ;;  %v3012_v59 = vrot.slane %v17544_v39, %v17035_v42  ;;  %v3020_v43 = vrot.slane %v17544_v39, %v17094_v13 }
0x163f   : > { %3994 = vmatpush1.bf16.msra.mxu0 %v15442_v45  ;;  %4037 = vmatpush1.bf16.msra.mxu1 %v15445_v46  ;;  %v3016_v45 = vrot.slane %v17544_v39, %v17041_v44  ;;  %v3024_v46 = vrot.slane %v17544_v39, %v3023_v40 }
0x1640   : > { %3995 = vmatprep.subr.bf16.mxu0 %v15450_v22  ;;  %4038 = vmatprep.subr.bf16.mxu1 %v15453_v62 }
0x1643   : > { %3996 = vmatpush1.bf16.msra.mxu0 %v15448_v2  ;;  %4039 = vmatpush1.bf16.msra.mxu1 %v15451_v36 }
0x1644   : > { %3997 = vmatprep.subr.bf16.mxu0 %v15456_v9  ;;  %4040 = vmatprep.subr.bf16.mxu1 %v15459_v10 }
0x1647   : > { %3998 = vmatpush1.bf16.msra.mxu0 %v15454_v56  ;;  %4041 = vmatpush1.bf16.msra.mxu1 %v15457_v11 }
0x1648   : > { %3999 = vmatprep.subr.bf16.mxu0 %v15462_v58  ;;  %4042 = vmatprep.subr.bf16.mxu1 %v15465_v57 }
0x164b   : > { %4000 = vmatpush1.bf16.msra.mxu0 %v15460_v12  ;;  %4043 = vmatpush1.bf16.msra.mxu1 %v15463_v14 }
0x164c   : > { %4001 = vmatprep.subr.bf16.mxu0 %v15468_v15  ;;  %4044 = vmatprep.subr.bf16.mxu1 %v15471_v26 }
0x164f   : > { %4002 = vmatpush1.bf16.msra.mxu0 %v15466_v16  ;;  %4045 = vmatpush1.bf16.msra.mxu1 %v15469_v17 }
0x1650   : > { %13725 = vmatprep.subr.bf16.mxu0 %v15472_v20  ;;  %13747 = vmatprep.subr.bf16.mxu1 %v15473_v54 }
0x1652   : > { %4020 = vmatmul.mubr.bf16.vlgmr.msra.gmra.mrb[36].mxu0 %v17401_v50  ;;  %4063 = vmatmul.mubr.bf16.vlgmr.msra.gmra.mrb[32].mxu1 %v17401_v50  ;;  %v15484_v50 = vld [vmem:[%s16969_s16 + $0x58] sm:$0xff]  }
0x1653   : > { %13726 = vmatpush3.bf16.msra.mxu0 %v15474_v60  ;;  %13748 = vmatpush3.bf16.msra.mxu1 %v15475_v61 }
0x1654   : > { %13727 = vmatprep.subr.bf16.mxu0 %v15476_v6  ;;  %13749 = vmatprep.subr.bf16.mxu1 %v15477_v7 }
0x1657   : > { %13728 = vmatpush3.bf16.msra.mxu0 %v15478_v8  ;;  %13750 = vmatpush3.bf16.msra.mxu1 %v15479_v52 }
0x1658   : > { %13729 = vmatprep.subr.bf16.mxu0 %v15480_v53  ;;  %13751 = vmatprep.subr.bf16.mxu1 %v15481_v55 }
0x165b   : > { %13730 = vmatpush3.bf16.msra.mxu0 %v15482_v21  ;;  %13752 = vmatpush3.bf16.msra.mxu1 %v15483_v23 }
0x165c   : > { %13731 = vmatprep.subr.bf16.mxu0 %v15484_v50  ;;  %13753 = vmatprep.subr.bf16.mxu1 %v15485_v24  ;;  %v15506_v50 = vld [vmem:[%s16969_s16 + $0x100] sm:$0xff]  }
0x165d   : > { %v15507_v24 = vld [vmem:[%s16969_s16 + $0x180] sm:$0xff]  }
0x165f   : > { %13732 = vmatpush3.bf16.msra.mxu0 %v15486_v25  ;;  %13754 = vmatpush3.bf16.msra.mxu1 %v15487_v3  ;;  %v15508_v25 = vld [vmem:[%s16969_s16 + $0x148] sm:$0xff]  }
0x1660   : > { %13733 = vmatprep.subr.bf16.mxu0 %v15488_v48  ;;  %13755 = vmatprep.subr.bf16.mxu1 %v15489_v49  ;;  %v15509_v3 = vld [vmem:[%s16969_s16 + $0x1c8] sm:$0xff]  }
0x1661   : > { %v15510_v48 = vld [vmem:[%s16969_s16 + $0x108] sm:$0xff]  }
0x1662   : > { %v15511_v49 = vld [vmem:[%s16969_s16 + $0x188] sm:$0xff]  }
0x1663   : > { %13734 = vmatpush3.bf16.msra.mxu0 %v15490_v27  ;;  %13756 = vmatpush3.bf16.msra.mxu1 %v15491_v28  ;;  %v15512_v27 = vld [vmem:[%s16969_s16 + $0x150] sm:$0xff]  }
0x1664   : > { %13735 = vmatprep.subr.bf16.mxu0 %v15492_v29  ;;  %13757 = vmatprep.subr.bf16.mxu1 %v15493_v51  ;;  %v15513_v28 = vld [vmem:[%s16969_s16 + $0x1d0] sm:$0xff]  }
0x1665   : > { %v15514_v29 = vld [vmem:[%s16969_s16 + $0x110] sm:$0xff]  }
0x1666   : > { %v15515_v51 = vld [vmem:[%s16969_s16 + $0x190] sm:$0xff]  }
0x1667   : > { %13736 = vmatpush3.bf16.msra.mxu0 %v15494_v30  ;;  %13758 = vmatpush3.bf16.msra.mxu1 %v15495_v63  ;;  %v15516_v30 = vld [vmem:[%s16969_s16 + $0x158] sm:$0xff]  }
0x1668   : > { %13737 = vmatprep.subr.bf16.mxu0 %v15496_v31  ;;  %13759 = vmatprep.subr.bf16.mxu1 %v15497_v32  ;;  %v15517_v63 = vld [vmem:[%s16969_s16 + $0x1d8] sm:$0xff]  }
0x1669   : > { %v15518_v31 = vld [vmem:[%s16969_s16 + $0x118] sm:$0xff]  }
0x166a   : > { %v15519_v32 = vld [vmem:[%s16969_s16 + $0x198] sm:$0xff]  }
0x166b   : > { %13738 = vmatpush3.bf16.msra.mxu0 %v15498_v33  ;;  %13760 = vmatpush3.bf16.msra.mxu1 %v15499_v34  ;;  %v15520_v33 = vld [vmem:[%s16969_s16 + $0x160] sm:$0xff]  }
0x166c   : > { %13739 = vmatprep.subr.bf16.mxu0 %v15500_v35  ;;  %13761 = vmatprep.subr.bf16.mxu1 %v15501_v18  ;;  %v15521_v34 = vld [vmem:[%s16969_s16 + $0x1e0] sm:$0xff]  }
0x166d   : > { %v15522_v35 = vld [vmem:[%s16969_s16 + $0x120] sm:$0xff]  }
0x166e   : > { %v15523_v18 = vld [vmem:[%s16969_s16 + $0x1a0] sm:$0xff]  }
0x166f   : > { %13740 = vmatpush3.bf16.msra.mxu0 %v15502_v19  ;;  %13762 = vmatpush3.bf16.msra.mxu1 %v15503_v47  ;;  %v15524_v19 = vld [vmem:[%s16969_s16 + $0x168] sm:$0xff]  }
0x1670   : > { %13769 = vmatprep.subr.bf16.mxu0 %v15504_v37  ;;  %13791 = vmatprep.subr.bf16.mxu1 %v15505_v38  ;;  %v15525_v47 = vld [vmem:[%s16969_s16 + $0x1e8] sm:$0xff]   ;;  %v3027_v37 = vsub.s32 4, %v17032_v41  ;;  %v3035_v38 = vsub.s32 6, %v17032_v41 }
0x16c5   : > { %v3763_v22 = vpop.f32.mrb[24].mxu0  ;;  %v3806_v62 = vpop.f32.mrb[20].mxu1 }
0x16c6   : > { %v3764_v2 = vadd.f32 %v3763_v22, %v3012_v59  ;;  %v3807_v36 = vadd.f32 %v3806_v62, %v3020_v43  ;;  %v3765_v9 = vpop.f32.mrb[25].mxu0  ;;  %v3808_v10 = vpop.f32.mrb[21].mxu1  ;;  %v3028_v22 = vrot.slane %v17544_v39, %v3027_v37  ;;  %v3036_v62 = vrot.slane %v17544_v39, %v3035_v38 }
0x16c7   : > { %v3766_v56 = vadd.f32 %v3765_v9, %v3016_v45  ;;  %v3809_v11 = vadd.f32 %v3808_v10, %v3024_v46  ;;  %v3767_v58 = vpop.f32.mrb[26].mxu0  ;;  %v3810_v57 = vpop.f32.mrb[22].mxu1 }
0x16c8   : > { %v3768_v12 = vadd.f32 %v3767_v58, %v3012_v59  ;;  %v3811_v14 = vadd.f32 %v3810_v57, %v3020_v43  ;;  %v3769_v15 = vpop.f32.mrb[27].mxu0  ;;  %v3812_v26 = vpop.f32.mrb[23].mxu1  ;;  %v4073_v20 = vmax.f32 %v3764_v2, 0.0  ;;  %v4075_v54 = vmax.f32 %v3807_v36, 0.0  ;;  %v15528_v2 = vld [vmem:[%s16969_s16 + $0x170] sm:$0xff]  }
0x16c9   : > { %v3770_v16 = vadd.f32 %v3769_v15, %v3016_v45  ;;  %v3813_v17 = vadd.f32 %v3812_v26, %v3024_v46  ;;  %v4074_v6 = vmax.f32 %v3766_v56, 0.0  ;;  %v4076_v7 = vmax.f32 %v3809_v11, 0.0  ;;  %v15526_v45 = vld [vmem:[%s16969_s16 + $0x128] sm:$0xff]   ;;  %v15529_v36 = vld [vmem:[%s16969_s16 + $0x1f0] sm:$0xff]  }
0x16ca   : > { %v4089_v60 = vmax.f32 %v3768_v12, 0.0  ;;  %v4091_v61 = vmax.f32 %v3811_v14, 0.0  ;;  %v3031_v59 = vsub.s32 5, %v17032_v41  ;;  %v3039_v43 = vsub.s32 7, %v17032_v41  ;;  %v15527_v46 = vld [vmem:[%s16969_s16 + $0x1a8] sm:$0xff]   ;;  %v15530_v58 = vld [vmem:[%s16969_s16 + $0x130] sm:$0xff]  }
0x16cb   : > { %v4090_v8 = vmax.f32 %v3770_v16, 0.0  ;;  %v4092_v52 = vmax.f32 %v3813_v17, 0.0  ;;  %v15531_v57 = vld [vmem:[%s16969_s16 + $0x1b0] sm:$0xff]   ;;  %v15532_v16 = vld [vmem:[%s16969_s16 + $0x178] sm:$0xff]  }
0x16cc   : > { %v4362_v53 = vpack.c.bf16 %v4089_v60, %v4073_v20  ;;  %v4364_v55 = vpack.c.bf16 %v4091_v61, %v4075_v54  ;;  %v3032_v9 = vrot.slane %v17544_v39, %v3031_v59  ;;  %v3040_v10 = vrot.slane %v17544_v39, %v3039_v43  ;;  %v15533_v17 = vld [vmem:[%s16969_s16 + $0x1f8] sm:$0xff]  }
0x16cd   : > { %v4363_v21 = vpack.c.bf16 %v4090_v8, %v4074_v6  ;;  %v4365_v23 = vpack.c.bf16 %v4092_v52, %v4076_v7 }
0x16cf   : > { %5184 = vmatprep.mubr.bf16.mxu0 %v4363_v21  ;;  %5225 = vmatprep.mubr.bf16.mxu1 %v4365_v23  ;;  %v15535_v21 = vld [vmem:[%s16969_s16 + $0x1b8] sm:$0xff]  }
0x16d0   : > { %5185 = vmatmul.mubr.bf16.vlgmr.msra.gmra.mrb[40].mxu0 %v4362_v53  ;;  %5226 = vmatmul.mubr.bf16.vlgmr.msra.gmra.mrb[36].mxu1 %v4364_v55  ;;  %v15534_v55 = vld [vmem:[%s16969_s16 + $0x138] sm:$0xff]  }
0x16d1   : > { %13770 = vmatpush3.bf16.msra.mxu0 %v15506_v50  ;;  %13792 = vmatpush3.bf16.msra.mxu1 %v15507_v24 }
0x16d2   : > { %13771 = vmatprep.subr.bf16.mxu0 %v15508_v25  ;;  %13793 = vmatprep.subr.bf16.mxu1 %v15509_v3  ;;  %v15536_v3 = vld [vmem:[%s16969_s16 + $0x240] sm:$0xff]  }
0x16d5   : > { %13772 = vmatpush3.bf16.msra.mxu0 %v15510_v48  ;;  %13794 = vmatpush3.bf16.msra.mxu1 %v15511_v49  ;;  %v15537_v48 = vld [vmem:[%s16969_s16 + $0x2c0] sm:$0xff]  }
0x16d6   : > { %13773 = vmatprep.subr.bf16.mxu0 %v15512_v27  ;;  %13795 = vmatprep.subr.bf16.mxu1 %v15513_v28 }
0x16d9   : > { %13774 = vmatpush3.bf16.msra.mxu0 %v15514_v29  ;;  %13796 = vmatpush3.bf16.msra.mxu1 %v15515_v51 }
0x16da   : > { %13775 = vmatprep.subr.bf16.mxu0 %v15516_v30  ;;  %13797 = vmatprep.subr.bf16.mxu1 %v15517_v63 }
0x16dd   : > { %13776 = vmatpush3.bf16.msra.mxu0 %v15518_v31  ;;  %13798 = vmatpush3.bf16.msra.mxu1 %v15519_v32  ;;  %v15538_v32 = vld [vmem:[%s16969_s16 + $0x200] sm:$0xff]  }
0x16de   : > { %13777 = vmatprep.subr.bf16.mxu0 %v15520_v33  ;;  %13799 = vmatprep.subr.bf16.mxu1 %v15521_v34  ;;  %v15539_v33 = vld [vmem:[%s16969_s16 + $0x280] sm:$0xff]   ;;  %v15540_v34 = vld [vmem:[%s16969_s16 + $0x248] sm:$0xff]  }
0x16e1   : > { %13778 = vmatpush3.bf16.msra.mxu0 %v15522_v35  ;;  %13800 = vmatpush3.bf16.msra.mxu1 %v15523_v18  ;;  %v15541_v35 = vld [vmem:[%s16969_s16 + $0x2c8] sm:$0xff]  }
0x16e2   : > { %13779 = vmatprep.subr.bf16.mxu0 %v15524_v19  ;;  %13801 = vmatprep.subr.bf16.mxu1 %v15525_v47  ;;  %v15542_v18 = vld [vmem:[%s16969_s16 + $0x208] sm:$0xff]   ;;  %v15544_v47 = vld [vmem:[%s16969_s16 + $0x250] sm:$0xff]  }
0x16e3   : > { %v15543_v19 = vld [vmem:[%s16969_s16 + $0x288] sm:$0xff]  }
0x16e5   : > { %v3849_v56 = vpop.f32.mrb[28].mxu0  ;;  %v3892_v11 = vpop.f32.mrb[24].mxu1  ;;  %13780 = vmatpush3.bf16.msra.mxu0 %v15526_v45  ;;  %13802 = vmatpush3.bf16.msra.mxu1 %v15527_v46  ;;  %v15545_v45 = vld [vmem:[%s16969_s16 + $0x2d0] sm:$0xff]  }
0x16e6   : > { %v3850_v12 = vadd.f32 %v3849_v56, %v3028_v22  ;;  %v3893_v14 = vadd.f32 %v3892_v11, %v3036_v62  ;;  %v3851_v15 = vpop.f32.mrb[29].mxu0  ;;  %v3894_v26 = vpop.f32.mrb[25].mxu1  ;;  %13781 = vmatprep.subr.bf16.mxu0 %v15528_v2  ;;  %13803 = vmatprep.subr.bf16.mxu1 %v15529_v36  ;;  %v15546_v46 = vld [vmem:[%s16969_s16 + $0x210] sm:$0xff]   ;;  %v15549_v2 = vld [vmem:[%s16969_s16 + $0x2d8] sm:$0xff]   ;;  %v15553_v56 = vld [vmem:[%s16969_s16 + $0x2e0] sm:$0xff]  }
0x16e7   : > { %v3852_v20 = vadd.f32 %v3851_v15, %v3032_v9  ;;  %v3895_v54 = vadd.f32 %v3894_v26, %v3040_v10  ;;  %v3853_v60 = vpop.f32.mrb[30].mxu0  ;;  %v3896_v39 = vpop.f32.mrb[26].mxu1  ;;  %v15550_v36 = vld [vmem:[%s16969_s16 + $0x218] sm:$0xff]   ;;  %v15554_v11 = vld [vmem:[%s16969_s16 + $0x220] sm:$0xff]   ;;  %v15558_v15 = vld [vmem:[%s16969_s16 + $0x228] sm:$0xff]  }
0x16e8   : > { %v3854_v61 = vadd.f32 %v3853_v60, %v3028_v22  ;;  %v3897_v6 = vadd.f32 %v3896_v39, %v3036_v62  ;;  %v3855_v7 = vpop.f32.mrb[31].mxu0  ;;  %v3898_v8 = vpop.f32.mrb[27].mxu1  ;;  %v4077_v23 = vmax.f32 %v3850_v12, 0.0  ;;  %v4079_v50 = vmax.f32 %v3893_v14, 0.0  ;;  %v15547_v22 = vld [vmem:[%s16969_s16 + $0x290] sm:$0xff]   ;;  %v15548_v62 = vld [vmem:[%s16969_s16 + $0x258] sm:$0xff]  }
0x16e9   : > { %v3856_v52 = vadd.f32 %v3855_v7, %v3032_v9  ;;  %v3899_v53 = vadd.f32 %v3898_v8, %v3040_v10  ;;  %13782 = vmatpush3.bf16.msra.mxu0 %v15530_v58  ;;  %13804 = vmatpush3.bf16.msra.mxu1 %v15531_v57  ;;  %v4078_v49 = vmax.f32 %v3852_v20, 0.0  ;;  %v4080_v27 = vmax.f32 %v3895_v54, 0.0  ;;  %v15551_v9 = vld [vmem:[%s16969_s16 + $0x298] sm:$0xff]   ;;  %v15552_v10 = vld [vmem:[%s16969_s16 + $0x260] sm:$0xff]   ;;  %v15556_v57 = vld [vmem:[%s16969_s16 + $0x268] sm:$0xff]  }
0x16ea   : > { %v4093_v24 = vmax.f32 %v3854_v61, 0.0  ;;  %v4095_v25 = vmax.f32 %v3897_v6, 0.0  ;;  %13783 = vmatprep.subr.bf16.mxu0 %v15532_v16  ;;  %13805 = vmatprep.subr.bf16.mxu1 %v15533_v17  ;;  %v15555_v58 = vld [vmem:[%s16969_s16 + $0x2a0] sm:$0xff]   ;;  %v15557_v12 = vld [vmem:[%s16969_s16 + $0x2e8] sm:$0xff]   ;;  %v15560_v20 = vld [vmem:[%s16969_s16 + $0x270] sm:$0xff]  }
0x16eb   : > { %v4094_v28 = vmax.f32 %v3856_v52, 0.0  ;;  %v4096_v29 = vmax.f32 %v3899_v53, 0.0  ;;  %v17625_v14 = vld [vmem:[%s16971_s5 + $0xc] sm:$0xff] }
0x16ec   : > { %v4366_v51 = vpack.c.bf16 %v4093_v24, %v4077_v23  ;;  %v4368_v30 = vpack.c.bf16 %v4095_v25, %v4079_v50  ;;  %v15559_v26 = vld [vmem:[%s16969_s16 + $0x2a8] sm:$0xff]   ;;  %v3044_v16 = vrot.slane %v17625_v14, %v17035_v42  ;;  %v3052_v17 = vrot.slane %v17625_v14, %v17094_v13  ;;  %v15561_v54 = vld [vmem:[%s16969_s16 + $0x2f0] sm:$0xff]  }
0x16ed   : > { %v4367_v63 = vpack.c.bf16 %v4094_v28, %v4078_v49  ;;  %v4369_v31 = vpack.c.bf16 %v4096_v29, %v4080_v27  ;;  %13784 = vmatpush3.bf16.msra.mxu0 %v15534_v55  ;;  %13806 = vmatpush3.bf16.msra.mxu1 %v15535_v21  ;;  %v3048_v60 = vrot.slane %v17625_v14, %v17041_v44  ;;  %v15562_v7 = vld [vmem:[%s16969_s16 + $0x230] sm:$0xff]   ;;  %v15564_v55 = vld [vmem:[%s16969_s16 + $0x278] sm:$0xff]  }
0x16ee   : > { %13813 = vmatprep.subr.bf16.mxu0 %v15536_v3  ;;  %13835 = vmatprep.subr.bf16.mxu1 %v15537_v48  ;;  %v3056_v39 = vrot.slane %v17625_v14, %v3023_v40  ;;  %v15563_v42 = vld [vmem:[%s16969_s16 + $0x2b0] sm:$0xff]   ;;  %v15565_v44 = vld [vmem:[%s16969_s16 + $0x2f8] sm:$0xff]  }
0x16ef   : > { %5266 = vmatprep.mubr.bf16.mxu0 %v4367_v63  ;;  %5307 = vmatprep.mubr.bf16.mxu1 %v4369_v31  ;;  %v15566_v28 = vld [vmem:[%s16969_s16 + $0x238] sm:$0xff]  }
0x16f0   : > { %5267 = vmatmul.mubr.bf16.vlgmr.msra.gmra.mrb[44].mxu0 %v4366_v51  ;;  %5308 = vmatmul.mubr.bf16.vlgmr.msra.gmra.mrb[40].mxu1 %v4368_v30  ;;  %v15567_v29 = vld [vmem:[%s16969_s16 + $0x2b8] sm:$0xff]  }
0x16f1   : > { %13814 = vmatpush3.bf16.msra.mxu0 %v15538_v32  ;;  %13836 = vmatpush3.bf16.msra.mxu1 %v15539_v33  ;;  %v15568_v32 = vld [vmem:[%s16969_s16 + $0x340] sm:$0xff]  }
0x16f2   : > { %13815 = vmatprep.subr.bf16.mxu0 %v15540_v34  ;;  %13837 = vmatprep.subr.bf16.mxu1 %v15541_v35  ;;  %v15569_v33 = vld [vmem:[%s16969_s16 + $0x3c0] sm:$0xff]  }
0x16f5   : > { %13816 = vmatpush3.bf16.msra.mxu0 %v15542_v18  ;;  %13838 = vmatpush3.bf16.msra.mxu1 %v15543_v19 }
0x16f6   : > { %13817 = vmatprep.subr.bf16.mxu0 %v15544_v47  ;;  %13839 = vmatprep.subr.bf16.mxu1 %v15545_v45 }
0x16f9   : > { %13818 = vmatpush3.bf16.msra.mxu0 %v15546_v46  ;;  %13840 = vmatpush3.bf16.msra.mxu1 %v15547_v22 }
0x16fa   : > { %13819 = vmatprep.subr.bf16.mxu0 %v15548_v62  ;;  %13841 = vmatprep.subr.bf16.mxu1 %v15549_v2  ;;  %v15570_v62 = vld [vmem:[%s16969_s16 + $0x300] sm:$0xff]  }
0x16fb   : > { %v15571_v2 = vld [vmem:[%s16969_s16 + $0x380] sm:$0xff]  }
0x16fd   : > { %13820 = vmatpush3.bf16.msra.mxu0 %v15550_v36  ;;  %13842 = vmatpush3.bf16.msra.mxu1 %v15551_v9  ;;  %v15572_v36 = vld [vmem:[%s16969_s16 + $0x348] sm:$0xff]  }
0x16fe   : > { %13821 = vmatprep.subr.bf16.mxu0 %v15552_v10  ;;  %13843 = vmatprep.subr.bf16.mxu1 %v15553_v56  ;;  %v15573_v9 = vld [vmem:[%s16969_s16 + $0x3c8] sm:$0xff]  }
0x16ff   : > { %v15574_v10 = vld [vmem:[%s16969_s16 + $0x308] sm:$0xff]  }
0x1700   : > { %v15575_v56 = vld [vmem:[%s16969_s16 + $0x388] sm:$0xff]  }
0x1701   : > { %13822 = vmatpush3.bf16.msra.mxu0 %v15554_v11  ;;  %13844 = vmatpush3.bf16.msra.mxu1 %v15555_v58  ;;  %v15576_v11 = vld [vmem:[%s16969_s16 + $0x350] sm:$0xff]  }
0x1702   : > { %13823 = vmatprep.subr.bf16.mxu0 %v15556_v57  ;;  %13845 = vmatprep.subr.bf16.mxu1 %v15557_v12  ;;  %v15577_v58 = vld [vmem:[%s16969_s16 + $0x3d0] sm:$0xff]  }
0x1703   : > { %v15578_v57 = vld [vmem:[%s16969_s16 + $0x310] sm:$0xff]  }
0x1704   : > { %v15579_v12 = vld [vmem:[%s16969_s16 + $0x390] sm:$0xff]  }
0x1705   : > { %v3935_v61 = vpop.f32.mrb[32].mxu0  ;;  %v3978_v6 = vpop.f32.mrb[28].mxu1  ;;  %13824 = vmatpush3.bf16.msra.mxu0 %v15558_v15  ;;  %13846 = vmatpush3.bf16.msra.mxu1 %v15559_v26  ;;  %v15580_v15 = vld [vmem:[%s16969_s16 + $0x358] sm:$0xff]  }
0x1706   : > { %v3936_v8 = vadd.f32 %v3935_v61, %v3044_v16  ;;  %v3979_v52 = vadd.f32 %v3978_v6, %v3052_v17  ;;  %v3937_v13 = vpop.f32.mrb[33].mxu0  ;;  %v3980_v53 = vpop.f32.mrb[29].mxu1  ;;  %13825 = vmatprep.subr.bf16.mxu0 %v15560_v20  ;;  %13847 = vmatprep.subr.bf16.mxu1 %v15561_v54  ;;  %v15581_v26 = vld [vmem:[%s16969_s16 + $0x3d8] sm:$0xff]   ;;  %v15584_v20 = vld [vmem:[%s16969_s16 + $0x360] sm:$0xff]   ;;  %v15588_v61 = vld [vmem:[%s16969_s16 + $0x368] sm:$0xff]  }
0x1707   : > { %v3938_v21 = vadd.f32 %v3937_v13, %v3048_v60  ;;  %v3981_v23 = vadd.f32 %v3980_v53, %v3056_v39  ;;  %v3939_v50 = vpop.f32.mrb[34].mxu0  ;;  %v3982_v40 = vpop.f32.mrb[30].mxu1  ;;  %v15585_v54 = vld [vmem:[%s16969_s16 + $0x3e0] sm:$0xff]   ;;  %v15589_v6 = vld [vmem:[%s16969_s16 + $0x3e8] sm:$0xff]   ;;  %v15592_v13 = vld [vmem:[%s16969_s16 + $0x370] sm:$0xff]  }
0x1708   : > { %v3940_v24 = vadd.f32 %v3939_v50, %v3044_v16  ;;  %v3983_v25 = vadd.f32 %v3982_v40, %v3052_v17  ;;  %v3941_v3 = vpop.f32.mrb[35].mxu0  ;;  %v3984_v48 = vpop.f32.mrb[31].mxu1  ;;  %v4081_v51 = vmax.f32 %v3936_v8, 0.0  ;;  %v4083_v30 = vmax.f32 %v3979_v52, 0.0  ;;  %v15582_v16 = vld [vmem:[%s16969_s16 + $0x318] sm:$0xff]   ;;  %v15593_v53 = vld [vmem:[%s16969_s16 + $0x3f0] sm:$0xff]  }
0x1709   : > { %v3942_v49 = vadd.f32 %v3941_v3, %v3048_v60  ;;  %v3985_v27 = vadd.f32 %v3984_v48, %v3056_v39  ;;  %13826 = vmatpush3.bf16.msra.mxu0 %v15562_v7  ;;  %13848 = vmatpush3.bf16.msra.mxu1 %v15563_v42  ;;  %v4082_v34 = vmax.f32 %v3938_v21, 0.0  ;;  %v4084_v35 = vmax.f32 %v3981_v23, 0.0  ;;  %v15583_v17 = vld [vmem:[%s16969_s16 + $0x398] sm:$0xff]   ;;  %v15586_v60 = vld [vmem:[%s16969_s16 + $0x320] sm:$0xff]   ;;  %v15590_v7 = vld [vmem:[%s16969_s16 + $0x328] sm:$0xff]  }
0x170a   : > { %v4097_v63 = vmax.f32 %v3940_v24, 0.0  ;;  %v4099_v31 = vmax.f32 %v3983_v25, 0.0  ;;  %13827 = vmatprep.subr.bf16.mxu0 %v15564_v55  ;;  %13849 = vmatprep.subr.bf16.mxu1 %v15565_v44  ;;  %v15587_v39 = vld [vmem:[%s16969_s16 + $0x3a0] sm:$0xff]   ;;  %v15591_v42 = vld [vmem:[%s16969_s16 + $0x3a8] sm:$0xff]   ;;  %v3060_v8 = vrot.slane %v17625_v14, %v3027_v37  ;;  %v3068_v52 = vrot.slane %v17625_v14, %v3035_v38  ;;  %v15594_v37 = vld [vmem:[%s16969_s16 + $0x330] sm:$0xff]  }
0x170b   : > { %v4098_v18 = vmax.f32 %v3942_v49, 0.0  ;;  %v4100_v19 = vmax.f32 %v3985_v27, 0.0  ;;  %v3064_v55 = vrot.slane %v17625_v14, %v3031_v59  ;;  %v3072_v44 = vrot.slane %v17625_v14, %v3039_v43  ;;  %v15595_v50 = vld [vmem:[%s16969_s16 + $0x3b0] sm:$0xff]   ;;  %v15596_v3 = vld [vmem:[%s16969_s16 + $0x378] sm:$0xff]  }
0x170c   : > { %v4370_v47 = vpack.c.bf16 %v4097_v63, %v4081_v51  ;;  %v4372_v45 = vpack.c.bf16 %v4099_v31, %v4083_v30  ;;  %v15597_v59 = vld [vmem:[%s16969_s16 + $0x3f8] sm:$0xff]  }
0x170d   : > { %v4371_v46 = vpack.c.bf16 %v4098_v18, %v4082_v34  ;;  %v4373_v22 = vpack.c.bf16 %v4100_v19, %v4084_v35  ;;  %13828 = vmatpush3.bf16.msra.mxu0 %v15566_v28  ;;  %13850 = vmatpush3.bf16.msra.mxu1 %v15567_v29  ;;  %v15598_v63 = vld [vmem:[%s16969_s16 + $0x338] sm:$0xff]  }
0x170e   : > { %13857 = vmatprep.subr.bf16.mxu0 %v15568_v32  ;;  %13879 = vmatprep.subr.bf16.mxu1 %v15569_v33  ;;  %v15599_v31 = vld [vmem:[%s16969_s16 + $0x3b8] sm:$0xff]  }
0x170f   : > { %5348 = vmatprep.mubr.bf16.mxu0 %v4371_v46  ;;  %5389 = vmatprep.mubr.bf16.mxu1 %v4373_v22 }
0x1710   : > { %5349 = vmatmul.mubr.bf16.vlgmr.msra.gmra.mrb[48].mxu0 %v4370_v47  ;;  %5390 = vmatmul.mubr.bf16.vlgmr.msra.gmra.mrb[44].mxu1 %v4372_v45 }
0x1711   : > { %13858 = vmatpush3.bf16.msra.mxu0 %v15570_v62  ;;  %13880 = vmatpush3.bf16.msra.mxu1 %v15571_v2 }
0x1712   : > { %13859 = vmatprep.subr.bf16.mxu0 %v15572_v36  ;;  %13881 = vmatprep.subr.bf16.mxu1 %v15573_v9 }
0x1715   : > { %13860 = vmatpush3.bf16.msra.mxu0 %v15574_v10  ;;  %13882 = vmatpush3.bf16.msra.mxu1 %v15575_v56  ;;  %v13060_v10 = vld [vmem:[%s16971_s5 + $0x14] ss:$0 sm:$0xff] }
0x1716   : > { %13861 = vmatprep.subr.bf16.mxu0 %v15576_v11  ;;  %13883 = vmatprep.subr.bf16.mxu1 %v15577_v58 }
0x1719   : > { %13862 = vmatpush3.bf16.msra.mxu0 %v15578_v57  ;;  %13884 = vmatpush3.bf16.msra.mxu1 %v15579_v12 }
0x171a   : > { %13863 = vmatprep.subr.bf16.mxu0 %v15580_v15  ;;  %13885 = vmatprep.subr.bf16.mxu1 %v15581_v26 }
0x171d   : > { %13864 = vmatpush3.bf16.msra.mxu0 %v15582_v16  ;;  %13886 = vmatpush3.bf16.msra.mxu1 %v15583_v17 }
0x171e   : > { %13865 = vmatprep.subr.bf16.mxu0 %v15584_v20  ;;  %13887 = vmatprep.subr.bf16.mxu1 %v15585_v54 }
0x1721   : > { %13866 = vmatpush3.bf16.msra.mxu0 %v15586_v60  ;;  %13888 = vmatpush3.bf16.msra.mxu1 %v15587_v39 }
0x1722   : > { %13867 = vmatprep.subr.bf16.mxu0 %v15588_v61  ;;  %13889 = vmatprep.subr.bf16.mxu1 %v15589_v6 }
0x1725   : > { %v4021_v21 = vpop.f32.mrb[36].mxu0  ;;  %v4064_v23 = vpop.f32.mrb[32].mxu1  ;;  %13868 = vmatpush3.bf16.msra.mxu0 %v15590_v7  ;;  %13890 = vmatpush3.bf16.msra.mxu1 %v15591_v42 }
0x1726   : > { %v4022_v40 = vadd.f32 %v4021_v21, %v3060_v8  ;;  %v4065_v38 = vadd.f32 %v4064_v23, %v3068_v52  ;;  %v4023_v24 = vpop.f32.mrb[37].mxu0  ;;  %v4066_v25 = vpop.f32.mrb[33].mxu1  ;;  %13869 = vmatprep.subr.bf16.mxu0 %v15592_v13  ;;  %13891 = vmatprep.subr.bf16.mxu1 %v15593_v53 }
0x1727   : > { %v4024_v48 = vadd.f32 %v4023_v24, %v3064_v55  ;;  %v4067_v41 = vadd.f32 %v4066_v25, %v3072_v44  ;;  %v4025_v49 = vpop.f32.mrb[38].mxu0  ;;  %v4068_v43 = vpop.f32.mrb[34].mxu1 }
0x1728   : > { %v4026_v14 = vadd.f32 %v4025_v49, %v3060_v8  ;;  %v4069_v27 = vadd.f32 %v4068_v43, %v3068_v52  ;;  %v4027_v28 = vpop.f32.mrb[39].mxu0  ;;  %v4070_v29 = vpop.f32.mrb[35].mxu1  ;;  %v4085_v32 = vmax.f32 %v4022_v40, 0.0  ;;  %v4087_v33 = vmax.f32 %v4065_v38, 0.0 }
0x1729   : > { %v4028_v51 = vadd.f32 %v4027_v28, %v3064_v55  ;;  %v4071_v30 = vadd.f32 %v4070_v29, %v3072_v44  ;;  %13870 = vmatpush3.bf16.msra.mxu0 %v15594_v37  ;;  %13892 = vmatpush3.bf16.msra.mxu1 %v15595_v50  ;;  %v4086_v18 = vmax.f32 %v4024_v48, 0.0  ;;  %v4088_v19 = vmax.f32 %v4067_v41, 0.0 }
0x172a   : > { %v4101_v34 = vmax.f32 %v4026_v14, 0.0  ;;  %v4103_v35 = vmax.f32 %v4069_v27, 0.0  ;;  %13871 = vmatprep.subr.bf16.mxu0 %v15596_v3  ;;  %13893 = vmatprep.subr.bf16.mxu1 %v15597_v59 }
0x172b   : > { %v4102_v47 = vmax.f32 %v4028_v51, 0.0  ;;  %v4104_v45 = vmax.f32 %v4071_v30, 0.0 }
0x172c   : > { %v4374_v46 = vpack.c.bf16 %v4101_v34, %v4085_v32  ;;  %v4376_v22 = vpack.c.bf16 %v4103_v35, %v4087_v33 }
0x172d   : > { %v4375_v62 = vpack.c.bf16 %v4102_v47, %v4086_v18  ;;  %v4377_v2 = vpack.c.bf16 %v4104_v45, %v4088_v19  ;;  %13872 = vmatpush3.bf16.msra.mxu0 %v15598_v63  ;;  %13894 = vmatpush3.bf16.msra.mxu1 %v15599_v31 }
0x172f   : > { %5430 = vmatprep.mubr.bf16.mxu0 %v4375_v62  ;;  %5471 = vmatprep.mubr.bf16.mxu1 %v4377_v2 }
0x1730   : > { %5431 = vmatmul.mubr.bf16.vlgmr.msra.gmra.mrb[52].mxu0 %v4374_v46  ;;  %5472 = vmatmul.mubr.bf16.vlgmr.msra.gmra.mrb[48].mxu1 %v4376_v22 }
0x17a3   : > { %v13741_v36 = vpop.f32.mrb[40].mxu0  ;;  %v13763_v9 = vpop.f32.mrb[36].mxu1 }
0x17a4   : > { %v13742_v56 = vpop.f32.mrb[41].mxu0  ;;  %v13764_v11 = vpop.f32.mrb[37].mxu1 }
0x17a5   : > { %v13743_v58 = vadd.f32 %v13742_v56, %v13741_v36  ;;  %v13765_v57 = vadd.f32 %v13764_v11, %v13763_v9  ;;  %v13744_v12 = vpop.f32.mrb[42].mxu0  ;;  %v13766_v15 = vpop.f32.mrb[38].mxu1 }
0x17a6   : > { %v13745_v26 = vpop.f32.mrb[43].mxu0  ;;  %v13767_v16 = vpop.f32.mrb[39].mxu1 }
0x17a7   : > { %v5187_v17 = vadd.f32 %v13743_v58, %v13060_v10  ;;  %v13746_v20 = vadd.f32 %v13745_v26, %v13744_v12  ;;  %v13768_v54 = vadd.f32 %v13767_v16, %v13766_v15 }
0x17a9   : > { %v5228_v60 = vadd.f32 %v13765_v57, %v5187_v17  ;;  %v5190_v39 = vadd.f32 %v13746_v20, %v13060_v10 }
0x17ab   : > { %v5231_v61 = vadd.f32 %v13768_v54, %v5190_v39 }
0x17c3   : > { %v13785_v6 = vpop.f32.mrb[44].mxu0  ;;  %v13807_v7 = vpop.f32.mrb[40].mxu1 }
0x17c4   : > { %v13786_v42 = vpop.f32.mrb[45].mxu0  ;;  %v13808_v8 = vpop.f32.mrb[41].mxu1 }
0x17c5   : > { %v13787_v52 = vadd.f32 %v13786_v42, %v13785_v6  ;;  %v13809_v13 = vadd.f32 %v13808_v8, %v13807_v7  ;;  %v13788_v53 = vpop.f32.mrb[46].mxu0  ;;  %v13810_v55 = vpop.f32.mrb[42].mxu1  ;;  %v13189_v8 = vld [vmem:[%s16971_s5 + $0x17] ss:$0 sm:$0xff] }
0x17c6   : > { %v13789_v44 = vpop.f32.mrb[47].mxu0  ;;  %v13811_v21 = vpop.f32.mrb[43].mxu1 }
0x17c7   : > { %v5269_v23 = vadd.f32 %v13787_v52, %v5228_v60  ;;  %v13790_v37 = vadd.f32 %v13789_v44, %v13788_v53  ;;  %v13812_v50 = vadd.f32 %v13811_v21, %v13810_v55  ;;  %v13190_v53 = vld [vmem:[%s16971_s5 + $0x18] ss:$0 sm:$0xff] }
0x17c9   : > { %v5310_v40 = vadd.f32 %v13809_v13, %v5269_v23  ;;  %v5272_v38 = vadd.f32 %v13790_v37, %v5231_v61 }
0x17cb   : > { %v5313_v24 = vadd.f32 %v13812_v50, %v5272_v38 }
0x17e3   : > { %v13829_v25 = vpop.f32.mrb[48].mxu0  ;;  %v13851_v3 = vpop.f32.mrb[44].mxu1 }
0x17e4   : > { %v13830_v59 = vpop.f32.mrb[49].mxu0  ;;  %v13852_v48 = vpop.f32.mrb[45].mxu1 }
0x17e5   : > { %v13831_v41 = vadd.f32 %v13830_v59, %v13829_v25  ;;  %v13853_v49 = vadd.f32 %v13852_v48, %v13851_v3  ;;  %v13832_v43 = vpop.f32.mrb[50].mxu0  ;;  %v13854_v14 = vpop.f32.mrb[46].mxu1 }
0x17e6   : > { %v13833_v27 = vpop.f32.mrb[51].mxu0  ;;  %v13855_v28 = vpop.f32.mrb[47].mxu1 }
0x17e7   : > { %v5351_v29 = vadd.f32 %v13831_v41, %v5310_v40  ;;  %v13834_v51 = vadd.f32 %v13833_v27, %v13832_v43  ;;  %v13856_v30 = vadd.f32 %v13855_v28, %v13854_v14 }
0x17e9   : > { %v5392_v63 = vadd.f32 %v13853_v49, %v5351_v29  ;;  %v5354_v31 = vadd.f32 %v13834_v51, %v5313_v24  ;;  %v13192_v51 = vld [vmem:[#allocation15] ss:$0 sm:$0xff] (!%p13191_p13) }
0x17eb   : > { %v5395_v32 = vadd.f32 %v13856_v30, %v5354_v31 }
0x1803   : > { %v13873_v33 = vpop.f32.mrb[52].mxu0  ;;  %v13895_v34 = vpop.f32.mrb[48].mxu1 }
0x1804   : > { %v13874_v35 = vpop.f32.mrb[53].mxu0  ;;  %v13896_v18 = vpop.f32.mrb[49].mxu1 }
0x1805   : > { %v13875_v19 = vadd.f32 %v13874_v35, %v13873_v33  ;;  %v13897_v47 = vadd.f32 %v13896_v18, %v13895_v34  ;;  %v13876_v45 = vpop.f32.mrb[54].mxu0  ;;  %v13898_v46 = vpop.f32.mrb[50].mxu1 }
0x1806   : > { %v13877_v22 = vpop.f32.mrb[55].mxu0  ;;  %v13899_v62 = vpop.f32.mrb[51].mxu1 }
0x1807   : > { %v5433_v2 = vadd.f32 %v13875_v19, %v5392_v63  ;;  %v13878_v36 = vadd.f32 %v13877_v22, %v13876_v45  ;;  %v13900_v9 = vadd.f32 %v13899_v62, %v13898_v46  ;;  %v13193_v63 = vld [vmem:[#allocation15 + $0x1] ss:$0 sm:$0xff] (!%p13191_p13) }
0x1809   : > { %v5474_v10 = vadd.f32 %v13897_v47, %v5433_v2  ;;  %v5436_v56 = vadd.f32 %v13878_v36, %v5395_v32 }
0x180b   : > { %v5477_v11 = vadd.f32 %v13900_v9, %v5436_v56  ;;  %v5480_v58 = vadd.f32 %v5474_v10, %v17393_v4 }
0x180d   : > { %5484 = vadd.xlane.f32.xlu1 %v5480_v58  ;;  %v5481_v57 = vadd.f32 %v5477_v11, %v17395_v5 }
0x180f   : > { %5486 = vadd.xlane.f32.xlu0 %v5481_v57 }
0x189a   : > { %v5485_v12 = vpop.xlane.xlu1 %5484 }
0x189b   : > { %v5488_v15 = vmul.f32 0.0078125, %v5485_v12 }
0x189c   : > { %v5487_v26 = vpop.xlane.xlu0 %5486 }
0x189d   : > { %v5490_v16 = vsub.f32 %v5480_v58, %v5488_v15  ;;  %v5489_v17 = vmul.f32 0.0078125, %v5487_v26 }
0x189f   : > { %v5491_v20 = vsub.f32 %v5481_v57, %v5489_v17  ;;  %v5492_v54 = vmul.f32 %v5490_v16, %v5490_v16 }
0x18a1   : > { %5494 = vadd.xlane.f32.xlu1 %v5492_v54  ;;  %v5493_v60 = vmul.f32 %v5491_v20, %v5491_v20 }
0x18a3   : > { %5496 = vadd.xlane.f32.xlu0 %v5493_v60 }
0x192e   : > { %v5495_v39 = vpop.xlane.xlu1 %5494 }
0x192f   : > { %v5498_v61 = vmul.f32 0.0078125, %v5495_v39 }
0x1930   : > { %v5497_v6 = vpop.xlane.xlu0 %5496 }
0x1931   : > { %v5500_v4 = vadd.f32 1e-05, %v5498_v61  ;;  %v5499_v7 = vmul.f32 0.0078125, %v5497_v6 }
0x1933   : > { %15668 = vrsqrt.f32 %v5500_v4  ;;  %v5501_v5 = vadd.f32 1e-05, %v5499_v7 }
0x1935   : > { %15670 = vrsqrt.f32 %v5501_v5 }
0x193d   : > { %v15669_v42 = vpop.eup %15668 }
0x193e   : > { %v5504_v52 = vmul.f32 %v15669_v42, %v5490_v16 }
0x193f   : > { %v15671_v13 = vpop.eup %15670 }
0x1940   : > { %v5512_v55 = vmul.f32 %v13189_v8, %v5504_v52  ;;  %v5505_v44 = vmul.f32 %v15671_v13, %v5491_v20  ;;  %5527 = sbr.rel (%p13191_p13) target bundleno = 6784 (0x1a80), region = 104 }
0x1942   : > { %v5520_v21 = vadd.f32 %v13190_v53, %v5512_v55  ;;  %v5513_v23 = vmul.f32 %v13189_v8, %v5505_v44 }
0x1944   : > { %5522 = vst [vmem:[#allocation2] sm:$0xff] %v5520_v21  ;;  %v5521_v37 = vadd.f32 %v13190_v53, %v5513_v23  ;;  %5530 = vadd.xlane.f32.xlu0 (!%p13191_p13), %v5520_v21 }
0x1946   : > { %5523 = vst [vmem:[#allocation2 + $0x8] sm:$0xff] %v5521_v37 }
0x1948   : > { %5532 = vadd.xlane.f32.xlu0 %v5521_v37 }
0x19d1   : > { %v5531_v50 = vpop.xlane.xlu0 %5530 }
0x19d2   : > { %v5534_v40 = vmul.f32 0.0078125, %v5531_v50 }
0x19d4   : > { %v5536_v38 = vsub.f32 %v5520_v21, %v5534_v40 }
0x19d5   : > { %v5533_v24 = vpop.xlane.xlu0 %5532 }
0x19d6   : > { %v5535_v25 = vmul.f32 0.0078125, %v5533_v24  ;;  %v5538_v3 = vmul.f32 %v5536_v38, %v5536_v38 }
0x19d8   : > { %v5537_v59 = vsub.f32 %v5521_v37, %v5535_v25  ;;  %5540 = vadd.xlane.f32.xlu1 %v5538_v3 }
0x19da   : > { %v5539_v48 = vmul.f32 %v5537_v59, %v5537_v59 }
0x19dc   : > { %5542 = vadd.xlane.f32.xlu1 %v5539_v48 }
0x1a65   : > { %v5541_v41 = vpop.xlane.xlu1 %5540 }
0x1a66   : > { %v5544_v49 = vmul.f32 0.0078125, %v5541_v41 }
0x1a68   : > { %v5546_v43 = vadd.f32 1e-05, %v5544_v49 }
0x1a69   : > { %v5543_v14 = vpop.xlane.xlu1 %5542 }
0x1a6a   : > { %15674 = vrsqrt.f32 %v5546_v43  ;;  %v5545_v27 = vmul.f32 0.0078125, %v5543_v14 }
0x1a6c   : > { %v5547_v28 = vadd.f32 1e-05, %v5545_v27 }
0x1a6e   : > { %15676 = vrsqrt.f32 %v5547_v28 }
0x1a74   : > { %v15675_v29 = vpop.eup %15674 }
0x1a75   : > { %v5550_v30 = vmul.f32 %v15675_v29, %v5536_v38 }
0x1a77   : > { %v5558_v31 = vmul.f32 %v13192_v51, %v5550_v30 }
0x1a78   : > { %v15677_v32 = vpop.eup %15676 }
0x1a79   : > { %v5566_v33 = vadd.f32 %v13193_v63, %v5558_v31  ;;  %v5551_v34 = vmul.f32 %v15677_v32, %v5537_v59 }
0x1a7b   : > { %5568 = vst [vmem:[#allocation3] sm:$0xff] %v5566_v33  ;;  %v5559_v35 = vmul.f32 %v13192_v51, %v5551_v34 }
0x1a7d   : > { %v5567_v18 = vadd.f32 %v13193_v63, %v5559_v35 }
0x1a7f   : > { %5569 = vst [vmem:[#allocation3 + $0x8] sm:$0xff] %v5567_v18 }
0x1a80 PF: > { %p13194_p7 = scmp.lt.s32.totalorder %s16780_s11, 4 }
0x1a81   : > { %p13195_p0 = scmp.ne.s32.totalorder (!%p13194_p7), %s16780_s11, 4 }
0x1a82   : > { %5573 = sbr.rel (%p13194_p7) target bundleno = 17794 (0x4582), region = 108 }
0x1a89   : > { %5577 = sbr.rel (%p13195_p0) target bundleno = 7148 (0x1bec), region = 112  ;;  %s18896_s5 = sld [smem:[#allocation29_spill]] (!%p13195_p0)  ;;  %v5594_v47 = vld [vmem:[#allocation4] sm:$0xff] (!%p13195_p0)  ;;  %v16515_v45 = vmov (!%p13195_p0), 0   ;;  %v5595_v46 = vld [vmem:[#allocation4 + $0x8] sm:$0xff] (!%p13195_p0)  ;;  %v5596_v22 = vld [vmem:[#allocation4 + $0x10] sm:$0xff] (!%p13195_p0)  ;;  %v5578_v10 = vlaneseq (!%p13195_p0) }
0x1a8a   : > { %15678 = vset.pattern.permute.xlu0 (!%p13195_p0), %v16515_v45  ;;  %v5597_v62 = vld [vmem:[#allocation4 + $0x18] sm:$0xff] (!%p13195_p0)  ;;  %v14813_v2 = vpack.c.bf16 (!%p13195_p0), %v5595_v46, %v5594_v47  ;;  %vm5598_vm12 = vcmask (!%p13195_p0), 261120   ;;  %v16516_v58 = vmov (!%p13195_p0), 0.0  }
0x1a8b   : > { %v14817_v36 = vpack.c.bf16 (!%p13195_p0), %v5597_v62, %v5596_v22  ;;  %v5579_v56 = vand.u32 (!%p13195_p0), 127, %v5578_v10 }
0x1a8c   : > { %14814 = vmatprep.subr.bf16.mxu0 (!%p13195_p0), %v14813_v2 }
0x1a8d   : > { %14816 = vmatpush3.bf16.msra.mxu0 (!%p13195_p0), %v14813_v2 }
0x1a8e   : > { %14818 = vmatprep.subr.bf16.mxu0 (!%p13195_p0), %v14817_v36 }
0x1a8f   : > { %v5580_v19 = vld [vmem:[%s18896_s5] sm:$0xff] (!%p13195_p0)  ;;  %v5581_v9 = vld [vmem:[%s18896_s5 + $0x8] sm:$0xff] (!%p13195_p0) }
0x1a90   : > { %5583 = vperm.xlu0 %15678, %v5580_v19  }
0x1a91   : > { %14820 = vmatpush3.bf16.msra.mxu0 %v14817_v36 }
0x1a94   : > { %5586 = vperm.xlu0 %15678, %v5581_v9  }
0x1b0f   : > { %v5584_v11 = vpop.permute.xlu0 %5583 }
0x1b10   : > { %vm5588_vm13 = vcmp.eq.s32.totalorder %v5584_v11, %v5579_v56 }
0x1b11   : > { %v13196_v57 = vsel %vm5588_vm13, 1.0, %v16516_v58 }
0x1b12   : > { %14418 = vmatprep.mubr.msk.f32.mxu0 %vm5598_vm12, %v13196_v57 }
0x1b13   : > { %v5587_v12 = vpop.permute.xlu0 %5586 }
0x1b14   : > { %vm5589_vm14 = vcmp.eq.s32.totalorder %v5587_v12, %v5579_v56 }
0x1b15   : > { %v13197_v15 = vsel %vm5589_vm14, 1.0, %v16516_v58 }
0x1b16   : > { %14419 = vmatmul.mubr.msk.f32.vlgmr.msra.gmra.mrb[0].mxu0 %vm5598_vm12, %v13197_v15 }
0x1be9   : > { %v14420_v26 = vpop.f32.mrb[0].mxu0 }
0x1bea   : > { %5681 = vst [vmem:[#allocation2 + $0x8] sm:$0xff] %v14420_v26  ;;  %v5671_v16 = vpop.f32.mrb[1].mxu0 }
0x1beb   : > { %5680 = vst [vmem:[#allocation2] sm:$0xff] %v5671_v16 }
0x1bec PF: > { %v5686_v17 = vld [vmem:[%s16978_s2] sm:$0xff]  ;;  %v16517_v6 = vmov 0   ;;  %v5721_v30 = vlaneseq  ;;  %v5687_v35 = vld [vmem:[%s16978_s2 + $0x8] sm:$0xf]  ;;  %v16518_v19 = vmov 0.0   ;;  %vm16519_vm15 = vmmov 0  }
0x1bed   : > { %v5688_v20 = vld [vmem:[%s16978_s2 + $0x60] sm:$0xff]  ;;  %5896 = vmatprep.mubr.bf16.mxu0 %v16517_v6  ;;  %v5689_v18 = vld [vmem:[%s16978_s2 + $0x68] sm:$0xf]  ;;  %14421 = vmatprep.subr.bf16.mxu1 %v16518_v19  ;;  %vm5965_vm0 = vcmask 130048   ;;  %s16520_s18 = smov 96   ;;  %s16521_s20 = smov 112  }
0x1bee   : > { %v5690_v54 = vld [vmem:[%s16978_s2 + $0xc0] sm:$0xff]  ;;  %v13201_v60 = vcombine.high %v5686_v17, %v5688_v20  ;;  %v13200_v39 = vcombine.low %v5686_v17, %v5688_v20  ;;  %v17724_v63 = vshrl.u32 %v5721_v30, 7  ;;  %v13202_v47 = vcombine.low %v5687_v35, %v5689_v18  ;;  %v5691_v45 = vld [vmem:[%s16978_s2 + $0xc8] sm:$0xf]  ;;  %14437 = vmatprep.mubr.msk.bf16.mxu1 %vm16519_vm15, %v16518_v19  ;;  %vm17755_vm1 = vmpackc.low %vm5965_vm0, %vm5965_vm0  ;;  %s16522_s1 = smov 80   ;;  %s16523_s8 = smov 64  }
0x1bef   : > { %v5692_v61 = vld [vmem:[%s16978_s2 + $0x120] sm:$0xff]  ;;  %v5693_v46 = vld [vmem:[%s16978_s2 + $0x128] sm:$0xf]  ;;  %s16524_s13 = smov 48   ;;  %s16525_s12 = smov 32   ;;  %vm7648_vm2 = vcmask 261120  }
0x1bf0   : > { %v13204_v4 = vcombine.high %v5690_v54, %v5692_v61  ;;  %v5694_v7 = vld [vmem:[%s16978_s2 + $0x180] sm:$0xff]  ;;  %5864 = vmatprep.subr.bf16.mxu0 %v13201_v60  ;;  %v13203_v42 = vcombine.low %v5690_v54, %v5692_v61  ;;  %v17727_v31 = vsub.s32 0, %v17724_v63  ;;  %v17733_v33 = vsub.s32 1, %v17724_v63  ;;  %14422 = vmatpush3.bf16.msra.mxu1 %v13202_v47  ;;  %v5695_v56 = vld [vmem:[%s16978_s2 + $0x188] sm:$0xf]  ;;  %s16526_s0 = smov 16  }
0x1bf1   : > { %v5696_v5 = vld [vmem:[%s16978_s2 + $0x1e0] sm:$0xff]  ;;  %5865 = vmatpush1.bf16.msra.mxu0 %v13200_v39  ;;  %v5683_v28 = vld [vmem:[#allocation2 + $0x8] sm:$0xff]  ;;  %v13205_v9 = vcombine.low %v5691_v45, %v5693_v46  ;;  %14423 = vmatprep.subr.bf16.mxu1 %v16518_v19  ;;  %v5697_v11 = vld [vmem:[%s16978_s2 + $0x1e8] sm:$0xf]  ;;  %vm7651_vm3 = vcmask 392192   ;;  %vm7654_vm4 = vcmask 523264  }
0x1bf2   : > { %5866 = vmatprep.subr.bf16.mxu0 %v13204_v4  ;;  %v13207_v8 = vcombine.high %v5694_v7, %v5696_v5  ;;  %v5698_v52 = vld [vmem:[%s16978_s2 + $0x240] sm:$0xff]  ;;  %v13206_v53 = vcombine.low %v5694_v7, %v5696_v5  ;;  %v5682_v27 = vld [vmem:[#allocation2] sm:$0xff]  ;;  %v13208_v26 = vcombine.low %v5695_v56, %v5697_v11  ;;  %v5699_v20 = vld [vmem:[%s16978_s2 + $0x248] sm:$0xf]  ;;  %vm7657_vm5 = vcmask 654336   ;;  %p13626_p4 = scmp.ne.s32.totalorder %s16780_s11, 9 }
0x1bf3   : > { %v5700_v13 = vld [vmem:[%s16978_s2 + $0x2a0] sm:$0xff]  ;;  %v17721_v51 = vpack.c.bf16 %v5683_v28, %v5682_v27  ;;  %v5701_v54 = vld [vmem:[%s16978_s2 + $0x2a8] sm:$0xf]  ;;  %vm7660_vm6 = vcmask 785408   ;;  %vm7663_vm7 = vcmask 916480  }
0x1bf4   : > { %v5702_v55 = vld [vmem:[%s16978_s2 + $0x300] sm:$0xff]  ;;  %v13210_v21 = vcombine.high %v5698_v52, %v5700_v13  ;;  %v13209_v23 = vcombine.low %v5698_v52, %v5700_v13  ;;  %14424 = vmatpush3.bf16.msra.mxu1 %v13205_v9  ;;  %v13211_v60 = vcombine.low %v5699_v20, %v5701_v54  ;;  %v5703_v39 = vld [vmem:[%s16978_s2 + $0x308] sm:$0xf] }
0x1bf5   : > { %5867 = vmatpush1.bf16.msra.mxu0 %v13203_v42  ;;  %v5704_v44 = vld [vmem:[%s16978_s2 + $0x360] sm:$0xff]  ;;  %14425 = vmatprep.subr.bf16.mxu1 %v16518_v19  ;;  %v5705_v61 = vld [vmem:[%s16978_s2 + $0x368] sm:$0xf] }
0x1bf6   : > { %5868 = vmatprep.subr.bf16.mxu0 %v13207_v8  ;;  %v5706_v37 = vld [vmem:[%s16978_s2 + $0x3c0] sm:$0xff]  ;;  %v13213_v40 = vcombine.high %v5702_v55, %v5704_v44  ;;  %v13212_v38 = vcombine.low %v5702_v55, %v5704_v44  ;;  %v13214_v4 = vcombine.low %v5703_v39, %v5705_v61  ;;  %v5707_v5 = vld [vmem:[%s16978_s2 + $0x3c8] sm:$0xf] }
0x1bf7   : > { %v5708_v50 = vld [vmem:[%s16978_s2 + $0x420] sm:$0xff]  ;;  %v5709_v42 = vld [vmem:[%s16978_s2 + $0x428] sm:$0xf] }
0x1bf8   : > { %v5710_v24 = vld [vmem:[%s16978_s2 + $0x480] sm:$0xff]  ;;  %v13216_v3 = vcombine.high %v5706_v37, %v5708_v50  ;;  %v13215_v59 = vcombine.low %v5706_v37, %v5708_v50  ;;  %14426 = vmatpush3.bf16.msra.mxu1 %v13208_v26  ;;  %v13217_v8 = vcombine.low %v5707_v5, %v5709_v42  ;;  %v5711_v52 = vld [vmem:[%s16978_s2 + $0x488] sm:$0xf] }
0x1bf9   : > { %5869 = vmatpush1.bf16.msra.mxu0 %v13206_v53  ;;  %v5712_v25 = vld [vmem:[%s16978_s2 + $0x4e0] sm:$0xff]  ;;  %14427 = vmatprep.subr.bf16.mxu1 %v16518_v19  ;;  %v5713_v13 = vld [vmem:[%s16978_s2 + $0x4e8] sm:$0xf] }
0x1bfa   : > { %5870 = vmatprep.subr.bf16.mxu0 %v13210_v21  ;;  %v5714_v48 = vld [vmem:[%s16978_s2 + $0x540] sm:$0xff]  ;;  %v13219_v49 = vcombine.high %v5710_v24, %v5712_v25  ;;  %v13218_v43 = vcombine.low %v5710_v24, %v5712_v25  ;;  %v13220_v53 = vcombine.low %v5711_v52, %v5713_v13  ;;  %v5715_v55 = vld [vmem:[%s16978_s2 + $0x548] sm:$0xf] }
0x1bfb   : > { %v5716_v41 = vld [vmem:[%s16978_s2 + $0x5a0] sm:$0xff]  ;;  %v5717_v44 = vld [vmem:[%s16978_s2 + $0x5a8] sm:$0xf] }
0x1bfc   : > { %v13222_v14 = vcombine.high %v5714_v48, %v5716_v41  ;;  %v13221_v29 = vcombine.low %v5714_v48, %v5716_v41  ;;  %v17730_v32 = vld [vmem:[%s16990_s22] sm:$0x7]  ;;  %14428 = vmatpush3.bf16.msra.mxu1 %v13211_v60  ;;  %v13223_v21 = vcombine.low %v5715_v55, %v5717_v44 }
0x1bfd   : > { %5871 = vmatpush1.bf16.msra.mxu0 %v13209_v23  ;;  %v5724_v34 = vrot.slane %v17730_v32, %v17727_v31  ;;  %v5728_v62 = vrot.slane %v17730_v32, %v17733_v33  ;;  %14429 = vmatprep.subr.bf16.mxu1 %v16518_v19 }
0x1bfe   : > { %5872 = vmatprep.subr.bf16.mxu0 %v13213_v40 }
0x1c00   : > { %14430 = vmatpush3.bf16.msra.mxu1 %v13214_v4 }
0x1c01   : > { %5873 = vmatpush1.bf16.msra.mxu0 %v13212_v38  ;;  %14431 = vmatprep.subr.bf16.mxu1 %v16518_v19 }
0x1c02   : > { %5874 = vmatprep.subr.bf16.mxu0 %v13216_v3 }
0x1c04   : > { %14432 = vmatpush3.bf16.msra.mxu1 %v13217_v8 }
0x1c05   : > { %5875 = vmatpush1.bf16.msra.mxu0 %v13215_v59  ;;  %14433 = vmatprep.subr.bf16.mxu1 %v16518_v19  ;;  %v17795_v59 = vsub.s32 2, %v17724_v63 }
0x1c06   : > { %5876 = vmatprep.subr.bf16.mxu0 %v13219_v49 }
0x1c07   : > { %v5732_v41 = vrot.slane %v17730_v32, %v17795_v59 }
0x1c08   : > { %14434 = vmatpush3.bf16.msra.mxu1 %v13220_v53 }
0x1c09   : > { %5877 = vmatpush1.bf16.msra.mxu0 %v13218_v43  ;;  %14435 = vmatprep.subr.bf16.mxu1 %v16518_v19 }
0x1c0a   : > { %5878 = vmatprep.subr.bf16.mxu0 %v13222_v14 }
0x1c0c   : > { %14436 = vmatpush3.bf16.msra.mxu1 %v13223_v21 }
0x1c0d   : > { %5879 = vmatpush1.bf16.msra.mxu0 %v13221_v29 }
0x1c0f   : > { %14438 = vmatmul.mubr.bf16.vlgmr.msra.gmra.mrb[0].mxu1 %v17721_v51 }
0x1c10   : > { %5897 = vmatmul.mubr.bf16.vlgmr.msra.gmra.mrb[0].mxu0 %v17721_v51 }
0x1ce2   : > { %v5941_v48 = vpop.f32.mrb[0].mxu1 }
0x1ce3   : > { %v5898_v22 = vpop.f32.mrb[0].mxu0  ;;  %v14439_v49 = vpop.f32.mrb[1].mxu1  ;;  %v17799_v14 = vadd.f32 %v5941_v48, %v5732_v41 }
0x1ce4   : > { %v17746_v2 = vadd.f32 %v5898_v22, %v5724_v34  ;;  %v5900_v36 = vpop.f32.mrb[1].mxu0  ;;  %v5944_v43 = vpop.f32.mrb[2].mxu1 }
0x1ce5   : > { %v5902_v10 = vpop.f32.mrb[2].mxu0  ;;  %v5901_v57 = vadd.f32 %v5900_v36, %v5728_v62  ;;  %v17801_v27 = vadd.f32 %v5944_v43, %v5732_v41  ;;  %v14440_v28 = vpop.f32.mrb[3].mxu1 }
0x1ce6   : > { %v5904_v58 = vpop.f32.mrb[3].mxu0  ;;  %14445 = vmatprep.mubr.msk.f32.mxu0 %vm5965_vm0, %v17746_v2  ;;  %v17775_v7 = vadd.f32 %v5902_v10, %v5724_v34 }
0x1ce7   : > { %v5905_v12 = vadd.f32 %v5904_v58, %v5728_v62  ;;  %v14827_v29 = vpack.c.bf16 %v17801_v27, %v17799_v14 }
0x1ce9   : > { %v17759_v16 = vpack.i.bf16 %v5905_v12, %v5901_v57  ;;  %v14821_v17 = vpack.c.bf16 %v5905_v12, %v5901_v57 }
0x1ceb   : > { %15685 = vrot.lane.b32.xlu1 %v17759_v16, %s16520_s18  ;;  %14823 = vmatprep.subr.msk.bf16.mxu0 %vm17755_vm1, %v14821_v17 }
0x1cec   : > { %14826 = vmatpush3.bf16.xpose.msk.msra.mxu0 %vm17755_vm1, %v14821_v17 }
0x1ced   : > { %14828 = vmatprep.subr.bf16.mxu0 %v14827_v29 }
0x1cef   : > { %6160 = vrot.lane.b32.xlu1 %v17746_v2, %s16521_s20 }
0x1cf3   : > { %14446 = vmatmul.mubr.msk.f32.vlgmr.msra.gmra.mrb[4].mxu0 %vm5965_vm0, %v17775_v7 }
0x1cf4   : > { %14830 = vmatpush3.bf16.msra.mxu0 %v14827_v29 }
0x1d5d   : > { %v15686_v56 = vpop.permute.xlu1 %15685 }
0x1d5e   : > { %v15688_v17 = vunpack.i.h.bf16 %v15686_v56  ;;  %v15687_v20 = vunpack.i.l.bf16 %v15686_v56 }
0x1d60   : > { %v14841_v39 = vpack.c.bf16 %v15688_v17, %v15687_v20 }
0x1d61   : > { %v6161_v11 = vpop.permute.xlu1 %6160 }
0x1dc6   : > { %v14447_v23 = vpop.f32.mrb[4].mxu0 }
0x1dc7   : > { %v6044_v37 = vpop.f32.mrb[5].mxu0  ;;  %v6054_v50 = vmul.f32 0.25, %v14447_v23 }
0x1dc8   : > { %v6053_v40 = vmul.f32 0.25, %v6044_v37 }
0x1dc9   : > { %v6056_v24 = vadd.f32 %v6054_v50, %v17004_v1 }
0x1dca   : > { %v6055_v38 = vadd.f32 %v6053_v40, %v16999_v0 }
0x1dcb   : > { %v6060_v3 = vsel %vm5965_vm0, %v6056_v24, -inf }
0x1dcc   : > { %v6057_v25 = vsel %vm5965_vm0, %v6055_v38, -inf }
0x1dcd   : > { %6058 = vmax.xlane.f32.xlu0 %v6057_v25 }
0x1dd1   : > { %6061 = vmax.xlane.f32.xlu0 %v6060_v3 }
0x1de7   : > { %15680 = vrot.lane.b32.xlu0 %v17759_v16, %s16521_s20 }
0x1deb   : > { %6366 = vrot.lane.b32.xlu0 %v17746_v2, %s16520_s18 }
0x1e5a   : > { %v6059_v51 = vpop.xlane.xlu0 %6058 }
0x1e5b   : > { %v6063_v30 = vsub.f32 %v6055_v38, %v6059_v51 }
0x1e5d   : > { %v6065_v35 = vmul.f32 1.442695, %v6063_v30 }
0x1e5e   : > { %v6062_v32 = vpop.xlane.xlu0 %6061 }
0x1e5f   : > { %v6064_v34 = vsub.f32 %v6056_v24, %v6062_v32 }
0x1e61   : > { %v6067_v18 = vmul.f32 1.442695, %v6064_v34  ;;  %v17849_v34 = vpack.i.bf16 %v17801_v27, %v17799_v14 }
0x1e62   : > { %v15681_v47 = vpop.permute.xlu0 %15680 }
0x1e63   : > { %16017 = vpow2.f32 %v6067_v18  ;;  %v15683_v45 = vunpack.i.h.bf16 %v15681_v47  ;;  %v15682_v46 = vunpack.i.l.bf16 %v15681_v47 }
0x1e64   : > { %16019 = vpow2.f32 %v6065_v35 }
0x1e65   : > { %v14831_v22 = vpack.c.bf16 %v15683_v45, %v15682_v46 }
0x1e66   : > { %v6367_v4 = vpop.permute.xlu0 %6366 }
0x1e67   : > { %14833 = vmatprep.subr.msk.bf16.mxu0 %vm17755_vm1, %v14831_v22 }
0x1e6d   : > { %v16018_v62 = vpop.eup %16017 }
0x1e6e   : > { %v6072_v36 = vsel %vm5965_vm0, %v16018_v62, 0.0  ;;  %v16020_v9 = vpop.eup %16019 }
0x1e6f   : > { %6073 = vadd.xlane.f32.xlu1 %v6072_v36  ;;  %v6069_v10 = vsel %vm5965_vm0, %v16020_v9, 0.0 }
0x1e73   : > { %6070 = vadd.xlane.f32.xlu1 %v6069_v10 }
0x1e84   : > { %6162 = vrot.lane.b32.xlu1 %v17775_v7, %s16521_s20 }
0x1e88   : > { %6368 = vrot.lane.b32.xlu1 %v17775_v7, %s16520_s18 }
0x1efc   : > { %v6074_v58 = vpop.xlane.xlu1 %6073 }
0x1efd   : > { %16021 = vrcp.f32 %v6074_v58 }
0x1f00   : > { %v6071_v57 = vpop.xlane.xlu1 %6070 }
0x1f01   : > { %16023 = vrcp.f32 %v6071_v57 }
0x1f04   : > { %v6163_v61 = vpop.permute.xlu1 %6162 }
0x1f07   : > { %v16022_v12 = vpop.eup %16021 }
0x1f08   : > { %v6078_v60 = vmul.f32 %v16022_v12, %v16018_v62  ;;  %v6369_v5 = vpop.permute.xlu1 %6368 }
0x1f0b   : > { %v16024_v26 = vpop.eup %16023 }
0x1f0c   : > { %v6077_v54 = vmul.f32 %v16024_v26, %v16020_v9 }
0x1f0e   : > { %14452 = vmatprep.mubr.msk.f32.mxu0 %vm5965_vm0, %v6077_v54 }
0x1f0f   : > { %14453 = vmatmul.mubr.msk.f32.vlgmr.msra.gmra.mrb[6].mxu0 %vm5965_vm0, %v6078_v60 }
0x1f10   : > { %14836 = vmatpush3.bf16.xpose.msk.msra.mxu0 %vm17755_vm1, %v14831_v22  ;;  %14459 = vmatprep.mubr.msk.f32.mxu0 %vm5965_vm0, %v6161_v11 }
0x1f11   : > { %14843 = vmatprep.subr.msk.bf16.mxu0 %vm17755_vm1, %v14841_v39 }
0x1f17   : > { %14460 = vmatmul.mubr.msk.f32.vlgmr.msra.gmra.mrb[8].mxu0 %vm5965_vm0, %v6163_v61 }
0x1f18   : > { %14846 = vmatpush3.bf16.xpose.msk.msra.mxu0 %vm17755_vm1, %v14841_v39  ;;  %14473 = vmatprep.mubr.msk.f32.mxu0 %vm5965_vm0, %v6367_v4 }
0x1f1f   : > { %14474 = vmatmul.mubr.msk.f32.vlgmr.msra.gmra.mrb[10].mxu0 %vm5965_vm0, %v6369_v5 }
0x1fe2   : > { %v17829_v42 = vpop.f32.mrb[6].mxu0 }
0x1fe3   : > { %v17831_v8 = vpop.f32.mrb[7].mxu0 }
0x1fea   : > { %v14461_v52 = vpop.f32.mrb[8].mxu0 }
0x1feb   : > { %v6242_v13 = vpop.f32.mrb[9].mxu0  ;;  %v6252_v38 = vmul.f32 0.25, %v14461_v52 }
0x1fec   : > { %v6251_v62 = vmul.f32 0.25, %v6242_v13 }
0x1fed   : > { %v6254_v24 = vadd.f32 %v6252_v38, %v17004_v1 }
0x1fee   : > { %v6253_v36 = vadd.f32 %v6251_v62, %v16999_v0 }
0x1fef   : > { %v6258_v25 = vsel %vm5965_vm0, %v6254_v24, -inf }
0x1ff0   : > { %v6255_v9 = vsel %vm5965_vm0, %v6253_v36, -inf }
0x1ff2   : > { %v14475_v53 = vpop.f32.mrb[10].mxu0 }
0x1ff3   : > { %v6458_v55 = vmul.f32 0.25, %v14475_v53  ;;  %v6448_v44 = vpop.f32.mrb[11].mxu0 }
0x1ff4   : > { %v6457_v21 = vmul.f32 0.25, %v6448_v44 }
0x1ff5   : > { %v6460_v23 = vadd.f32 %v6458_v55, %v17004_v1 }
0x1ff6   : > { %v6459_v37 = vadd.f32 %v6457_v21, %v16999_v0 }
0x1ff7   : > { %v6464_v50 = vsel %vm5965_vm0, %v6460_v23, -inf }
0x1ff8   : > { %6465 = vmax.xlane.f32.xlu1 %v6464_v50  ;;  %v6461_v40 = vsel %vm5965_vm0, %v6459_v37, -inf }
0x1ff9   : > { %6462 = vmax.xlane.f32.xlu0 %v6461_v40 }
0x2009   : > { %15695 = vrot.lane.b32.xlu1 %v17759_v16, %s16522_s1 }
0x200d   : > { %6570 = vrot.lane.b32.xlu1 %v17746_v2, %s16522_s1 }
0x2011   : > { %6572 = vrot.lane.b32.xlu1 %v17775_v7, %s16522_s1 }
0x2035   : > { %6259 = vmax.xlane.f32.xlu1 %v6258_v25 }
0x2085   : > { %v6466_v3 = vpop.xlane.xlu1 %6465 }
0x2086   : > { %v6468_v48 = vsub.f32 %v6460_v23, %v6466_v3  ;;  %v6463_v41 = vpop.xlane.xlu0 %6462 }
0x2087   : > { %v6467_v49 = vsub.f32 %v6459_v37, %v6463_v41 }
0x2088   : > { %v6471_v43 = vmul.f32 1.442695, %v6468_v48 }
0x2089   : > { %v6469_v28 = vmul.f32 1.442695, %v6467_v49  ;;  %v15696_v35 = vpop.permute.xlu1 %15695 }
0x208a   : > { %16025 = vpow2.f32 %v6471_v43  ;;  %v15698_v58 = vunpack.i.h.bf16 %v15696_v35  ;;  %v15697_v57 = vunpack.i.l.bf16 %v15696_v35 }
0x208b   : > { %16027 = vpow2.f32 %v6469_v28 }
0x208c   : > { %v14851_v20 = vpack.c.bf16 %v15698_v58, %v15697_v57 }
0x208d   : > { %v6571_v18 = vpop.permute.xlu1 %6570 }
0x2091   : > { %v6573_v47 = vpop.permute.xlu1 %6572 }
0x2094   : > { %v16026_v29 = vpop.eup %16025 }
0x2095   : > { %v6476_v51 = vsel %vm5965_vm0, %v16026_v29, 0.0  ;;  %v16028_v30 = vpop.eup %16027 }
0x2096   : > { %6477 = vadd.xlane.f32.xlu0 %v6476_v51  ;;  %v6473_v32 = vsel %vm5965_vm0, %v16028_v30, 0.0 }
0x209a   : > { %6474 = vadd.xlane.f32.xlu0 %v6473_v32 }
0x20b0   : > { %15690 = vrot.lane.b32.xlu0 %v17849_v34, %s16520_s18 }
0x20c2   : > { %v6260_v45 = vpop.xlane.xlu1 %6259 }
0x20c3   : > { %v6262_v46 = vsub.f32 %v6254_v24, %v6260_v45 }
0x20c5   : > { %v6265_v22 = vmul.f32 1.442695, %v6262_v46 }
0x20c7   : > { %16029 = vpow2.f32 %v6265_v22 }
0x20cf   : > { %6256 = vmax.xlane.f32.xlu0 %v6255_v9 }
0x20d1   : > { %v17855_v10 = vpop.eup %16029 }
0x20d2   : > { %v6270_v14 = vsel %vm5965_vm0, %v17855_v10, 0.0 }
0x20d3   : > { %6271 = vadd.xlane.f32.xlu1 %v6270_v14 }
0x2123   : > { %v6478_v27 = vpop.xlane.xlu0 %6477 }
0x2124   : > { %16031 = vrcp.f32 %v6478_v27 }
0x2127   : > { %v6475_v56 = vpop.xlane.xlu0 %6474 }
0x2128   : > { %16033 = vrcp.f32 %v6475_v56 }
0x212b   : > { %v15691_v11 = vpop.permute.xlu0 %15690 }
0x212c   : > { %v15693_v12 = vunpack.i.h.bf16 %v15691_v11  ;;  %v15692_v26 = vunpack.i.l.bf16 %v15691_v11 }
0x212e   : > { %v14847_v17 = vpack.c.bf16 %v15693_v12, %v15692_v26  ;;  %v16032_v54 = vpop.eup %16031 }
0x212f   : > { %v6482_v61 = vmul.f32 %v16032_v54, %v16026_v29 }
0x2130   : > { %14848 = vmatprep.subr.bf16.mxu0 %v14847_v17 }
0x2131   : > { %14850 = vmatpush3.bf16.msra.mxu0 %v14847_v17 }
0x2132   : > { %v16034_v60 = vpop.eup %16033  ;;  %14853 = vmatprep.subr.msk.bf16.mxu0 %vm17755_vm1, %v14851_v20 }
0x2133   : > { %v6481_v39 = vmul.f32 %v16034_v60, %v16028_v30 }
0x2135   : > { %14480 = vmatprep.mubr.msk.f32.mxu0 %vm5965_vm0, %v6481_v39 }
0x2136   : > { %14481 = vmatmul.mubr.msk.f32.vlgmr.msra.gmra.mrb[12].mxu0 %vm5965_vm0, %v6482_v61 }
0x2137   : > { %14487 = vmatprep.mubr.msk.f32.mxu0 %vm5965_vm0, %v6571_v18 }
0x213a   : > { %14856 = vmatpush3.bf16.xpose.msk.msra.mxu0 %vm17755_vm1, %v14851_v20 }
0x2141   : > { %14488 = vmatmul.mubr.msk.f32.vlgmr.msra.gmra.mrb[14].mxu0 %vm5965_vm0, %v6573_v47 }
0x215c   : > { %v6257_v5 = vpop.xlane.xlu0 %6256 }
0x215d   : > { %v6261_v53 = vsub.f32 %v6253_v36, %v6257_v5 }
0x215f   : > { %v6263_v55 = vmul.f32 1.442695, %v6261_v53 }
0x2160   : > { %v6272_v46 = vpop.xlane.xlu1 %6271 }
0x2161   : > { %16035 = vpow2.f32 %v6263_v55 }
0x216b   : > { %v16036_v25 = vpop.eup %16035 }
0x216c   : > { %v6267_v3 = vsel %vm5965_vm0, %v16036_v25, 0.0 }
0x2209   : > { %v17867_v4 = vpop.f32.mrb[12].mxu0 }
0x220a   : > { %v17869_v52 = vpop.f32.mrb[13].mxu0 }
0x220b   : > { %v15754_v13 = vpack.i.bf16 %v17867_v4, %v17869_v52 }
0x2214   : > { %v14489_v44 = vpop.f32.mrb[14].mxu0 }
0x2215   : > { %v6652_v21 = vpop.f32.mrb[15].mxu0  ;;  %v6662_v23 = vmul.f32 0.25, %v14489_v44 }
0x2216   : > { %v6661_v37 = vmul.f32 0.25, %v6652_v21 }
0x2217   : > { %v6664_v40 = vadd.f32 %v6662_v23, %v17004_v1 }
0x2218   : > { %v6663_v50 = vadd.f32 %v6661_v37, %v16999_v0 }
0x2219   : > { %v6668_v24 = vsel %vm5965_vm0, %v6664_v40, -inf }
0x221a   : > { %v6665_v38 = vsel %vm5965_vm0, %v6663_v50, -inf }
0x221b   : > { %6666 = vmax.xlane.f32.xlu0 %v6665_v38 }
0x221f   : > { %6669 = vmax.xlane.f32.xlu0 %v6668_v24 }
0x2223   : > { %6268 = vadd.xlane.f32.xlu0 %v6267_v3 }
0x22a8   : > { %v6667_v48 = vpop.xlane.xlu0 %6666 }
0x22a9   : > { %v6671_v41 = vsub.f32 %v6663_v50, %v6667_v48 }
0x22ab   : > { %v6673_v49 = vmul.f32 1.442695, %v6671_v41 }
0x22ac   : > { %v6670_v43 = vpop.xlane.xlu0 %6669 }
0x22ad   : > { %16037 = vpow2.f32 %v6673_v49  ;;  %v6672_v28 = vsub.f32 %v6664_v40, %v6670_v43 }
0x22af   : > { %v6675_v29 = vmul.f32 1.442695, %v6672_v28 }
0x22b0   : > { %v6269_v51 = vpop.xlane.xlu0 %6268 }
0x22b1   : > { %16039 = vpow2.f32 %v6675_v29 }
0x22b2   : > { %16041 = vrcp.f32 %v6269_v51 }
0x22b3   : > { %16043 = vrcp.f32 %v6272_v46 }
0x22b7   : > { %v16038_v30 = vpop.eup %16037 }
0x22b8   : > { %v6677_v32 = vsel %vm5965_vm0, %v16038_v30, 0.0 }
0x22b9   : > { %6678 = vadd.xlane.f32.xlu0 %v6677_v32 }
0x22bb   : > { %v16040_v35 = vpop.eup %16039 }
0x22bc   : > { %v16042_v18 = vpop.eup %16041  ;;  %v6680_v47 = vsel %vm5965_vm0, %v16040_v35, 0.0 }
0x22bd   : > { %6681 = vadd.xlane.f32.xlu1 %v6680_v47  ;;  %v6275_v45 = vmul.f32 %v16042_v18, %v16036_v25  ;;  %v16044_v56 = vpop.eup %16043 }
0x22be   : > { %v6276_v26 = vmul.f32 %v16044_v56, %v17855_v10 }
0x22bf   : > { %14466 = vmatprep.mubr.msk.f32.mxu1 %vm5965_vm0, %v6275_v45 }
0x22ce   : > { %15705 = vrot.lane.b32.xlu1 %v17849_v34, %s16522_s1 }
0x22cf   : > { %15700 = vrot.lane.b32.xlu0 %v17849_v34, %s16521_s20 }
0x22d2   : > { %15710 = vrot.lane.b32.xlu1 %v17759_v16, %s16523_s8 }
0x22d3   : > { %6776 = vrot.lane.b32.xlu0 %v17775_v7, %s16523_s8 }
0x22d6   : > { %6774 = vrot.lane.b32.xlu1 %v17746_v2, %s16523_s8 }
0x2346   : > { %v6679_v22 = vpop.xlane.xlu0 %6678 }
0x2347   : > { %16045 = vrcp.f32 %v6679_v22 }
0x234a   : > { %v6682_v62 = vpop.xlane.xlu1 %6681  ;;  %v15701_v36 = vpop.permute.xlu0 %15700 }
0x234b   : > { %16047 = vrcp.f32 %v6682_v62  ;;  %v15703_v9 = vunpack.i.h.bf16 %v15701_v36  ;;  %v15702_v14 = vunpack.i.l.bf16 %v15701_v36 }
0x234d   : > { %v14837_v27 = vpack.c.bf16 %v15703_v9, %v15702_v14 }
0x234e   : > { %v15706_v11 = vpop.permute.xlu1 %15705  ;;  %v6777_v10 = vpop.permute.xlu0 %6776 }
0x234f   : > { %v15708_v58 = vunpack.i.h.bf16 %v15706_v11  ;;  %v15707_v57 = vunpack.i.l.bf16 %v15706_v11  ;;  %14838 = vmatprep.subr.bf16.mxu1 %v14837_v27 }
0x2350   : > { %14840 = vmatpush3.bf16.msra.mxu1 %v14837_v27 }
0x2351   : > { %v16046_v12 = vpop.eup %16045  ;;  %v14857_v17 = vpack.c.bf16 %v15708_v58, %v15707_v57 }
0x2352   : > { %v15711_v20 = vpop.permute.xlu1 %15710  ;;  %v6685_v54 = vmul.f32 %v16046_v12, %v16038_v30 }
0x2353   : > { %v15713_v60 = vunpack.i.h.bf16 %v15711_v20  ;;  %v15712_v39 = vunpack.i.l.bf16 %v15711_v20  ;;  %14467 = vmatmul.mubr.msk.f32.vlgmr.msra.gmra.mrb[4].mxu1 %vm5965_vm0, %v6276_v26  ;;  %14858 = vmatprep.subr.bf16.mxu1 %v14857_v17 }
0x2354   : > { %14860 = vmatpush3.bf16.msra.mxu1 %v14857_v17  ;;  %14494 = vmatprep.mubr.msk.f32.mxu1 %vm5965_vm0, %v6685_v54 }
0x2355   : > { %v16048_v61 = vpop.eup %16047  ;;  %v14861_v5 = vpack.c.bf16 %v15713_v60, %v15712_v39 }
0x2356   : > { %v6686_v53 = vmul.f32 %v16048_v61, %v16040_v35  ;;  %v6775_v55 = vpop.permute.xlu1 %6774 }
0x2357   : > { %14863 = vmatprep.subr.msk.bf16.mxu1 %vm17755_vm1, %v14861_v5 }
0x2358   : > { %14495 = vmatmul.mubr.msk.f32.vlgmr.msra.gmra.mrb[6].mxu1 %vm5965_vm0, %v6686_v53 }
0x2359   : > { %14501 = vmatprep.mubr.msk.f32.mxu1 %vm5965_vm0, %v6775_v55 }
0x235d   : > { %14866 = vmatpush3.bf16.xpose.msk.msra.mxu1 %vm17755_vm1, %v14861_v5 }
0x2364   : > { %14502 = vmatmul.mubr.msk.f32.vlgmr.msra.gmra.mrb[8].mxu1 %vm5965_vm0, %v6777_v10 }
0x2426   : > { %v17901_v44 = vpop.f32.mrb[4].mxu1 }
0x2427   : > { %v17903_v21 = vpop.f32.mrb[5].mxu1 }
0x2428   : > { %v15749_v23 = vpack.i.bf16 %v17901_v44, %v17903_v21  ;;  %v5948_v21 = vld [vmem:[%s16978_s2 + $0xc] sm:$0xf] }
0x242b   : > { %v17907_v37 = vpop.f32.mrb[6].mxu1 }
0x242c   : > { %v17909_v50 = vpop.f32.mrb[7].mxu1 }
0x242d   : > { %v15759_v40 = vpack.i.bf16 %v17907_v37, %v17909_v50 }
0x2437   : > { %v14503_v38 = vpop.f32.mrb[8].mxu1 }
0x2438   : > { %v6866_v24 = vmul.f32 0.25, %v14503_v38  ;;  %v6856_v25 = vpop.f32.mrb[9].mxu1 }
0x2439   : > { %v6865_v3 = vmul.f32 0.25, %v6856_v25 }
0x243a   : > { %v6868_v48 = vadd.f32 %v6866_v24, %v17004_v1 }
0x243b   : > { %v6867_v41 = vadd.f32 %v6865_v3, %v16999_v0 }
0x243c   : > { %v6872_v49 = vsel %vm5965_vm0, %v6868_v48, -inf }
0x243d   : > { %6873 = vmax.xlane.f32.xlu0 %v6872_v49  ;;  %v6869_v43 = vsel %vm5965_vm0, %v6867_v41, -inf }
0x243e   : > { %6870 = vmax.xlane.f32.xlu1 %v6869_v43 }
0x244f   : > { %15715 = vrot.lane.b32.xlu1 %v17849_v34, %s16523_s8 }
0x2453   : > { %6978 = vrot.lane.b32.xlu1 %v17746_v2, %s16524_s13 }
0x2457   : > { %6980 = vrot.lane.b32.xlu1 %v17775_v7, %s16524_s13 }
0x24ca   : > { %v6874_v28 = vpop.xlane.xlu0 %6873 }
0x24cb   : > { %v6876_v29 = vsub.f32 %v6868_v48, %v6874_v28  ;;  %v6871_v51 = vpop.xlane.xlu1 %6870 }
0x24cc   : > { %v6875_v30 = vsub.f32 %v6867_v41, %v6871_v51 }
0x24cd   : > { %v6879_v32 = vmul.f32 1.442695, %v6876_v29 }
0x24ce   : > { %v6877_v35 = vmul.f32 1.442695, %v6875_v30 }
0x24cf   : > { %16049 = vpow2.f32 %v6879_v32  ;;  %v15716_v18 = vpop.permute.xlu1 %15715 }
0x24d0   : > { %v15718_v47 = vunpack.i.h.bf16 %v15716_v18  ;;  %v15717_v45 = vunpack.i.l.bf16 %v15716_v18  ;;  %16051 = vpow2.f32 %v6877_v35 }
0x24d2   : > { %v14867_v46 = vpack.c.bf16 %v15718_v47, %v15717_v45 }
0x24d3   : > { %v6979_v54 = vpop.permute.xlu1 %6978 }
0x24d4   : > { %14868 = vmatprep.subr.bf16.mxu0 %v14867_v46 }
0x24d5   : > { %14870 = vmatpush3.bf16.msra.mxu0 %v14867_v46 }
0x24d7   : > { %v6981_v60 = vpop.permute.xlu1 %6980 }
0x24d9   : > { %v16050_v22 = vpop.eup %16049 }
0x24da   : > { %v6884_v62 = vsel %vm5965_vm0, %v16050_v22, 0.0  ;;  %v16052_v36 = vpop.eup %16051 }
0x24db   : > { %6885 = vadd.xlane.f32.xlu0 %v6884_v62  ;;  %v6881_v9 = vsel %vm5965_vm0, %v16052_v36, 0.0 }
0x24df   : > { %6882 = vadd.xlane.f32.xlu0 %v6881_v9 }
0x24f5   : > { %15720 = vrot.lane.b32.xlu0 %v17759_v16, %s16524_s13 }
0x2568   : > { %v6886_v14 = vpop.xlane.xlu0 %6885 }
0x2569   : > { %16053 = vrcp.f32 %v6886_v14 }
0x256c   : > { %v6883_v27 = vpop.xlane.xlu0 %6882 }
0x256d   : > { %16055 = vrcp.f32 %v6883_v27 }
0x2570   : > { %v15721_v56 = vpop.permute.xlu0 %15720 }
0x2571   : > { %v15723_v11 = vunpack.i.h.bf16 %v15721_v56  ;;  %v15722_v58 = vunpack.i.l.bf16 %v15721_v56 }
0x2573   : > { %v14871_v57 = vpack.c.bf16 %v15723_v11, %v15722_v58  ;;  %v16054_v12 = vpop.eup %16053 }
0x2574   : > { %v6890_v20 = vmul.f32 %v16054_v12, %v16050_v22 }
0x2575   : > { %14873 = vmatprep.subr.msk.bf16.mxu0 %vm17755_vm1, %v14871_v57 }
0x2577   : > { %v16056_v26 = vpop.eup %16055 }
0x2578   : > { %v6889_v17 = vmul.f32 %v16056_v26, %v16052_v36 }
0x257a   : > { %14508 = vmatprep.mubr.msk.f32.mxu0 %vm5965_vm0, %v6889_v17 }
0x257b   : > { %14509 = vmatmul.mubr.msk.f32.vlgmr.msra.gmra.mrb[16].mxu0 %vm5965_vm0, %v6890_v20 }
0x257c   : > { %14876 = vmatpush3.bf16.xpose.msk.msra.mxu0 %vm17755_vm1, %v14871_v57  ;;  %14515 = vmatprep.mubr.msk.f32.mxu0 %vm5965_vm0, %v6979_v54 }
0x2583   : > { %14516 = vmatmul.mubr.msk.f32.vlgmr.msra.gmra.mrb[18].mxu0 %vm5965_vm0, %v6981_v60 }
0x264e   : > { %v17935_v39 = vpop.f32.mrb[16].mxu0 }
0x264f   : > { %v17937_v61 = vpop.f32.mrb[17].mxu0 }
0x2650   : > { %v15764_v5 = vpack.i.bf16 %v17935_v39, %v17937_v61 }
0x2656   : > { %v14517_v53 = vpop.f32.mrb[18].mxu0 }
0x2657   : > { %v7070_v55 = vmul.f32 0.25, %v14517_v53  ;;  %v7060_v10 = vpop.f32.mrb[19].mxu0 }
0x2658   : > { %v7069_v38 = vmul.f32 0.25, %v7060_v10 }
0x2659   : > { %v7072_v24 = vadd.f32 %v7070_v55, %v17004_v1 }
0x265a   : > { %v7071_v25 = vadd.f32 %v7069_v38, %v16999_v0 }
0x265b   : > { %v7076_v3 = vsel %vm5965_vm0, %v7072_v24, -inf }
0x265c   : > { %7077 = vmax.xlane.f32.xlu0 %v7076_v3  ;;  %v7073_v48 = vsel %vm5965_vm0, %v7071_v25, -inf }
0x265d   : > { %7074 = vmax.xlane.f32.xlu1 %v7073_v48 }
0x266e   : > { %15725 = vrot.lane.b32.xlu1 %v17849_v34, %s16524_s13 }
0x2672   : > { %7182 = vrot.lane.b32.xlu1 %v17746_v2, %s16525_s12 }
0x2676   : > { %7184 = vrot.lane.b32.xlu1 %v17775_v7, %s16525_s12 }
0x26e9   : > { %v7078_v41 = vpop.xlane.xlu0 %7077 }
0x26ea   : > { %v7080_v49 = vsub.f32 %v7072_v24, %v7078_v41  ;;  %v7075_v43 = vpop.xlane.xlu1 %7074 }
0x26eb   : > { %v7079_v28 = vsub.f32 %v7071_v25, %v7075_v43 }
0x26ec   : > { %v7083_v29 = vmul.f32 1.442695, %v7080_v49 }
0x26ed   : > { %v7081_v51 = vmul.f32 1.442695, %v7079_v28 }
0x26ee   : > { %16057 = vpow2.f32 %v7083_v29  ;;  %v15726_v30 = vpop.permute.xlu1 %15725 }
0x26ef   : > { %v15728_v32 = vunpack.i.h.bf16 %v15726_v30  ;;  %v15727_v35 = vunpack.i.l.bf16 %v15726_v30  ;;  %16059 = vpow2.f32 %v7081_v51 }
0x26f1   : > { %v14877_v18 = vpack.c.bf16 %v15728_v32, %v15727_v35 }
0x26f2   : > { %v7183_v26 = vpop.permute.xlu1 %7182 }
0x26f3   : > { %14878 = vmatprep.subr.bf16.mxu1 %v14877_v18 }
0x26f4   : > { %14880 = vmatpush3.bf16.msra.mxu1 %v14877_v18 }
0x26f6   : > { %v7185_v17 = vpop.permute.xlu1 %7184 }
0x26f8   : > { %v16058_v47 = vpop.eup %16057 }
0x26f9   : > { %v7088_v45 = vsel %vm5965_vm0, %v16058_v47, 0.0  ;;  %v16060_v46 = vpop.eup %16059 }
0x26fa   : > { %7089 = vadd.xlane.f32.xlu0 %v7088_v45  ;;  %v7085_v22 = vsel %vm5965_vm0, %v16060_v46, 0.0 }
0x26fe   : > { %7086 = vadd.xlane.f32.xlu0 %v7085_v22 }
0x2714   : > { %15730 = vrot.lane.b32.xlu0 %v17759_v16, %s16525_s12 }
0x2787   : > { %v7090_v62 = vpop.xlane.xlu0 %7089 }
0x2788   : > { %16061 = vrcp.f32 %v7090_v62 }
0x278b   : > { %v7087_v36 = vpop.xlane.xlu0 %7086 }
0x278c   : > { %16063 = vrcp.f32 %v7087_v36 }
0x278f   : > { %v15731_v9 = vpop.permute.xlu0 %15730 }
0x2790   : > { %v15733_v14 = vunpack.i.h.bf16 %v15731_v9  ;;  %v15732_v27 = vunpack.i.l.bf16 %v15731_v9 }
0x2792   : > { %v14881_v56 = vpack.c.bf16 %v15733_v14, %v15732_v27  ;;  %v16062_v11 = vpop.eup %16061 }
0x2793   : > { %v7094_v12 = vmul.f32 %v16062_v11, %v16058_v47 }
0x2794   : > { %14883 = vmatprep.subr.msk.bf16.mxu1 %vm17755_vm1, %v14881_v56 }
0x2796   : > { %v16064_v58 = vpop.eup %16063 }
0x2797   : > { %v7093_v57 = vmul.f32 %v16064_v58, %v16060_v46 }
0x2799   : > { %14522 = vmatprep.mubr.msk.f32.mxu1 %vm5965_vm0, %v7093_v57 }
0x279a   : > { %14523 = vmatmul.mubr.msk.f32.vlgmr.msra.gmra.mrb[10].mxu1 %vm5965_vm0, %v7094_v12 }
0x279b   : > { %14886 = vmatpush3.bf16.xpose.msk.msra.mxu1 %vm17755_vm1, %v14881_v56  ;;  %14529 = vmatprep.mubr.msk.f32.mxu1 %vm5965_vm0, %v7183_v26 }
0x27a2   : > { %14530 = vmatmul.mubr.msk.f32.vlgmr.msra.gmra.mrb[12].mxu1 %vm5965_vm0, %v7185_v17 }
0x286d   : > { %v17963_v20 = vpop.f32.mrb[10].mxu1 }
0x286e   : > { %v17965_v54 = vpop.f32.mrb[11].mxu1 }
0x286f   : > { %v15769_v60 = vpack.i.bf16 %v17963_v20, %v17965_v54  ;;  %v5950_v20 = vld [vmem:[%s16978_s2 + $0xcc] sm:$0xf] }
0x2875   : > { %v14531_v53 = vpop.f32.mrb[12].mxu1 }
0x2876   : > { %v7274_v55 = vmul.f32 0.25, %v14531_v53  ;;  %v7264_v10 = vpop.f32.mrb[13].mxu1 }
0x2877   : > { %v7273_v38 = vmul.f32 0.25, %v7264_v10 }
0x2878   : > { %v7276_v24 = vadd.f32 %v7274_v55, %v17004_v1 }
0x2879   : > { %v7275_v25 = vadd.f32 %v7273_v38, %v16999_v0 }
0x287a   : > { %v7280_v3 = vsel %vm5965_vm0, %v7276_v24, -inf }
0x287b   : > { %7281 = vmax.xlane.f32.xlu0 %v7280_v3  ;;  %v7277_v48 = vsel %vm5965_vm0, %v7275_v25, -inf }
0x287c   : > { %7278 = vmax.xlane.f32.xlu1 %v7277_v48 }
0x288d   : > { %15735 = vrot.lane.b32.xlu1 %v17849_v34, %s16525_s12 }
0x2891   : > { %7386 = vrot.lane.b32.xlu1 %v17746_v2, %s16526_s0 }
0x2895   : > { %7388 = vrot.lane.b32.xlu1 %v17775_v7, %s16526_s0 }
0x2908   : > { %v7282_v41 = vpop.xlane.xlu0 %7281 }
0x2909   : > { %v7284_v49 = vsub.f32 %v7276_v24, %v7282_v41  ;;  %v7279_v43 = vpop.xlane.xlu1 %7278 }
0x290a   : > { %v7283_v28 = vsub.f32 %v7275_v25, %v7279_v43 }
0x290b   : > { %v7287_v29 = vmul.f32 1.442695, %v7284_v49 }
0x290c   : > { %v7285_v51 = vmul.f32 1.442695, %v7283_v28 }
0x290d   : > { %16065 = vpow2.f32 %v7287_v29  ;;  %v15736_v30 = vpop.permute.xlu1 %15735 }
0x290e   : > { %v15738_v32 = vunpack.i.h.bf16 %v15736_v30  ;;  %v15737_v35 = vunpack.i.l.bf16 %v15736_v30  ;;  %16067 = vpow2.f32 %v7285_v51 }
0x2910   : > { %v14887_v18 = vpack.c.bf16 %v15738_v32, %v15737_v35 }
0x2911   : > { %v7387_v57 = vpop.permute.xlu1 %7386 }
0x2912   : > { %14888 = vmatprep.subr.bf16.mxu0 %v14887_v18 }
0x2913   : > { %14890 = vmatpush3.bf16.msra.mxu0 %v14887_v18 }
0x2917   : > { %v16066_v47 = vpop.eup %16065 }
0x2918   : > { %v7292_v2 = vsel %vm5965_vm0, %v16066_v47, 0.0  ;;  %v16068_v45 = vpop.eup %16067 }
0x2919   : > { %7293 = vadd.xlane.f32.xlu0 %v7292_v2  ;;  %v7289_v7 = vsel %vm5965_vm0, %v16068_v45, 0.0  ;;  %v5953_v2 = vld [vmem:[%s16978_s2 + $0x1ec] sm:$0xf] }
0x291d   : > { %7290 = vadd.xlane.f32.xlu0 %v7289_v7  ;;  %v5954_v7 = vld [vmem:[%s16978_s2 + $0x24c] sm:$0xf] }
0x2933   : > { %15740 = vrot.lane.b32.xlu0 %v17759_v16, %s16526_s0  ;;  %v7389_v16 = vpop.permute.xlu1 %7388 }
0x29a6   : > { %v7294_v46 = vpop.xlane.xlu0 %7293 }
0x29a7   : > { %16069 = vrcp.f32 %v7294_v46  ;;  %v5955_v46 = vld [vmem:[%s16978_s2 + $0x2ac] sm:$0xf] }
0x29aa   : > { %v7291_v22 = vpop.xlane.xlu0 %7290 }
0x29ab   : > { %16071 = vrcp.f32 %v7291_v22  ;;  %v13276_v22 = vcombine.low %v5954_v7, %v5955_v46 }
0x29ae   : > { %v15741_v62 = vpop.permute.xlu0 %15740 }
0x29af   : > { %v15743_v36 = vunpack.i.h.bf16 %v15741_v62  ;;  %v15742_v9 = vunpack.i.l.bf16 %v15741_v62  ;;  %v5956_v62 = vld [vmem:[%s16978_s2 + $0x30c] sm:$0xf] }
0x29b1   : > { %v14891_v14 = vpack.c.bf16 %v15743_v36, %v15742_v9  ;;  %v16070_v27 = vpop.eup %16069  ;;  %v5957_v36 = vld [vmem:[%s16978_s2 + $0x36c] sm:$0xf] }
0x29b2   : > { %v7298_v58 = vmul.f32 %v16070_v27, %v16066_v47  ;;  %v5952_v47 = vld [vmem:[%s16978_s2 + $0x18c] sm:$0xf]  ;;  %v13277_v9 = vcombine.low %v5956_v62, %v5957_v36 }
0x29b3   : > { %14893 = vmatprep.subr.msk.bf16.mxu0 %vm17755_vm1, %v14891_v14  ;;  %v5959_v27 = vld [vmem:[%s16978_s2 + $0x42c] sm:$0xf] }
0x29b5   : > { %v16072_v56 = vpop.eup %16071 }
0x29b6   : > { %v7297_v11 = vmul.f32 %v16072_v56, %v16068_v45  ;;  %v13275_v45 = vcombine.low %v5952_v47, %v5953_v2 }
0x29b8   : > { %14536 = vmatprep.mubr.msk.f32.mxu0 %vm5965_vm0, %v7297_v11  ;;  %v5960_v11 = vld [vmem:[%s16978_s2 + $0x48c] sm:$0xf] }
0x29b9   : > { %14537 = vmatmul.mubr.msk.f32.vlgmr.msra.gmra.mrb[20].mxu0 %vm5965_vm0, %v7298_v58  ;;  %v5961_v58 = vld [vmem:[%s16978_s2 + $0x4ec] sm:$0xf] }
0x29ba   : > { %14896 = vmatpush3.bf16.xpose.msk.msra.mxu0 %vm17755_vm1, %v14891_v14  ;;  %14543 = vmatprep.mubr.msk.f32.mxu0 %vm5965_vm0, %v7387_v57  ;;  %v5958_v14 = vld [vmem:[%s16978_s2 + $0x3cc] sm:$0xf]  ;;  %v13279_v57 = vcombine.low %v5960_v11, %v5961_v58  ;;  %v7918_v58 = vld [vmem:[%s16978_s2 + $0x14] sm:$0xff] }
0x29bb   : > { %14573 = vmatprep.subr.bf16.mxu0 %v16518_v19  ;;  %v13278_v56 = vcombine.low %v5958_v14, %v5959_v27  ;;  %v16157_v14 = vld [vmem:[#allocation2] sm:$0xff] }
0x29c1   : > { %14544 = vmatmul.mubr.msk.f32.vlgmr.msra.gmra.mrb[22].mxu0 %vm5965_vm0, %v7389_v16  ;;  %v5962_v16 = vld [vmem:[%s16978_s2 + $0x54c] sm:$0xf] }
0x29c2   : > { %14589 = vmatprep.mubr.msk.bf16.mxu0 %vm16519_vm15, %v16518_v19 }
0x2a8c   : > { %v14538_v12 = vpop.f32.mrb[20].mxu0 }
0x2a8d   : > { %v7377_v26 = vpop.f32.mrb[21].mxu0 }
0x2a8e   : > { %v15774_v17 = vpack.i.bf16 %v14538_v12, %v7377_v26  ;;  %v5963_v12 = vld [vmem:[%s16978_s2 + $0x5ac] sm:$0xf] }
0x2a8f   : > { %v13280_v26 = vcombine.low %v5962_v16, %v5963_v12  ;;  %v7920_v16 = vld [vmem:[%s16978_s2 + $0xd4] sm:$0xff] }
0x2a94   : > { %v14545_v53 = vpop.f32.mrb[22].mxu0 }
0x2a95   : > { %v7478_v55 = vmul.f32 0.25, %v14545_v53  ;;  %v7468_v10 = vpop.f32.mrb[23].mxu0 }
0x2a96   : > { %v7477_v38 = vmul.f32 0.25, %v7468_v10 }
0x2a97   : > { %v7480_v24 = vadd.f32 %v7478_v55, %v17004_v1 }
0x2a98   : > { %v7479_v25 = vadd.f32 %v7477_v38, %v16999_v0 }
0x2a99   : > { %v7484_v3 = vsel %vm5965_vm0, %v7480_v24, -inf }
0x2a9a   : > { %7485 = vmax.xlane.f32.xlu0 %v7484_v3  ;;  %v7481_v48 = vsel %vm5965_vm0, %v7479_v25, -inf }
0x2a9b   : > { %7482 = vmax.xlane.f32.xlu1 %v7481_v48 }
0x2aac   : > { %15745 = vrot.lane.b32.xlu1 %v17849_v34, %s16526_s0 }
0x2ab0   : > { %15755 = vrot.lane.b32.xlu1 %v15754_v13, %s16525_s12 }
0x2ab4   : > { %15760 = vrot.lane.b32.xlu1 %v15759_v40, %s16524_s13 }
0x2ab8   : > { %15765 = vrot.lane.b32.xlu1 %v15764_v5, %s16523_s8 }
0x2abc   : > { %15775 = vrot.lane.b32.xlu1 %v15774_v17, %s16520_s18 }
0x2b27   : > { %v7486_v41 = vpop.xlane.xlu0 %7485 }
0x2b28   : > { %v7488_v49 = vsub.f32 %v7480_v24, %v7486_v41  ;;  %v7483_v34 = vpop.xlane.xlu1 %7482 }
0x2b29   : > { %v7487_v43 = vsub.f32 %v7479_v25, %v7483_v34 }
0x2b2a   : > { %v7491_v28 = vmul.f32 1.442695, %v7488_v49 }
0x2b2b   : > { %v7489_v29 = vmul.f32 1.442695, %v7487_v43 }
0x2b2c   : > { %v15746_v4 = vpop.permute.xlu1 %15745 }
0x2b2d   : > { %16073 = vpow2.f32 %v7489_v29  ;;  %v15748_v52 = vunpack.i.h.bf16 %v15746_v4  ;;  %v15747_v13 = vunpack.i.l.bf16 %v15746_v4 }
0x2b2e   : > { %16075 = vpow2.f32 %v7491_v28 }
0x2b2f   : > { %v14897_v37 = vpack.c.bf16 %v15748_v52, %v15747_v13 }
0x2b30   : > { %v15756_v10 = vpop.permute.xlu1 %15755 }
0x2b31   : > { %14898 = vmatprep.subr.bf16.mxu1 %v14897_v37  ;;  %v15758_v49 = vunpack.i.h.bf16 %v15756_v10  ;;  %v15757_v34 = vunpack.i.l.bf16 %v15756_v10  ;;  %v7923_v10 = vld [vmem:[%s16978_s2 + $0x1f4] sm:$0xff] }
0x2b32   : > { %14900 = vmatpush3.bf16.msra.mxu1 %v14897_v37 }
0x2b33   : > { %14553 = vmatprep.subr.bf16.mxu1 %v16518_v19 }
0x2b34   : > { %v15761_v3 = vpop.permute.xlu1 %15760 }
0x2b35   : > { %v15763_v29 = vunpack.i.h.bf16 %v15761_v3  ;;  %v15762_v4 = vunpack.i.l.bf16 %v15761_v3 }
0x2b37   : > { %v16074_v50 = vpop.eup %16073 }
0x2b38   : > { %v7493_v40 = vsel %vm5965_vm0, %v16074_v50, 0.0  ;;  %v16076_v39 = vpop.eup %16075  ;;  %v15766_v52 = vpop.permute.xlu1 %15765 }
0x2b39   : > { %7494 = vadd.xlane.f32.xlu0 %v7493_v40  ;;  %v7496_v61 = vsel %vm5965_vm0, %v16076_v39, 0.0  ;;  %v15767_v40 = vunpack.i.l.bf16 %v15766_v52 }
0x2b3d   : > { %7497 = vadd.xlane.f32.xlu0 %v7496_v61 }
0x2b53   : > { %15750 = vrot.lane.b32.xlu0 %v15749_v23, %s16526_s0  ;;  %v5949_v23 = vld [vmem:[%s16978_s2 + $0x6c] sm:$0xf] }
0x2b54   : > { %v13273_v54 = vcombine.low %v5948_v21, %v5949_v23 }
0x2b57   : > { %15770 = vrot.lane.b32.xlu0 %v15769_v60, %s16522_s1  ;;  %v5951_v60 = vld [vmem:[%s16978_s2 + $0x12c] sm:$0xf] }
0x2b58   : > { %v13274_v18 = vcombine.low %v5950_v20, %v5951_v60 }
0x2bc6   : > { %v7495_v5 = vpop.xlane.xlu0 %7494 }
0x2bc7   : > { %16077 = vrcp.f32 %v7495_v5 }
0x2bca   : > { %v7498_v51 = vpop.xlane.xlu0 %7497 }
0x2bcb   : > { %16079 = vrcp.f32 %v7498_v51  ;;  %v15776_v51 = vpop.permute.xlu1 %15775 }
0x2bce   : > { %v15751_v38 = vpop.permute.xlu0 %15750 }
0x2bcf   : > { %v15753_v24 = vunpack.i.h.bf16 %v15751_v38  ;;  %v15752_v25 = vunpack.i.l.bf16 %v15751_v38  ;;  %v7805_v38 = vld [vmem:[%s16978_s2 + $0x10] sm:$0xf] }
0x2bd1   : > { %v16078_v30 = vpop.eup %16077  ;;  %v7647_v48 = vsel %vm5965_vm0, %v17829_v42, %v15753_v24  ;;  %v7646_v41 = vsel %vm5965_vm0, %v17831_v8, %v15752_v25  ;;  %v15768_v42 = vunpack.i.h.bf16 %v15766_v52  ;;  %v7806_v24 = vld [vmem:[%s16978_s2 + $0x70] sm:$0xf] }
0x2bd2   : > { %v7501_v32 = vmul.f32 %v16078_v30, %v16074_v50  ;;  %v7649_v43 = vsel %vm7648_vm2, %v7646_v41, %v15757_v34  ;;  %v7650_v28 = vsel %vm7648_vm2, %v7647_v48, %v15758_v49  ;;  %v15771_v13 = vpop.permute.xlu0 %15770  ;;  %v13284_v25 = vcombine.low %v7805_v38, %v7806_v24  ;;  %v7924_v41 = vld [vmem:[%s16978_s2 + $0x254] sm:$0xff]  ;;  %v7819_v38 = vld [vmem:[%s16978_s2 + $0x550] sm:$0xf] }
0x2bd3   : > { %v7652_v37 = vsel %vm7651_vm3, %v7649_v43, %v15762_v4  ;;  %v7653_v50 = vsel %vm7651_vm3, %v7650_v28, %v15763_v29  ;;  %v15772_v8 = vunpack.i.l.bf16 %v15771_v13  ;;  %v7925_v49 = vld [vmem:[%s16978_s2 + $0x2b4] sm:$0xff]  ;;  %v7820_v24 = vld [vmem:[%s16978_s2 + $0x5b0] sm:$0xf] }
0x2bd4   : > { %14550 = vmatprep.mubr.msk.f32.mxu1 %vm5965_vm0, %v7501_v32  ;;  %v7655_v61 = vsel %vm7654_vm4, %v7652_v37, %v15767_v40  ;;  %v7656_v5 = vsel %vm7654_vm4, %v7653_v50, %v15768_v42  ;;  %14574 = vmatpush3.bf16.msra.mxu0 %v13284_v25  ;;  %v13299_v43 = vcombine.high %v7924_v41, %v7925_v49 }
0x2bd5   : > { %v16080_v35 = vpop.eup %16079  ;;  %v7658_v30 = vsel %vm7657_vm5, %v7655_v61, %v15772_v8  ;;  %14575 = vmatprep.subr.bf16.mxu0 %v16518_v19  ;;  %v13298_v28 = vcombine.low %v7924_v41, %v7925_v49  ;;  %v7927_v8 = vld [vmem:[%s16978_s2 + $0x374] sm:$0xff]  ;;  %v13291_v25 = vcombine.low %v7819_v38, %v7820_v24 }
0x2bd6   : > { %v7502_v44 = vmul.f32 %v16080_v35, %v16076_v39  ;;  %v15773_v39 = vunpack.i.h.bf16 %v15771_v13  ;;  %v15778_v35 = vunpack.i.h.bf16 %v15776_v51 }
0x2bd8   : > { %14551 = vmatmul.mubr.msk.f32.vlgmr.msra.gmra.mrb[14].mxu1 %vm5965_vm0, %v7502_v44  ;;  %v7659_v32 = vsel %vm7657_vm5, %v7656_v5, %v15773_v39  ;;  %v15777_v44 = vunpack.i.l.bf16 %v15776_v51  ;;  %v7926_v39 = vld [vmem:[%s16978_s2 + $0x314] sm:$0xff]  ;;  %v7807_v51 = vld [vmem:[%s16978_s2 + $0xd0] sm:$0xf] }
0x2bd9   : > { %14569 = vmatprep.mubr.msk.bf16.mxu1 %vm16519_vm15, %v16518_v19  ;;  %14554 = vmatpush3.bf16.msra.mxu1 %v13273_v54  ;;  %v7662_v60 = vsel %vm7660_vm6, %v7659_v32, %v15778_v35  ;;  %v13301_v61 = vcombine.high %v7926_v39, %v7927_v8  ;;  %v13300_v5 = vcombine.low %v7926_v39, %v7927_v8  ;;  %v7928_v35 = vld [vmem:[%s16978_s2 + $0x3d4] sm:$0xff] }
0x2bda   : > { %14555 = vmatprep.subr.bf16.mxu1 %v16518_v19  ;;  %v7661_v54 = vsel %vm7660_vm6, %v7658_v30, %v15777_v44  ;;  %v7808_v30 = vld [vmem:[%s16978_s2 + $0x130] sm:$0xf]  ;;  %v7929_v44 = vld [vmem:[%s16978_s2 + $0x434] sm:$0xff] }
0x2bdb   : > { %v13285_v32 = vcombine.low %v7807_v51, %v7808_v30  ;;  %v7934_v51 = vld [vmem:[%s16990_s22 + $0x5] sm:$0x3] }
0x2bdc   : > { %v7940_v30 = vrot.slane %v7934_v51, %v17727_v31 }
0x2bdd   : > { %14556 = vmatpush3.bf16.msra.mxu1 %v13274_v18  ;;  %14576 = vmatpush3.bf16.msra.mxu0 %v13285_v32 }
0x2bde   : > { %14557 = vmatprep.subr.bf16.mxu1 %v16518_v19  ;;  %14577 = vmatprep.subr.bf16.mxu0 %v16518_v19 }
0x2be1   : > { %14558 = vmatpush3.bf16.msra.mxu1 %v13275_v45  ;;  %v13272_v45 = vld [vmem:[%s16990_s22 + $0x3] ss:$0 sm:$0xff] }
0x2be2   : > { %14559 = vmatprep.subr.bf16.mxu1 %v16518_v19 }
0x2be5   : > { %14560 = vmatpush3.bf16.msra.mxu1 %v13276_v22 }
0x2be6   : > { %14561 = vmatprep.subr.bf16.mxu1 %v16518_v19 }
0x2be9   : > { %14562 = vmatpush3.bf16.msra.mxu1 %v13277_v9 }
0x2bea   : > { %14563 = vmatprep.subr.bf16.mxu1 %v16518_v19 }
0x2bed   : > { %14564 = vmatpush3.bf16.msra.mxu1 %v13278_v56  ;;  %v16158_v56 = vld [vmem:[#allocation2 + $0x8] sm:$0xff] }
0x2bee   : > { %14565 = vmatprep.subr.bf16.mxu1 %v16518_v19 }
0x2bf1   : > { %14566 = vmatpush3.bf16.msra.mxu1 %v13279_v57  ;;  %v7919_v57 = vld [vmem:[%s16978_s2 + $0x74] sm:$0xff] }
0x2bf2   : > { %14567 = vmatprep.subr.bf16.mxu1 %v16518_v19  ;;  %v13292_v12 = vcombine.low %v7918_v58, %v7919_v57 }
0x2bf5   : > { %14568 = vmatpush3.bf16.msra.mxu1 %v13280_v26  ;;  %v13293_v26 = vcombine.high %v7918_v58, %v7919_v57  ;;  %v5684_v58 = vld [vmem:[#allocation3] sm:$0xff]  ;;  %v5685_v57 = vld [vmem:[#allocation3 + $0x8] sm:$0xff] }
0x2bf7   : > { %8027 = vmatprep.subr.bf16.mxu1 %v13293_v26  ;;  %v7816_v26 = vld [vmem:[%s16978_s2 + $0x430] sm:$0xf] }
0x2cab   : > { %v14552_v17 = vpop.f32.mrb[14].mxu1 }
0x2cac   : > { %v7581_v53 = vpop.f32.mrb[15].mxu1 }
0x2cad   : > { %v15779_v55 = vpack.i.bf16 %v14552_v17, %v7581_v53  ;;  %v7921_v17 = vld [vmem:[%s16978_s2 + $0x134] sm:$0xff] }
0x2cae   : > { %v7922_v53 = vld [vmem:[%s16978_s2 + $0x194] sm:$0xff]  ;;  %v13294_v3 = vcombine.low %v7920_v16, %v7921_v17 }
0x2caf   : > { %15780 = vrot.lane.b32.xlu0 %v15779_v55, %s16521_s20  ;;  %v13295_v55 = vcombine.high %v7920_v16, %v7921_v17  ;;  %v13297_v48 = vcombine.high %v7922_v53, %v7923_v10  ;;  %v13296_v34 = vcombine.low %v7922_v53, %v7923_v10  ;;  %v7935_v16 = vpack.c.bf16 %v5685_v57, %v5684_v58  ;;  %v7817_v53 = vld [vmem:[%s16978_s2 + $0x490] sm:$0xf] }
0x2d21   : > { %v15781_v21 = vpop.permute.xlu0 %15780 }
0x2d22   : > { %v15783_v23 = vunpack.i.h.bf16 %v15781_v21  ;;  %v15782_v20 = vunpack.i.l.bf16 %v15781_v21  ;;  %v13303_v21 = vcombine.high %v7928_v35, %v7929_v44 }
0x2d24   : > { %v7665_v18 = vsel %vm7663_vm7, %v7662_v60, %v15783_v23  ;;  %v7664_v47 = vsel %vm7663_vm7, %v7661_v54, %v15782_v20  ;;  %v13302_v23 = vcombine.low %v7928_v35, %v7929_v44  ;;  %v7809_v20 = vld [vmem:[%s16978_s2 + $0x190] sm:$0xf] }
0x2d25   : > { %v7666_v2 = vpack.c.bf16 %v7665_v18, %v7664_v47  ;;  %v7810_v54 = vld [vmem:[%s16978_s2 + $0x1f0] sm:$0xf]  ;;  %v7930_v18 = vld [vmem:[%s16978_s2 + $0x494] sm:$0xff] }
0x2d26   : > { %v13286_v60 = vcombine.low %v7809_v20, %v7810_v54  ;;  %v7931_v47 = vld [vmem:[%s16978_s2 + $0x4f4] sm:$0xff] }
0x2d27   : > { %14570 = vmatmul.mubr.bf16.vlgmr.msra.gmra.mrb[16].mxu1 %v7666_v2  ;;  %v13305_v2 = vcombine.high %v7930_v18, %v7931_v47 }
0x2d28   : > { %8059 = vmatprep.mubr.bf16.mxu1 %v16517_v6  ;;  %8028 = vmatpush1.bf16.msra.mxu1 %v13292_v12  ;;  %v7815_v12 = vld [vmem:[%s16978_s2 + $0x3d0] sm:$0xf] }
0x2d29   : > { %8029 = vmatprep.subr.bf16.mxu1 %v13295_v55  ;;  %14578 = vmatpush3.bf16.msra.mxu0 %v13286_v60  ;;  %v13289_v17 = vcombine.low %v7815_v12, %v7816_v26  ;;  %v7818_v55 = vld [vmem:[%s16978_s2 + $0x4f0] sm:$0xf] }
0x2d2a   : > { %14579 = vmatprep.subr.bf16.mxu0 %v16518_v19  ;;  %v13290_v10 = vcombine.low %v7817_v53, %v7818_v55 }
0x2d2c   : > { %8030 = vmatpush1.bf16.msra.mxu1 %v13294_v3 }
0x2d2d   : > { %8031 = vmatprep.subr.bf16.mxu1 %v13297_v48 }
0x2d30   : > { %8032 = vmatpush1.bf16.msra.mxu1 %v13296_v34 }
0x2d31   : > { %8033 = vmatprep.subr.bf16.mxu1 %v13299_v43 }
0x2d34   : > { %8034 = vmatpush1.bf16.msra.mxu1 %v13298_v28 }
0x2d35   : > { %8035 = vmatprep.subr.bf16.mxu1 %v13301_v61 }
0x2d38   : > { %8036 = vmatpush1.bf16.msra.mxu1 %v13300_v5 }
0x2d39   : > { %8037 = vmatprep.subr.bf16.mxu1 %v13303_v21 }
0x2d3c   : > { %8038 = vmatpush1.bf16.msra.mxu1 %v13302_v23 }
0x2d3d   : > { %8039 = vmatprep.subr.bf16.mxu1 %v13305_v2 }
0x2dfa   : > { %v7755_v7 = vpop.f32.mrb[16].mxu1 }
0x2dfb   : > { %v7756_v46 = vadd.f32 %v13272_v45, %v7755_v7  ;;  %v14571_v22 = vpop.f32.mrb[17].mxu1  ;;  %v7811_v7 = vld [vmem:[%s16978_s2 + $0x250] sm:$0xf] }
0x2dfc   : > { %v7758_v62 = vpop.f32.mrb[18].mxu1 }
0x2dfd   : > { %v7759_v36 = vadd.f32 %v13272_v45, %v7758_v62  ;;  %v14572_v9 = vpop.f32.mrb[19].mxu1  ;;  %v7762_v27 = vadd.f32 %v16157_v14, %v7756_v46  ;;  %v13304_v45 = vcombine.low %v7930_v18, %v7931_v47  ;;  %v7812_v46 = vld [vmem:[%s16978_s2 + $0x2b0] sm:$0xf]  ;;  %v7932_v62 = vld [vmem:[%s16978_s2 + $0x554] sm:$0xff] }
0x2dfe   : > { %v13287_v22 = vcombine.low %v7811_v7, %v7812_v46 }
0x2dff   : > { %7766 = vadd.xlane.f32.xlu1 %v7762_v27  ;;  %v7763_v11 = vadd.f32 %v16158_v56, %v7759_v36  ;;  %8040 = vmatpush1.bf16.msra.mxu1 %v13304_v45  ;;  %v7933_v36 = vld [vmem:[%s16978_s2 + $0x5b4] sm:$0xff]  ;;  %v7814_v56 = vld [vmem:[%s16978_s2 + $0x370] sm:$0xf]  ;;  %v13283_v45 = vld [vmem:[%s16990_s22 + $0x4] ss:$0 sm:$0xff] }
0x2e00   : > { %v13307_v9 = vcombine.high %v7932_v62, %v7933_v36  ;;  %14580 = vmatpush3.bf16.msra.mxu0 %v13287_v22  ;;  %v13306_v14 = vcombine.low %v7932_v62, %v7933_v36 }
0x2e01   : > { %7768 = vadd.xlane.f32.xlu0 %v7763_v11  ;;  %14581 = vmatprep.subr.bf16.mxu0 %v16518_v19 }
0x2e02   : > { %8041 = vmatprep.subr.bf16.mxu1 %v13307_v9 }
0x2e03   : > { %8042 = vmatpush1.bf16.msra.mxu1 %v13306_v14 }
0x2e06   : > { %8060 = vmatmul.mubr.bf16.vlgmr.msra.gmra.mrb[20].mxu1 %v7935_v16 }
0x2e8c   : > { %v7767_v29 = vpop.xlane.xlu1 %7766 }
0x2e8d   : > { %v7771_v4 = vmul.f32 0.0078125, %v7767_v29 }
0x2e8e   : > { %v7769_v52 = vpop.xlane.xlu0 %7768 }
0x2e8f   : > { %v18081_v13 = vsub.f32 %v7762_v27, %v7771_v4  ;;  %v7772_v37 = vmul.f32 0.0078125, %v7769_v52  ;;  %v7813_v27 = vld [vmem:[%s16978_s2 + $0x310] sm:$0xf]  ;;  %v13281_v4 = vld [vmem:[%s16990_s22 + $0x19] ss:$0 sm:$0xff] }
0x2e91   : > { %v18083_v50 = vsub.f32 %v7763_v11, %v7772_v37  ;;  %v7775_v42 = vmul.f32 %v18081_v13, %v18081_v13  ;;  %v13288_v11 = vcombine.low %v7813_v27, %v7814_v56 }
0x2e93   : > { %7777 = vadd.xlane.f32.xlu0 %v7775_v42  ;;  %v7776_v40 = vmul.f32 %v18083_v50, %v18083_v50  ;;  %14582 = vmatpush3.bf16.msra.mxu0 %v13288_v11 }
0x2e94   : > { %14583 = vmatprep.subr.bf16.mxu0 %v16518_v19 }
0x2e97   : > { %7779 = vadd.xlane.f32.xlu0 %v7776_v40  ;;  %14584 = vmatpush3.bf16.msra.mxu0 %v13289_v17  ;;  %v13282_v40 = vld [vmem:[%s16990_s22 + $0x1a] ss:$0 sm:$0xff] }
0x2e98   : > { %14585 = vmatprep.subr.bf16.mxu0 %v16518_v19 }
0x2e9b   : > { %14586 = vmatpush3.bf16.msra.mxu0 %v13290_v10 }
0x2e9c   : > { %14587 = vmatprep.subr.bf16.mxu0 %v16518_v19 }
0x2e9f   : > { %14588 = vmatpush3.bf16.msra.mxu0 %v13291_v25 }
0x2ed9   : > { %v8061_v32 = vpop.f32.mrb[20].mxu1 }
0x2eda   : > { %v8062_v35 = vadd.f32 %v8061_v32, %v7940_v30 }
0x2f20   : > { %v7778_v3 = vpop.xlane.xlu0 %7777 }
0x2f21   : > { %v7781_v48 = vmul.f32 0.0078125, %v7778_v3 }
0x2f23   : > { %v7783_v41 = vadd.f32 1e-05, %v7781_v48 }
0x2f24   : > { %v7780_v49 = vpop.xlane.xlu0 %7779 }
0x2f25   : > { %16081 = vrsqrt.f32 %v7783_v41  ;;  %v7782_v34 = vmul.f32 0.0078125, %v7780_v49 }
0x2f27   : > { %v7784_v43 = vadd.f32 1e-05, %v7782_v34 }
0x2f29   : > { %16083 = vrsqrt.f32 %v7784_v43 }
0x2f2f   : > { %v16082_v28 = vpop.eup %16081 }
0x2f30   : > { %v7787_v29 = vmul.f32 %v16082_v28, %v18081_v13  ;;  %v7944_v13 = vrot.slane %v7934_v51, %v17733_v33 }
0x2f32   : > { %v7795_v42 = vmul.f32 %v13281_v4, %v7787_v29 }
0x2f33   : > { %v16084_v52 = vpop.eup %16083 }
0x2f34   : > { %v7788_v37 = vmul.f32 %v16084_v52, %v18083_v50  ;;  %v18121_v8 = vadd.f32 %v13282_v40, %v7795_v42  ;;  %v8063_v50 = vpop.f32.mrb[21].mxu1 }
0x2f35   : > { %v8064_v44 = vadd.f32 %v8063_v50, %v7944_v13  ;;  %v8065_v21 = vpop.f32.mrb[22].mxu1 }
0x2f36   : > { %v7796_v39 = vmul.f32 %v13281_v4, %v7788_v37  ;;  %v8066_v23 = vadd.f32 %v8065_v21, %v7940_v30  ;;  %v8067_v20 = vpop.f32.mrb[23].mxu1 }
0x2f37   : > { %v8068_v54 = vadd.f32 %v8067_v20, %v7944_v13 }
0x2f38   : > { %v18123_v61 = vadd.f32 %v13282_v40, %v7796_v39  ;;  %v14901_v60 = vpack.c.bf16 %v8066_v23, %v8062_v35  ;;  %v18134_v47 = vpack.i.bf16 %v8066_v23, %v8062_v35 }
0x2f39   : > { %v14907_v18 = vpack.c.bf16 %v8068_v54, %v8064_v44  ;;  %v18136_v2 = vpack.i.bf16 %v8068_v54, %v8064_v44 }
0x2f3a   : > { %v7822_v5 = vpack.c.bf16 %v18123_v61, %v18121_v8  ;;  %14903 = vmatprep.subr.msk.bf16.mxu0 %vm17755_vm1, %v14901_v60 }
0x2f3c   : > { %14590 = vmatmul.mubr.bf16.vlgmr.msra.gmra.mrb[24].mxu0 %v7822_v5 }
0x2f3d   : > { %14906 = vmatpush3.bf16.xpose.msk.msra.mxu0 %vm17755_vm1, %v14901_v60 }
0x2f3e   : > { %14908 = vmatprep.subr.bf16.mxu0 %v14907_v18 }
0x300f   : > { %v7911_v7 = vpop.f32.mrb[24].mxu0 }
0x3010   : > { %v18139_v46 = vadd.f32 %v13283_v45, %v7911_v7  ;;  %v14591_v22 = vpop.f32.mrb[25].mxu0 }
0x3011   : > { %v7914_v62 = vpop.f32.mrb[26].mxu0 }
0x3012   : > { %v18141_v36 = vadd.f32 %v13283_v45, %v7914_v62  ;;  %v14592_v9 = vpop.f32.mrb[27].mxu0  ;;  %14597 = vmatprep.mubr.msk.f32.mxu0 %vm5965_vm0, %v18139_v46 }
0x3014   : > { %14598 = vmatmul.mubr.msk.f32.vlgmr.msra.gmra.mrb[28].mxu0 %vm5965_vm0, %v18141_v36 }
0x3015   : > { %14910 = vmatpush3.bf16.msra.mxu0 %v14907_v18 }
0x30e7   : > { %v14599_v14 = vpop.f32.mrb[28].mxu0 }
0x30e8   : > { %v8175_v27 = vmul.f32 0.25, %v14599_v14  ;;  %v8165_v56 = vpop.f32.mrb[29].mxu0 }
0x30e9   : > { %v8174_v11 = vmul.f32 0.25, %v8165_v56 }
0x30ea   : > { %v8177_v58 = vadd.f32 %v8175_v27, %v17004_v1 }
0x30eb   : > { %v8176_v57 = vadd.f32 %v8174_v11, %v16999_v0 }
0x30ec   : > { %v8181_v16 = vsel %vm5965_vm0, %v8177_v58, -inf }
0x30ed   : > { %8182 = vmax.xlane.f32.xlu0 %v8181_v16  ;;  %v8178_v12 = vsel %vm5965_vm0, %v8176_v57, -inf }
0x30ee   : > { %8179 = vmax.xlane.f32.xlu1 %v8178_v12 }
0x30ff   : > { %15785 = vrot.lane.b32.xlu1 %v18134_v47, %s16521_s20 }
0x317a   : > { %v8183_v26 = vpop.xlane.xlu0 %8182 }
0x317b   : > { %v8185_v17 = vsub.f32 %v8177_v58, %v8183_v26  ;;  %v8180_v53 = vpop.xlane.xlu1 %8179 }
0x317c   : > { %v8184_v55 = vsub.f32 %v8176_v57, %v8180_v53 }
0x317d   : > { %v8188_v10 = vmul.f32 1.442695, %v8185_v17 }
0x317e   : > { %v8186_v38 = vmul.f32 1.442695, %v8184_v55 }
0x317f   : > { %16085 = vpow2.f32 %v8188_v10  ;;  %v15786_v24 = vpop.permute.xlu1 %15785 }
0x3180   : > { %16087 = vpow2.f32 %v8186_v38  ;;  %v15788_v25 = vunpack.i.h.bf16 %v15786_v24  ;;  %v15787_v3 = vunpack.i.l.bf16 %v15786_v24 }
0x3182   : > { %v14911_v48 = vpack.c.bf16 %v15788_v25, %v15787_v3 }
0x3184   : > { %14913 = vmatprep.subr.msk.bf16.mxu0 %vm17755_vm1, %v14911_v48 }
0x3189   : > { %v16086_v41 = vpop.eup %16085 }
0x318a   : > { %v16088_v49 = vpop.eup %16087  ;;  %v8193_v34 = vsel %vm5965_vm0, %v16086_v41, 0.0 }
0x318b   : > { %8194 = vadd.xlane.f32.xlu0 %v8193_v34  ;;  %v8190_v43 = vsel %vm5965_vm0, %v16088_v49, 0.0 }
0x318c   : > { %8191 = vadd.xlane.f32.xlu1 %v8190_v43 }
0x319d   : > { %8283 = vrot.lane.b32.xlu1 %v18141_v36, %s16521_s20 }
0x31a1   : > { %8281 = vrot.lane.b32.xlu0 %v18139_v46, %s16521_s20 }
0x3218   : > { %v8195_v28 = vpop.xlane.xlu0 %8194 }
0x3219   : > { %16089 = vrcp.f32 %v8195_v28  ;;  %v8192_v29 = vpop.xlane.xlu1 %8191 }
0x321a   : > { %16091 = vrcp.f32 %v8192_v29 }
0x321c   : > { %v8282_v40 = vpop.permute.xlu0 %8281 }
0x321d   : > { %v8284_v39 = vpop.permute.xlu1 %8283 }
0x3223   : > { %v16090_v4 = vpop.eup %16089 }
0x3224   : > { %v16092_v52 = vpop.eup %16091  ;;  %v8199_v42 = vmul.f32 %v16090_v4, %v16086_v41 }
0x3225   : > { %v8198_v37 = vmul.f32 %v16092_v52, %v16088_v49 }
0x3227   : > { %14604 = vmatprep.mubr.msk.f32.mxu0 %vm5965_vm0, %v8198_v37 }
0x3228   : > { %14605 = vmatmul.mubr.msk.f32.vlgmr.msra.gmra.mrb[30].mxu0 %vm5965_vm0, %v8199_v42 }
0x3229   : > { %14916 = vmatpush3.bf16.xpose.msk.msra.mxu0 %vm17755_vm1, %v14911_v48  ;;  %14611 = vmatprep.mubr.msk.f32.mxu0 %vm5965_vm0, %v8282_v40 }
0x3230   : > { %14612 = vmatmul.mubr.msk.f32.vlgmr.msra.gmra.mrb[32].mxu0 %vm5965_vm0, %v8284_v39 }
0x32fb   : > { %v18167_v5 = vpop.f32.mrb[30].mxu0 }
0x32fc   : > { %v18169_v51 = vpop.f32.mrb[31].mxu0 }
0x3303   : > { %v14613_v30 = vpop.f32.mrb[32].mxu0 }
0x3304   : > { %v8373_v13 = vmul.f32 0.25, %v14613_v30  ;;  %v8363_v32 = vpop.f32.mrb[33].mxu0 }
0x3305   : > { %v8372_v35 = vmul.f32 0.25, %v8363_v32 }
0x3306   : > { %v8375_v50 = vadd.f32 %v8373_v13, %v17004_v1 }
0x3307   : > { %v8374_v44 = vadd.f32 %v8372_v35, %v16999_v0 }
0x3308   : > { %v8379_v21 = vsel %vm5965_vm0, %v8375_v50, -inf }
0x3309   : > { %8380 = vmax.xlane.f32.xlu0 %v8379_v21  ;;  %v8376_v23 = vsel %vm5965_vm0, %v8374_v44, -inf }
0x330a   : > { %8377 = vmax.xlane.f32.xlu1 %v8376_v23 }
0x3396   : > { %v8381_v20 = vpop.xlane.xlu0 %8380 }
0x3397   : > { %v8383_v54 = vsub.f32 %v8375_v50, %v8381_v20  ;;  %v8378_v60 = vpop.xlane.xlu1 %8377 }
0x3398   : > { %v8382_v18 = vsub.f32 %v8374_v44, %v8378_v60 }
0x3399   : > { %v8386_v45 = vmul.f32 1.442695, %v8383_v54 }
0x339a   : > { %v8384_v7 = vmul.f32 1.442695, %v8382_v18 }
0x339b   : > { %16093 = vpow2.f32 %v8386_v45 }
0x339c   : > { %16095 = vpow2.f32 %v8384_v7 }
0x33a5   : > { %v16094_v22 = vpop.eup %16093 }
0x33a6   : > { %v16096_v62 = vpop.eup %16095  ;;  %v8391_v9 = vsel %vm5965_vm0, %v16094_v22, 0.0 }
0x33a7   : > { %8392 = vadd.xlane.f32.xlu1 %v8391_v9  ;;  %v8388_v14 = vsel %vm5965_vm0, %v16096_v62, 0.0 }
0x33a8   : > { %8389 = vadd.xlane.f32.xlu0 %v8388_v14 }
0x33b8   : > { %15795 = vrot.lane.b32.xlu1 %v18134_v47, %s16520_s18 }
0x33bc   : > { %15800 = vrot.lane.b32.xlu1 %v18134_v47, %s16522_s1 }
0x33be   : > { %15790 = vrot.lane.b32.xlu0 %v18136_v2, %s16521_s20 }
0x33c0   : > { %8487 = vrot.lane.b32.xlu1 %v18139_v46, %s16520_s18 }
0x33c2   : > { %8489 = vrot.lane.b32.xlu0 %v18141_v36, %s16520_s18 }
0x33c4   : > { %8691 = vrot.lane.b32.xlu1 %v18139_v46, %s16522_s1 }
0x33c6   : > { %15805 = vrot.lane.b32.xlu0 %v18134_v47, %s16523_s8 }
0x33c8   : > { %8693 = vrot.lane.b32.xlu1 %v18141_v36, %s16522_s1 }
0x33ca   : > { %8895 = vrot.lane.b32.xlu0 %v18139_v46, %s16523_s8 }
0x33cc   : > { %8897 = vrot.lane.b32.xlu1 %v18141_v36, %s16523_s8 }
0x3434   : > { %v8393_v27 = vpop.xlane.xlu1 %8392 }
0x3435   : > { %16097 = vrcp.f32 %v8393_v27  ;;  %v8390_v56 = vpop.xlane.xlu0 %8389 }
0x3436   : > { %16099 = vrcp.f32 %v8390_v56 }
0x3438   : > { %v15796_v11 = vpop.permute.xlu1 %15795 }
0x3439   : > { %v15791_v58 = vpop.permute.xlu0 %15790  ;;  %v15798_v57 = vunpack.i.h.bf16 %v15796_v11  ;;  %v15797_v16 = vunpack.i.l.bf16 %v15796_v11 }
0x343a   : > { %v15793_v12 = vunpack.i.h.bf16 %v15791_v58  ;;  %v15792_v26 = vunpack.i.l.bf16 %v15791_v58 }
0x343b   : > { %v14921_v24 = vpack.c.bf16 %v15798_v57, %v15797_v16 }
0x343c   : > { %v14917_v17 = vpack.c.bf16 %v15793_v12, %v15792_v26  ;;  %v15801_v53 = vpop.permute.xlu1 %15800 }
0x343d   : > { %v15803_v55 = vunpack.i.h.bf16 %v15801_v53  ;;  %v15802_v10 = vunpack.i.l.bf16 %v15801_v53  ;;  %v8490_v38 = vpop.permute.xlu0 %8489 }
0x343e   : > { %14918 = vmatprep.subr.bf16.mxu0 %v14917_v17 }
0x343f   : > { %v16098_v25 = vpop.eup %16097  ;;  %v14931_v3 = vpack.c.bf16 %v15803_v55, %v15802_v10  ;;  %14920 = vmatpush3.bf16.msra.mxu0 %v14917_v17 }
0x3440   : > { %v16100_v48 = vpop.eup %16099  ;;  %v8488_v41 = vpop.permute.xlu1 %8487  ;;  %14923 = vmatprep.subr.msk.bf16.mxu0 %vm17755_vm1, %v14921_v24  ;;  %v8397_v43 = vmul.f32 %v16098_v25, %v16094_v22 }
0x3441   : > { %v15806_v49 = vpop.permute.xlu0 %15805  ;;  %14933 = vmatprep.subr.msk.bf16.mxu1 %vm17755_vm1, %v14931_v3  ;;  %v8396_v34 = vmul.f32 %v16100_v48, %v16096_v62 }
0x3442   : > { %v15808_v28 = vunpack.i.h.bf16 %v15806_v49  ;;  %v15807_v29 = vunpack.i.l.bf16 %v15806_v49  ;;  %14936 = vmatpush3.bf16.xpose.msk.msra.mxu1 %vm17755_vm1, %v14931_v3 }
0x3443   : > { %14618 = vmatprep.mubr.msk.f32.mxu0 %vm5965_vm0, %v8396_v34 }
0x3444   : > { %v14941_v4 = vpack.c.bf16 %v15808_v28, %v15807_v29  ;;  %14619 = vmatmul.mubr.msk.f32.vlgmr.msra.gmra.mrb[34].mxu0 %vm5965_vm0, %v8397_v43  ;;  %v8692_v52 = vpop.permute.xlu1 %8691 }
0x3445   : > { %14625 = vmatprep.mubr.msk.f32.mxu0 %vm5965_vm0, %v8488_v41  ;;  %14639 = vmatprep.mubr.msk.f32.mxu1 %vm5965_vm0, %v8692_v52  ;;  %v8896_v42 = vpop.permute.xlu0 %8895 }
0x3446   : > { %14943 = vmatprep.subr.msk.bf16.mxu1 %vm17755_vm1, %v14941_v4 }
0x3448   : > { %v8694_v37 = vpop.permute.xlu1 %8693  ;;  %14926 = vmatpush3.bf16.xpose.msk.msra.mxu0 %vm17755_vm1, %v14921_v24 }
0x3449   : > { %14640 = vmatmul.mubr.msk.f32.vlgmr.msra.gmra.mrb[24].mxu1 %vm5965_vm0, %v8694_v37 }
0x344a   : > { %14946 = vmatpush3.bf16.xpose.msk.msra.mxu1 %vm17755_vm1, %v14941_v4  ;;  %14653 = vmatprep.mubr.msk.f32.mxu1 %vm5965_vm0, %v8896_v42 }
0x344c   : > { %v8898_v40 = vpop.permute.xlu1 %8897 }
0x344f   : > { %14626 = vmatmul.mubr.msk.f32.vlgmr.msra.gmra.mrb[36].mxu0 %vm5965_vm0, %v8490_v38 }
0x3451   : > { %14654 = vmatmul.mubr.msk.f32.vlgmr.msra.gmra.mrb[26].mxu1 %vm5965_vm0, %v8898_v40 }
0x3517   : > { %v18217_v39 = vpop.f32.mrb[34].mxu0 }
0x3518   : > { %v18219_v30 = vpop.f32.mrb[35].mxu0 }
0x3519   : > { %v15854_v13 = vpack.i.bf16 %v18217_v39, %v18219_v30 }
0x351c   : > { %v14641_v32 = vpop.f32.mrb[24].mxu1 }
0x351d   : > { %v8773_v35 = vpop.f32.mrb[25].mxu1  ;;  %v8783_v9 = vmul.f32 0.25, %v14641_v32 }
0x351e   : > { %v8782_v23 = vmul.f32 0.25, %v8773_v35 }
0x351f   : > { %v8785_v11 = vadd.f32 %v8783_v9, %v17004_v1 }
0x3520   : > { %v8784_v14 = vadd.f32 %v8782_v23, %v16999_v0 }
0x3521   : > { %v8789_v12 = vsel %vm5965_vm0, %v8785_v11, -inf }
0x3522   : > { %v14627_v50 = vpop.f32.mrb[36].mxu0  ;;  %v8786_v57 = vsel %vm5965_vm0, %v8784_v14, -inf }
0x3523   : > { %v8579_v44 = vmul.f32 0.25, %v14627_v50  ;;  %v8569_v21 = vpop.f32.mrb[37].mxu0 }
0x3524   : > { %v8578_v20 = vmul.f32 0.25, %v8569_v21  ;;  %v14655_v54 = vpop.f32.mrb[26].mxu1 }
0x3525   : > { %v8581_v60 = vadd.f32 %v8579_v44, %v17004_v1  ;;  %v8987_v18 = vmul.f32 0.25, %v14655_v54  ;;  %v8977_v45 = vpop.f32.mrb[27].mxu1 }
0x3526   : > { %v8580_v7 = vadd.f32 %v8578_v20, %v16999_v0  ;;  %v8986_v58 = vmul.f32 0.25, %v8977_v45 }
0x3527   : > { %v8989_v22 = vadd.f32 %v8987_v18, %v17004_v1  ;;  %v8585_v62 = vsel %vm5965_vm0, %v8581_v60, -inf }
0x3528   : > { %8586 = vmax.xlane.f32.xlu1 %v8585_v62  ;;  %v8582_v27 = vsel %vm5965_vm0, %v8580_v7, -inf  ;;  %v8988_v16 = vadd.f32 %v8986_v58, %v16999_v0 }
0x3529   : > { %8583 = vmax.xlane.f32.xlu0 %v8582_v27  ;;  %v8993_v56 = vsel %vm5965_vm0, %v8989_v22, -inf }
0x352a   : > { %v8990_v26 = vsel %vm5965_vm0, %v8988_v16, -inf }
0x352c   : > { %8994 = vmax.xlane.f32.xlu1 %v8993_v56 }
0x352d   : > { %8787 = vmax.xlane.f32.xlu0 %v8786_v57 }
0x3531   : > { %8790 = vmax.xlane.f32.xlu0 %v8789_v12 }
0x3535   : > { %8991 = vmax.xlane.f32.xlu0 %v8990_v26 }
0x35b5   : > { %v8587_v17 = vpop.xlane.xlu1 %8586 }
0x35b6   : > { %v8584_v53 = vpop.xlane.xlu0 %8583  ;;  %v8589_v41 = vsub.f32 %v8581_v60, %v8587_v17 }
0x35b7   : > { %v8588_v49 = vsub.f32 %v8580_v7, %v8584_v53 }
0x35b8   : > { %v8592_v4 = vmul.f32 1.442695, %v8589_v41 }
0x35b9   : > { %v8995_v55 = vpop.xlane.xlu1 %8994  ;;  %v8590_v52 = vmul.f32 1.442695, %v8588_v49 }
0x35ba   : > { %v8788_v10 = vpop.xlane.xlu0 %8787  ;;  %v8997_v24 = vsub.f32 %v8989_v22, %v8995_v55 }
0x35bb   : > { %v8792_v38 = vsub.f32 %v8784_v14, %v8788_v10 }
0x35bc   : > { %v9000_v34 = vmul.f32 1.442695, %v8997_v24 }
0x35bd   : > { %v8794_v25 = vmul.f32 1.442695, %v8792_v38 }
0x35be   : > { %v8791_v3 = vpop.xlane.xlu0 %8790 }
0x35bf   : > { %16101 = vpow2.f32 %v8794_v25  ;;  %v8793_v48 = vsub.f32 %v8785_v11, %v8791_v3 }
0x35c1   : > { %v8796_v43 = vmul.f32 1.442695, %v8793_v48 }
0x35c2   : > { %v8992_v28 = vpop.xlane.xlu0 %8991 }
0x35c3   : > { %16103 = vpow2.f32 %v8796_v43  ;;  %v8996_v29 = vsub.f32 %v8988_v16, %v8992_v28 }
0x35c4   : > { %16105 = vpow2.f32 %v9000_v34 }
0x35c5   : > { %v8998_v37 = vmul.f32 1.442695, %v8996_v29 }
0x35c7   : > { %16107 = vpow2.f32 %v8998_v37 }
0x35c8   : > { %16109 = vpow2.f32 %v8592_v4 }
0x35c9   : > { %v16102_v42 = vpop.eup %16101  ;;  %16111 = vpow2.f32 %v8590_v52 }
0x35ca   : > { %v8798_v40 = vsel %vm5965_vm0, %v16102_v42, 0.0 }
0x35cb   : > { %8799 = vadd.xlane.f32.xlu0 %v8798_v40 }
0x35cd   : > { %v18236_v32 = vpop.eup %16103 }
0x35ce   : > { %v8801_v35 = vsel %vm5965_vm0, %v18236_v32, 0.0  ;;  %v18240_v50 = vpop.eup %16105 }
0x35cf   : > { %8802 = vadd.xlane.f32.xlu1 %v8801_v35  ;;  %v9005_v23 = vsel %vm5965_vm0, %v18240_v50, 0.0 }
0x35d1   : > { %v16108_v44 = vpop.eup %16107 }
0x35d2   : > { %v16110_v21 = vpop.eup %16109  ;;  %v9002_v20 = vsel %vm5965_vm0, %v16108_v44, 0.0 }
0x35d3   : > { %v16112_v54 = vpop.eup %16111  ;;  %9006 = vadd.xlane.f32.xlu1 %v9005_v23  ;;  %9003 = vadd.xlane.f32.xlu0 %v9002_v20  ;;  %v8597_v60 = vsel %vm5965_vm0, %v16110_v21, 0.0 }
0x35d4   : > { %v8594_v18 = vsel %vm5965_vm0, %v16112_v54, 0.0 }
0x35d7   : > { %8598 = vadd.xlane.f32.xlu1 %v8597_v60  ;;  %8595 = vadd.xlane.f32.xlu0 %v8594_v18 }
0x35e8   : > { %15815 = vrot.lane.b32.xlu1 %v18136_v2, %s16522_s1 }
0x35ec   : > { %15820 = vrot.lane.b32.xlu1 %v18136_v2, %s16523_s8 }
0x35ed   : > { %15810 = vrot.lane.b32.xlu0 %v18136_v2, %s16520_s18 }
0x35f0   : > { %15825 = vrot.lane.b32.xlu1 %v18134_v47, %s16524_s13 }
0x35f1   : > { %9099 = vrot.lane.b32.xlu0 %v18139_v46, %s16524_s13 }
0x35f4   : > { %9101 = vrot.lane.b32.xlu1 %v18141_v36, %s16524_s13 }
0x3658   : > { %v8800_v45 = vpop.xlane.xlu0 %8799 }
0x3659   : > { %16113 = vrcp.f32 %v8800_v45 }
0x365c   : > { %v8803_v7 = vpop.xlane.xlu1 %8802 }
0x3660   : > { %v9007_v22 = vpop.xlane.xlu1 %9006  ;;  %v9004_v62 = vpop.xlane.xlu0 %9003 }
0x3663   : > { %v16114_v53 = vpop.eup %16113 }
0x3664   : > { %v8599_v9 = vpop.xlane.xlu1 %8598  ;;  %v8596_v14 = vpop.xlane.xlu0 %8595  ;;  %v8806_v49 = vmul.f32 %v16114_v53, %v16102_v42 }
0x3665   : > { %16115 = vrcp.f32 %v8599_v9 }
0x3666   : > { %16117 = vrcp.f32 %v8596_v14 }
0x3667   : > { %16119 = vrcp.f32 %v8803_v7 }
0x3668   : > { %v15816_v27 = vpop.permute.xlu1 %15815  ;;  %v15811_v56 = vpop.permute.xlu0 %15810  ;;  %16121 = vrcp.f32 %v9004_v62 }
0x3669   : > { %v15818_v11 = vunpack.i.h.bf16 %v15816_v27  ;;  %v15817_v58 = vunpack.i.l.bf16 %v15816_v27  ;;  %v15813_v57 = vunpack.i.h.bf16 %v15811_v56  ;;  %v15812_v16 = vunpack.i.l.bf16 %v15811_v56 }
0x366a   : > { %16123 = vrcp.f32 %v9007_v22 }
0x366b   : > { %v14927_v12 = vpack.c.bf16 %v15813_v57, %v15812_v16  ;;  %v14937_v17 = vpack.c.bf16 %v15818_v11, %v15817_v58 }
0x366c   : > { %v15821_v26 = vpop.permute.xlu1 %15820  ;;  %v9100_v35 = vpop.permute.xlu0 %9099 }
0x366d   : > { %14928 = vmatprep.subr.bf16.mxu0 %v14927_v12  ;;  %v15823_v24 = vunpack.i.h.bf16 %v15821_v26  ;;  %v15822_v25 = vunpack.i.l.bf16 %v15821_v26 }
0x366e   : > { %14930 = vmatpush3.bf16.msra.mxu0 %v14927_v12 }
0x366f   : > { %v16116_v55 = vpop.eup %16115  ;;  %14938 = vmatprep.subr.bf16.mxu0 %v14937_v17  ;;  %v14947_v43 = vpack.c.bf16 %v15823_v24, %v15822_v25 }
0x3670   : > { %v16118_v10 = vpop.eup %16117  ;;  %v8603_v38 = vmul.f32 %v16116_v55, %v16110_v21  ;;  %v15826_v3 = vpop.permute.xlu1 %15825 }
0x3671   : > { %v8602_v48 = vmul.f32 %v16118_v10, %v16112_v54  ;;  %v16120_v41 = vpop.eup %16119  ;;  %v15828_v28 = vunpack.i.h.bf16 %v15826_v3  ;;  %v15827_v29 = vunpack.i.l.bf16 %v15826_v3 }
0x3672   : > { %v16122_v34 = vpop.eup %16121  ;;  %v8807_v4 = vmul.f32 %v16120_v41, %v18236_v32 }
0x3673   : > { %14632 = vmatprep.mubr.msk.f32.mxu0 %vm5965_vm0, %v8602_v48  ;;  %v9010_v37 = vmul.f32 %v16122_v34, %v16108_v44  ;;  %v14951_v40 = vpack.c.bf16 %v15828_v28, %v15827_v29 }
0x3674   : > { %14633 = vmatmul.mubr.msk.f32.vlgmr.msra.gmra.mrb[38].mxu0 %vm5965_vm0, %v8603_v38  ;;  %v16124_v52 = vpop.eup %16123  ;;  %v9102_v32 = vpop.permute.xlu1 %9101 }
0x3675   : > { %14940 = vmatpush3.bf16.msra.mxu0 %v14937_v17  ;;  %14646 = vmatprep.mubr.msk.f32.mxu0 %vm5965_vm0, %v8806_v49  ;;  %v9011_v42 = vmul.f32 %v16124_v52, %v18240_v50 }
0x3676   : > { %14948 = vmatprep.subr.bf16.mxu0 %v14947_v43 }
0x3678   : > { %14647 = vmatmul.mubr.msk.f32.vlgmr.msra.gmra.mrb[40].mxu0 %vm5965_vm0, %v8807_v4 }
0x3679   : > { %14950 = vmatpush3.bf16.msra.mxu0 %v14947_v43  ;;  %14660 = vmatprep.mubr.msk.f32.mxu0 %vm5965_vm0, %v9010_v37 }
0x367a   : > { %14953 = vmatprep.subr.msk.bf16.mxu0 %vm17755_vm1, %v14951_v40 }
0x367c   : > { %14661 = vmatmul.mubr.msk.f32.vlgmr.msra.gmra.mrb[42].mxu0 %vm5965_vm0, %v9011_v42 }
0x367d   : > { %14667 = vmatprep.mubr.msk.f32.mxu0 %vm5965_vm0, %v9100_v35 }
0x3682   : > { %14956 = vmatpush3.bf16.xpose.msk.msra.mxu0 %vm17755_vm1, %v14951_v40 }
0x3689   : > { %14668 = vmatmul.mubr.msk.f32.vlgmr.msra.gmra.mrb[44].mxu0 %vm5965_vm0, %v9102_v32 }
0x3747   : > { %v18273_v44 = vpop.f32.mrb[38].mxu0 }
0x3748   : > { %v18275_v21 = vpop.f32.mrb[39].mxu0 }
0x3749   : > { %v15859_v50 = vpack.i.bf16 %v18273_v44, %v18275_v21 }
0x374b   : > { %v18279_v23 = vpop.f32.mrb[40].mxu0 }
0x374c   : > { %v18281_v20 = vpop.f32.mrb[41].mxu0 }
0x374d   : > { %v15864_v54 = vpack.i.bf16 %v18279_v23, %v18281_v20 }
0x374f   : > { %v18285_v60 = vpop.f32.mrb[42].mxu0 }
0x3750   : > { %v18287_v18 = vpop.f32.mrb[43].mxu0 }
0x3751   : > { %v15869_v45 = vpack.i.bf16 %v18285_v60, %v18287_v18 }
0x375c   : > { %v14669_v7 = vpop.f32.mrb[44].mxu0 }
0x375d   : > { %v9191_v22 = vmul.f32 0.25, %v14669_v7  ;;  %v9181_v62 = vpop.f32.mrb[45].mxu0 }
0x375e   : > { %v9190_v9 = vmul.f32 0.25, %v9181_v62 }
0x375f   : > { %v9193_v14 = vadd.f32 %v9191_v22, %v17004_v1 }
0x3760   : > { %v9192_v27 = vadd.f32 %v9190_v9, %v16999_v0 }
0x3761   : > { %v9197_v56 = vsel %vm5965_vm0, %v9193_v14, -inf }
0x3762   : > { %9198 = vmax.xlane.f32.xlu1 %v9197_v56  ;;  %v9194_v11 = vsel %vm5965_vm0, %v9192_v27, -inf }
0x3763   : > { %9195 = vmax.xlane.f32.xlu0 %v9194_v11 }
0x3773   : > { %15835 = vrot.lane.b32.xlu1 %v18134_v47, %s16525_s12 }
0x3777   : > { %9303 = vrot.lane.b32.xlu1 %v18139_v46, %s16525_s12 }
0x377b   : > { %9305 = vrot.lane.b32.xlu1 %v18141_v36, %s16525_s12 }
0x37ef   : > { %v9199_v58 = vpop.xlane.xlu1 %9198 }
0x37f0   : > { %v9201_v57 = vsub.f32 %v9193_v14, %v9199_v58  ;;  %v9196_v16 = vpop.xlane.xlu0 %9195 }
0x37f1   : > { %v9200_v12 = vsub.f32 %v9192_v27, %v9196_v16 }
0x37f2   : > { %v9204_v26 = vmul.f32 1.442695, %v9201_v57 }
0x37f3   : > { %v9202_v17 = vmul.f32 1.442695, %v9200_v12  ;;  %v15836_v3 = vpop.permute.xlu1 %15835 }
0x37f4   : > { %16125 = vpow2.f32 %v9204_v26  ;;  %v15838_v41 = vunpack.i.h.bf16 %v15836_v3  ;;  %v15837_v49 = vunpack.i.l.bf16 %v15836_v3 }
0x37f5   : > { %16127 = vpow2.f32 %v9202_v17 }
0x37f6   : > { %v14961_v29 = vpack.c.bf16 %v15838_v41, %v15837_v49 }
0x37f7   : > { %v9304_v42 = vpop.permute.xlu1 %9303 }
0x37fb   : > { %v9306_v35 = vpop.permute.xlu1 %9305 }
0x37fe   : > { %v16126_v53 = vpop.eup %16125 }
0x37ff   : > { %v9209_v55 = vsel %vm5965_vm0, %v16126_v53, 0.0  ;;  %v16128_v10 = vpop.eup %16127 }
0x3800   : > { %9210 = vadd.xlane.f32.xlu0 %v9209_v55  ;;  %v9206_v38 = vsel %vm5965_vm0, %v16128_v10, 0.0 }
0x3804   : > { %9207 = vadd.xlane.f32.xlu0 %v9206_v38 }
0x381a   : > { %15830 = vrot.lane.b32.xlu0 %v18136_v2, %s16524_s13 }
0x388d   : > { %v9211_v24 = vpop.xlane.xlu0 %9210 }
0x388e   : > { %16129 = vrcp.f32 %v9211_v24 }
0x3891   : > { %v9208_v25 = vpop.xlane.xlu0 %9207 }
0x3892   : > { %16131 = vrcp.f32 %v9208_v25 }
0x3895   : > { %v15831_v48 = vpop.permute.xlu0 %15830 }
0x3896   : > { %v15833_v34 = vunpack.i.h.bf16 %v15831_v48  ;;  %v15832_v43 = vunpack.i.l.bf16 %v15831_v48 }
0x3898   : > { %v14957_v28 = vpack.c.bf16 %v15833_v34, %v15832_v43  ;;  %v16130_v4 = vpop.eup %16129 }
0x3899   : > { %v9215_v40 = vmul.f32 %v16130_v4, %v16126_v53 }
0x389a   : > { %14958 = vmatprep.subr.bf16.mxu1 %v14957_v28 }
0x389b   : > { %14960 = vmatpush3.bf16.msra.mxu1 %v14957_v28 }
0x389c   : > { %v16132_v52 = vpop.eup %16131  ;;  %14963 = vmatprep.subr.msk.bf16.mxu1 %vm17755_vm1, %v14961_v29 }
0x389d   : > { %v9214_v37 = vmul.f32 %v16132_v52, %v16128_v10 }
0x389f   : > { %14674 = vmatprep.mubr.msk.f32.mxu1 %vm5965_vm0, %v9214_v37 }
0x38a0   : > { %14675 = vmatmul.mubr.msk.f32.vlgmr.msra.gmra.mrb[28].mxu1 %vm5965_vm0, %v9215_v40 }
0x38a1   : > { %14681 = vmatprep.mubr.msk.f32.mxu1 %vm5965_vm0, %v9304_v42 }
0x38a4   : > { %14966 = vmatpush3.bf16.xpose.msk.msra.mxu1 %vm17755_vm1, %v14961_v29 }
0x38ab   : > { %14682 = vmatmul.mubr.msk.f32.vlgmr.msra.gmra.mrb[30].mxu1 %vm5965_vm0, %v9306_v35 }
0x3973   : > { %v18313_v32 = vpop.f32.mrb[28].mxu1 }
0x3974   : > { %v18315_v7 = vpop.f32.mrb[29].mxu1 }
0x3975   : > { %v15874_v22 = vpack.i.bf16 %v18313_v32, %v18315_v7 }
0x397e   : > { %v14683_v62 = vpop.f32.mrb[30].mxu1 }
0x397f   : > { %v9395_v9 = vmul.f32 0.25, %v14683_v62  ;;  %v9385_v14 = vpop.f32.mrb[31].mxu1 }
0x3980   : > { %v9394_v27 = vmul.f32 0.25, %v9385_v14 }
0x3981   : > { %v9397_v56 = vadd.f32 %v9395_v9, %v17004_v1 }
0x3982   : > { %v9396_v11 = vadd.f32 %v9394_v27, %v16999_v0 }
0x3983   : > { %v9401_v58 = vsel %vm5965_vm0, %v9397_v56, -inf }
0x3984   : > { %9402 = vmax.xlane.f32.xlu1 %v9401_v58  ;;  %v9398_v57 = vsel %vm5965_vm0, %v9396_v11, -inf }
0x3985   : > { %9399 = vmax.xlane.f32.xlu0 %v9398_v57 }
0x3995   : > { %15845 = vrot.lane.b32.xlu1 %v18134_v47, %s16526_s0 }
0x3999   : > { %9507 = vrot.lane.b32.xlu1 %v18139_v46, %s16526_s0 }
0x399d   : > { %9509 = vrot.lane.b32.xlu1 %v18141_v36, %s16526_s0 }
0x3a11   : > { %v9403_v16 = vpop.xlane.xlu1 %9402 }
0x3a12   : > { %v9405_v12 = vsub.f32 %v9397_v56, %v9403_v16  ;;  %v9400_v26 = vpop.xlane.xlu0 %9399 }
0x3a13   : > { %v9404_v17 = vsub.f32 %v9396_v11, %v9400_v26 }
0x3a14   : > { %v9408_v53 = vmul.f32 1.442695, %v9405_v12 }
0x3a15   : > { %v9406_v55 = vmul.f32 1.442695, %v9404_v17  ;;  %v15846_v25 = vpop.permute.xlu1 %15845  ;;  %v8070_v17 = vld [vmem:[%s16978_s2 + $0x1c] sm:$0xf] }
0x3a16   : > { %16133 = vpow2.f32 %v9408_v53  ;;  %v15848_v48 = vunpack.i.h.bf16 %v15846_v25  ;;  %v15847_v41 = vunpack.i.l.bf16 %v15846_v25  ;;  %v8071_v53 = vld [vmem:[%s16978_s2 + $0x7c] sm:$0xf] }
0x3a17   : > { %16135 = vpow2.f32 %v9406_v55  ;;  %v8072_v55 = vld [vmem:[%s16978_s2 + $0xdc] sm:$0xf] }
0x3a18   : > { %v14971_v28 = vpack.c.bf16 %v15848_v48, %v15847_v41  ;;  %v8076_v25 = vld [vmem:[%s16978_s2 + $0x25c] sm:$0xf] }
0x3a19   : > { %v9508_v40 = vpop.permute.xlu1 %9507  ;;  %v8078_v41 = vld [vmem:[%s16978_s2 + $0x31c] sm:$0xf] }
0x3a1d   : > { %v9510_v42 = vpop.permute.xlu1 %9509 }
0x3a20   : > { %v16134_v10 = vpop.eup %16133 }
0x3a21   : > { %v9413_v38 = vsel %vm5965_vm0, %v16134_v10, 0.0  ;;  %v16136_v24 = vpop.eup %16135 }
0x3a22   : > { %9414 = vadd.xlane.f32.xlu0 %v9413_v38  ;;  %v9410_v47 = vsel %vm5965_vm0, %v16136_v24, 0.0  ;;  %v8073_v38 = vld [vmem:[%s16978_s2 + $0x13c] sm:$0xf] }
0x3a26   : > { %9411 = vadd.xlane.f32.xlu0 %v9410_v47  ;;  %v8074_v47 = vld [vmem:[%s16978_s2 + $0x19c] sm:$0xf] }
0x3a3c   : > { %15840 = vrot.lane.b32.xlu0 %v18136_v2, %s16525_s12 }
0x3aaf   : > { %v9415_v46 = vpop.xlane.xlu0 %9414 }
0x3ab0   : > { %16137 = vrcp.f32 %v9415_v46  ;;  %v8075_v46 = vld [vmem:[%s16978_s2 + $0x1fc] sm:$0xf] }
0x3ab3   : > { %v9412_v36 = vpop.xlane.xlu0 %9411 }
0x3ab4   : > { %16139 = vrcp.f32 %v9412_v36  ;;  %v13359_v36 = vcombine.low %v8074_v47, %v8075_v46  ;;  %v13356_v47 = vld [vmem:[%s16990_s22 + $0x7] ss:$0 sm:$0xff] }
0x3ab7   : > { %v15841_v3 = vpop.permute.xlu0 %15840 }
0x3ab8   : > { %v15843_v49 = vunpack.i.h.bf16 %v15841_v3  ;;  %v15842_v34 = vunpack.i.l.bf16 %v15841_v3  ;;  %v8077_v3 = vld [vmem:[%s16978_s2 + $0x2bc] sm:$0xf] }
0x3ab9   : > { %v13360_v48 = vcombine.low %v8076_v25, %v8077_v3 }
0x3aba   : > { %v14967_v43 = vpack.c.bf16 %v15843_v49, %v15842_v34  ;;  %v16138_v29 = vpop.eup %16137  ;;  %v8079_v49 = vld [vmem:[%s16978_s2 + $0x37c] sm:$0xf] }
0x3abb   : > { %v9419_v37 = vmul.f32 %v16138_v29, %v16134_v10  ;;  %v13357_v10 = vcombine.low %v8070_v17, %v8071_v53  ;;  %v13361_v34 = vcombine.low %v8078_v41, %v8079_v49 }
0x3abc   : > { %14968 = vmatprep.subr.bf16.mxu0 %v14967_v43 }
0x3abd   : > { %14970 = vmatpush3.bf16.msra.mxu0 %v14967_v43  ;;  %v8080_v43 = vld [vmem:[%s16978_s2 + $0x3dc] sm:$0xf] }
0x3abe   : > { %v16140_v4 = vpop.eup %16139  ;;  %14973 = vmatprep.subr.msk.bf16.mxu0 %vm17755_vm1, %v14971_v28 }
0x3abf   : > { %v9418_v52 = vmul.f32 %v16140_v4, %v16136_v24  ;;  %v13358_v24 = vcombine.low %v8072_v55, %v8073_v38  ;;  %v8082_v4 = vld [vmem:[%s16978_s2 + $0x49c] sm:$0xf] }
0x3ac1   : > { %14688 = vmatprep.mubr.msk.f32.mxu0 %vm5965_vm0, %v9418_v52  ;;  %v8083_v52 = vld [vmem:[%s16978_s2 + $0x4fc] sm:$0xf] }
0x3ac2   : > { %14689 = vmatmul.mubr.msk.f32.vlgmr.msra.gmra.mrb[46].mxu0 %vm5965_vm0, %v9419_v37  ;;  %v13363_v37 = vcombine.low %v8082_v4, %v8083_v52 }
0x3ac3   : > { %14695 = vmatprep.mubr.msk.f32.mxu0 %vm5965_vm0, %v9508_v40  ;;  %v8084_v40 = vld [vmem:[%s16978_s2 + $0x55c] sm:$0xf] }
0x3ac6   : > { %14976 = vmatpush3.bf16.xpose.msk.msra.mxu0 %vm17755_vm1, %v14971_v28  ;;  %v8081_v28 = vld [vmem:[%s16978_s2 + $0x43c] sm:$0xf] }
0x3ac7   : > { %v13362_v29 = vcombine.low %v8080_v43, %v8081_v28  ;;  %v9919_v43 = vld [vmem:[%s16978_s2 + $0x20] sm:$0xff] }
0x3ac8   : > { %v9927_v28 = vld [vmem:[%s16978_s2 + $0x80] sm:$0xff] }
0x3ac9   : > { %v13367_v4 = vcombine.low %v9919_v43, %v9927_v28  ;;  %v13368_v52 = vcombine.high %v9919_v43, %v9927_v28  ;;  %v10024_v28 = vld [vmem:[%s16978_s2 + $0x508] sm:$0xff] }
0x3acb   : > { %10772 = vmatprep.subr.bf16.mxu0 %v13368_v52 }
0x3acd   : > { %14696 = vmatmul.mubr.msk.f32.vlgmr.msra.gmra.mrb[48].mxu0 %vm5965_vm0, %v9510_v42  ;;  %v8085_v42 = vld [vmem:[%s16978_s2 + $0x5bc] sm:$0xf] }
0x3ace   : > { %10804 = vmatprep.mubr.bf16.mxu0 %v16517_v6  ;;  %10773 = vmatpush1.bf16.msra.mxu0 %v13367_v4 }
0x3b95   : > { %v14690_v35 = vpop.f32.mrb[46].mxu0 }
0x3b96   : > { %v9498_v62 = vpop.f32.mrb[47].mxu0 }
0x3b97   : > { %v15879_v9 = vpack.i.bf16 %v14690_v35, %v9498_v62  ;;  %v13364_v35 = vcombine.low %v8084_v40, %v8085_v42  ;;  %v9935_v40 = vld [vmem:[%s16978_s2 + $0xe0] sm:$0xff] }
0x3b98   : > { %v9943_v42 = vld [vmem:[%s16978_s2 + $0x140] sm:$0xff] }
0x3ba0   : > { %v14697_v14 = vpop.f32.mrb[48].mxu0 }
0x3ba1   : > { %v9599_v27 = vmul.f32 0.25, %v14697_v14  ;;  %v9589_v56 = vpop.f32.mrb[49].mxu0 }
0x3ba2   : > { %v9598_v11 = vmul.f32 0.25, %v9589_v56 }
0x3ba3   : > { %v9601_v58 = vadd.f32 %v9599_v27, %v17004_v1 }
0x3ba4   : > { %v9600_v57 = vadd.f32 %v9598_v11, %v16999_v0 }
0x3ba5   : > { %v9605_v16 = vsel %vm5965_vm0, %v9601_v58, -inf }
0x3ba6   : > { %9606 = vmax.xlane.f32.xlu1 %v9605_v16  ;;  %v9602_v15 = vsel %vm5965_vm0, %v9600_v57, -inf }
0x3ba7   : > { %9603 = vmax.xlane.f32.xlu0 %v9602_v15 }
0x3bb7   : > { %15855 = vrot.lane.b32.xlu1 %v15854_v13, %s16526_s0 }
0x3bbb   : > { %15860 = vrot.lane.b32.xlu1 %v15859_v50, %s16525_s12 }
0x3bbf   : > { %15865 = vrot.lane.b32.xlu1 %v15864_v54, %s16524_s13 }
0x3bc3   : > { %15875 = vrot.lane.b32.xlu1 %v15874_v22, %s16522_s1 }
0x3c33   : > { %v9607_v0 = vpop.xlane.xlu1 %9606 }
0x3c34   : > { %v9609_v1 = vsub.f32 %v9601_v58, %v9607_v0  ;;  %v9604_v12 = vpop.xlane.xlu0 %9603 }
0x3c35   : > { %v9608_v39 = vsub.f32 %v9600_v57, %v9604_v12 }
0x3c36   : > { %v9612_v30 = vmul.f32 1.442695, %v9609_v1 }
0x3c37   : > { %v9610_v13 = vmul.f32 1.442695, %v9608_v39  ;;  %v15856_v27 = vpop.permute.xlu1 %15855 }
0x3c38   : > { %16141 = vpow2.f32 %v9612_v30  ;;  %v15858_v57 = vunpack.i.h.bf16 %v15856_v27  ;;  %v15857_v16 = vunpack.i.l.bf16 %v15856_v27 }
0x3c39   : > { %16143 = vpow2.f32 %v9610_v13 }
0x3c3a   : > { %v9768_v30 = vsel %vm5965_vm0, %v18167_v5, %v15858_v57  ;;  %v9767_v13 = vsel %vm5965_vm0, %v18169_v51, %v15857_v16 }
0x3c3b   : > { %v15861_v56 = vpop.permute.xlu1 %15860 }
0x3c3c   : > { %v15863_v15 = vunpack.i.h.bf16 %v15861_v56  ;;  %v15862_v0 = vunpack.i.l.bf16 %v15861_v56 }
0x3c3f   : > { %v15866_v58 = vpop.permute.xlu1 %15865 }
0x3c40   : > { %v15868_v1 = vunpack.i.h.bf16 %v15866_v58  ;;  %v15867_v12 = vunpack.i.l.bf16 %v15866_v58 }
0x3c42   : > { %v16142_v44 = vpop.eup %16141 }
0x3c43   : > { %v9617_v21 = vsel %vm5965_vm0, %v16142_v44, 0.0  ;;  %v16144_v50 = vpop.eup %16143 }
0x3c44   : > { %9618 = vadd.xlane.f32.xlu0 %v9617_v21  ;;  %v9614_v23 = vsel %vm5965_vm0, %v16144_v50, 0.0  ;;  %v9769_v21 = vsel %vm7648_vm2, %v9767_v13, %v15862_v0 }
0x3c48   : > { %9615 = vadd.xlane.f32.xlu0 %v9614_v23  ;;  %v15876_v23 = vpop.permute.xlu1 %15875 }
0x3c5e   : > { %15850 = vrot.lane.b32.xlu0 %v18136_v2, %s16526_s0 }
0x3c62   : > { %15870 = vrot.lane.b32.xlu0 %v15869_v45, %s16523_s8 }
0x3c66   : > { %15880 = vrot.lane.b32.xlu0 %v15879_v9, %s16520_s18 }
0x3cd1   : > { %v9619_v20 = vpop.xlane.xlu0 %9618 }
0x3cd2   : > { %16145 = vrcp.f32 %v9619_v20  ;;  %v9771_v20 = vsel %vm7651_vm3, %v9769_v21, %v15867_v12 }
0x3cd5   : > { %v9616_v54 = vpop.xlane.xlu0 %9615 }
0x3cd6   : > { %16147 = vrcp.f32 %v9616_v54 }
0x3cd9   : > { %v15851_v32 = vpop.permute.xlu0 %15850 }
0x3cda   : > { %v15853_v7 = vunpack.i.h.bf16 %v15851_v32  ;;  %v15852_v22 = vunpack.i.l.bf16 %v15851_v32 }
0x3cdc   : > { %v14977_v26 = vpack.c.bf16 %v15853_v7, %v15852_v22  ;;  %v16146_v2 = vpop.eup %16145 }
0x3cdd   : > { %v9623_v45 = vmul.f32 %v16146_v2, %v16142_v44  ;;  %v15871_v11 = vpop.permute.xlu0 %15870  ;;  %v15877_v2 = vunpack.i.l.bf16 %v15876_v23 }
0x3cde   : > { %14978 = vmatprep.subr.bf16.mxu1 %v14977_v26  ;;  %v15872_v39 = vunpack.i.l.bf16 %v15871_v11 }
0x3cdf   : > { %14980 = vmatpush3.bf16.msra.mxu1 %v14977_v26  ;;  %v15878_v26 = vunpack.i.h.bf16 %v15876_v23 }
0x3ce0   : > { %v16148_v60 = vpop.eup %16147  ;;  %14705 = vmatprep.subr.bf16.mxu1 %v16518_v19  ;;  %v9773_v7 = vsel %vm7654_vm4, %v9771_v20, %v15872_v39  ;;  %v9959_v39 = vld [vmem:[%s16978_s2 + $0x200] sm:$0xff] }
0x3ce1   : > { %v9622_v18 = vmul.f32 %v16148_v60, %v16144_v50  ;;  %v15881_v44 = vpop.permute.xlu0 %15880  ;;  %v9770_v50 = vsel %vm7648_vm2, %v9768_v30, %v15863_v15  ;;  %v9775_v60 = vsel %vm7657_vm5, %v9773_v7, %v15877_v2  ;;  %v9952_v30 = vld [vmem:[%s16978_s2 + $0x1a8] sm:$0xff]  ;;  %v9967_v20 = vld [vmem:[%s16978_s2 + $0x260] sm:$0xff] }
0x3ce2   : > { %v9772_v54 = vsel %vm7651_vm3, %v9770_v50, %v15868_v1  ;;  %v15883_v22 = vunpack.i.h.bf16 %v15881_v44  ;;  %v15882_v5 = vunpack.i.l.bf16 %v15881_v44  ;;  %v9960_v44 = vld [vmem:[%s16978_s2 + $0x208] sm:$0xff] }
0x3ce3   : > { %14702 = vmatprep.mubr.msk.f32.mxu1 %vm5965_vm0, %v9622_v18  ;;  %v13401_v50 = vcombine.low %v9952_v30, %v9960_v44  ;;  %v13402_v23 = vcombine.high %v9952_v30, %v9960_v44 }
0x3ce4   : > { %14703 = vmatmul.mubr.msk.f32.vlgmr.msra.gmra.mrb[32].mxu1 %vm5965_vm0, %v9623_v45  ;;  %v9777_v53 = vsel %vm7660_vm6, %v9775_v60, %v15882_v5  ;;  %v9991_v60 = vld [vmem:[%s16978_s2 + $0x380] sm:$0xff] }
0x3ce5   : > { %14721 = vmatprep.mubr.msk.bf16.mxu1 %vm16519_vm15, %v16518_v19  ;;  %14706 = vmatpush3.bf16.msra.mxu1 %v13357_v10 }
0x3ce6   : > { %14707 = vmatprep.subr.bf16.mxu1 %v16518_v19 }
0x3ce9   : > { %14708 = vmatpush3.bf16.msra.mxu1 %v13358_v24 }
0x3cea   : > { %14709 = vmatprep.subr.bf16.mxu1 %v16518_v19 }
0x3ced   : > { %14710 = vmatpush3.bf16.msra.mxu1 %v13359_v36 }
0x3cee   : > { %14711 = vmatprep.subr.bf16.mxu1 %v16518_v19 }
0x3cf1   : > { %14712 = vmatpush3.bf16.msra.mxu1 %v13360_v48 }
0x3cf2   : > { %14713 = vmatprep.subr.bf16.mxu1 %v16518_v19 }
0x3cf5   : > { %14714 = vmatpush3.bf16.msra.mxu1 %v13361_v34 }
0x3cf6   : > { %14715 = vmatprep.subr.bf16.mxu1 %v16518_v19 }
0x3cf9   : > { %14716 = vmatpush3.bf16.msra.mxu1 %v13362_v29  ;;  %v9920_v29 = vld [vmem:[%s16978_s2 + $0x28] sm:$0xff] }
0x3cfa   : > { %14717 = vmatprep.subr.bf16.mxu1 %v16518_v19 }
0x3cfd   : > { %14718 = vmatpush3.bf16.msra.mxu1 %v13363_v37  ;;  %v9928_v37 = vld [vmem:[%s16978_s2 + $0x88] sm:$0xff] }
0x3cfe   : > { %14719 = vmatprep.subr.bf16.mxu1 %v16518_v19  ;;  %v15873_v19 = vunpack.i.h.bf16 %v15871_v11 }
0x3d00   : > { %v9774_v32 = vsel %vm7654_vm4, %v9772_v54, %v15873_v19  ;;  %v9951_v19 = vld [vmem:[%s16978_s2 + $0x1a0] sm:$0xff] }
0x3d01   : > { %14720 = vmatpush3.bf16.msra.mxu1 %v13364_v35  ;;  %v9776_v18 = vsel %vm7657_vm5, %v9774_v32, %v15878_v26  ;;  %v13369_v35 = vcombine.low %v9920_v29, %v9928_v37  ;;  %v13400_v13 = vcombine.high %v9951_v19, %v9959_v39  ;;  %v13399_v21 = vcombine.low %v9951_v19, %v9959_v39  ;;  %v9975_v54 = vld [vmem:[%s16978_s2 + $0x2c0] sm:$0xff]  ;;  %v9968_v32 = vld [vmem:[%s16978_s2 + $0x268] sm:$0xff] }
0x3d02   : > { %v9778_v55 = vsel %vm7660_vm6, %v9776_v18, %v15883_v22  ;;  %v13416_v7 = vcombine.high %v9967_v20, %v9975_v54  ;;  %v9976_v22 = vld [vmem:[%s16978_s2 + $0x2c8] sm:$0xff]  ;;  %v13415_v5 = vcombine.low %v9967_v20, %v9975_v54 }
0x3d03   : > { %v13417_v26 = vcombine.low %v9968_v32, %v9976_v22  ;;  %v13418_v2 = vcombine.high %v9968_v32, %v9976_v22  ;;  %v9984_v18 = vld [vmem:[%s16978_s2 + $0x328] sm:$0xff] }
0x3db7   : > { %v14704_v62 = vpop.f32.mrb[32].mxu1 }
0x3db8   : > { %v9702_v9 = vpop.f32.mrb[33].mxu1 }
0x3db9   : > { %v15884_v14 = vpack.i.bf16 %v14704_v62, %v9702_v9  ;;  %v13370_v62 = vcombine.high %v9920_v29, %v9928_v37  ;;  %v13384_v9 = vcombine.high %v9935_v40, %v9943_v42  ;;  %v10031_v37 = vld [vmem:[%s16978_s2 + $0x560] sm:$0xff] }
0x3dbb   : > { %15885 = vrot.lane.b32.xlu1 %v15884_v14, %s16521_s20  ;;  %v9944_v14 = vld [vmem:[%s16978_s2 + $0x148] sm:$0xff]  ;;  %10815 = vmatprep.subr.bf16.mxu1 %v13370_v62 }
0x3dbc   : > { %10774 = vmatprep.subr.bf16.mxu0 %v13384_v9  ;;  %v10040_v62 = vld [vmem:[%s16978_s2 + $0x5c8] sm:$0xff] }
0x3e2d   : > { %v15886_v51 = vpop.permute.xlu1 %15885 }
0x3e2e   : > { %v15888_v45 = vunpack.i.h.bf16 %v15886_v51  ;;  %v15887_v17 = vunpack.i.l.bf16 %v15886_v51  ;;  %v9983_v51 = vld [vmem:[%s16978_s2 + $0x320] sm:$0xff] }
0x3e30   : > { %v9780_v10 = vsel %vm7663_vm7, %v9778_v55, %v15888_v45  ;;  %v9779_v38 = vsel %vm7663_vm7, %v9777_v53, %v15887_v17  ;;  %v13432_v45 = vcombine.high %v9983_v51, %v9991_v60  ;;  %v9992_v17 = vld [vmem:[%s16978_s2 + $0x388] sm:$0xff]  ;;  %v13431_v53 = vcombine.low %v9983_v51, %v9991_v60  ;;  %v9946_v51 = vld [vmem:[%s16978_s2 + $0x158] sm:$0xff] }
0x3e31   : > { %v9781_v24 = vpack.c.bf16 %v9780_v10, %v9779_v38  ;;  %v13433_v55 = vcombine.low %v9984_v18, %v9992_v17  ;;  %v13434_v10 = vcombine.high %v9984_v18, %v9992_v17  ;;  %v9999_v38 = vld [vmem:[%s16978_s2 + $0x3e0] sm:$0xff] }
0x3e33   : > { %14722 = vmatmul.mubr.bf16.vlgmr.msra.gmra.mrb[36].mxu1 %v9781_v24  ;;  %v10007_v24 = vld [vmem:[%s16978_s2 + $0x440] sm:$0xff] }
0x3e34   : > { %10847 = vmatprep.mubr.bf16.mxu1 %v16517_v6  ;;  %10816 = vmatpush1.bf16.msra.mxu1 %v13369_v35 }
0x3f06   : > { %v9870_v46 = vpop.f32.mrb[36].mxu1 }
0x3f07   : > { %v9871_v36 = vadd.f32 %v13356_v47, %v9870_v46  ;;  %v14723_v25 = vpop.f32.mrb[37].mxu1  ;;  %v13448_v46 = vcombine.high %v9999_v38, %v10007_v24 }
0x3f08   : > { %v9873_v3 = vpop.f32.mrb[38].mxu1  ;;  %v13447_v25 = vcombine.low %v9999_v38, %v10007_v24 }
0x3f09   : > { %v9877_v48 = vadd.f32 %v9871_v36, %v18121_v8  ;;  %v9874_v41 = vadd.f32 %v13356_v47, %v9873_v3  ;;  %v14724_v49 = vpop.f32.mrb[39].mxu1  ;;  %v9936_v8 = vld [vmem:[%s16978_s2 + $0xe8] sm:$0xff] }
0x3f0a   : > { %v13386_v27 = vcombine.high %v9936_v8, %v9944_v14  ;;  %v13385_v56 = vcombine.low %v9936_v8, %v9944_v14  ;;  %v10000_v47 = vld [vmem:[%s16978_s2 + $0x3e8] sm:$0xff]  ;;  %v10023_v49 = vld [vmem:[%s16978_s2 + $0x500] sm:$0xff] }
0x3f0b   : > { %v9878_v34 = vadd.f32 %v9874_v41, %v18123_v61  ;;  %9881 = vadd.xlane.f32.xlu0 %v9877_v48  ;;  %v13383_v61 = vcombine.low %v9935_v40, %v9943_v42  ;;  %v10008_v36 = vld [vmem:[%s16978_s2 + $0x448] sm:$0xff]  ;;  %v10015_v41 = vld [vmem:[%s16978_s2 + $0x4a0] sm:$0xff] }
0x3f0c   : > { %10817 = vmatprep.subr.bf16.mxu1 %v13386_v27  ;;  %v13449_v3 = vcombine.low %v10000_v47, %v10008_v36  ;;  %v13464_v43 = vcombine.high %v10015_v41, %v10023_v49  ;;  %v13463_v29 = vcombine.low %v10015_v41, %v10023_v49  ;;  %v10039_v40 = vld [vmem:[%s16978_s2 + $0x5c0] sm:$0xff]  ;;  %v10032_v42 = vld [vmem:[%s16978_s2 + $0x568] sm:$0xff]  ;;  %v9921_v27 = vld [vmem:[%s16978_s2 + $0x30] sm:$0xff] }
0x3f0d   : > { %9883 = vadd.xlane.f32.xlu1 %v9878_v34  ;;  %10775 = vmatpush1.bf16.msra.mxu0 %v13383_v61  ;;  %v13480_v35 = vcombine.high %v10031_v37, %v10039_v40  ;;  %v13479_v9 = vcombine.low %v10031_v37, %v10039_v40  ;;  %v13481_v8 = vcombine.low %v10032_v42, %v10040_v62  ;;  %v9929_v61 = vld [vmem:[%s16978_s2 + $0x90] sm:$0xff] }
0x3f0e   : > { %10818 = vmatpush1.bf16.msra.mxu1 %v13385_v56  ;;  %10776 = vmatprep.subr.bf16.mxu0 %v13400_v13  ;;  %v13482_v14 = vcombine.high %v10032_v42, %v10040_v62  ;;  %v9922_v56 = vld [vmem:[%s16978_s2 + $0x38] sm:$0xff]  ;;  %v10001_v62 = vld [vmem:[%s16978_s2 + $0x3f0] sm:$0xff] }
0x3f0f   : > { %10819 = vmatprep.subr.bf16.mxu1 %v13402_v23  ;;  %v13365_v23 = vld [vmem:[%s16990_s22 + $0x1b] ss:$0 sm:$0xff] }
0x3f11   : > { %10777 = vmatpush1.bf16.msra.mxu0 %v13399_v21 }
0x3f12   : > { %10820 = vmatpush1.bf16.msra.mxu1 %v13401_v50  ;;  %10778 = vmatprep.subr.bf16.mxu0 %v13416_v7  ;;  %v13366_v7 = vld [vmem:[%s16990_s22 + $0x1c] ss:$0 sm:$0xff] }
0x3f13   : > { %10821 = vmatprep.subr.bf16.mxu1 %v13418_v2  ;;  %v9938_v2 = vld [vmem:[%s16978_s2 + $0xf8] sm:$0xff] }
0x3f14   : > { %v13390_v17 = vcombine.high %v9938_v2, %v9946_v51  ;;  %v13389_v24 = vcombine.low %v9938_v2, %v9946_v51 }
0x3f15   : > { %10779 = vmatpush1.bf16.msra.mxu0 %v13415_v5  ;;  %v9937_v5 = vld [vmem:[%s16978_s2 + $0xf0] sm:$0xff] }
0x3f16   : > { %10822 = vmatpush1.bf16.msra.mxu1 %v13417_v26  ;;  %10780 = vmatprep.subr.bf16.mxu0 %v13432_v45  ;;  %v9945_v26 = vld [vmem:[%s16978_s2 + $0x150] sm:$0xff] }
0x3f17   : > { %10823 = vmatprep.subr.bf16.mxu1 %v13434_v10  ;;  %v13388_v45 = vcombine.high %v9937_v5, %v9945_v26  ;;  %v9962_v10 = vld [vmem:[%s16978_s2 + $0x218] sm:$0xff]  ;;  %v13387_v38 = vcombine.low %v9937_v5, %v9945_v26  ;;  %v9924_v5 = vld [vmem:[%s16978_s2 + $0x48] sm:$0xff] }
0x3f18   : > { %v9932_v26 = vld [vmem:[%s16978_s2 + $0xa8] sm:$0xff] }
0x3f19   : > { %10781 = vmatpush1.bf16.msra.mxu0 %v13431_v53  ;;  %v9953_v53 = vld [vmem:[%s16978_s2 + $0x1b0] sm:$0xff] }
0x3f1a   : > { %10824 = vmatpush1.bf16.msra.mxu1 %v13433_v55  ;;  %10782 = vmatprep.subr.bf16.mxu0 %v13448_v46  ;;  %v9954_v55 = vld [vmem:[%s16978_s2 + $0x1b8] sm:$0xff] }
0x3f1b   : > { %v13406_v46 = vcombine.high %v9954_v55, %v9962_v10  ;;  %v13405_v49 = vcombine.low %v9954_v55, %v9962_v10  ;;  %v9940_v55 = vld [vmem:[%s16978_s2 + $0x108] sm:$0xff] }
0x3f1c   : > { %v9948_v10 = vld [vmem:[%s16978_s2 + $0x168] sm:$0xff] }
0x3f1d   : > { %10783 = vmatpush1.bf16.msra.mxu0 %v13447_v25  ;;  %v9977_v25 = vld [vmem:[%s16978_s2 + $0x2d0] sm:$0xff] }
0x3f1e   : > { %10784 = vmatprep.subr.bf16.mxu0 %v13464_v43 }
0x3f21   : > { %10785 = vmatpush1.bf16.msra.mxu0 %v13463_v29  ;;  %v9993_v29 = vld [vmem:[%s16978_s2 + $0x390] sm:$0xff] }
0x3f22   : > { %10786 = vmatprep.subr.bf16.mxu0 %v13480_v35 }
0x3f25   : > { %10787 = vmatpush1.bf16.msra.mxu0 %v13479_v9  ;;  %v10009_v9 = vld [vmem:[%s16978_s2 + $0x450] sm:$0xff] }
0x3f98   : > { %v9882_v11 = vpop.xlane.xlu0 %9881 }
0x3f99   : > { %v9885_v58 = vmul.f32 0.0078125, %v9882_v11  ;;  %v13372_v11 = vcombine.high %v9921_v27, %v9929_v61 }
0x3f9a   : > { %v9884_v57 = vpop.xlane.xlu1 %9883 }
0x3f9b   : > { %v18428_v16 = vsub.f32 %v9877_v48, %v9885_v58  ;;  %v9886_v15 = vmul.f32 0.0078125, %v9884_v57  ;;  %v13450_v48 = vcombine.high %v10000_v47, %v10008_v36  ;;  %v9930_v58 = vld [vmem:[%s16978_s2 + $0x98] sm:$0xff]  ;;  %v13371_v57 = vcombine.low %v9921_v27, %v9929_v61  ;;  %10858 = vmatprep.subr.bf16.mxu0 %v13372_v11  ;;  %v9969_v36 = vld [vmem:[%s16978_s2 + $0x270] sm:$0xff] }
0x3f9c   : > { %v13419_v37 = vcombine.low %v9969_v36, %v9977_v25 }
0x3f9d   : > { %v18430_v0 = vsub.f32 %v9878_v34, %v9886_v15  ;;  %v9889_v1 = vmul.f32 %v18428_v16, %v18428_v16  ;;  %10825 = vmatprep.subr.bf16.mxu1 %v13450_v48  ;;  %v10016_v34 = vld [vmem:[%s16978_s2 + $0x4a8] sm:$0xff]  ;;  %v13373_v15 = vcombine.low %v9922_v56, %v9930_v58  ;;  %v9978_v48 = vld [vmem:[%s16978_s2 + $0x2d8] sm:$0xff] }
0x3f9e   : > { %10826 = vmatpush1.bf16.msra.mxu1 %v13449_v3  ;;  %v13465_v4 = vcombine.low %v10016_v34, %v10024_v28  ;;  %v13466_v52 = vcombine.high %v10016_v34, %v10024_v28  ;;  %v9970_v3 = vld [vmem:[%s16978_s2 + $0x278] sm:$0xff]  ;;  %v13420_v34 = vcombine.high %v9969_v36, %v9977_v25  ;;  %v9985_v28 = vld [vmem:[%s16978_s2 + $0x330] sm:$0xff]  ;;  %v9955_v36 = vld [vmem:[%s16978_s2 + $0x1c0] sm:$0xff] }
0x3f9f   : > { %9891 = vadd.xlane.f32.xlu0 %v9889_v1  ;;  %v9890_v12 = vmul.f32 %v18430_v0, %v18430_v0  ;;  %v13374_v1 = vcombine.high %v9922_v56, %v9930_v58  ;;  %v13422_v43 = vcombine.high %v9970_v3, %v9978_v48  ;;  %v13421_v40 = vcombine.low %v9970_v3, %v9978_v48  ;;  %v10017_v58 = vld [vmem:[%s16978_s2 + $0x4b0] sm:$0xff]  ;;  %v9963_v25 = vld [vmem:[%s16978_s2 + $0x220] sm:$0xff]  ;;  %v9956_v3 = vld [vmem:[%s16978_s2 + $0x1c8] sm:$0xff] }
0x3fa0   : > { %10827 = vmatprep.subr.bf16.mxu1 %v13466_v52  ;;  %v9994_v52 = vld [vmem:[%s16978_s2 + $0x398] sm:$0xff]  ;;  %v13436_v42 = vcombine.high %v9985_v28, %v9993_v29  ;;  %v13435_v27 = vcombine.low %v9985_v28, %v9993_v29  ;;  %v13452_v56 = vcombine.high %v10001_v62, %v10009_v9  ;;  %v9964_v48 = vld [vmem:[%s16978_s2 + $0x228] sm:$0xff]  ;;  %v9971_v28 = vld [vmem:[%s16978_s2 + $0x280] sm:$0xff] }
0x3fa1   : > { %v9979_v29 = vld [vmem:[%s16978_s2 + $0x2e0] sm:$0xff] }
0x3fa2   : > { %10828 = vmatpush1.bf16.msra.mxu1 %v13465_v4  ;;  %v9986_v4 = vld [vmem:[%s16978_s2 + $0x338] sm:$0xff] }
0x3fa3   : > { %9893 = vadd.xlane.f32.xlu0 %v9890_v12  ;;  %10829 = vmatprep.subr.bf16.mxu1 %v13482_v14  ;;  %v13438_v35 = vcombine.high %v9986_v4, %v9994_v52  ;;  %v10010_v14 = vld [vmem:[%s16978_s2 + $0x458] sm:$0xff]  ;;  %v13437_v61 = vcombine.low %v9986_v4, %v9994_v52  ;;  %v9972_v4 = vld [vmem:[%s16978_s2 + $0x288] sm:$0xff] }
0x3fa4   : > { %v9980_v52 = vld [vmem:[%s16978_s2 + $0x2e8] sm:$0xff] }
0x3fa6   : > { %10830 = vmatpush1.bf16.msra.mxu1 %v13481_v8  ;;  %v10002_v8 = vld [vmem:[%s16978_s2 + $0x3f8] sm:$0xff] }
0x3fa7   : > { %10901 = vmatprep.subr.bf16.mxu1 %v13374_v1  ;;  %v13454_v11 = vcombine.high %v10002_v8, %v10010_v14  ;;  %v10026_v1 = vld [vmem:[%s16978_s2 + $0x518] sm:$0xff] }
0x402c   : > { %v9892_v12 = vpop.xlane.xlu0 %9891 }
0x402d   : > { %v9895_v19 = vmul.f32 0.0078125, %v9892_v12  ;;  %v13451_v12 = vcombine.low %v10001_v62, %v10009_v9  ;;  %v9987_v62 = vld [vmem:[%s16978_s2 + $0x340] sm:$0xff] }
0x402e   : > { %v9995_v9 = vld [vmem:[%s16978_s2 + $0x3a0] sm:$0xff] }
0x402f   : > { %v9897_v39 = vadd.f32 1e-05, %v9895_v19  ;;  %v13453_v19 = vcombine.low %v10002_v8, %v10010_v14  ;;  %v9988_v8 = vld [vmem:[%s16978_s2 + $0x348] sm:$0xff] }
0x4030   : > { %v9894_v30 = vpop.xlane.xlu0 %9893  ;;  %v9996_v14 = vld [vmem:[%s16978_s2 + $0x3a8] sm:$0xff] }
0x4031   : > { %16149 = vrsqrt.f32 %v9897_v39  ;;  %v9896_v13 = vmul.f32 0.0078125, %v9894_v30 }
0x4033   : > { %v9898_v44 = vadd.f32 1e-05, %v9896_v13  ;;  %v10033_v13 = vld [vmem:[%s16978_s2 + $0x570] sm:$0xff] }
0x4035   : > { %16151 = vrsqrt.f32 %v9898_v44  ;;  %v10041_v44 = vld [vmem:[%s16978_s2 + $0x5d0] sm:$0xff] }
0x4036   : > { %v13483_v2 = vcombine.low %v10033_v13, %v10041_v44 }
0x403b   : > { %v16150_v21 = vpop.eup %16149 }
0x403c   : > { %v9901_v50 = vmul.f32 %v16150_v21, %v18428_v16  ;;  %v10034_v21 = vld [vmem:[%s16978_s2 + $0x578] sm:$0xff] }
0x403e   : > { %v9909_v54 = vmul.f32 %v13365_v23, %v9901_v50  ;;  %v10042_v50 = vld [vmem:[%s16978_s2 + $0x5d8] sm:$0xff] }
0x403f   : > { %v16152_v20 = vpop.eup %16151  ;;  %v13485_v51 = vcombine.low %v10034_v21, %v10042_v50 }
0x4040   : > { %v9902_v32 = vmul.f32 %v16152_v20, %v18430_v0  ;;  %v18472_v60 = vadd.f32 %v13366_v7, %v9909_v54  ;;  %v9961_v0 = vld [vmem:[%s16978_s2 + $0x210] sm:$0xff]  ;;  %v13484_v54 = vcombine.high %v10033_v13, %v10041_v44  ;;  %v10019_v13 = vld [vmem:[%s16978_s2 + $0x4c0] sm:$0xff] }
0x4041   : > { %v13404_v47 = vcombine.high %v9953_v53, %v9961_v0  ;;  %v13403_v41 = vcombine.low %v9953_v53, %v9961_v0  ;;  %v9939_v53 = vld [vmem:[%s16978_s2 + $0x100] sm:$0xff] }
0x4042   : > { %v9910_v22 = vmul.f32 %v13365_v23, %v9902_v32  ;;  %v13486_v32 = vcombine.high %v10034_v21, %v10042_v50  ;;  %v9947_v0 = vld [vmem:[%s16978_s2 + $0x160] sm:$0xff]  ;;  %v10020_v21 = vld [vmem:[%s16978_s2 + $0x4c8] sm:$0xff] }
0x4043   : > { %v10027_v44 = vld [vmem:[%s16978_s2 + $0x520] sm:$0xff]  ;;  %v10028_v50 = vld [vmem:[%s16978_s2 + $0x528] sm:$0xff] }
0x4044   : > { %v18474_v18 = vadd.f32 %v13366_v7, %v9910_v22  ;;  %v9923_v7 = vld [vmem:[%s16978_s2 + $0x40] sm:$0xff] }
0x4045   : > { %v9931_v22 = vld [vmem:[%s16978_s2 + $0xa0] sm:$0xff] }
0x4046   : > { %v18478_v16 = vpack.c.bf16 %v18474_v18, %v18472_v60 }
0x4048   : > { %10805 = vmatmul.mubr.bf16.vlgmr.msra.gmra.mrb[52].mxu0 %v18478_v16  ;;  %10848 = vmatmul.mubr.bf16.vlgmr.msra.gmra.mrb[40].mxu1 %v18478_v16 }
0x4049   : > { %10859 = vmatpush1.bf16.msra.mxu0 %v13371_v57  ;;  %10902 = vmatpush1.bf16.msra.mxu1 %v13373_v15  ;;  %v10025_v57 = vld [vmem:[%s16978_s2 + $0x510] sm:$0xff]  ;;  %v10018_v15 = vld [vmem:[%s16978_s2 + $0x4b8] sm:$0xff] }
0x404a   : > { %10860 = vmatprep.subr.bf16.mxu0 %v13388_v45  ;;  %10903 = vmatprep.subr.bf16.mxu1 %v13390_v17  ;;  %v13468_v39 = vcombine.high %v10017_v58, %v10025_v57  ;;  %v13470_v30 = vcombine.high %v10018_v15, %v10026_v1  ;;  %v13467_v23 = vcombine.low %v10017_v58, %v10025_v57  ;;  %v10003_v58 = vld [vmem:[%s16978_s2 + $0x400] sm:$0xff] }
0x404b   : > { %10890 = vmatprep.mubr.bf16.mxu0 %v16517_v6  ;;  %10933 = vmatprep.mubr.bf16.mxu1 %v16517_v6  ;;  %v13469_v20 = vcombine.low %v10018_v15, %v10026_v1  ;;  %v13376_v45 = vcombine.high %v9923_v7, %v9931_v22  ;;  %v13378_v17 = vcombine.high %v9924_v5, %v9932_v26  ;;  %v10011_v57 = vld [vmem:[%s16978_s2 + $0x460] sm:$0xff]  ;;  %v10004_v15 = vld [vmem:[%s16978_s2 + $0x408] sm:$0xff] }
0x404c   : > { %v10012_v1 = vld [vmem:[%s16978_s2 + $0x468] sm:$0xff] }
0x404d   : > { %10861 = vmatpush1.bf16.msra.mxu0 %v13387_v38  ;;  %10904 = vmatpush1.bf16.msra.mxu1 %v13389_v24  ;;  %v13375_v38 = vcombine.low %v9923_v7, %v9931_v22  ;;  %v13377_v24 = vcombine.low %v9924_v5, %v9932_v26  ;;  %v10035_v7 = vld [vmem:[%s16978_s2 + $0x580] sm:$0xff]  ;;  %v10036_v5 = vld [vmem:[%s16978_s2 + $0x588] sm:$0xff] }
0x404e   : > { %10862 = vmatprep.subr.bf16.mxu0 %v13404_v47  ;;  %10905 = vmatprep.subr.bf16.mxu1 %v13406_v46  ;;  %v13392_v47 = vcombine.high %v9939_v53, %v9947_v0  ;;  %v13394_v46 = vcombine.high %v9940_v55, %v9948_v10  ;;  %v10043_v22 = vld [vmem:[%s16978_s2 + $0x5e0] sm:$0xff]  ;;  %v10044_v26 = vld [vmem:[%s16978_s2 + $0x5e8] sm:$0xff] }
0x4051   : > { %10863 = vmatpush1.bf16.msra.mxu0 %v13403_v41  ;;  %10906 = vmatpush1.bf16.msra.mxu1 %v13405_v49  ;;  %v13391_v41 = vcombine.low %v9939_v53, %v9947_v0  ;;  %v13393_v49 = vcombine.low %v9940_v55, %v9948_v10  ;;  %v9925_v53 = vld [vmem:[%s16978_s2 + $0x50] sm:$0xff]  ;;  %v9926_v55 = vld [vmem:[%s16978_s2 + $0x58] sm:$0xff] }
0x4052   : > { %10864 = vmatprep.subr.bf16.mxu0 %v13420_v34  ;;  %10907 = vmatprep.subr.bf16.mxu1 %v13422_v43  ;;  %v13408_v34 = vcombine.high %v9955_v36, %v9963_v25  ;;  %v13410_v43 = vcombine.high %v9956_v3, %v9964_v48  ;;  %v9933_v0 = vld [vmem:[%s16978_s2 + $0xb0] sm:$0xff]  ;;  %v9934_v10 = vld [vmem:[%s16978_s2 + $0xb8] sm:$0xff] }
0x4055   : > { %10865 = vmatpush1.bf16.msra.mxu0 %v13419_v37  ;;  %10908 = vmatpush1.bf16.msra.mxu1 %v13421_v40  ;;  %v13407_v37 = vcombine.low %v9955_v36, %v9963_v25  ;;  %v13409_v40 = vcombine.low %v9956_v3, %v9964_v48  ;;  %v9941_v36 = vld [vmem:[%s16978_s2 + $0x110] sm:$0xff]  ;;  %v9942_v3 = vld [vmem:[%s16978_s2 + $0x118] sm:$0xff] }
0x4056   : > { %10866 = vmatprep.subr.bf16.mxu0 %v13436_v42  ;;  %10909 = vmatprep.subr.bf16.mxu1 %v13438_v35  ;;  %v13424_v42 = vcombine.high %v9971_v28, %v9979_v29  ;;  %v13426_v35 = vcombine.high %v9972_v4, %v9980_v52  ;;  %v9949_v25 = vld [vmem:[%s16978_s2 + $0x170] sm:$0xff]  ;;  %v9950_v48 = vld [vmem:[%s16978_s2 + $0x178] sm:$0xff] }
0x4059   : > { %10867 = vmatpush1.bf16.msra.mxu0 %v13435_v27  ;;  %10910 = vmatpush1.bf16.msra.mxu1 %v13437_v61  ;;  %v13423_v27 = vcombine.low %v9971_v28, %v9979_v29  ;;  %v13425_v61 = vcombine.low %v9972_v4, %v9980_v52  ;;  %v9957_v28 = vld [vmem:[%s16978_s2 + $0x1d0] sm:$0xff]  ;;  %v9958_v4 = vld [vmem:[%s16978_s2 + $0x1d8] sm:$0xff] }
0x405a   : > { %10868 = vmatprep.subr.bf16.mxu0 %v13452_v56  ;;  %10911 = vmatprep.subr.bf16.mxu1 %v13454_v11  ;;  %v13440_v56 = vcombine.high %v9987_v62, %v9995_v9  ;;  %v13442_v11 = vcombine.high %v9988_v8, %v9996_v14  ;;  %v9965_v29 = vld [vmem:[%s16978_s2 + $0x230] sm:$0xff]  ;;  %v9966_v52 = vld [vmem:[%s16978_s2 + $0x238] sm:$0xff] }
0x405d   : > { %10869 = vmatpush1.bf16.msra.mxu0 %v13451_v12  ;;  %10912 = vmatpush1.bf16.msra.mxu1 %v13453_v19  ;;  %v13439_v12 = vcombine.low %v9987_v62, %v9995_v9  ;;  %v13441_v19 = vcombine.low %v9988_v8, %v9996_v14  ;;  %v9973_v62 = vld [vmem:[%s16978_s2 + $0x290] sm:$0xff]  ;;  %v9974_v8 = vld [vmem:[%s16978_s2 + $0x298] sm:$0xff] }
0x405e   : > { %10870 = vmatprep.subr.bf16.mxu0 %v13468_v39  ;;  %10913 = vmatprep.subr.bf16.mxu1 %v13470_v30  ;;  %v13456_v39 = vcombine.high %v10003_v58, %v10011_v57  ;;  %v13458_v30 = vcombine.high %v10004_v15, %v10012_v1  ;;  %v9981_v9 = vld [vmem:[%s16978_s2 + $0x2f0] sm:$0xff]  ;;  %v9982_v14 = vld [vmem:[%s16978_s2 + $0x2f8] sm:$0xff] }
0x4061   : > { %10871 = vmatpush1.bf16.msra.mxu0 %v13467_v23  ;;  %10914 = vmatpush1.bf16.msra.mxu1 %v13469_v20  ;;  %v13455_v23 = vcombine.low %v10003_v58, %v10011_v57  ;;  %v13457_v20 = vcombine.low %v10004_v15, %v10012_v1  ;;  %v9989_v58 = vld [vmem:[%s16978_s2 + $0x350] sm:$0xff]  ;;  %v9990_v15 = vld [vmem:[%s16978_s2 + $0x358] sm:$0xff] }
0x4062   : > { %10872 = vmatprep.subr.bf16.mxu0 %v13484_v54  ;;  %10915 = vmatprep.subr.bf16.mxu1 %v13486_v32  ;;  %v13472_v54 = vcombine.high %v10019_v13, %v10027_v44  ;;  %v13474_v32 = vcombine.high %v10020_v21, %v10028_v50  ;;  %v9997_v57 = vld [vmem:[%s16978_s2 + $0x3b0] sm:$0xff]  ;;  %v9998_v1 = vld [vmem:[%s16978_s2 + $0x3b8] sm:$0xff] }
0x4065   : > { %10873 = vmatpush1.bf16.msra.mxu0 %v13483_v2  ;;  %10916 = vmatpush1.bf16.msra.mxu1 %v13485_v51  ;;  %v13471_v2 = vcombine.low %v10019_v13, %v10027_v44  ;;  %v13473_v51 = vcombine.low %v10020_v21, %v10028_v50  ;;  %v10013_v13 = vld [vmem:[%s16978_s2 + $0x470] sm:$0xff]  ;;  %v10006_v44 = vld [vmem:[%s16978_s2 + $0x418] sm:$0xff]  ;;  %v13443_v50 = vcombine.low %v9989_v58, %v9997_v57 }
0x4066   : > { %10944 = vmatprep.subr.bf16.mxu0 %v13376_v45  ;;  %10987 = vmatprep.subr.bf16.mxu1 %v13378_v17  ;;  %v13488_v45 = vcombine.high %v10035_v7, %v10043_v22  ;;  %v13490_v17 = vcombine.high %v10036_v5, %v10044_v26  ;;  %v10014_v21 = vld [vmem:[%s16978_s2 + $0x478] sm:$0xff] }
0x4068   : > { %10891 = vmatmul.mubr.bf16.vlgmr.msra.gmra.mrb[56].mxu0 %v18478_v16  ;;  %10934 = vmatmul.mubr.bf16.vlgmr.msra.gmra.mrb[44].mxu1 %v18478_v16 }
0x4069   : > { %10945 = vmatpush1.bf16.msra.mxu0 %v13375_v38  ;;  %10988 = vmatpush1.bf16.msra.mxu1 %v13377_v24  ;;  %v13487_v38 = vcombine.low %v10035_v7, %v10043_v22  ;;  %v13489_v24 = vcombine.low %v10036_v5, %v10044_v26  ;;  %v10029_v7 = vld [vmem:[%s16978_s2 + $0x530] sm:$0xff]  ;;  %v10022_v22 = vld [vmem:[%s16978_s2 + $0x4d8] sm:$0xff] }
0x406a   : > { %10946 = vmatprep.subr.bf16.mxu0 %v13392_v47  ;;  %10989 = vmatprep.subr.bf16.mxu1 %v13394_v46  ;;  %v13380_v47 = vcombine.high %v9925_v53, %v9933_v0  ;;  %v13382_v46 = vcombine.high %v9926_v55, %v9934_v10  ;;  %v10030_v5 = vld [vmem:[%s16978_s2 + $0x538] sm:$0xff] }
0x406b   : > { %10976 = vmatprep.mubr.bf16.mxu0 %v16517_v6  ;;  %11019 = vmatprep.mubr.bf16.mxu1 %v16517_v6 }
0x406d   : > { %10947 = vmatpush1.bf16.msra.mxu0 %v13391_v41  ;;  %10990 = vmatpush1.bf16.msra.mxu1 %v13393_v49  ;;  %v13379_v41 = vcombine.low %v9925_v53, %v9933_v0  ;;  %v13381_v49 = vcombine.low %v9926_v55, %v9934_v10  ;;  %v10045_v53 = vld [vmem:[%s16978_s2 + $0x5f0] sm:$0xff]  ;;  %v10038_v0 = vld [vmem:[%s16978_s2 + $0x598] sm:$0xff] }
0x406e   : > { %10948 = vmatprep.subr.bf16.mxu0 %v13408_v34  ;;  %10991 = vmatprep.subr.bf16.mxu1 %v13410_v43  ;;  %v13396_v34 = vcombine.high %v9941_v36, %v9949_v25  ;;  %v13398_v43 = vcombine.high %v9942_v3, %v9950_v48  ;;  %v10046_v55 = vld [vmem:[%s16978_s2 + $0x5f8] sm:$0xff] }
0x4071   : > { %10949 = vmatpush1.bf16.msra.mxu0 %v13407_v37  ;;  %10992 = vmatpush1.bf16.msra.mxu1 %v13409_v40  ;;  %v13395_v37 = vcombine.low %v9941_v36, %v9949_v25  ;;  %v13397_v40 = vcombine.low %v9942_v3, %v9950_v48  ;;  %v13493_v36 = vcombine.low %v10038_v0, %v10046_v55  ;;  %v15889_v25 = vld [vmem:[%s16984_s10 + $0x40] sm:$0xff]  }
0x4072   : > { %10950 = vmatprep.subr.bf16.mxu0 %v13424_v42  ;;  %10993 = vmatprep.subr.bf16.mxu1 %v13426_v35  ;;  %v13412_v42 = vcombine.high %v9957_v28, %v9965_v29  ;;  %v13414_v35 = vcombine.high %v9958_v4, %v9966_v52  ;;  %v15890_v3 = vld [vmem:[%s16984_s10 + $0xc0] sm:$0xff]  }
0x4073   : > { %v15891_v48 = vld [vmem:[%s16984_s10] sm:$0xff]  }
0x4075   : > { %10951 = vmatpush1.bf16.msra.mxu0 %v13423_v27  ;;  %10994 = vmatpush1.bf16.msra.mxu1 %v13425_v61  ;;  %v13411_v27 = vcombine.low %v9957_v28, %v9965_v29  ;;  %v13413_v61 = vcombine.low %v9958_v4, %v9966_v52  ;;  %v15896_v28 = vld [vmem:[%s16984_s10 + $0x88] sm:$0xff]   ;;  %v15897_v29 = vld [vmem:[%s16984_s10 + $0x50] sm:$0xff]  }
0x4076   : > { %10952 = vmatprep.subr.bf16.mxu0 %v13440_v56  ;;  %10995 = vmatprep.subr.bf16.mxu1 %v13442_v11  ;;  %v13428_v56 = vcombine.high %v9973_v62, %v9981_v9  ;;  %v13430_v11 = vcombine.high %v9974_v8, %v9982_v14  ;;  %v15898_v4 = vld [vmem:[%s16984_s10 + $0xd0] sm:$0xff]  }
0x4077   : > { %v15899_v52 = vld [vmem:[%s16984_s10 + $0x10] sm:$0xff]  }
0x4079   : > { %10953 = vmatpush1.bf16.msra.mxu0 %v13439_v12  ;;  %10996 = vmatpush1.bf16.msra.mxu1 %v13441_v19  ;;  %v13427_v12 = vcombine.low %v9973_v62, %v9981_v9  ;;  %v13444_v19 = vcombine.high %v9989_v58, %v9997_v57  ;;  %v15905_v62 = vld [vmem:[%s16984_s10 + $0x60] sm:$0xff]   ;;  %v15913_v58 = vld [vmem:[%s16984_s10 + $0x70] sm:$0xff]  }
0x407a   : > { %10954 = vmatprep.subr.bf16.mxu0 %v13456_v39  ;;  %10997 = vmatprep.subr.bf16.mxu1 %v13458_v30  ;;  %v13446_v39 = vcombine.high %v9990_v15, %v9998_v1  ;;  %v10005_v30 = vld [vmem:[%s16978_s2 + $0x410] sm:$0xff]  ;;  %v15906_v9 = vld [vmem:[%s16984_s10 + $0xe0] sm:$0xff]  }
0x407b   : > { %v13459_v26 = vcombine.low %v10005_v30, %v10013_v13  ;;  %v15914_v57 = vld [vmem:[%s16984_s10 + $0xf0] sm:$0xff]  }
0x407d   : > { %10955 = vmatpush1.bf16.msra.mxu0 %v13455_v23  ;;  %10998 = vmatpush1.bf16.msra.mxu1 %v13457_v20  ;;  %v13445_v23 = vcombine.low %v9990_v15, %v9998_v1  ;;  %v13460_v20 = vcombine.high %v10005_v30, %v10013_v13  ;;  %v15915_v15 = vld [vmem:[%s16984_s10 + $0x30] sm:$0xff]   ;;  %v15921_v30 = vld [vmem:[%s16984_s10 + $0x140] sm:$0xff]  }
0x407e   : > { %10956 = vmatprep.subr.bf16.mxu0 %v13472_v54  ;;  %10999 = vmatprep.subr.bf16.mxu1 %v13474_v32  ;;  %v13462_v54 = vcombine.high %v10006_v44, %v10014_v21  ;;  %v10021_v32 = vld [vmem:[%s16978_s2 + $0x4d0] sm:$0xff]  ;;  %v15922_v13 = vld [vmem:[%s16984_s10 + $0x1c0] sm:$0xff]  }
0x407f   : > { %v13475_v10 = vcombine.low %v10021_v32, %v10029_v7  ;;  %v15916_v1 = vld [vmem:[%s16984_s10 + $0xb0] sm:$0xff]  }
0x4081   : > { %10957 = vmatpush1.bf16.msra.mxu0 %v13471_v2  ;;  %11000 = vmatpush1.bf16.msra.mxu1 %v13473_v51  ;;  %v13461_v2 = vcombine.low %v10006_v44, %v10014_v21  ;;  %v13476_v51 = vcombine.high %v10021_v32, %v10029_v7  ;;  %v18617_v44 = vld [vmem:[%s16990_s22 + $0x8] sm:$0xff]  ;;  %v10066_v21 = vsub.s32 3, %v17724_v63 }
0x4082   : > { %10958 = vmatprep.subr.bf16.mxu0 %v13488_v45  ;;  %11001 = vmatprep.subr.bf16.mxu1 %v13490_v17  ;;  %v13478_v45 = vcombine.high %v10022_v22, %v10030_v5  ;;  %v10037_v17 = vld [vmem:[%s16978_s2 + $0x590] sm:$0xff] }
0x4085   : > { %10959 = vmatpush1.bf16.msra.mxu0 %v13487_v38  ;;  %11002 = vmatpush1.bf16.msra.mxu1 %v13489_v24  ;;  %v13477_v38 = vcombine.low %v10022_v22, %v10030_v5  ;;  %v13492_v24 = vcombine.high %v10037_v17, %v10045_v53 }
0x4086   : > { %11030 = vmatprep.subr.bf16.mxu0 %v13380_v47  ;;  %11073 = vmatprep.subr.bf16.mxu1 %v13382_v46  ;;  %v13494_v47 = vcombine.high %v10038_v0, %v10046_v55  ;;  %v13491_v46 = vcombine.low %v10037_v17, %v10045_v53 }
0x4088   : > { %10977 = vmatmul.mubr.bf16.vlgmr.msra.gmra.mrb[60].mxu0 %v18478_v16  ;;  %11020 = vmatmul.mubr.bf16.vlgmr.msra.gmra.mrb[48].mxu1 %v18478_v16 }
0x4089   : > { %11031 = vmatpush1.bf16.msra.mxu0 %v13379_v41  ;;  %11074 = vmatpush1.bf16.msra.mxu1 %v13381_v49  ;;  %v15892_v41 = vld [vmem:[%s16984_s10 + $0x80] sm:$0xff]   ;;  %v15893_v49 = vld [vmem:[%s16984_s10 + $0x48] sm:$0xff]  }
0x408a   : > { %11032 = vmatprep.subr.bf16.mxu0 %v13396_v34  ;;  %11075 = vmatprep.subr.bf16.mxu1 %v13398_v43  ;;  %v15894_v34 = vld [vmem:[%s16984_s10 + $0xc8] sm:$0xff]  }
0x408b   : > { %11062 = vmatprep.mubr.bf16.mxu0 %v16517_v6  ;;  %11105 = vmatprep.mubr.bf16.mxu1 %v16517_v6  ;;  %v13429_v6 = vcombine.low %v9974_v8, %v9982_v14  ;;  %v15895_v43 = vld [vmem:[%s16984_s10 + $0x8] sm:$0xff]   ;;  %v15907_v8 = vld [vmem:[%s16984_s10 + $0x20] sm:$0xff]  }
0x408c   : > { %v15908_v14 = vld [vmem:[%s16984_s10 + $0xa0] sm:$0xff]  }
0x408d   : > { %11033 = vmatpush1.bf16.msra.mxu0 %v13395_v37  ;;  %11076 = vmatpush1.bf16.msra.mxu1 %v13397_v40  ;;  %v15900_v37 = vld [vmem:[%s16984_s10 + $0x90] sm:$0xff]   ;;  %v15902_v40 = vld [vmem:[%s16984_s10 + $0xd8] sm:$0xff]  }
0x408e   : > { %11034 = vmatprep.subr.bf16.mxu0 %v13412_v42  ;;  %11077 = vmatprep.subr.bf16.mxu1 %v13414_v35  ;;  %v15903_v42 = vld [vmem:[%s16984_s10 + $0x18] sm:$0xff]  }
0x408f   : > { %v15904_v35 = vld [vmem:[%s16984_s10 + $0x98] sm:$0xff]  }
0x4091   : > { %11035 = vmatpush1.bf16.msra.mxu0 %v13411_v27  ;;  %11078 = vmatpush1.bf16.msra.mxu1 %v13413_v61  ;;  %v15909_v27 = vld [vmem:[%s16984_s10 + $0x68] sm:$0xff]  }
0x4092   : > { %11036 = vmatprep.subr.bf16.mxu0 %v13428_v56  ;;  %11079 = vmatprep.subr.bf16.mxu1 %v13430_v11  ;;  %v15910_v61 = vld [vmem:[%s16984_s10 + $0xe8] sm:$0xff]  }
0x4093   : > { %v15911_v56 = vld [vmem:[%s16984_s10 + $0x28] sm:$0xff]  }
0x4094   : > { %v15912_v11 = vld [vmem:[%s16984_s10 + $0xa8] sm:$0xff]  }
0x4095   : > { %11037 = vmatpush1.bf16.msra.mxu0 %v13427_v12  ;;  %11080 = vmatpush1.bf16.msra.mxu1 %v13429_v6  ;;  %v15917_v12 = vld [vmem:[%s16984_s10 + $0x78] sm:$0xff]  }
0x4096   : > { %11038 = vmatprep.subr.bf16.mxu0 %v13444_v19  ;;  %11081 = vmatprep.subr.bf16.mxu1 %v13446_v39  ;;  %v15918_v6 = vld [vmem:[%s16984_s10 + $0xf8] sm:$0xff]  }
0x4097   : > { %v15919_v19 = vld [vmem:[%s16984_s10 + $0x38] sm:$0xff]  }
0x4098   : > { %v15920_v39 = vld [vmem:[%s16984_s10 + $0xb8] sm:$0xff]  }
0x4099   : > { %11039 = vmatpush1.bf16.msra.mxu0 %v13443_v50  ;;  %11082 = vmatpush1.bf16.msra.mxu1 %v13445_v23  ;;  %v10055_v50 = vrot.slane %v18617_v44, %v17727_v31  ;;  %v10063_v23 = vrot.slane %v18617_v44, %v17795_v59 }
0x409a   : > { %11040 = vmatprep.subr.bf16.mxu0 %v13460_v20  ;;  %11083 = vmatprep.subr.bf16.mxu1 %v13462_v54  ;;  %v10059_v20 = vrot.slane %v18617_v44, %v17733_v33  ;;  %v10067_v54 = vrot.slane %v18617_v44, %v10066_v21 }
0x409d   : > { %11041 = vmatpush1.bf16.msra.mxu0 %v13459_v26  ;;  %11084 = vmatpush1.bf16.msra.mxu1 %v13461_v2 }
0x409e   : > { %11042 = vmatprep.subr.bf16.mxu0 %v13476_v51  ;;  %11085 = vmatprep.subr.bf16.mxu1 %v13478_v45 }
0x40a1   : > { %11043 = vmatpush1.bf16.msra.mxu0 %v13475_v10  ;;  %11086 = vmatpush1.bf16.msra.mxu1 %v13477_v38 }
0x40a2   : > { %11044 = vmatprep.subr.bf16.mxu0 %v13492_v24  ;;  %11087 = vmatprep.subr.bf16.mxu1 %v13494_v47 }
0x40a5   : > { %11045 = vmatpush1.bf16.msra.mxu0 %v13491_v46  ;;  %11088 = vmatpush1.bf16.msra.mxu1 %v13493_v36 }
0x40a6   : > { %14071 = vmatprep.subr.bf16.mxu0 %v15889_v25  ;;  %14093 = vmatprep.subr.bf16.mxu1 %v15890_v3 }
0x40a8   : > { %11063 = vmatmul.mubr.bf16.vlgmr.msra.gmra.mrb[64].mxu0 %v18478_v16  ;;  %11106 = vmatmul.mubr.bf16.vlgmr.msra.gmra.mrb[52].mxu1 %v18478_v16  ;;  %v15901_v16 = vld [vmem:[%s16984_s10 + $0x58] sm:$0xff]  }
0x40a9   : > { %14072 = vmatpush3.bf16.msra.mxu0 %v15891_v48  ;;  %14094 = vmatpush3.bf16.msra.mxu1 %v15892_v41 }
0x40aa   : > { %14073 = vmatprep.subr.bf16.mxu0 %v15893_v49  ;;  %14095 = vmatprep.subr.bf16.mxu1 %v15894_v34 }
0x40ad   : > { %14074 = vmatpush3.bf16.msra.mxu0 %v15895_v43  ;;  %14096 = vmatpush3.bf16.msra.mxu1 %v15896_v28 }
0x40ae   : > { %14075 = vmatprep.subr.bf16.mxu0 %v15897_v29  ;;  %14097 = vmatprep.subr.bf16.mxu1 %v15898_v4 }
0x40b1   : > { %14076 = vmatpush3.bf16.msra.mxu0 %v15899_v52  ;;  %14098 = vmatpush3.bf16.msra.mxu1 %v15900_v37  ;;  %v15923_v52 = vld [vmem:[%s16984_s10 + $0x100] sm:$0xff]  }
0x40b2   : > { %14077 = vmatprep.subr.bf16.mxu0 %v15901_v16  ;;  %14099 = vmatprep.subr.bf16.mxu1 %v15902_v40  ;;  %v15924_v37 = vld [vmem:[%s16984_s10 + $0x180] sm:$0xff]   ;;  %v15925_v16 = vld [vmem:[%s16984_s10 + $0x148] sm:$0xff]  }
0x40b3   : > { %v15926_v40 = vld [vmem:[%s16984_s10 + $0x1c8] sm:$0xff]  }
0x40b5   : > { %14078 = vmatpush3.bf16.msra.mxu0 %v15903_v42  ;;  %14100 = vmatpush3.bf16.msra.mxu1 %v15904_v35  ;;  %v15927_v42 = vld [vmem:[%s16984_s10 + $0x108] sm:$0xff]  }
0x40b6   : > { %14079 = vmatprep.subr.bf16.mxu0 %v15905_v62  ;;  %14101 = vmatprep.subr.bf16.mxu1 %v15906_v9  ;;  %v15928_v35 = vld [vmem:[%s16984_s10 + $0x188] sm:$0xff]   ;;  %v15929_v62 = vld [vmem:[%s16984_s10 + $0x150] sm:$0xff]  }
0x40b7   : > { %v15930_v9 = vld [vmem:[%s16984_s10 + $0x1d0] sm:$0xff]  }
0x40b9   : > { %14080 = vmatpush3.bf16.msra.mxu0 %v15907_v8  ;;  %14102 = vmatpush3.bf16.msra.mxu1 %v15908_v14  ;;  %v15931_v8 = vld [vmem:[%s16984_s10 + $0x110] sm:$0xff]  }
0x40ba   : > { %14081 = vmatprep.subr.bf16.mxu0 %v15909_v27  ;;  %14103 = vmatprep.subr.bf16.mxu1 %v15910_v61  ;;  %v15932_v14 = vld [vmem:[%s16984_s10 + $0x190] sm:$0xff]   ;;  %v15933_v27 = vld [vmem:[%s16984_s10 + $0x158] sm:$0xff]  }
0x40bb   : > { %v15934_v61 = vld [vmem:[%s16984_s10 + $0x1d8] sm:$0xff]  }
0x40bd   : > { %14082 = vmatpush3.bf16.msra.mxu0 %v15911_v56  ;;  %14104 = vmatpush3.bf16.msra.mxu1 %v15912_v11  ;;  %v15935_v56 = vld [vmem:[%s16984_s10 + $0x118] sm:$0xff]  }
0x40be   : > { %14083 = vmatprep.subr.bf16.mxu0 %v15913_v58  ;;  %14105 = vmatprep.subr.bf16.mxu1 %v15914_v57  ;;  %v15936_v11 = vld [vmem:[%s16984_s10 + $0x198] sm:$0xff]   ;;  %v15937_v58 = vld [vmem:[%s16984_s10 + $0x160] sm:$0xff]  }
0x40bf   : > { %v15938_v57 = vld [vmem:[%s16984_s10 + $0x1e0] sm:$0xff]  }
0x40c1   : > { %14084 = vmatpush3.bf16.msra.mxu0 %v15915_v15  ;;  %14106 = vmatpush3.bf16.msra.mxu1 %v15916_v1  ;;  %v15939_v15 = vld [vmem:[%s16984_s10 + $0x120] sm:$0xff]  }
0x40c2   : > { %14085 = vmatprep.subr.bf16.mxu0 %v15917_v12  ;;  %14107 = vmatprep.subr.bf16.mxu1 %v15918_v6  ;;  %v15940_v1 = vld [vmem:[%s16984_s10 + $0x1a0] sm:$0xff]   ;;  %v15941_v12 = vld [vmem:[%s16984_s10 + $0x168] sm:$0xff]  }
0x40c3   : > { %v15942_v6 = vld [vmem:[%s16984_s10 + $0x1e8] sm:$0xff]  }
0x40c5   : > { %14086 = vmatpush3.bf16.msra.mxu0 %v15919_v19  ;;  %14108 = vmatpush3.bf16.msra.mxu1 %v15920_v39  ;;  %v10070_v19 = vsub.s32 4, %v17724_v63  ;;  %v10078_v39 = vsub.s32 6, %v17724_v63 }
0x40c6   : > { %14115 = vmatprep.subr.bf16.mxu0 %v15921_v30  ;;  %14137 = vmatprep.subr.bf16.mxu1 %v15922_v13  ;;  %v10074_v30 = vsub.s32 5, %v17724_v63  ;;  %v10082_v13 = vsub.s32 7, %v17724_v63 }
0x411b   : > { %v10806_v32 = vpop.f32.mrb[52].mxu0  ;;  %v10849_v7 = vpop.f32.mrb[40].mxu1 }
0x411c   : > { %v10807_v22 = vadd.f32 %v10806_v32, %v10055_v50  ;;  %v10850_v5 = vadd.f32 %v10849_v7, %v10063_v23  ;;  %v10808_v26 = vpop.f32.mrb[53].mxu0  ;;  %v10851_v2 = vpop.f32.mrb[41].mxu1  ;;  %v15945_v32 = vld [vmem:[%s16984_s10 + $0x170] sm:$0xff]  }
0x411d   : > { %v10809_v51 = vadd.f32 %v10808_v26, %v10059_v20  ;;  %v10852_v45 = vadd.f32 %v10851_v2, %v10067_v54  ;;  %v10810_v17 = vpop.f32.mrb[54].mxu0  ;;  %v10853_v53 = vpop.f32.mrb[42].mxu1  ;;  %v15946_v7 = vld [vmem:[%s16984_s10 + $0x1f0] sm:$0xff]  }
0x411e   : > { %v10811_v0 = vadd.f32 %v10810_v17, %v10055_v50  ;;  %v10854_v55 = vadd.f32 %v10853_v53, %v10063_v23  ;;  %v10812_v10 = vpop.f32.mrb[55].mxu0  ;;  %v10855_v38 = vpop.f32.mrb[43].mxu1  ;;  %v11116_v46 = vmax.f32 %v10807_v22, 0.0  ;;  %v11118_v36 = vmax.f32 %v10850_v5, 0.0  ;;  %v15943_v50 = vld [vmem:[%s16984_s10 + $0x128] sm:$0xff]  }
0x411f   : > { %v10813_v24 = vadd.f32 %v10812_v10, %v10059_v20  ;;  %v10856_v47 = vadd.f32 %v10855_v38, %v10067_v54  ;;  %v11117_v48 = vmax.f32 %v10809_v51, 0.0  ;;  %v11119_v41 = vmax.f32 %v10852_v45, 0.0  ;;  %v15944_v23 = vld [vmem:[%s16984_s10 + $0x1a8] sm:$0xff]   ;;  %v15947_v51 = vld [vmem:[%s16984_s10 + $0x130] sm:$0xff]   ;;  %v15949_v10 = vld [vmem:[%s16984_s10 + $0x178] sm:$0xff]  }
0x4120   : > { %v11132_v25 = vmax.f32 %v10811_v0, 0.0  ;;  %v11134_v3 = vmax.f32 %v10854_v55, 0.0  ;;  %v10071_v20 = vrot.slane %v18617_v44, %v10070_v19  ;;  %v10079_v54 = vrot.slane %v18617_v44, %v10078_v39  ;;  %v15948_v45 = vld [vmem:[%s16984_s10 + $0x1b0] sm:$0xff]   ;;  %v15950_v38 = vld [vmem:[%s16984_s10 + $0x1f8] sm:$0xff]  }
0x4121   : > { %v11133_v49 = vmax.f32 %v10813_v24, 0.0  ;;  %v11135_v34 = vmax.f32 %v10856_v47, 0.0  ;;  %v10075_v22 = vrot.slane %v18617_v44, %v10074_v30  ;;  %v10083_v5 = vrot.slane %v18617_v44, %v10082_v13 }
0x4122   : > { %v11405_v43 = vpack.c.bf16 %v11132_v25, %v11116_v46  ;;  %v11407_v28 = vpack.c.bf16 %v11134_v3, %v11118_v36 }
0x4123   : > { %v11406_v29 = vpack.c.bf16 %v11133_v49, %v11117_v48  ;;  %v11408_v4 = vpack.c.bf16 %v11135_v34, %v11119_v41  ;;  %v15951_v34 = vld [vmem:[%s16984_s10 + $0x138] sm:$0xff]  }
0x4125   : > { %12227 = vmatprep.mubr.bf16.mxu0 %v11406_v29  ;;  %12268 = vmatprep.mubr.bf16.mxu1 %v11408_v4 }
0x4126   : > { %12228 = vmatmul.mubr.bf16.vlgmr.msra.gmra.mrb[68].mxu0 %v11405_v43  ;;  %12269 = vmatmul.mubr.bf16.vlgmr.msra.gmra.mrb[56].mxu1 %v11407_v28  ;;  %v15952_v43 = vld [vmem:[%s16984_s10 + $0x1b8] sm:$0xff]  }
0x4127   : > { %14116 = vmatpush3.bf16.msra.mxu0 %v15923_v52  ;;  %14138 = vmatpush3.bf16.msra.mxu1 %v15924_v37  ;;  %v15953_v37 = vld [vmem:[%s16984_s10 + $0x240] sm:$0xff]  }
0x4128   : > { %14117 = vmatprep.subr.bf16.mxu0 %v15925_v16  ;;  %14139 = vmatprep.subr.bf16.mxu1 %v15926_v40  ;;  %v15954_v16 = vld [vmem:[%s16984_s10 + $0x2c0] sm:$0xff]  }
0x412b   : > { %14118 = vmatpush3.bf16.msra.mxu0 %v15927_v42  ;;  %14140 = vmatpush3.bf16.msra.mxu1 %v15928_v35 }
0x412c   : > { %14119 = vmatprep.subr.bf16.mxu0 %v15929_v62  ;;  %14141 = vmatprep.subr.bf16.mxu1 %v15930_v9 }
0x412f   : > { %14120 = vmatpush3.bf16.msra.mxu0 %v15931_v8  ;;  %14142 = vmatpush3.bf16.msra.mxu1 %v15932_v14 }
0x4130   : > { %14121 = vmatprep.subr.bf16.mxu0 %v15933_v27  ;;  %14143 = vmatprep.subr.bf16.mxu1 %v15934_v61  ;;  %v15955_v61 = vld [vmem:[%s16984_s10 + $0x200] sm:$0xff]  }
0x4133   : > { %14122 = vmatpush3.bf16.msra.mxu0 %v15935_v56  ;;  %14144 = vmatpush3.bf16.msra.mxu1 %v15936_v11  ;;  %v15956_v56 = vld [vmem:[%s16984_s10 + $0x280] sm:$0xff]   ;;  %v15957_v11 = vld [vmem:[%s16984_s10 + $0x248] sm:$0xff]  }
0x4134   : > { %14123 = vmatprep.subr.bf16.mxu0 %v15937_v58  ;;  %14145 = vmatprep.subr.bf16.mxu1 %v15938_v57  ;;  %v15958_v58 = vld [vmem:[%s16984_s10 + $0x2c8] sm:$0xff]  }
0x4135   : > { %v15959_v57 = vld [vmem:[%s16984_s10 + $0x208] sm:$0xff]  }
0x4137   : > { %14124 = vmatpush3.bf16.msra.mxu0 %v15939_v15  ;;  %14146 = vmatpush3.bf16.msra.mxu1 %v15940_v1  ;;  %v15960_v15 = vld [vmem:[%s16984_s10 + $0x288] sm:$0xff]   ;;  %v15961_v1 = vld [vmem:[%s16984_s10 + $0x250] sm:$0xff]  }
0x4138   : > { %14125 = vmatprep.subr.bf16.mxu0 %v15941_v12  ;;  %14147 = vmatprep.subr.bf16.mxu1 %v15942_v6  ;;  %v15962_v12 = vld [vmem:[%s16984_s10 + $0x2d0] sm:$0xff]  }
0x4139   : > { %v15963_v6 = vld [vmem:[%s16984_s10 + $0x210] sm:$0xff]  }
0x413b   : > { %v10892_v26 = vpop.f32.mrb[56].mxu0  ;;  %v10935_v2 = vpop.f32.mrb[44].mxu1  ;;  %14126 = vmatpush3.bf16.msra.mxu0 %v15943_v50  ;;  %14148 = vmatpush3.bf16.msra.mxu1 %v15944_v23  ;;  %v15964_v50 = vld [vmem:[%s16984_s10 + $0x290] sm:$0xff]   ;;  %v15965_v23 = vld [vmem:[%s16984_s10 + $0x258] sm:$0xff]  }
0x413c   : > { %v10893_v17 = vadd.f32 %v10892_v26, %v10071_v20  ;;  %v10936_v53 = vadd.f32 %v10935_v2, %v10079_v54  ;;  %v10894_v0 = vpop.f32.mrb[57].mxu0  ;;  %v10937_v55 = vpop.f32.mrb[45].mxu1  ;;  %14127 = vmatprep.subr.bf16.mxu0 %v15945_v32  ;;  %14149 = vmatprep.subr.bf16.mxu1 %v15946_v7  ;;  %v15968_v32 = vld [vmem:[%s16984_s10 + $0x298] sm:$0xff]   ;;  %v15969_v7 = vld [vmem:[%s16984_s10 + $0x260] sm:$0xff]   ;;  %v15973_v2 = vld [vmem:[%s16984_s10 + $0x268] sm:$0xff]  }
0x413d   : > { %v10895_v24 = vadd.f32 %v10894_v0, %v10075_v22  ;;  %v10938_v47 = vadd.f32 %v10937_v55, %v10083_v5  ;;  %v10896_v46 = vpop.f32.mrb[58].mxu0  ;;  %v10939_v44 = vpop.f32.mrb[46].mxu1  ;;  %v15972_v26 = vld [vmem:[%s16984_s10 + $0x2a0] sm:$0xff]  }
0x413e   : > { %v10897_v36 = vadd.f32 %v10896_v46, %v10071_v20  ;;  %v10940_v25 = vadd.f32 %v10939_v44, %v10079_v54  ;;  %v10898_v3 = vpop.f32.mrb[59].mxu0  ;;  %v10941_v48 = vpop.f32.mrb[47].mxu1  ;;  %v11120_v28 = vmax.f32 %v10893_v17, 0.0  ;;  %v11122_v29 = vmax.f32 %v10936_v53, 0.0  ;;  %v15966_v20 = vld [vmem:[%s16984_s10 + $0x2d8] sm:$0xff]   ;;  %v15975_v17 = vld [vmem:[%s16984_s10 + $0x228] sm:$0xff]  }
0x413f   : > { %v10899_v41 = vadd.f32 %v10898_v3, %v10075_v22  ;;  %v10942_v49 = vadd.f32 %v10941_v48, %v10083_v5  ;;  %14128 = vmatpush3.bf16.msra.mxu0 %v15947_v51  ;;  %14150 = vmatpush3.bf16.msra.mxu1 %v15948_v45  ;;  %v11121_v40 = vmax.f32 %v10895_v24, 0.0  ;;  %v11123_v42 = vmax.f32 %v10938_v47, 0.0  ;;  %v15967_v54 = vld [vmem:[%s16984_s10 + $0x218] sm:$0xff]   ;;  %v15970_v22 = vld [vmem:[%s16984_s10 + $0x2e0] sm:$0xff]   ;;  %v15974_v51 = vld [vmem:[%s16984_s10 + $0x2e8] sm:$0xff]  }
0x4140   : > { %v11136_v4 = vmax.f32 %v10897_v36, 0.0  ;;  %v11138_v52 = vmax.f32 %v10940_v25, 0.0  ;;  %14129 = vmatprep.subr.bf16.mxu0 %v15949_v10  ;;  %14151 = vmatprep.subr.bf16.mxu1 %v15950_v38  ;;  %v15971_v5 = vld [vmem:[%s16984_s10 + $0x220] sm:$0xff]   ;;  %v18698_v45 = vld [vmem:[%s16990_s22 + $0x10] sm:$0xff] }
0x4141   : > { %v11137_v35 = vmax.f32 %v10899_v41, 0.0  ;;  %v11139_v62 = vmax.f32 %v10942_v49, 0.0  ;;  %v15976_v53 = vld [vmem:[%s16984_s10 + $0x2a8] sm:$0xff]   ;;  %v10087_v0 = vrot.slane %v18698_v45, %v17727_v31  ;;  %v10095_v55 = vrot.slane %v18698_v45, %v17795_v59  ;;  %v15977_v10 = vld [vmem:[%s16984_s10 + $0x270] sm:$0xff]   ;;  %v15981_v41 = vld [vmem:[%s16984_s10 + $0x278] sm:$0xff]  }
0x4142   : > { %v11409_v9 = vpack.c.bf16 %v11136_v4, %v11120_v28  ;;  %v11411_v8 = vpack.c.bf16 %v11138_v52, %v11122_v29  ;;  %v15978_v38 = vld [vmem:[%s16984_s10 + $0x2f0] sm:$0xff]   ;;  %v10091_v24 = vrot.slane %v18698_v45, %v17733_v33  ;;  %v10099_v47 = vrot.slane %v18698_v45, %v10066_v21  ;;  %v15982_v33 = vld [vmem:[%s16984_s10 + $0x2f8] sm:$0xff]  }
0x4143   : > { %v11410_v14 = vpack.c.bf16 %v11137_v35, %v11121_v40  ;;  %v11412_v27 = vpack.c.bf16 %v11139_v62, %v11123_v42  ;;  %14130 = vmatpush3.bf16.msra.mxu0 %v15951_v34  ;;  %14152 = vmatpush3.bf16.msra.mxu1 %v15952_v43  ;;  %v15979_v36 = vld [vmem:[%s16984_s10 + $0x230] sm:$0xff]   ;;  %v15983_v40 = vld [vmem:[%s16984_s10 + $0x238] sm:$0xff]  }
0x4144   : > { %14159 = vmatprep.subr.bf16.mxu0 %v15953_v37  ;;  %14181 = vmatprep.subr.bf16.mxu1 %v15954_v16  ;;  %v15980_v31 = vld [vmem:[%s16984_s10 + $0x2b0] sm:$0xff]   ;;  %v15984_v42 = vld [vmem:[%s16984_s10 + $0x2b8] sm:$0xff]  }
0x4145   : > { %12309 = vmatprep.mubr.bf16.mxu0 %v11410_v14  ;;  %12350 = vmatprep.mubr.bf16.mxu1 %v11412_v27  ;;  %v15985_v14 = vld [vmem:[%s16984_s10 + $0x340] sm:$0xff]  }
0x4146   : > { %12310 = vmatmul.mubr.bf16.vlgmr.msra.gmra.mrb[72].mxu0 %v11409_v9  ;;  %12351 = vmatmul.mubr.bf16.vlgmr.msra.gmra.mrb[60].mxu1 %v11411_v8  ;;  %v15986_v27 = vld [vmem:[%s16984_s10 + $0x3c0] sm:$0xff]  }
0x4147   : > { %14160 = vmatpush3.bf16.msra.mxu0 %v15955_v61  ;;  %14182 = vmatpush3.bf16.msra.mxu1 %v15956_v56 }
0x4148   : > { %14161 = vmatprep.subr.bf16.mxu0 %v15957_v11  ;;  %14183 = vmatprep.subr.bf16.mxu1 %v15958_v58 }
0x414b   : > { %14162 = vmatpush3.bf16.msra.mxu0 %v15959_v57  ;;  %14184 = vmatpush3.bf16.msra.mxu1 %v15960_v15 }
0x414c   : > { %14163 = vmatprep.subr.bf16.mxu0 %v15961_v1  ;;  %14185 = vmatprep.subr.bf16.mxu1 %v15962_v12 }
0x414f   : > { %14164 = vmatpush3.bf16.msra.mxu0 %v15963_v6  ;;  %14186 = vmatpush3.bf16.msra.mxu1 %v15964_v50  ;;  %v15987_v6 = vld [vmem:[%s16984_s10 + $0x300] sm:$0xff]  }
0x4150   : > { %14165 = vmatprep.subr.bf16.mxu0 %v15965_v23  ;;  %14187 = vmatprep.subr.bf16.mxu1 %v15966_v20  ;;  %v15988_v50 = vld [vmem:[%s16984_s10 + $0x380] sm:$0xff]   ;;  %v15989_v23 = vld [vmem:[%s16984_s10 + $0x348] sm:$0xff]  }
0x4151   : > { %v15990_v20 = vld [vmem:[%s16984_s10 + $0x3c8] sm:$0xff]  }
0x4153   : > { %14166 = vmatpush3.bf16.msra.mxu0 %v15967_v54  ;;  %14188 = vmatpush3.bf16.msra.mxu1 %v15968_v32  ;;  %v15991_v54 = vld [vmem:[%s16984_s10 + $0x308] sm:$0xff]  }
0x4154   : > { %14167 = vmatprep.subr.bf16.mxu0 %v15969_v7  ;;  %14189 = vmatprep.subr.bf16.mxu1 %v15970_v22  ;;  %v15992_v32 = vld [vmem:[%s16984_s10 + $0x388] sm:$0xff]   ;;  %v15993_v7 = vld [vmem:[%s16984_s10 + $0x350] sm:$0xff]  }
0x4155   : > { %v15994_v22 = vld [vmem:[%s16984_s10 + $0x3d0] sm:$0xff]  }
0x4157   : > { %14168 = vmatpush3.bf16.msra.mxu0 %v15971_v5  ;;  %14190 = vmatpush3.bf16.msra.mxu1 %v15972_v26  ;;  %v15995_v5 = vld [vmem:[%s16984_s10 + $0x310] sm:$0xff]  }
0x4158   : > { %14169 = vmatprep.subr.bf16.mxu0 %v15973_v2  ;;  %14191 = vmatprep.subr.bf16.mxu1 %v15974_v51  ;;  %v15996_v26 = vld [vmem:[%s16984_s10 + $0x390] sm:$0xff]   ;;  %v15997_v2 = vld [vmem:[%s16984_s10 + $0x358] sm:$0xff]  }
0x4159   : > { %v15998_v51 = vld [vmem:[%s16984_s10 + $0x3d8] sm:$0xff]  }
0x415b   : > { %v10978_v46 = vpop.f32.mrb[60].mxu0  ;;  %v11021_v44 = vpop.f32.mrb[48].mxu1  ;;  %14170 = vmatpush3.bf16.msra.mxu0 %v15975_v17  ;;  %14192 = vmatpush3.bf16.msra.mxu1 %v15976_v53  ;;  %v15999_v17 = vld [vmem:[%s16984_s10 + $0x318] sm:$0xff]  }
0x415c   : > { %v10979_v25 = vadd.f32 %v10978_v46, %v10087_v0  ;;  %v11022_v3 = vadd.f32 %v11021_v44, %v10095_v55  ;;  %v10980_v59 = vpop.f32.mrb[61].mxu0  ;;  %v11023_v48 = vpop.f32.mrb[49].mxu1  ;;  %14171 = vmatprep.subr.bf16.mxu0 %v15977_v10  ;;  %14193 = vmatprep.subr.bf16.mxu1 %v15978_v38  ;;  %v16000_v53 = vld [vmem:[%s16984_s10 + $0x398] sm:$0xff]   ;;  %v16003_v10 = vld [vmem:[%s16984_s10 + $0x320] sm:$0xff]   ;;  %v16007_v46 = vld [vmem:[%s16984_s10 + $0x328] sm:$0xff]  }
0x415d   : > { %v10981_v49 = vadd.f32 %v10980_v59, %v10091_v24  ;;  %v11024_v34 = vadd.f32 %v11023_v48, %v10099_v47  ;;  %v10982_v43 = vpop.f32.mrb[62].mxu0  ;;  %v11025_v21 = vpop.f32.mrb[50].mxu1  ;;  %v16004_v38 = vld [vmem:[%s16984_s10 + $0x3a0] sm:$0xff]   ;;  %v16008_v44 = vld [vmem:[%s16984_s10 + $0x3a8] sm:$0xff]   ;;  %v10107_v59 = vrot.slane %v18698_v45, %v10074_v30  ;;  %v10115_v48 = vrot.slane %v18698_v45, %v10082_v13  ;;  %v16014_v30 = vld [vmem:[%s16984_s10 + $0x3f8] sm:$0xff]  }
0x415e   : > { %v10983_v28 = vadd.f32 %v10982_v43, %v10087_v0  ;;  %v11026_v29 = vadd.f32 %v11025_v21, %v10095_v55  ;;  %v10984_v4 = vpop.f32.mrb[63].mxu0  ;;  %v11027_v52 = vpop.f32.mrb[51].mxu1  ;;  %v11124_v35 = vmax.f32 %v10979_v25, 0.0  ;;  %v11126_v62 = vmax.f32 %v11022_v3, 0.0  ;;  %v16001_v0 = vld [vmem:[%s16984_s10 + $0x360] sm:$0xff]   ;;  %v16009_v25 = vld [vmem:[%s16984_s10 + $0x370] sm:$0xff]  }
0x415f   : > { %v10985_v37 = vadd.f32 %v10984_v4, %v10091_v24  ;;  %v11028_v16 = vadd.f32 %v11027_v52, %v10099_v47  ;;  %14172 = vmatpush3.bf16.msra.mxu0 %v15979_v36  ;;  %14194 = vmatpush3.bf16.msra.mxu1 %v15980_v31  ;;  %v11125_v61 = vmax.f32 %v10981_v49, 0.0  ;;  %v11127_v56 = vmax.f32 %v11024_v34, 0.0  ;;  %v16002_v55 = vld [vmem:[%s16984_s10 + $0x3e0] sm:$0xff]   ;;  %v16005_v24 = vld [vmem:[%s16984_s10 + $0x368] sm:$0xff]   ;;  %v16010_v3 = vld [vmem:[%s16984_s10 + $0x3f0] sm:$0xff]  }
0x4160   : > { %v11140_v9 = vmax.f32 %v10983_v28, 0.0  ;;  %v11142_v8 = vmax.f32 %v11026_v29, 0.0  ;;  %14173 = vmatprep.subr.bf16.mxu0 %v15981_v41  ;;  %14195 = vmatprep.subr.bf16.mxu1 %v15982_v33  ;;  %v16006_v47 = vld [vmem:[%s16984_s10 + $0x3e8] sm:$0xff]   ;;  %v10103_v36 = vrot.slane %v18698_v45, %v10070_v19  ;;  %v10111_v31 = vrot.slane %v18698_v45, %v10078_v39  ;;  %v16011_v19 = vld [vmem:[%s16984_s10 + $0x330] sm:$0xff]   ;;  %v16013_v28 = vld [vmem:[%s16984_s10 + $0x378] sm:$0xff]  }
0x4161   : > { %v11141_v11 = vmax.f32 %v10985_v37, 0.0  ;;  %v11143_v58 = vmax.f32 %v11028_v16, 0.0  ;;  %v16012_v49 = vld [vmem:[%s16984_s10 + $0x3b0] sm:$0xff]  }
0x4162   : > { %v11413_v57 = vpack.c.bf16 %v11140_v9, %v11124_v35  ;;  %v11415_v15 = vpack.c.bf16 %v11142_v8, %v11126_v62  ;;  %v16015_v35 = vld [vmem:[%s16984_s10 + $0x338] sm:$0xff]  }
0x4163   : > { %v11414_v1 = vpack.c.bf16 %v11141_v11, %v11125_v61  ;;  %v11416_v12 = vpack.c.bf16 %v11143_v58, %v11127_v56  ;;  %14174 = vmatpush3.bf16.msra.mxu0 %v15983_v40  ;;  %14196 = vmatpush3.bf16.msra.mxu1 %v15984_v42  ;;  %v16016_v62 = vld [vmem:[%s16984_s10 + $0x3b8] sm:$0xff]   ;;  %s18899_s10 = sld [smem:[#allocation37_spill]] (!%p13626_p4) }
0x4164   : > { %14203 = vmatprep.subr.bf16.mxu0 %v15985_v14  ;;  %14225 = vmatprep.subr.bf16.mxu1 %v15986_v27 }
0x4165   : > { %12391 = vmatprep.mubr.bf16.mxu0 %v11414_v1  ;;  %12432 = vmatprep.mubr.bf16.mxu1 %v11416_v12 }
0x4166   : > { %12392 = vmatmul.mubr.bf16.vlgmr.msra.gmra.mrb[76].mxu0 %v11413_v57  ;;  %12433 = vmatmul.mubr.bf16.vlgmr.msra.gmra.mrb[64].mxu1 %v11415_v15 }
0x4167   : > { %14204 = vmatpush3.bf16.msra.mxu0 %v15987_v6  ;;  %14226 = vmatpush3.bf16.msra.mxu1 %v15988_v50 }
0x4168   : > { %14205 = vmatprep.subr.bf16.mxu0 %v15989_v23  ;;  %14227 = vmatprep.subr.bf16.mxu1 %v15990_v20  ;;  %v13495_v23 = vld [vmem:[%s16990_s22 + $0x18] ss:$0 sm:$0xff] }
0x416b   : > { %14206 = vmatpush3.bf16.msra.mxu0 %v15991_v54  ;;  %14228 = vmatpush3.bf16.msra.mxu1 %v15992_v32 }
0x416c   : > { %14207 = vmatprep.subr.bf16.mxu0 %v15993_v7  ;;  %14229 = vmatprep.subr.bf16.mxu1 %v15994_v22 }
0x416f   : > { %14208 = vmatpush3.bf16.msra.mxu0 %v15995_v5  ;;  %14230 = vmatpush3.bf16.msra.mxu1 %v15996_v26 }
0x4170   : > { %14209 = vmatprep.subr.bf16.mxu0 %v15997_v2  ;;  %14231 = vmatprep.subr.bf16.mxu1 %v15998_v51 }
0x4173   : > { %14210 = vmatpush3.bf16.msra.mxu0 %v15999_v17  ;;  %14232 = vmatpush3.bf16.msra.mxu1 %v16000_v53 }
0x4174   : > { %14211 = vmatprep.subr.bf16.mxu0 %v16001_v0  ;;  %14233 = vmatprep.subr.bf16.mxu1 %v16002_v55 }
0x4177   : > { %14212 = vmatpush3.bf16.msra.mxu0 %v16003_v10  ;;  %14234 = vmatpush3.bf16.msra.mxu1 %v16004_v38 }
0x4178   : > { %14213 = vmatprep.subr.bf16.mxu0 %v16005_v24  ;;  %14235 = vmatprep.subr.bf16.mxu1 %v16006_v47 }
0x417b   : > { %v11064_v41 = vpop.f32.mrb[64].mxu0  ;;  %v11107_v33 = vpop.f32.mrb[52].mxu1  ;;  %14214 = vmatpush3.bf16.msra.mxu0 %v16007_v46  ;;  %14236 = vmatpush3.bf16.msra.mxu1 %v16008_v44 }
0x417c   : > { %v11065_v34 = vadd.f32 %v11064_v41, %v10103_v36  ;;  %v11108_v39 = vadd.f32 %v11107_v33, %v10111_v31  ;;  %v11066_v43 = vpop.f32.mrb[65].mxu0  ;;  %v11109_v21 = vpop.f32.mrb[53].mxu1  ;;  %14215 = vmatprep.subr.bf16.mxu0 %v16009_v25  ;;  %14237 = vmatprep.subr.bf16.mxu1 %v16010_v3 }
0x417d   : > { %v11067_v29 = vadd.f32 %v11066_v43, %v10107_v59  ;;  %v11110_v63 = vadd.f32 %v11109_v21, %v10115_v48  ;;  %v11068_v4 = vpop.f32.mrb[66].mxu0  ;;  %v11111_v13 = vpop.f32.mrb[54].mxu1 }
0x417e   : > { %v11069_v45 = vadd.f32 %v11068_v4, %v10103_v36  ;;  %v11112_v52 = vadd.f32 %v11111_v13, %v10111_v31  ;;  %v11070_v37 = vpop.f32.mrb[67].mxu0  ;;  %v11113_v16 = vpop.f32.mrb[55].mxu1  ;;  %v11128_v9 = vmax.f32 %v11065_v34, 0.0  ;;  %v11130_v8 = vmax.f32 %v11108_v39, 0.0 }
0x417f   : > { %v11071_v40 = vadd.f32 %v11070_v37, %v10107_v59  ;;  %v11114_v42 = vadd.f32 %v11113_v16, %v10115_v48  ;;  %14216 = vmatpush3.bf16.msra.mxu0 %v16011_v19  ;;  %14238 = vmatpush3.bf16.msra.mxu1 %v16012_v49  ;;  %v11129_v61 = vmax.f32 %v11067_v29, 0.0  ;;  %v11131_v56 = vmax.f32 %v11110_v63, 0.0 }
0x4180   : > { %v11144_v14 = vmax.f32 %v11069_v45, 0.0  ;;  %v11146_v27 = vmax.f32 %v11112_v52, 0.0  ;;  %14217 = vmatprep.subr.bf16.mxu0 %v16013_v28  ;;  %14239 = vmatprep.subr.bf16.mxu1 %v16014_v30 }
0x4181   : > { %v11145_v11 = vmax.f32 %v11071_v40, 0.0  ;;  %v11147_v58 = vmax.f32 %v11114_v42, 0.0 }
0x4182   : > { %v11417_v57 = vpack.c.bf16 %v11144_v14, %v11128_v9  ;;  %v11419_v15 = vpack.c.bf16 %v11146_v27, %v11130_v8 }
0x4183   : > { %v11418_v1 = vpack.c.bf16 %v11145_v11, %v11129_v61  ;;  %v11420_v12 = vpack.c.bf16 %v11147_v58, %v11131_v56  ;;  %14218 = vmatpush3.bf16.msra.mxu0 %v16015_v35  ;;  %14240 = vmatpush3.bf16.msra.mxu1 %v16016_v62 }
0x4185   : > { %12473 = vmatprep.mubr.bf16.mxu0 %v11418_v1  ;;  %12514 = vmatprep.mubr.bf16.mxu1 %v11420_v12 }
0x4186   : > { %12474 = vmatmul.mubr.bf16.vlgmr.msra.gmra.mrb[80].mxu0 %v11417_v57  ;;  %12515 = vmatmul.mubr.bf16.vlgmr.msra.gmra.mrb[68].mxu1 %v11419_v15 }
0x41f9   : > { %v14087_v6 = vpop.f32.mrb[68].mxu0  ;;  %v14109_v50 = vpop.f32.mrb[56].mxu1 }
0x41fa   : > { %v14088_v20 = vpop.f32.mrb[69].mxu0  ;;  %v14110_v54 = vpop.f32.mrb[57].mxu1 }
0x41fb   : > { %v14089_v32 = vadd.f32 %v14088_v20, %v14087_v6  ;;  %v14111_v7 = vadd.f32 %v14110_v54, %v14109_v50  ;;  %v14090_v22 = vpop.f32.mrb[70].mxu0  ;;  %v14112_v5 = vpop.f32.mrb[58].mxu1 }
0x41fc   : > { %v14091_v26 = vpop.f32.mrb[71].mxu0  ;;  %v14113_v2 = vpop.f32.mrb[59].mxu1 }
0x41fd   : > { %v12230_v51 = vadd.f32 %v14089_v32, %v13495_v23  ;;  %v14092_v17 = vadd.f32 %v14091_v26, %v14090_v22  ;;  %v14114_v53 = vadd.f32 %v14113_v2, %v14112_v5 }
0x41ff   : > { %v12271_v0 = vadd.f32 %v14111_v7, %v12230_v51  ;;  %v12233_v55 = vadd.f32 %v14092_v17, %v13495_v23 }
0x4201   : > { %v12274_v10 = vadd.f32 %v14114_v53, %v12233_v55 }
0x4219   : > { %v14131_v38 = vpop.f32.mrb[72].mxu0  ;;  %v14153_v24 = vpop.f32.mrb[60].mxu1 }
0x421a   : > { %v14132_v47 = vpop.f32.mrb[73].mxu0  ;;  %v14154_v46 = vpop.f32.mrb[61].mxu1 }
0x421b   : > { %v14133_v44 = vadd.f32 %v14132_v47, %v14131_v38  ;;  %v14155_v36 = vadd.f32 %v14154_v46, %v14153_v24  ;;  %v14134_v31 = vpop.f32.mrb[74].mxu0  ;;  %v14156_v25 = vpop.f32.mrb[62].mxu1  ;;  %v13624_v24 = vld [vmem:[%s16990_s22 + $0x1d] ss:$0 sm:$0xff] }
0x421c   : > { %v14135_v3 = vpop.f32.mrb[75].mxu0  ;;  %v14157_v59 = vpop.f32.mrb[63].mxu1 }
0x421d   : > { %v12312_v48 = vadd.f32 %v14133_v44, %v12271_v0  ;;  %v14136_v41 = vadd.f32 %v14135_v3, %v14134_v31  ;;  %v14158_v33 = vadd.f32 %v14157_v59, %v14156_v25  ;;  %v13625_v44 = vld [vmem:[%s16990_s22 + $0x1e] ss:$0 sm:$0xff] }
0x421f   : > { %v12353_v19 = vadd.f32 %v14155_v36, %v12312_v48  ;;  %v12315_v49 = vadd.f32 %v14136_v41, %v12274_v10 }
0x4221   : > { %v12356_v34 = vadd.f32 %v14158_v33, %v12315_v49 }
0x4239   : > { %v14175_v39 = vpop.f32.mrb[76].mxu0  ;;  %v14197_v43 = vpop.f32.mrb[64].mxu1 }
0x423a   : > { %v14176_v21 = vpop.f32.mrb[77].mxu0  ;;  %v14198_v28 = vpop.f32.mrb[65].mxu1 }
0x423b   : > { %v14177_v30 = vadd.f32 %v14176_v21, %v14175_v39  ;;  %v14199_v29 = vadd.f32 %v14198_v28, %v14197_v43  ;;  %v14178_v63 = vpop.f32.mrb[78].mxu0  ;;  %v14200_v4 = vpop.f32.mrb[66].mxu1 }
0x423c   : > { %v14179_v13 = vpop.f32.mrb[79].mxu0  ;;  %v14201_v45 = vpop.f32.mrb[67].mxu1 }
0x423d   : > { %v12394_v52 = vadd.f32 %v14177_v30, %v12353_v19  ;;  %v14180_v37 = vadd.f32 %v14179_v13, %v14178_v63  ;;  %v14202_v16 = vadd.f32 %v14201_v45, %v14200_v4  ;;  %v13627_v45 = vld [vmem:[#allocation15 + $0x2] ss:$0 sm:$0xff] (!%p13626_p4) }
0x423f   : > { %v12435_v40 = vadd.f32 %v14199_v29, %v12394_v52  ;;  %v12397_v42 = vadd.f32 %v14180_v37, %v12356_v34  ;;  %v13628_v37 = vld [vmem:[#allocation15 + $0x3] ss:$0 sm:$0xff] (!%p13626_p4) }
0x4241   : > { %v12438_v35 = vadd.f32 %v14202_v16, %v12397_v42  ;;  %v13629_v42 = vld [vmem:[#allocation15 + $0x4] ss:$0 sm:$0xff] (!%p13626_p4) }
0x4259   : > { %v14219_v62 = vpop.f32.mrb[80].mxu0  ;;  %v14241_v9 = vpop.f32.mrb[68].mxu1 }
0x425a   : > { %v14220_v8 = vpop.f32.mrb[81].mxu0  ;;  %v14242_v14 = vpop.f32.mrb[69].mxu1 }
0x425b   : > { %v14221_v27 = vadd.f32 %v14220_v8, %v14219_v62  ;;  %v14243_v61 = vadd.f32 %v14242_v14, %v14241_v9  ;;  %v14222_v56 = vpop.f32.mrb[82].mxu0  ;;  %v14244_v11 = vpop.f32.mrb[70].mxu1 }
0x425c   : > { %v14223_v58 = vpop.f32.mrb[83].mxu0  ;;  %v14245_v57 = vpop.f32.mrb[71].mxu1 }
0x425d   : > { %v12476_v15 = vadd.f32 %v14221_v27, %v12435_v40  ;;  %v14224_v1 = vadd.f32 %v14223_v58, %v14222_v56  ;;  %v14246_v12 = vadd.f32 %v14245_v57, %v14244_v11 }
0x425f   : > { %v12517_v6 = vadd.f32 %v14243_v61, %v12476_v15  ;;  %v12479_v50 = vadd.f32 %v14224_v1, %v12438_v35  ;;  %v13630_v61 = vld [vmem:[#allocation15 + $0x5] ss:$0 sm:$0xff] (!%p13626_p4) }
0x4261   : > { %v12520_v23 = vadd.f32 %v14246_v12, %v12479_v50  ;;  %v12523_v20 = vadd.f32 %v12517_v6, %v18472_v60 }
0x4263   : > { %12527 = vadd.xlane.f32.xlu0 %v12523_v20  ;;  %v12524_v54 = vadd.f32 %v12520_v23, %v18474_v18 }
0x4265   : > { %12529 = vadd.xlane.f32.xlu1 %v12524_v54 }
0x42f0   : > { %v12528_v32 = vpop.xlane.xlu0 %12527 }
0x42f1   : > { %v12531_v7 = vmul.f32 0.0078125, %v12528_v32 }
0x42f2   : > { %v12530_v22 = vpop.xlane.xlu1 %12529 }
0x42f3   : > { %v12533_v5 = vsub.f32 %v12523_v20, %v12531_v7  ;;  %v12532_v26 = vmul.f32 0.0078125, %v12530_v22 }
0x42f5   : > { %v12534_v2 = vsub.f32 %v12524_v54, %v12532_v26  ;;  %v12535_v51 = vmul.f32 %v12533_v5, %v12533_v5 }
0x42f7   : > { %12537 = vadd.xlane.f32.xlu0 %v12535_v51  ;;  %v12536_v17 = vmul.f32 %v12534_v2, %v12534_v2 }
0x42f9   : > { %12539 = vadd.xlane.f32.xlu1 %v12536_v17 }
0x4384   : > { %v12538_v53 = vpop.xlane.xlu0 %12537 }
0x4385   : > { %v12541_v0 = vmul.f32 0.0078125, %v12538_v53 }
0x4386   : > { %v12540_v55 = vpop.xlane.xlu1 %12539 }
0x4387   : > { %v12543_v60 = vadd.f32 1e-05, %v12541_v0  ;;  %v12542_v10 = vmul.f32 0.0078125, %v12540_v55 }
0x4389   : > { %16153 = vrsqrt.f32 %v12543_v60  ;;  %v12544_v18 = vadd.f32 1e-05, %v12542_v10 }
0x438b   : > { %16155 = vrsqrt.f32 %v12544_v18 }
0x4393   : > { %v16154_v38 = vpop.eup %16153 }
0x4394   : > { %v12547_v47 = vmul.f32 %v16154_v38, %v12533_v5 }
0x4395   : > { %v16156_v46 = vpop.eup %16155 }
0x4396   : > { %v12555_v36 = vmul.f32 %v13624_v24, %v12547_v47  ;;  %v12548_v31 = vmul.f32 %v16156_v46, %v12534_v2  ;;  %12570 = sbr.rel (%p13626_p4) target bundleno = 17794 (0x4582), region = 116 }
0x4398   : > { %v12563_v25 = vadd.f32 %v13625_v44, %v12555_v36  ;;  %v12556_v3 = vmul.f32 %v13624_v24, %v12548_v31 }
0x439a   : > { %12565 = vst [vmem:[#allocation2] sm:$0xff] %v12563_v25  ;;  %v12564_v59 = vadd.f32 %v13625_v44, %v12556_v3  ;;  %12573 = vadd.xlane.f32.xlu0 (!%p13626_p4), %v12563_v25 }
0x439c   : > { %12566 = vst [vmem:[#allocation2 + $0x8] sm:$0xff] %v12564_v59 }
0x439e   : > { %12575 = vadd.xlane.f32.xlu0 %v12564_v59 }
0x4427   : > { %v12574_v48 = vpop.xlane.xlu0 %12573 }
0x4428   : > { %v12577_v41 = vmul.f32 0.0078125, %v12574_v48 }
0x442a   : > { %v12579_v33 = vsub.f32 %v12563_v25, %v12577_v41 }
0x442b   : > { %v12576_v19 = vpop.xlane.xlu0 %12575 }
0x442c   : > { %v12578_v49 = vmul.f32 0.0078125, %v12576_v19  ;;  %v12581_v34 = vmul.f32 %v12579_v33, %v12579_v33 }
0x442e   : > { %v12580_v39 = vsub.f32 %v12564_v59, %v12578_v49  ;;  %12583 = vadd.xlane.f32.xlu1 %v12581_v34 }
0x4430   : > { %v12582_v43 = vmul.f32 %v12580_v39, %v12580_v39 }
0x4432   : > { %12585 = vadd.xlane.f32.xlu1 %v12582_v43 }
0x44bb   : > { %v12584_v21 = vpop.xlane.xlu1 %12583 }
0x44bc   : > { %v12587_v28 = vmul.f32 0.0078125, %v12584_v21 }
0x44be   : > { %v12589_v30 = vadd.f32 1e-05, %v12587_v28 }
0x44bf   : > { %v12586_v29 = vpop.xlane.xlu1 %12585 }
0x44c0   : > { %16159 = vrsqrt.f32 %v12589_v30  ;;  %v12588_v63 = vmul.f32 0.0078125, %v12586_v29 }
0x44c2   : > { %v12590_v4 = vadd.f32 1e-05, %v12588_v63 }
0x44c4   : > { %16161 = vrsqrt.f32 %v12590_v4 }
0x44ca   : > { %v16160_v13 = vpop.eup %16159 }
0x44cb   : > { %v12593_v52 = vmul.f32 %v16160_v13, %v12579_v33 }
0x44cd   : > { %v12601_v16 = vmul.f32 %v13627_v45, %v12593_v52 }
0x44ce   : > { %v16162_v40 = vpop.eup %16161 }
0x44cf   : > { %v12609_v35 = vadd.f32 %v13628_v37, %v12601_v16  ;;  %v12594_v62 = vmul.f32 %v16162_v40, %v12580_v39 }
0x44d1   : > { %v12618_v9 = vmul.f32 %v13629_v42, %v12609_v35  ;;  %v12602_v8 = vmul.f32 %v13627_v45, %v12594_v62 }
0x44d3   : > { %12620 = vadd.xlane.f32.xlu0 %v12618_v9  ;;  %v12610_v14 = vadd.f32 %v13628_v37, %v12602_v8 }
0x44d5   : > { %v12619_v27 = vmul.f32 %v13629_v42, %v12610_v14 }
0x44d7   : > { %12622 = vadd.xlane.f32.xlu1 %v12619_v27 }
0x4560   : > { %v12621_v56 = vpop.xlane.xlu0 %12620 }
0x4561   : > { %v12631_v11 = vadd.f32 %v13630_v61, %v12621_v56 }
0x4563   : > { %v13631_v58 = vmul.f32 -1.442695, %v12631_v11 }
0x4564   : > { %v12623_v57 = vpop.xlane.xlu1 %12622 }
0x4565   : > { %16163 = vpow2.f32 %v13631_v58  ;;  %v12632_v15 = vadd.f32 %v13630_v61, %v12623_v57 }
0x4567   : > { %v13632_v1 = vmul.f32 -1.442695, %v12632_v15 }
0x4569   : > { %16165 = vpow2.f32 %v13632_v1 }
0x456f   : > { %v16164_v12 = vpop.eup %16163 }
0x4570   : > { %v12639_v6 = vadd.f32 1.0, %v16164_v12 }
0x4572   : > { %16167 = vrcp.f32 %v12639_v6 }
0x4573   : > { %v16166_v50 = vpop.eup %16165 }
0x4574   : > { %v12640_v23 = vadd.f32 1.0, %v16166_v50 }
0x4576   : > { %16169 = vrcp.f32 %v12640_v23 }
0x457c   : > { %v16168_v20 = vpop.eup %16167 }
0x457d   : > { %12645 = vst [vmem:[%s18899_s10] sm:$0xff] %v16168_v20 }
0x4580   : > { %v16170_v54 = vpop.eup %16169 }
0x4581   : > { %12646 = vst [vmem:[%s18899_s10 + $0x8] sm:$0xff] %v16170_v54 }
0x4582 PF: > { %s18900_s19 = sld [smem:[#allocation25_spill]]  ;;  %s18901_s26 = sld [smem:[#allocation23_spill]] }
0x4583   : > { %s18902_s15 = sld [smem:[#allocation27_spill]]  ;;  %s18903_s30 = sld [smem:[#allocation24_spill]] }
0x4584   : > { %s18904_s18 = sld [smem:[#allocation26_spill]]  ;;  %s18905_s13 = smov %s16465_s14 }
0x4585   : > { %s18907_s16 = smov %s16477_s17 }
0x4588   : > { %p28_p6 = scmp.ge.s32.totalorder %s18900_s19, 12   ;;  %s18906_s14 = smov %s18901_s26 }
0x4589   : > { %s18908_s17 = smov %s18903_s30 }
0x458a   :  { %30 = sbr.rel (!%p28_p6) target bundleno = 21 (0x15), region = 188 }
0x4591   :  { %12658 = vsyncpa [#allocation5], 1 }
0x4592   :  { %12660 = vsyncpa [#allocation5 + $0x1], 1 }
0x4593   :  { %12661 = vsyncpa [#allocation7], 1 }
0x4594   :  { %12663 = vsyncpa [#allocation7 + $0x1], 1 }
0x4595   :  { %12664 = vsyncpa [#allocation10], 1 }
0x4596   :  { %12666 = vsyncpa [#allocation10 + $0x1], 1 }
0x4597   :  { %12667 = vsyncpa [#allocation13], 1 }
0x4598   :  { %12669 = vsyncpa [#allocation13 + $0x1], 1 }
0x4599   :  { %12670 = vsyncpa [#allocation16], 1 }

</bundles_post_ra>
